<compile_context>
chip_gen: v5e
topology: v5e:2x2
jax: 0.10.0
libtpu: 0.0.40
codegen_flags: <defaults>
</compile_context>

<pallas_src>
import functools
import numpy as np
import jax
import jax.numpy as jnp
from jax.experimental import pallas as pl
from jax.experimental.pallas import tpu as pltpu

_BN_EPS = 1e-5
_VMEM_LIMIT = 32 * 1024 * 1024

_M_TILES = (512, 256, 128, 64, 32, 16, 8)      # row (sublane) tiles
_LANE_TILES = (512, 384, 256, 128)             # lane tiles (K / N)


def _round_up(x, m):
    return ((x + m - 1) // m) * m


def _tile_dim(d, align, candidates):
    """Pad dim d to `dp` and pick a tile that divides dp."""
    dp = _round_up(d, align)
    if dp <= candidates[0]:
        return dp, dp
    for c in candidates:
        if dp % c == 0:
            return dp, c
    dp = _round_up(dp, candidates[0])
    return dp, candidates[0]


# ------------------------------ Pallas kernels --------------------------------

def _matmul_kernel(a_ref, b_ref, o_ref, acc_ref):
    @pl.when(pl.program_id(2) == 0)
    def _init():
        acc_ref[...] = jnp.zeros_like(acc_ref)
    acc_ref[...] += jnp.dot(a_ref[...], b_ref[...],
                            preferred_element_type=jnp.float32)

    @pl.when(pl.program_id(2) == pl.num_programs(2) - 1)
    def _done():
        o_ref[...] = acc_ref[...].astype(o_ref.dtype)


def _bn_matmul_kernel(a_ref, s_ref, t_ref, b_ref, o_ref, acc_ref):
    """relu(a * scale + shift) @ b  — BN+ReLU fused into the 1x1-conv matmul."""
    @pl.when(pl.program_id(2) == 0)
    def _init():
        acc_ref[...] = jnp.zeros_like(acc_ref)
    a = jnp.maximum(a_ref[...].astype(jnp.float32) * s_ref[...] + t_ref[...], 0.0)
    acc_ref[...] += jnp.dot(a.astype(jnp.bfloat16), b_ref[...],
                            preferred_element_type=jnp.float32)

    @pl.when(pl.program_id(2) == pl.num_programs(2) - 1)
    def _done():
        o_ref[...] = acc_ref[...].astype(o_ref.dtype)


def _bn_stats_kernel(x_ref, sum_ref, sq_ref, acc_s, acc_q):
    """Tiled single-pass per-channel sum / sum-of-squares reduction."""
    @pl.when(pl.program_id(0) == 0)
    def _init():
        acc_s[...] = jnp.zeros_like(acc_s)
        acc_q[...] = jnp.zeros_like(acc_q)
    x = x_ref[...].astype(jnp.float32)
    acc_s[...] += jnp.sum(x, axis=0, keepdims=True)
    acc_q[...] += jnp.sum(x * x, axis=0, keepdims=True)

    @pl.when(pl.program_id(0) == pl.num_programs(0) - 1)
    def _done():
        sum_ref[...] = acc_s[...]
        sq_ref[...] = acc_q[...]


def _bn_relu_kernel(x_ref, s_ref, t_ref, o_ref):
    y = jnp.maximum(x_ref[...].astype(jnp.float32) * s_ref[...] + t_ref[...], 0.0)
    o_ref[...] = y.astype(o_ref.dtype)


def _pool_max_kernel(x_ref, o_ref):
    o_ref[...] = jnp.max(x_ref[...], axis=0)


def _pool_mean_kernel(x_ref, o_ref):
    o_ref[...] = jnp.mean(x_ref[...].astype(jnp.float32), axis=0).astype(o_ref.dtype)


def _gap_kernel(x_ref, o_ref):
    o_ref[...] = jnp.mean(x_ref[...].astype(jnp.float32), axis=1)


# ------------------------------ Pallas wrappers --------------------------------

def pallas_matmul(a, b, *, out_dtype=jnp.float32):
    """Tiled, pipelined C = A @ B on the MXU (bf16 inputs, f32 accumulate)."""
    M, K = a.shape
    K2, N = b.shape
    assert K == K2
    Mp, tm = _tile_dim(M, 8, _M_TILES)
    Kp, tk = _tile_dim(K, 128, _LANE_TILES)
    Np, tn = _tile_dim(N, 128, _LANE_TILES)
    a = a.astype(jnp.bfloat16)
    b = b.astype(jnp.bfloat16)
    if (Mp - M) or (Kp - K):
        a = jnp.pad(a, ((0, Mp - M), (0, Kp - K)))
    if (Kp - K) or (Np - N):
        b = jnp.pad(b, ((0, Kp - K), (0, Np - N)))
    grid = (Mp // tm, Np // tn, Kp // tk)
    cost = pl.CostEstimate(flops=2 * Mp * Np * Kp, transcendentals=0,
                           bytes_accessed=Mp * Kp * 2 + Kp * Np * 2 + Mp * Np * 4)
    out = pl.pallas_call(
        _matmul_kernel,
        out_shape=jax.ShapeDtypeStruct((Mp, Np), out_dtype),
        grid=grid,
        in_specs=[pl.BlockSpec((tm, tk), lambda i, j, k: (i, k)),
                  pl.BlockSpec((tk, tn), lambda i, j, k: (k, j))],
        out_specs=pl.BlockSpec((tm, tn), lambda i, j, k: (i, j)),
        scratch_shapes=[pltpu.VMEM((tm, tn), jnp.float32)],
        compiler_params=pltpu.CompilerParams(
            dimension_semantics=("parallel", "parallel", "arbitrary"),
            vmem_limit_bytes=_VMEM_LIMIT),
        cost_estimate=cost,
    )(a, b)
    if (Mp, Np) != (M, N):
        out = out[:M, :N]
    return out


def pallas_bn_relu_matmul(a, scale, shift, b, *, out_dtype=jnp.float32):
    """C = relu(A * scale + shift) @ B  (BN+ReLU fused into the consumer matmul)."""
    M, K = a.shape
    K2, N = b.shape
    assert K == K2
    Mp, tm = _tile_dim(M, 8, _M_TILES)
    Kp, tk = _tile_dim(K, 128, _LANE_TILES)
    Np, tn = _tile_dim(N, 128, _LANE_TILES)
    b = b.astype(jnp.bfloat16)
    if (Mp - M) or (Kp - K):
        a = jnp.pad(a, ((0, Mp - M), (0, Kp - K)))
    if (Kp - K) or (Np - N):
        b = jnp.pad(b, ((0, Kp - K), (0, Np - N)))
    if Kp - K:
        scale = jnp.pad(scale, ((0, 0), (0, Kp - K)))
        shift = jnp.pad(shift, ((0, 0), (0, Kp - K)))
    grid = (Mp // tm, Np // tn, Kp // tk)
    cost = pl.CostEstimate(flops=2 * Mp * Np * Kp + 3 * Mp * Kp, transcendentals=0,
                           bytes_accessed=Mp * Kp * 2 + Kp * Np * 2 + Mp * Np * 4
                           + 2 * Kp * 4)
    out = pl.pallas_call(
        _bn_matmul_kernel,
        out_shape=jax.ShapeDtypeStruct((Mp, Np), out_dtype),
        grid=grid,
        in_specs=[pl.BlockSpec((tm, tk), lambda i, j, k: (i, k)),
                  pl.BlockSpec((1, tk), lambda i, j, k: (0, k)),
                  pl.BlockSpec((1, tk), lambda i, j, k: (0, k)),
                  pl.BlockSpec((tk, tn), lambda i, j, k: (k, j))],
        out_specs=pl.BlockSpec((tm, tn), lambda i, j, k: (i, j)),
        scratch_shapes=[pltpu.VMEM((tm, tn), jnp.float32)],
        compiler_params=pltpu.CompilerParams(
            dimension_semantics=("parallel", "parallel", "arbitrary"),
            vmem_limit_bytes=_VMEM_LIMIT),
        cost_estimate=cost,
    )(a, scale, shift, b)
    if (Mp, Np) != (M, N):
        out = out[:M, :N]
    return out


def pallas_bn_stats(x2d):
    """Per-channel (sum, sum_sq) over rows, tiled over row blocks."""
    M, C = x2d.shape
    Mp, rm = _tile_dim(M, 8, _M_TILES)
    xp = jnp.pad(x2d, ((0, Mp - M), (0, 0))) if Mp != M else x2d
    s, q = pl.pallas_call(
        _bn_stats_kernel,
        out_shape=(jax.ShapeDtypeStruct((1, C), jnp.float32),
                   jax.ShapeDtypeStruct((1, C), jnp.float32)),
        grid=(Mp // rm,),
        in_specs=[pl.BlockSpec((rm, C), lambda i: (i, 0))],
        out_specs=(pl.BlockSpec((1, C), lambda i: (0, 0)),
                   pl.BlockSpec((1, C), lambda i: (0, 0))),
        scratch_shapes=[pltpu.VMEM((1, C), jnp.float32),
                        pltpu.VMEM((1, C), jnp.float32)],
        compiler_params=pltpu.CompilerParams(
            dimension_semantics=("arbitrary",),
            vmem_limit_bytes=_VMEM_LIMIT),
    )(xp)
    return s, q


def bn_scale_shift(x2d, gamma_pad, beta_pad):
    """Train-mode BatchNorm batch statistics -> per-channel affine (scale, shift).

    Note: running stats are not tracked (single forward in train mode);
    normalization uses the biased batch variance, matching PyTorch.
    """
    M = x2d.shape[0]
    s, q = pallas_bn_stats(x2d)
    mean = s / M
    var = jnp.maximum(q / M - mean * mean, 0.0)
    scale = gamma_pad[None, :] * jax.lax.rsqrt(var + _BN_EPS)
    shift = beta_pad[None, :] - mean * scale
    return scale, shift


def pallas_bn_relu(x2d, scale, shift, *, out_dtype):
    """Tiled relu(x * scale + shift)."""
    M, C = x2d.shape
    Mp, rm = _tile_dim(M, 8, _M_TILES)
    xp = jnp.pad(x2d, ((0, Mp - M), (0, 0))) if Mp != M else x2d
    out = pl.pallas_call(
        _bn_relu_kernel,
        out_shape=jax.ShapeDtypeStruct((Mp, C), out_dtype),
        grid=(Mp // rm,),
        in_specs=[pl.BlockSpec((rm, C), lambda i: (i, 0)),
                  pl.BlockSpec((1, C), lambda i: (0, 0)),
                  pl.BlockSpec((1, C), lambda i: (0, 0))],
        out_specs=pl.BlockSpec((rm, C), lambda i: (i, 0)),
        compiler_params=pltpu.CompilerParams(
            dimension_semantics=("parallel",),
            vmem_limit_bytes=_VMEM_LIMIT),
    )(xp, scale, shift)
    return out[:M] if Mp != M else out


def pallas_pool(x_nhwc, k, stride, op):
    """k x k pooling; reduces the k*k taps inside the kernel, lane-dense output."""
    N, H, W, C = x_nhwc.shape
    Ho = (H - k) // stride + 1
    Wo = (W - k) // stride + 1
    taps = []
    for di in range(k):
        for dj in range(k):
            v = x_nhwc[:, di:di + stride * (Ho - 1) + 1:stride,
                       dj:dj + stride * (Wo - 1) + 1:stride, :]
            taps.append(v.reshape(N * Ho * Wo, C))
    stacked = jnp.stack(taps, axis=0)               # (k*k, M, C)
    M = N * Ho * Wo
    Mp, rm = _tile_dim(M, 8, _M_TILES)
    if Mp != M:
        stacked = jnp.pad(stacked, ((0, 0), (0, Mp - M), (0, 0)))
    T = k * k
    kern = _pool_max_kernel if op == "max" else _pool_mean_kernel
    out = pl.pallas_call(
        kern,
        out_shape=jax.ShapeDtypeStruct((Mp, C), x_nhwc.dtype),
        grid=(Mp // rm,),
        in_specs=[pl.BlockSpec((T, rm, C), lambda i: (0, i, 0))],
        out_specs=pl.BlockSpec((rm, C), lambda i: (i, 0)),
        compiler_params=pltpu.CompilerParams(
            dimension_semantics=("parallel",),
            vmem_limit_bytes=_VMEM_LIMIT),
    )(stacked)
    if Mp != M:
        out = out[:M]
    return out, (Ho, Wo)


def pallas_global_avgpool(x_nsc):
    """x: (N, H*W, C) -> (N, C) mean over spatial (adaptive_avg_pool2d((1,1)))."""
    N, HW, C = x_nsc.shape
    return pl.pallas_call(
        _gap_kernel,
        out_shape=jax.ShapeDtypeStruct((N, C), jnp.float32),
        in_specs=[pl.BlockSpec(memory_space=pltpu.MemorySpace.VMEM)],
        out_specs=pl.BlockSpec(memory_space=pltpu.MemorySpace.VMEM),
    )(x_nsc)


# ------------------------------ im2col (JAX glue) ------------------------------

def _im2col(x, kh, kw, stride):
    # TODO(synk): patches are still materialized in HBM (kh*kw duplication); a
    # fully fused taps-in-K-grid conv needs element-granular BlockSpec offsets.
    N, H, W, C = x.shape
    Ho = (H - kh) // stride + 1
    Wo = (W - kw) // stride + 1
    cols = []
    for di in range(kh):
        for dj in range(kw):
            cols.append(x[:, di:di + stride * (Ho - 1) + 1:stride,
                          dj:dj + stride * (Wo - 1) + 1:stride, :])
    patches = jnp.concatenate(cols, axis=-1)        # (N, Ho, Wo, kh*kw*C)
    return patches.reshape(N * Ho * Wo, kh * kw * C), (Ho, Wo)


# ------------------------------ Parameters -------------------------------------

def _kaiming_normal(key, shape):
    # nn.init.kaiming_normal_ default: fan_in, gain sqrt(2)
    _, cin, kh, kw = shape
    std = float(np.sqrt(2.0 / (cin * kh * kw)))
    return std * jax.random.normal(key, shape, dtype=jnp.float32)


def init_params(key, growth_rate, block_config, num_init_features, bn_size,
                num_classes):
    """Builds matrix-form, lane-padded (128) bf16 weights so the jit hot path
    contains no per-step transposes / re-padding."""
    p = {}

    def nk():
        nonlocal key
        key, sub = jax.random.split(key)
        return sub

    def pad_vec(v, cp):
        return jnp.pad(v, (0, cp - v.shape[0]))

    bott = bn_size * growth_rate
    bott_pad = _round_up(bott, 128)

    # per-block slab widths (all previous features of the block, lane-padded)
    slab_pads = []
    nf = num_init_features
    for bi, nl in enumerate(block_config):
        slab_pads.append(_round_up(nf + nl * growth_rate, 128))
        nf += nl * growth_rate
        if bi != len(block_config) - 1:
            nf //= 2

    # conv0 (3 -> num_init_features, 7x7 s2); output lands directly in block-0 slab
    w0 = _kaiming_normal(nk(), (num_init_features, 3, 7, 7))
    w0m = jnp.transpose(w0, (2, 3, 1, 0)).reshape(49 * 3, num_init_features)
    p["conv0_mat"] = jnp.pad(
        w0m, ((0, 0), (0, slab_pads[0] - num_init_features))).astype(jnp.bfloat16)
    p["norm0_g"] = pad_vec(jnp.ones((num_init_features,), jnp.float32), slab_pads[0])
    p["norm0_b"] = jnp.zeros((slab_pads[0],), jnp.float32)

    blocks, trans = [], []
    nf = num_init_features
    for bi, nl in enumerate(block_config):
        sp = slab_pads[bi]
        layers = []
        for li in range(nl):
            c_in = nf + li * growth_rate
            lp = {}
            lp["g1"] = pad_vec(jnp.ones((c_in,), jnp.float32), sp)
            lp["b1"] = jnp.zeros((sp,), jnp.float32)
            w1 = _kaiming_normal(nk(), (bott, c_in, 1, 1))[:, :, 0, 0]
            w1m = jnp.zeros((sp, bott_pad), jnp.float32)
            w1m = w1m.at[:c_in, :bott].set(w1.T)
            lp["w1"] = w1m.astype(jnp.bfloat16)
            lp["g2"] = pad_vec(jnp.ones((bott,), jnp.float32), bott_pad)
            lp["b2"] = jnp.zeros((bott_pad,), jnp.float32)
            # 3x3 conv weight as a (9*bott_pad, slab_pad) matrix whose output
            # columns are pre-positioned at this layer's slot in the slab.
            w2 = _kaiming_normal(nk(), (growth_rate, bott, 3, 3))
            w2m = jnp.zeros((9 * bott_pad, sp), jnp.float32)
            for t in range(9):
                di, dj = t // 3, t % 3
                w2m = w2m.at[t * bott_pad:t * bott_pad + bott,
                             c_in:c_in + growth_rate].set(w2[:, :, di, dj].T)
            lp["w2"] = w2m.astype(jnp.bfloat16)
            layers.append(lp)
        blocks.append({"layers": layers})
        nf += nl * growth_rate
        if bi != len(block_config) - 1:
            c_out = nf // 2
            next_sp = slab_pads[bi + 1]
            tp = {}
            tp["g"] = pad_vec(jnp.ones((nf,), jnp.float32), sp)
            tp["b"] = jnp.zeros((sp,), jnp.float32)
            wt = _kaiming_normal(nk(), (c_out, nf, 1, 1))[:, :, 0, 0]
            wtm = jnp.zeros((sp, next_sp), jnp.float32)
            wtm = wtm.at[:nf, :c_out].set(wt.T)
            tp["w"] = wtm.astype(jnp.bfloat16)
            trans.append(tp)
            nf = c_out
    p["blocks"] = blocks
    p["trans"] = trans

    sp_last = slab_pads[-1]
    p["norm5_g"] = pad_vec(jnp.ones((nf,), jnp.float32), sp_last)
    p["norm5_b"] = jnp.zeros((sp_last,), jnp.float32)

    bound = 1.0 / np.sqrt(nf)
    fc_w = jax.random.uniform(nk(), (num_classes, nf), jnp.float32, -bound, bound)
    fcm = jnp.zeros((sp_last, num_classes), jnp.float32)
    fcm = fcm.at[:nf, :].set(fc_w.T)        # pre-transposed once, outside the jit
    p["fc_mat"] = fcm.astype(jnp.bfloat16)
    p["fc_b"] = jnp.zeros((num_classes,), jnp.float32)

    meta = dict(growth_rate=growth_rate, block_config=tuple(block_config),
                num_init_features=num_init_features, bn_size=bn_size,
                num_classes=num_classes, slab_pads=tuple(slab_pads),
                bott_pad=bott_pad, final_features=nf)
    return p, meta


# ------------------------------ Forward -----------------------------------------

def densenet_forward(params, x_nchw, *, meta):
    growth = meta["growth_rate"]
    block_config = meta["block_config"]
    N = x_nchw.shape[0]

    x = jnp.transpose(x_nchw, (0, 2, 3, 1)).astype(jnp.bfloat16)   # NCHW -> NHWC
    # features[0]: pad2d_3 then conv0 7x7 s2 (no bias)
    # TODO(synk): newPad2d definition not provided in the source; assuming zero pad.
    x = jnp.pad(x, ((0, 0), (3, 3), (3, 3), (0, 0)))
    patches, (Ho, Wo) = _im2col(x, 7, 7, 2)
    y = pallas_matmul(patches, params["conv0_mat"])                # (M0, sp0) f32
    # norm0 + relu0 (train-mode batch stats)
    sc, sh = bn_scale_shift(y, params["norm0_g"], params["norm0_b"])
    y = pallas_bn_relu(y, sc, sh, out_dtype=jnp.bfloat16)
    # pool0: pad2d_1 then MaxPool 3x3 s2 (zero-pad OK: post-ReLU activations >= 0)
    y = y.reshape(N, Ho, Wo, -1)
    y = jnp.pad(y, ((0, 0), (1, 1), (1, 1), (0, 0)))
    slab, (H, W) = pallas_pool(y, 3, 2, "max")                     # (M, sp0) bf16

    nf = meta["num_init_features"]
    for bi, nl in enumerate(block_config):
        bp = params["blocks"][bi]
        for li in range(nl):
            lp = bp["layers"][li]
            # norm1 + relu1 + conv1 (1x1): BN affine fused into the matmul
            sc, sh = bn_scale_shift(slab, lp["g1"], lp["b1"])
            bott = pallas_bn_relu_matmul(slab, sc, sh, lp["w1"])   # (M, bott_pad) f32
            # norm2 + relu2
            sc2, sh2 = bn_scale_shift(bott, lp["g2"], lp["b2"])
            h = pallas_bn_relu(bott, sc2, sh2, out_dtype=jnp.bfloat16)
            # pad2d_1 + conv2 3x3 s1; weight matrix already places the growth_rate
            # output channels at this layer's column slot -> "concat" is an add.
            h = h.reshape(N, H, W, -1)
            h = jnp.pad(h, ((0, 0), (1, 1), (1, 1), (0, 0)))
            p2, _ = _im2col(h, 3, 3, 1)
            new_feat = pallas_matmul(p2, lp["w2"], out_dtype=jnp.bfloat16)
            slab = slab + new_feat          # target columns are zero -> exact concat
        nf += nl * growth
        if bi != len(block_config) - 1:
            tp = params["trans"][bi]
            # transition: norm + relu fused into 1x1 conv, then AvgPool 2x2 s2
            sc, sh = bn_scale_shift(slab, tp["g"], tp["b"])
            y = pallas_bn_relu_matmul(slab, sc, sh, tp["w"], out_dtype=jnp.bfloat16)
            y = y.reshape(N, H, W, -1)
            slab, (H, W) = pallas_pool(y, 2, 2, "mean")
            nf //= 2

    # norm5 + final F.relu
    sc, sh = bn_scale_shift(slab, params["norm5_g"], params["norm5_b"])
    fm = pallas_bn_relu(slab, sc, sh, out_dtype=jnp.float32)        # (M, Cp) f32
    Cp = fm.shape[1]
    nf_final = meta["final_features"]
    f_map = jnp.transpose(fm[:, :nf_final].reshape(N, H, W, nf_final), (0, 3, 1, 2))

    # adaptive_avg_pool2d((1,1)) + flatten + Linear
    pooled = pallas_global_avgpool(fm.reshape(N, H * W, Cp))        # (N, Cp) f32
    logits = pallas_matmul(pooled, params["fc_mat"]) + params["fc_b"][None, :]
    return logits, f_map


# ------------------------------ Main --------------------------------------------

if __name__ == "__main__":
    growth_rate = 4
    block_config = (2, 2)
    num_init_features = 8
    bn_size = 2
    num_classes = 2

    key = jax.random.PRNGKey(0)
    k_params, k_x = jax.random.split(key)
    params, meta = init_params(k_params, growth_rate, block_config,
                               num_init_features, bn_size, num_classes)

    x = jax.random.normal(k_x, (2, 3, 32, 32), dtype=jnp.float32)   # NCHW input

    fwd = jax.jit(functools.partial(densenet_forward, meta=meta))
    out, f_map = fwd(params, x)
    jax.block_until_ready((out, f_map))

    assert out.shape == (2, num_classes), out.shape
    assert f_map.shape == (2, meta["final_features"], 4, 4), f_map.shape
    assert bool(jnp.all(jnp.isfinite(out))) and bool(jnp.all(jnp.isfinite(f_map)))
    print("KERNEL_OK")
</pallas_src>

<mosaic_0001>
module attributes {stable_mosaic.version = 11 : i64} {
  func.func @_bn_stats_kernel(%arg0: i32, %arg1: memref<512x128xf32, #tpu.memory_space<vmem>>, %arg2: memref<1x128xf32, #tpu.memory_space<vmem>>, %arg3: memref<1x128xf32, #tpu.memory_space<vmem>>, %arg4: memref<1x128xf32, #tpu.memory_space<vmem>>, %arg5: memref<1x128xf32, #tpu.memory_space<vmem>>) attributes {dimension_semantics = [#tpu.dimension_semantics<arbitrary>], iteration_bounds = array<i64: 1>, scalar_prefetch = 0 : i64, scratch_operands = 2 : i64, tpu.core_type = #tpu.core_type<tc>, window_params = [{transform_indices = @transform_0, window_bounds = array<i64: 512, 128>}, {pipeline_mode = #tpu.pipeline_mode<synchronous>, transform_indices = @transform_1, window_bounds = array<i64: 1, 128>}, {pipeline_mode = #tpu.pipeline_mode<synchronous>, transform_indices = @transform_2, window_bounds = array<i64: 1, 128>}]} {
    %c0_i32 = arith.constant 0 : i32
    %0 = arith.cmpi eq, %arg0, %c0_i32 : i32
    %1 = arith.extui %0 : i1 to i32
    %c0_i32_0 = arith.constant 0 : i32
    %2 = arith.cmpi ne, %1, %c0_i32_0 : i32
    scf.if %2 {
      %cst_13 = arith.constant 0.000000e+00 : f32
      %18 = vector.broadcast %cst_13 : f32 to vector<1x128xf32>
      %c0_14 = arith.constant 0 : index
      %c0_15 = arith.constant 0 : index
      %19 = vector.load %arg4[%c0_14, %c0_15] : memref<1x128xf32, #tpu.memory_space<vmem>>, vector<1x128xf32>
      tpu.vector_store %arg4[%c0_14, %c0_15], %18 {strides = array<i32>} : memref<1x128xf32, #tpu.memory_space<vmem>>, vector<1x128xf32>,
      %cst_16 = arith.constant 0.000000e+00 : f32
      %20 = vector.broadcast %cst_16 : f32 to vector<1x128xf32>
      %c0_17 = arith.constant 0 : index
      %c0_18 = arith.constant 0 : index
      %21 = vector.load %arg5[%c0_17, %c0_18] : memref<1x128xf32, #tpu.memory_space<vmem>>, vector<1x128xf32>
      tpu.vector_store %arg5[%c0_17, %c0_18], %20 {strides = array<i32>} : memref<1x128xf32, #tpu.memory_space<vmem>>, vector<1x128xf32>,
    } else {
    }
    %c0 = arith.constant 0 : index
    %c0_1 = arith.constant 0 : index
    %3 = vector.load %arg1[%c0, %c0_1] : memref<512x128xf32, #tpu.memory_space<vmem>>, vector<512x128xf32>
    %c0_2 = arith.constant 0 : index
    %c0_3 = arith.constant 0 : index
    %4 = vector.load %arg4[%c0_2, %c0_3] : memref<1x128xf32, #tpu.memory_space<vmem>>, vector<1x128xf32>
    %cst = arith.constant dense<0.000000e+00> : vector<128xf32>
    %5 = vector.multi_reduction <add>, %3, %cst [0] : vector<512x128xf32> to vector<128xf32>
    %6 = vector.shape_cast %5 : vector<128xf32> to vector<1x128xf32>
    %7 = arith.addf %4, %6 : vector<1x128xf32>
    %c0_4 = arith.constant 0 : index
    %c0_5 = arith.constant 0 : index
    %8 = vector.load %arg4[%c0_4, %c0_5] : memref<1x128xf32, #tpu.memory_space<vmem>>, vector<1x128xf32>
    tpu.vector_store %arg4[%c0_4, %c0_5], %7 {strides = array<i32>} : memref<1x128xf32, #tpu.memory_space<vmem>>, vector<1x128xf32>,
    %c0_6 = arith.constant 0 : index
    %c0_7 = arith.constant 0 : index
    %9 = vector.load %arg5[%c0_6, %c0_7] : memref<1x128xf32, #tpu.memory_space<vmem>>, vector<1x128xf32>
    %10 = arith.mulf %3, %3 : vector<512x128xf32>
    %cst_8 = arith.constant dense<0.000000e+00> : vector<128xf32>
    %11 = vector.multi_reduction <add>, %10, %cst_8 [0] : vector<512x128xf32> to vector<128xf32>
    %12 = vector.shape_cast %11 : vector<128xf32> to vector<1x128xf32>
    %13 = arith.addf %9, %12 : vector<1x128xf32>
    %c0_9 = arith.constant 0 : index
    %c0_10 = arith.constant 0 : index
    %14 = vector.load %arg5[%c0_9, %c0_10] : memref<1x128xf32, #tpu.memory_space<vmem>>, vector<1x128xf32>
    tpu.vector_store %arg5[%c0_9, %c0_10], %13 {strides = array<i32>} : memref<1x128xf32, #tpu.memory_space<vmem>>, vector<1x128xf32>,
    %c0_i32_11 = arith.constant 0 : i32
    %15 = arith.cmpi eq, %arg0, %c0_i32_11 : i32
    %16 = arith.extui %15 : i1 to i32
    %c0_i32_12 = arith.constant 0 : i32
    %17 = arith.cmpi ne, %16, %c0_i32_12 : i32
    scf.if %17 {
      %c0_13 = arith.constant 0 : index
      %c0_14 = arith.constant 0 : index
      %18 = vector.load %arg4[%c0_13, %c0_14] : memref<1x128xf32, #tpu.memory_space<vmem>>, vector<1x128xf32>
      %c0_15 = arith.constant 0 : index
      %c0_16 = arith.constant 0 : index
      %19 = vector.load %arg2[%c0_15, %c0_16] : memref<1x128xf32, #tpu.memory_space<vmem>>, vector<1x128xf32>
      tpu.vector_store %arg2[%c0_15, %c0_16], %18 {strides = array<i32>} : memref<1x128xf32, #tpu.memory_space<vmem>>, vector<1x128xf32>,
      %c0_17 = arith.constant 0 : index
      %c0_18 = arith.constant 0 : index
      %20 = vector.load %arg5[%c0_17, %c0_18] : memref<1x128xf32, #tpu.memory_space<vmem>>, vector<1x128xf32>
      %c0_19 = arith.constant 0 : index
      %c0_20 = arith.constant 0 : index
      %21 = vector.load %arg3[%c0_19, %c0_20] : memref<1x128xf32, #tpu.memory_space<vmem>>, vector<1x128xf32>
      tpu.vector_store %arg3[%c0_19, %c0_20], %20 {strides = array<i32>} : memref<1x128xf32, #tpu.memory_space<vmem>>, vector<1x128xf32>,
    } else {
    }
    return
  }
  func.func @transform_0(%arg0: i32) -> (i32, i32) {
    %c0_i32 = arith.constant 0 : i32
    %c0_i32_0 = arith.constant 0 : i32
    return %arg0, %c0_i32 : i32, i32
  }
  func.func @transform_1(%arg0: i32) -> (i32, i32) {
    %c0_i32 = arith.constant 0 : i32
    %c0_i32_0 = arith.constant 0 : i32
    %c0_i32_1 = arith.constant 0 : i32
    return %c0_i32, %c0_i32_0 : i32, i32
  }
  func.func @transform_2(%arg0: i32) -> (i32, i32) {
    %c0_i32 = arith.constant 0 : i32
    %c0_i32_0 = arith.constant 0 : i32
    %c0_i32_1 = arith.constant 0 : i32
    return %c0_i32, %c0_i32_0 : i32, i32
  }
}

module attributes {stable_mosaic.version = 11 : i64} {
  func.func @_matmul_kernel(%arg0: i32, %arg1: i32, %arg2: i32, %arg3: memref<512x256xbf16, #tpu.memory_space<vmem>>, %arg4: memref<256x128xbf16, #tpu.memory_space<vmem>>, %arg5: memref<512x128xf32, #tpu.memory_space<vmem>>, %arg6: memref<512x128xf32, #tpu.memory_space<vmem>>) attributes {dimension_semantics = [#tpu.dimension_semantics<parallel>, #tpu.dimension_semantics<parallel>, #tpu.dimension_semantics<arbitrary>], iteration_bounds = array<i64: 1, 1, 1>, scalar_prefetch = 0 : i64, scratch_operands = 1 : i64, tpu.core_type = #tpu.core_type<tc>, window_params = [{transform_indices = @transform_0, window_bounds = array<i64: 512, 256>}, {transform_indices = @transform_1, window_bounds = array<i64: 256, 128>}, {transform_indices = @transform_2, window_bounds = array<i64: 512, 128>}]} {
    %c0_i32 = arith.constant 0 : i32
    %0 = arith.cmpi eq, %arg2, %c0_i32 : i32
    %1 = arith.extui %0 : i1 to i32
    %c0_i32_0 = arith.constant 0 : i32
    %2 = arith.cmpi ne, %1, %c0_i32_0 : i32
    scf.if %2 {
      %cst_10 = arith.constant 0.000000e+00 : f32
      %12 = vector.broadcast %cst_10 : f32 to vector<512x128xf32>
      %c0_11 = arith.constant 0 : index
      %c0_12 = arith.constant 0 : index
      %13 = vector.load %arg6[%c0_11, %c0_12] : memref<512x128xf32, #tpu.memory_space<vmem>>, vector<512x128xf32>
      tpu.vector_store %arg6[%c0_11, %c0_12], %12 {strides = array<i32>} : memref<512x128xf32, #tpu.memory_space<vmem>>, vector<512x128xf32>,
    } else {
    }
    %c0 = arith.constant 0 : index
    %c0_1 = arith.constant 0 : index
    %3 = vector.load %arg6[%c0, %c0_1] : memref<512x128xf32, #tpu.memory_space<vmem>>, vector<512x128xf32>
    %c0_2 = arith.constant 0 : index
    %c0_3 = arith.constant 0 : index
    %4 = vector.load %arg3[%c0_2, %c0_3] : memref<512x256xbf16, #tpu.memory_space<vmem>>, vector<512x256xbf16>
    %c0_4 = arith.constant 0 : index
    %c0_5 = arith.constant 0 : index
    %5 = vector.load %arg4[%c0_4, %c0_5] : memref<256x128xbf16, #tpu.memory_space<vmem>>, vector<256x128xbf16>
    %cst = arith.constant dense<0.000000e+00> : vector<512x128xf32>
    %6 = tpu.matmul %4, %5, %cst {dimension_numbers = #tpu.dot_dimension_numbers<[1], [0], [0], [1], [0, 0, 1, 1], [], []>} : vector<512x256xbf16>, vector<256x128xbf16>, vector<512x128xf32> -> vector<512x128xf32>
    %7 = arith.addf %3, %6 : vector<512x128xf32>
    %c0_6 = arith.constant 0 : index
    %c0_7 = arith.constant 0 : index
    %8 = vector.load %arg6[%c0_6, %c0_7] : memref<512x128xf32, #tpu.memory_space<vmem>>, vector<512x128xf32>
    tpu.vector_store %arg6[%c0_6, %c0_7], %7 {strides = array<i32>} : memref<512x128xf32, #tpu.memory_space<vmem>>, vector<512x128xf32>,
    %c0_i32_8 = arith.constant 0 : i32
    %9 = arith.cmpi eq, %arg2, %c0_i32_8 : i32
    %10 = arith.extui %9 : i1 to i32
    %c0_i32_9 = arith.constant 0 : i32
    %11 = arith.cmpi ne, %10, %c0_i32_9 : i32
    scf.if %11 {
      %c0_10 = arith.constant 0 : index
      %c0_11 = arith.constant 0 : index
      %12 = vector.load %arg6[%c0_10, %c0_11] : memref<512x128xf32, #tpu.memory_space<vmem>>, vector<512x128xf32>
      %c0_12 = arith.constant 0 : index
      %c0_13 = arith.constant 0 : index
      %13 = vector.load %arg5[%c0_12, %c0_13] : memref<512x128xf32, #tpu.memory_space<vmem>>, vector<512x128xf32>
      tpu.vector_store %arg5[%c0_12, %c0_13], %12 {strides = array<i32>} : memref<512x128xf32, #tpu.memory_space<vmem>>, vector<512x128xf32>,
    } else {
    }
    return
  }
  func.func @transform_0(%arg0: i32, %arg1: i32, %arg2: i32) -> (i32, i32) {
    %c0_i32 = arith.constant 0 : i32
    return %arg0, %arg2 : i32, i32
  }
  func.func @transform_1(%arg0: i32, %arg1: i32, %arg2: i32) -> (i32, i32) {
    %c0_i32 = arith.constant 0 : i32
    return %arg2, %arg1 : i32, i32
  }
  func.func @transform_2(%arg0: i32, %arg1: i32, %arg2: i32) -> (i32, i32) {
    %c0_i32 = arith.constant 0 : i32
    return %arg0, %arg1 : i32, i32
  }
}

module attributes {stable_mosaic.version = 11 : i64} {
  func.func @_bn_relu_kernel(%arg0: i32, %arg1: memref<512x128xf32, #tpu.memory_space<vmem>>, %arg2: memref<1x128xf32, #tpu.memory_space<vmem>>, %arg3: memref<1x128xf32, #tpu.memory_space<vmem>>, %arg4: memref<512x128xbf16, #tpu.memory_space<vmem>>) attributes {dimension_semantics = [#tpu.dimension_semantics<parallel>], iteration_bounds = array<i64: 1>, scalar_prefetch = 0 : i64, scratch_operands = 0 : i64, tpu.core_type = #tpu.core_type<tc>, window_params = [{transform_indices = @transform_0, window_bounds = array<i64: 512, 128>}, {pipeline_mode = #tpu.pipeline_mode<synchronous>, transform_indices = @transform_1, window_bounds = array<i64: 1, 128>}, {pipeline_mode = #tpu.pipeline_mode<synchronous>, transform_indices = @transform_2, window_bounds = array<i64: 1, 128>}, {transform_indices = @transform_3, window_bounds = array<i64: 512, 128>}]} {
    %c0 = arith.constant 0 : index
    %c0_0 = arith.constant 0 : index
    %0 = vector.load %arg1[%c0, %c0_0] : memref<512x128xf32, #tpu.memory_space<vmem>>, vector<512x128xf32>
    %c0_1 = arith.constant 0 : index
    %c0_2 = arith.constant 0 : index
    %1 = vector.load %arg2[%c0_1, %c0_2] : memref<1x128xf32, #tpu.memory_space<vmem>>, vector<1x128xf32>
    %2 = vector.broadcast %1 : vector<1x128xf32> to vector<512x128xf32>
    %3 = arith.mulf %0, %2 : vector<512x128xf32>
    %c0_3 = arith.constant 0 : index
    %c0_4 = arith.constant 0 : index
    %4 = vector.load %arg3[%c0_3, %c0_4] : memref<1x128xf32, #tpu.memory_space<vmem>>, vector<1x128xf32>
    %5 = vector.broadcast %4 : vector<1x128xf32> to vector<512x128xf32>
    %6 = arith.addf %3, %5 : vector<512x128xf32>
    %cst = arith.constant 0.000000e+00 : f32
    %7 = vector.broadcast %cst : f32 to vector<512x128xf32>
    %8 = arith.maximumf %6, %7 : vector<512x128xf32>
    %9 = arith.truncf %8 : vector<512x128xf32> to vector<512x128xbf16>
    %c0_5 = arith.constant 0 : index
    %c0_6 = arith.constant 0 : index
    %10 = vector.load %arg4[%c0_5, %c0_6] : memref<512x128xbf16, #tpu.memory_space<vmem>>, vector<512x128xbf16>
    tpu.vector_store %arg4[%c0_5, %c0_6], %9 {strides = array<i32>} : memref<512x128xbf16, #tpu.memory_space<vmem>>, vector<512x128xbf16>,
    return
  }
  func.func @transform_0(%arg0: i32) -> (i32, i32) {
    %c0_i32 = arith.constant 0 : i32
    %c0_i32_0 = arith.constant 0 : i32
    return %arg0, %c0_i32 : i32, i32
  }
  func.func @transform_1(%arg0: i32) -> (i32, i32) {
    %c0_i32 = arith.constant 0 : i32
    %c0_i32_0 = arith.constant 0 : i32
    %c0_i32_1 = arith.constant 0 : i32
    return %c0_i32, %c0_i32_0 : i32, i32
  }
  func.func @transform_2(%arg0: i32) -> (i32, i32) {
    %c0_i32 = arith.constant 0 : i32
    %c0_i32_0 = arith.constant 0 : i32
    %c0_i32_1 = arith.constant 0 : i32
    return %c0_i32, %c0_i32_0 : i32, i32
  }
  func.func @transform_3(%arg0: i32) -> (i32, i32) {
    %c0_i32 = arith.constant 0 : i32
    %c0_i32_0 = arith.constant 0 : i32
    return %arg0, %c0_i32 : i32, i32
  }
}

module attributes {stable_mosaic.version = 11 : i64} {
  func.func @_bn_stats_kernel(%arg0: i32, %arg1: memref<128x128xbf16, #tpu.memory_space<vmem>>, %arg2: memref<1x128xf32, #tpu.memory_space<vmem>>, %arg3: memref<1x128xf32, #tpu.memory_space<vmem>>, %arg4: memref<1x128xf32, #tpu.memory_space<vmem>>, %arg5: memref<1x128xf32, #tpu.memory_space<vmem>>) attributes {dimension_semantics = [#tpu.dimension_semantics<arbitrary>], iteration_bounds = array<i64: 1>, scalar_prefetch = 0 : i64, scratch_operands = 2 : i64, tpu.core_type = #tpu.core_type<tc>, window_params = [{transform_indices = @transform_0, window_bounds = array<i64: 128, 128>}, {pipeline_mode = #tpu.pipeline_mode<synchronous>, transform_indices = @transform_1, window_bounds = array<i64: 1, 128>}, {pipeline_mode = #tpu.pipeline_mode<synchronous>, transform_indices = @transform_2, window_bounds = array<i64: 1, 128>}]} {
    %c0_i32 = arith.constant 0 : i32
    %0 = arith.cmpi eq, %arg0, %c0_i32 : i32
    %1 = arith.extui %0 : i1 to i32
    %c0_i32_0 = arith.constant 0 : i32
    %2 = arith.cmpi ne, %1, %c0_i32_0 : i32
    scf.if %2 {
      %cst_13 = arith.constant 0.000000e+00 : f32
      %19 = vector.broadcast %cst_13 : f32 to vector<1x128xf32>
      %c0_14 = arith.constant 0 : index
      %c0_15 = arith.constant 0 : index
      %20 = vector.load %arg4[%c0_14, %c0_15] : memref<1x128xf32, #tpu.memory_space<vmem>>, vector<1x128xf32>
      tpu.vector_store %arg4[%c0_14, %c0_15], %19 {strides = array<i32>} : memref<1x128xf32, #tpu.memory_space<vmem>>, vector<1x128xf32>,
      %cst_16 = arith.constant 0.000000e+00 : f32
      %21 = vector.broadcast %cst_16 : f32 to vector<1x128xf32>
      %c0_17 = arith.constant 0 : index
      %c0_18 = arith.constant 0 : index
      %22 = vector.load %arg5[%c0_17, %c0_18] : memref<1x128xf32, #tpu.memory_space<vmem>>, vector<1x128xf32>
      tpu.vector_store %arg5[%c0_17, %c0_18], %21 {strides = array<i32>} : memref<1x128xf32, #tpu.memory_space<vmem>>, vector<1x128xf32>,
    } else {
    }
    %c0 = arith.constant 0 : index
    %c0_1 = arith.constant 0 : index
    %3 = vector.load %arg1[%c0, %c0_1] : memref<128x128xbf16, #tpu.memory_space<vmem>>, vector<128x128xbf16>
    %4 = arith.extf %3 : vector<128x128xbf16> to vector<128x128xf32>
    %c0_2 = arith.constant 0 : index
    %c0_3 = arith.constant 0 : index
    %5 = vector.load %arg4[%c0_2, %c0_3] : memref<1x128xf32, #tpu.memory_space<vmem>>, vector<1x128xf32>
    %cst = arith.constant dense<0.000000e+00> : vector<128xf32>
    %6 = vector.multi_reduction <add>, %4, %cst [0] : vector<128x128xf32> to vector<128xf32>
    %7 = vector.shape_cast %6 : vector<128xf32> to vector<1x128xf32>
    %8 = arith.addf %5, %7 : vector<1x128xf32>
    %c0_4 = arith.constant 0 : index
    %c0_5 = arith.constant 0 : index
    %9 = vector.load %arg4[%c0_4, %c0_5] : memref<1x128xf32, #tpu.memory_space<vmem>>, vector<1x128xf32>
    tpu.vector_store %arg4[%c0_4, %c0_5], %8 {strides = array<i32>} : memref<1x128xf32, #tpu.memory_space<vmem>>, vector<1x128xf32>,
    %c0_6 = arith.constant 0 : index
    %c0_7 = arith.constant 0 : index
    %10 = vector.load %arg5[%c0_6, %c0_7] : memref<1x128xf32, #tpu.memory_space<vmem>>, vector<1x128xf32>
    %11 = arith.mulf %4, %4 : vector<128x128xf32>
    %cst_8 = arith.constant dense<0.000000e+00> : vector<128xf32>
    %12 = vector.multi_reduction <add>, %11, %cst_8 [0] : vector<128x128xf32> to vector<128xf32>
    %13 = vector.shape_cast %12 : vector<128xf32> to vector<1x128xf32>
    %14 = arith.addf %10, %13 : vector<1x128xf32>
    %c0_9 = arith.constant 0 : index
    %c0_10 = arith.constant 0 : index
    %15 = vector.load %arg5[%c0_9, %c0_10] : memref<1x128xf32, #tpu.memory_space<vmem>>, vector<1x128xf32>
    tpu.vector_store %arg5[%c0_9, %c0_10], %14 {strides = array<i32>} : memref<1x128xf32, #tpu.memory_space<vmem>>, vector<1x128xf32>,
    %c0_i32_11 = arith.constant 0 : i32
    %16 = arith.cmpi eq, %arg0, %c0_i32_11 : i32
    %17 = arith.extui %16 : i1 to i32
    %c0_i32_12 = arith.constant 0 : i32
    %18 = arith.cmpi ne, %17, %c0_i32_12 : i32
    scf.if %18 {
      %c0_13 = arith.constant 0 : index
      %c0_14 = arith.constant 0 : index
      %19 = vector.load %arg4[%c0_13, %c0_14] : memref<1x128xf32, #tpu.memory_space<vmem>>, vector<1x128xf32>
      %c0_15 = arith.constant 0 : index
      %c0_16 = arith.constant 0 : index
      %20 = vector.load %arg2[%c0_15, %c0_16] : memref<1x128xf32, #tpu.memory_space<vmem>>, vector<1x128xf32>
      tpu.vector_store %arg2[%c0_15, %c0_16], %19 {strides = array<i32>} : memref<1x128xf32, #tpu.memory_space<vmem>>, vector<1x128xf32>,
      %c0_17 = arith.constant 0 : index
      %c0_18 = arith.constant 0 : index
      %21 = vector.load %arg5[%c0_17, %c0_18] : memref<1x128xf32, #tpu.memory_space<vmem>>, vector<1x128xf32>
      %c0_19 = arith.constant 0 : index
      %c0_20 = arith.constant 0 : index
      %22 = vector.load %arg3[%c0_19, %c0_20] : memref<1x128xf32, #tpu.memory_space<vmem>>, vector<1x128xf32>
      tpu.vector_store %arg3[%c0_19, %c0_20], %21 {strides = array<i32>} : memref<1x128xf32, #tpu.memory_space<vmem>>, vector<1x128xf32>,
    } else {
    }
    return
  }
  func.func @transform_0(%arg0: i32) -> (i32, i32) {
    %c0_i32 = arith.constant 0 : i32
    %c0_i32_0 = arith.constant 0 : i32
    return %arg0, %c0_i32 : i32, i32
  }
  func.func @transform_1(%arg0: i32) -> (i32, i32) {
    %c0_i32 = arith.constant 0 : i32
    %c0_i32_0 = arith.constant 0 : i32
    %c0_i32_1 = arith.constant 0 : i32
    return %c0_i32, %c0_i32_0 : i32, i32
  }
  func.func @transform_2(%arg0: i32) -> (i32, i32) {
    %c0_i32 = arith.constant 0 : i32
    %c0_i32_0 = arith.constant 0 : i32
    %c0_i32_1 = arith.constant 0 : i32
    return %c0_i32, %c0_i32_0 : i32, i32
  }
}

module attributes {stable_mosaic.version = 11 : i64} {
  func.func @_pool_max_kernel(%arg0: i32, %arg1: memref<9x128x128xbf16, #tpu.memory_space<vmem>>, %arg2: memref<128x128xbf16, #tpu.memory_space<vmem>>) attributes {dimension_semantics = [#tpu.dimension_semantics<parallel>], iteration_bounds = array<i64: 1>, scalar_prefetch = 0 : i64, scratch_operands = 0 : i64, tpu.core_type = #tpu.core_type<tc>, window_params = [{transform_indices = @transform_0, window_bounds = array<i64: 9, 128, 128>}, {transform_indices = @transform_1, window_bounds = array<i64: 128, 128>}]} {
    %c0 = arith.constant 0 : index
    %c0_0 = arith.constant 0 : index
    %c0_1 = arith.constant 0 : index
    %0 = vector.load %arg1[%c0, %c0_0, %c0_1] : memref<9x128x128xbf16, #tpu.memory_space<vmem>>, vector<9x128x128xbf16>
    %cst = arith.constant dense<0xFF80> : vector<128x128xbf16>
    %1 = vector.multi_reduction <maximumf>, %0, %cst [0] : vector<9x128x128xbf16> to vector<128x128xbf16>
    %c0_2 = arith.constant 0 : index
    %c0_3 = arith.constant 0 : index
    %2 = vector.load %arg2[%c0_2, %c0_3] : memref<128x128xbf16, #tpu.memory_space<vmem>>, vector<128x128xbf16>
    tpu.vector_store %arg2[%c0_2, %c0_3], %1 {strides = array<i32>} : memref<128x128xbf16, #tpu.memory_space<vmem>>, vector<128x128xbf16>,
    return
  }
  func.func @transform_0(%arg0: i32) -> (i32, i32, i32) {
    %c0_i32 = arith.constant 0 : i32
    %c0_i32_0 = arith.constant 0 : i32
    %c0_i32_1 = arith.constant 0 : i32
    return %c0_i32, %arg0, %c0_i32_0 : i32, i32, i32
  }
  func.func @transform_1(%arg0: i32) -> (i32, i32) {
    %c0_i32 = arith.constant 0 : i32
    %c0_i32_0 = arith.constant 0 : i32
    return %arg0, %c0_i32 : i32, i32
  }
}

module attributes {stable_mosaic.version = 11 : i64} {
  func.func @_bn_stats_kernel(%arg0: i32, %arg1: memref<128x128xf32, #tpu.memory_space<vmem>>, %arg2: memref<1x128xf32, #tpu.memory_space<vmem>>, %arg3: memref<1x128xf32, #tpu.memory_space<vmem>>, %arg4: memref<1x128xf32, #tpu.memory_space<vmem>>, %arg5: memref<1x128xf32, #tpu.memory_space<vmem>>) attributes {dimension_semantics = [#tpu.dimension_semantics<arbitrary>], iteration_bounds = array<i64: 1>, scalar_prefetch = 0 : i64, scratch_operands = 2 : i64, tpu.core_type = #tpu.core_type<tc>, window_params = [{transform_indices = @transform_0, window_bounds = array<i64: 128, 128>}, {pipeline_mode = #tpu.pipeline_mode<synchronous>, transform_indices = @transform_1, window_bounds = array<i64: 1, 128>}, {pipeline_mode = #tpu.pipeline_mode<synchronous>, transform_indices = @transform_2, window_bounds = array<i64: 1, 128>}]} {
    %c0_i32 = arith.constant 0 : i32
    %0 = arith.cmpi eq, %arg0, %c0_i32 : i32
    %1 = arith.extui %0 : i1 to i32
    %c0_i32_0 = arith.constant 0 : i32
    %2 = arith.cmpi ne, %1, %c0_i32_0 : i32
    scf.if %2 {
      %cst_13 = arith.constant 0.000000e+00 : f32
      %18 = vector.broadcast %cst_13 : f32 to vector<1x128xf32>
      %c0_14 = arith.constant 0 : index
      %c0_15 = arith.constant 0 : index
      %19 = vector.load %arg4[%c0_14, %c0_15] : memref<1x128xf32, #tpu.memory_space<vmem>>, vector<1x128xf32>
      tpu.vector_store %arg4[%c0_14, %c0_15], %18 {strides = array<i32>} : memref<1x128xf32, #tpu.memory_space<vmem>>, vector<1x128xf32>,
      %cst_16 = arith.constant 0.000000e+00 : f32
      %20 = vector.broadcast %cst_16 : f32 to vector<1x128xf32>
      %c0_17 = arith.constant 0 : index
      %c0_18 = arith.constant 0 : index
      %21 = vector.load %arg5[%c0_17, %c0_18] : memref<1x128xf32, #tpu.memory_space<vmem>>, vector<1x128xf32>
      tpu.vector_store %arg5[%c0_17, %c0_18], %20 {strides = array<i32>} : memref<1x128xf32, #tpu.memory_space<vmem>>, vector<1x128xf32>,
    } else {
    }
    %c0 = arith.constant 0 : index
    %c0_1 = arith.constant 0 : index
    %3 = vector.load %arg1[%c0, %c0_1] : memref<128x128xf32, #tpu.memory_space<vmem>>, vector<128x128xf32>
    %c0_2 = arith.constant 0 : index
    %c0_3 = arith.constant 0 : index
    %4 = vector.load %arg4[%c0_2, %c0_3] : memref<1x128xf32, #tpu.memory_space<vmem>>, vector<1x128xf32>
    %cst = arith.constant dense<0.000000e+00> : vector<128xf32>
    %5 = vector.multi_reduction <add>, %3, %cst [0] : vector<128x128xf32> to vector<128xf32>
    %6 = vector.shape_cast %5 : vector<128xf32> to vector<1x128xf32>
    %7 = arith.addf %4, %6 : vector<1x128xf32>
    %c0_4 = arith.constant 0 : index
    %c0_5 = arith.constant 0 : index
    %8 = vector.load %arg4[%c0_4, %c0_5] : memref<1x128xf32, #tpu.memory_space<vmem>>, vector<1x128xf32>
    tpu.vector_store %arg4[%c0_4, %c0_5], %7 {strides = array<i32>} : memref<1x128xf32, #tpu.memory_space<vmem>>, vector<1x128xf32>,
    %c0_6 = arith.constant 0 : index
    %c0_7 = arith.constant 0 : index
    %9 = vector.load %arg5[%c0_6, %c0_7] : memref<1x128xf32, #tpu.memory_space<vmem>>, vector<1x128xf32>
    %10 = arith.mulf %3, %3 : vector<128x128xf32>
    %cst_8 = arith.constant dense<0.000000e+00> : vector<128xf32>
    %11 = vector.multi_reduction <add>, %10, %cst_8 [0] : vector<128x128xf32> to vector<128xf32>
    %12 = vector.shape_cast %11 : vector<128xf32> to vector<1x128xf32>
    %13 = arith.addf %9, %12 : vector<1x128xf32>
    %c0_9 = arith.constant 0 : index
    %c0_10 = arith.constant 0 : index
    %14 = vector.load %arg5[%c0_9, %c0_10] : memref<1x128xf32, #tpu.memory_space<vmem>>, vector<1x128xf32>
    tpu.vector_store %arg5[%c0_9, %c0_10], %13 {strides = array<i32>} : memref<1x128xf32, #tpu.memory_space<vmem>>, vector<1x128xf32>,
    %c0_i32_11 = arith.constant 0 : i32
    %15 = arith.cmpi eq, %arg0, %c0_i32_11 : i32
    %16 = arith.extui %15 : i1 to i32
    %c0_i32_12 = arith.constant 0 : i32
    %17 = arith.cmpi ne, %16, %c0_i32_12 : i32
    scf.if %17 {
      %c0_13 = arith.constant 0 : index
      %c0_14 = arith.constant 0 : index
      %18 = vector.load %arg4[%c0_13, %c0_14] : memref<1x128xf32, #tpu.memory_space<vmem>>, vector<1x128xf32>
      %c0_15 = arith.constant 0 : index
      %c0_16 = arith.constant 0 : index
      %19 = vector.load %arg2[%c0_15, %c0_16] : memref<1x128xf32, #tpu.memory_space<vmem>>, vector<1x128xf32>
      tpu.vector_store %arg2[%c0_15, %c0_16], %18 {strides = array<i32>} : memref<1x128xf32, #tpu.memory_space<vmem>>, vector<1x128xf32>,
      %c0_17 = arith.constant 0 : index
      %c0_18 = arith.constant 0 : index
      %20 = vector.load %arg5[%c0_17, %c0_18] : memref<1x128xf32, #tpu.memory_space<vmem>>, vector<1x128xf32>
      %c0_19 = arith.constant 0 : index
      %c0_20 = arith.constant 0 : index
      %21 = vector.load %arg3[%c0_19, %c0_20] : memref<1x128xf32, #tpu.memory_space<vmem>>, vector<1x128xf32>
      tpu.vector_store %arg3[%c0_19, %c0_20], %20 {strides = array<i32>} : memref<1x128xf32, #tpu.memory_space<vmem>>, vector<1x128xf32>,
    } else {
    }
    return
  }
  func.func @transform_0(%arg0: i32) -> (i32, i32) {
    %c0_i32 = arith.constant 0 : i32
    %c0_i32_0 = arith.constant 0 : i32
    return %arg0, %c0_i32 : i32, i32
  }
  func.func @transform_1(%arg0: i32) -> (i32, i32) {
    %c0_i32 = arith.constant 0 : i32
    %c0_i32_0 = arith.constant 0 : i32
    %c0_i32_1 = arith.constant 0 : i32
    return %c0_i32, %c0_i32_0 : i32, i32
  }
  func.func @transform_2(%arg0: i32) -> (i32, i32) {
    %c0_i32 = arith.constant 0 : i32
    %c0_i32_0 = arith.constant 0 : i32
    %c0_i32_1 = arith.constant 0 : i32
    return %c0_i32, %c0_i32_0 : i32, i32
  }
}

module attributes {stable_mosaic.version = 11 : i64} {
  func.func @_bn_matmul_kernel(%arg0: i32, %arg1: i32, %arg2: i32, %arg3: memref<128x128xbf16, #tpu.memory_space<vmem>>, %arg4: memref<1x128xf32, #tpu.memory_space<vmem>>, %arg5: memref<1x128xf32, #tpu.memory_space<vmem>>, %arg6: memref<128x128xbf16, #tpu.memory_space<vmem>>, %arg7: memref<128x128xf32, #tpu.memory_space<vmem>>, %arg8: memref<128x128xf32, #tpu.memory_space<vmem>>) attributes {dimension_semantics = [#tpu.dimension_semantics<parallel>, #tpu.dimension_semantics<parallel>, #tpu.dimension_semantics<arbitrary>], iteration_bounds = array<i64: 1, 1, 1>, scalar_prefetch = 0 : i64, scratch_operands = 1 : i64, tpu.core_type = #tpu.core_type<tc>, window_params = [{transform_indices = @transform_0, window_bounds = array<i64: 128, 128>}, {transform_indices = @transform_1, window_bounds = array<i64: 1, 128>}, {transform_indices = @transform_2, window_bounds = array<i64: 1, 128>}, {transform_indices = @transform_3, window_bounds = array<i64: 128, 128>}, {transform_indices = @transform_4, window_bounds = array<i64: 128, 128>}]} {
    %c0_i32 = arith.constant 0 : i32
    %0 = arith.cmpi eq, %arg2, %c0_i32 : i32
    %1 = arith.extui %0 : i1 to i32
    %c0_i32_0 = arith.constant 0 : i32
    %2 = arith.cmpi ne, %1, %c0_i32_0 : i32
    scf.if %2 {
      %cst_15 = arith.constant 0.000000e+00 : f32
      %22 = vector.broadcast %cst_15 : f32 to vector<128x128xf32>
      %c0_16 = arith.constant 0 : index
      %c0_17 = arith.constant 0 : index
      %23 = vector.load %arg8[%c0_16, %c0_17] : memref<128x128xf32, #tpu.memory_space<vmem>>, vector<128x128xf32>
      tpu.vector_store %arg8[%c0_16, %c0_17], %22 {strides = array<i32>} : memref<128x128xf32, #tpu.memory_space<vmem>>, vector<128x128xf32>,
    } else {
    }
    %c0 = arith.constant 0 : index
    %c0_1 = arith.constant 0 : index
    %3 = vector.load %arg3[%c0, %c0_1] : memref<128x128xbf16, #tpu.memory_space<vmem>>, vector<128x128xbf16>
    %4 = arith.extf %3 : vector<128x128xbf16> to vector<128x128xf32>
    %c0_2 = arith.constant 0 : index
    %c0_3 = arith.constant 0 : index
    %5 = vector.load %arg4[%c0_2, %c0_3] : memref<1x128xf32, #tpu.memory_space<vmem>>, vector<1x128xf32>
    %6 = vector.broadcast %5 : vector<1x128xf32> to vector<128x128xf32>
    %7 = arith.mulf %4, %6 : vector<128x128xf32>
    %c0_4 = arith.constant 0 : index
    %c0_5 = arith.constant 0 : index
    %8 = vector.load %arg5[%c0_4, %c0_5] : memref<1x128xf32, #tpu.memory_space<vmem>>, vector<1x128xf32>
    %9 = vector.broadcast %8 : vector<1x128xf32> to vector<128x128xf32>
    %10 = arith.addf %7, %9 : vector<128x128xf32>
    %cst = arith.constant 0.000000e+00 : f32
    %11 = vector.broadcast %cst : f32 to vector<128x128xf32>
    %12 = arith.maximumf %10, %11 : vector<128x128xf32>
    %c0_6 = arith.constant 0 : index
    %c0_7 = arith.constant 0 : index
    %13 = vector.load %arg8[%c0_6, %c0_7] : memref<128x128xf32, #tpu.memory_space<vmem>>, vector<128x128xf32>
    %14 = arith.truncf %12 : vector<128x128xf32> to vector<128x128xbf16>
    %c0_8 = arith.constant 0 : index
    %c0_9 = arith.constant 0 : index
    %15 = vector.load %arg6[%c0_8, %c0_9] : memref<128x128xbf16, #tpu.memory_space<vmem>>, vector<128x128xbf16>
    %cst_10 = arith.constant dense<0.000000e+00> : vector<128x128xf32>
    %16 = tpu.matmul %14, %15, %cst_10 {dimension_numbers = #tpu.dot_dimension_numbers<[1], [0], [0], [1], [0, 0, 1, 1], [], []>} : vector<128x128xbf16>, vector<128x128xbf16>, vector<128x128xf32> -> vector<128x128xf32>
    %17 = arith.addf %13, %16 : vector<128x128xf32>
    %c0_11 = arith.constant 0 : index
    %c0_12 = arith.constant 0 : index
    %18 = vector.load %arg8[%c0_11, %c0_12] : memref<128x128xf32, #tpu.memory_space<vmem>>, vector<128x128xf32>
    tpu.vector_store %arg8[%c0_11, %c0_12], %17 {strides = array<i32>} : memref<128x128xf32, #tpu.memory_space<vmem>>, vector<128x128xf32>,
    %c0_i32_13 = arith.constant 0 : i32
    %19 = arith.cmpi eq, %arg2, %c0_i32_13 : i32
    %20 = arith.extui %19 : i1 to i32
    %c0_i32_14 = arith.constant 0 : i32
    %21 = arith.cmpi ne, %20, %c0_i32_14 : i32
    scf.if %21 {
      %c0_15 = arith.constant 0 : index
      %c0_16 = arith.constant 0 : index
      %22 = vector.load %arg8[%c0_15, %c0_16] : memref<128x128xf32, #tpu.memory_space<vmem>>, vector<128x128xf32>
      %c0_17 = arith.constant 0 : index
      %c0_18 = arith.constant 0 : index
      %23 = vector.load %arg7[%c0_17, %c0_18] : memref<128x128xf32, #tpu.memory_space<vmem>>, vector<128x128xf32>
      tpu.vector_store %arg7[%c0_17, %c0_18], %22 {strides = array<i32>} : memref<128x128xf32, #tpu.memory_space<vmem>>, vector<128x128xf32>,
    } else {
    }
    return
  }
  func.func @transform_0(%arg0: i32, %arg1: i32, %arg2: i32) -> (i32, i32) {
    %c0_i32 = arith.constant 0 : i32
    return %arg0, %arg2 : i32, i32
  }
  func.func @transform_1(%arg0: i32, %arg1: i32, %arg2: i32) -> (i32, i32) {
    %c0_i32 = arith.constant 0 : i32
    %c0_i32_0 = arith.constant 0 : i32
    return %c0_i32, %arg2 : i32, i32
  }
  func.func @transform_2(%arg0: i32, %arg1: i32, %arg2: i32) -> (i32, i32) {
    %c0_i32 = arith.constant 0 : i32
    %c0_i32_0 = arith.constant 0 : i32
    return %c0_i32, %arg2 : i32, i32
  }
  func.func @transform_3(%arg0: i32, %arg1: i32, %arg2: i32) -> (i32, i32) {
    %c0_i32 = arith.constant 0 : i32
    return %arg2, %arg1 : i32, i32
  }
  func.func @transform_4(%arg0: i32, %arg1: i32, %arg2: i32) -> (i32, i32) {
    %c0_i32 = arith.constant 0 : i32
    return %arg0, %arg1 : i32, i32
  }
}

module attributes {stable_mosaic.version = 11 : i64} {
  func.func @_bn_relu_kernel(%arg0: i32, %arg1: memref<128x128xf32, #tpu.memory_space<vmem>>, %arg2: memref<1x128xf32, #tpu.memory_space<vmem>>, %arg3: memref<1x128xf32, #tpu.memory_space<vmem>>, %arg4: memref<128x128xbf16, #tpu.memory_space<vmem>>) attributes {dimension_semantics = [#tpu.dimension_semantics<parallel>], iteration_bounds = array<i64: 1>, scalar_prefetch = 0 : i64, scratch_operands = 0 : i64, tpu.core_type = #tpu.core_type<tc>, window_params = [{transform_indices = @transform_0, window_bounds = array<i64: 128, 128>}, {pipeline_mode = #tpu.pipeline_mode<synchronous>, transform_indices = @transform_1, window_bounds = array<i64: 1, 128>}, {pipeline_mode = #tpu.pipeline_mode<synchronous>, transform_indices = @transform_2, window_bounds = array<i64: 1, 128>}, {transform_indices = @transform_3, window_bounds = array<i64: 128, 128>}]} {
    %c0 = arith.constant 0 : index
    %c0_0 = arith.constant 0 : index
    %0 = vector.load %arg1[%c0, %c0_0] : memref<128x128xf32, #tpu.memory_space<vmem>>, vector<128x128xf32>
    %c0_1 = arith.constant 0 : index
    %c0_2 = arith.constant 0 : index
    %1 = vector.load %arg2[%c0_1, %c0_2] : memref<1x128xf32, #tpu.memory_space<vmem>>, vector<1x128xf32>
    %2 = vector.broadcast %1 : vector<1x128xf32> to vector<128x128xf32>
    %3 = arith.mulf %0, %2 : vector<128x128xf32>
    %c0_3 = arith.constant 0 : index
    %c0_4 = arith.constant 0 : index
    %4 = vector.load %arg3[%c0_3, %c0_4] : memref<1x128xf32, #tpu.memory_space<vmem>>, vector<1x128xf32>
    %5 = vector.broadcast %4 : vector<1x128xf32> to vector<128x128xf32>
    %6 = arith.addf %3, %5 : vector<128x128xf32>
    %cst = arith.constant 0.000000e+00 : f32
    %7 = vector.broadcast %cst : f32 to vector<128x128xf32>
    %8 = arith.maximumf %6, %7 : vector<128x128xf32>
    %9 = arith.truncf %8 : vector<128x128xf32> to vector<128x128xbf16>
    %c0_5 = arith.constant 0 : index
    %c0_6 = arith.constant 0 : index
    %10 = vector.load %arg4[%c0_5, %c0_6] : memref<128x128xbf16, #tpu.memory_space<vmem>>, vector<128x128xbf16>
    tpu.vector_store %arg4[%c0_5, %c0_6], %9 {strides = array<i32>} : memref<128x128xbf16, #tpu.memory_space<vmem>>, vector<128x128xbf16>,
    return
  }
  func.func @transform_0(%arg0: i32) -> (i32, i32) {
    %c0_i32 = arith.constant 0 : i32
    %c0_i32_0 = arith.constant 0 : i32
    return %arg0, %c0_i32 : i32, i32
  }
  func.func @transform_1(%arg0: i32) -> (i32, i32) {
    %c0_i32 = arith.constant 0 : i32
    %c0_i32_0 = arith.constant 0 : i32
    %c0_i32_1 = arith.constant 0 : i32
    return %c0_i32, %c0_i32_0 : i32, i32
  }
  func.func @transform_2(%arg0: i32) -> (i32, i32) {
    %c0_i32 = arith.constant 0 : i32
    %c0_i32_0 = arith.constant 0 : i32
    %c0_i32_1 = arith.constant 0 : i32
    return %c0_i32, %c0_i32_0 : i32, i32
  }
  func.func @transform_3(%arg0: i32) -> (i32, i32) {
    %c0_i32 = arith.constant 0 : i32
    %c0_i32_0 = arith.constant 0 : i32
    return %arg0, %c0_i32 : i32, i32
  }
}

module attributes {stable_mosaic.version = 11 : i64} {
  func.func @_matmul_kernel(%arg0: i32, %arg1: i32, %arg2: i32, %arg3: memref<128x384xbf16, #tpu.memory_space<vmem>>, %arg4: memref<384x128xbf16, #tpu.memory_space<vmem>>, %arg5: memref<128x128xbf16, #tpu.memory_space<vmem>>, %arg6: memref<128x128xf32, #tpu.memory_space<vmem>>) attributes {dimension_semantics = [#tpu.dimension_semantics<parallel>, #tpu.dimension_semantics<parallel>, #tpu.dimension_semantics<arbitrary>], iteration_bounds = array<i64: 1, 1, 3>, scalar_prefetch = 0 : i64, scratch_operands = 1 : i64, tpu.core_type = #tpu.core_type<tc>, window_params = [{transform_indices = @transform_0, window_bounds = array<i64: 128, 384>}, {transform_indices = @transform_1, window_bounds = array<i64: 384, 128>}, {transform_indices = @transform_2, window_bounds = array<i64: 128, 128>}]} {
    %c0_i32 = arith.constant 0 : i32
    %0 = arith.cmpi eq, %arg2, %c0_i32 : i32
    %1 = arith.extui %0 : i1 to i32
    %c0_i32_0 = arith.constant 0 : i32
    %2 = arith.cmpi ne, %1, %c0_i32_0 : i32
    scf.if %2 {
      %cst_9 = arith.constant 0.000000e+00 : f32
      %12 = vector.broadcast %cst_9 : f32 to vector<128x128xf32>
      %c0_10 = arith.constant 0 : index
      %c0_11 = arith.constant 0 : index
      %13 = vector.load %arg6[%c0_10, %c0_11] : memref<128x128xf32, #tpu.memory_space<vmem>>, vector<128x128xf32>
      tpu.vector_store %arg6[%c0_10, %c0_11], %12 {strides = array<i32>} : memref<128x128xf32, #tpu.memory_space<vmem>>, vector<128x128xf32>,
    } else {
    }
    %c0 = arith.constant 0 : index
    %c0_1 = arith.constant 0 : index
    %3 = vector.load %arg6[%c0, %c0_1] : memref<128x128xf32, #tpu.memory_space<vmem>>, vector<128x128xf32>
    %c0_2 = arith.constant 0 : index
    %c0_3 = arith.constant 0 : index
    %4 = vector.load %arg3[%c0_2, %c0_3] : memref<128x384xbf16, #tpu.memory_space<vmem>>, vector<128x384xbf16>
    %c0_4 = arith.constant 0 : index
    %c0_5 = arith.constant 0 : index
    %5 = vector.load %arg4[%c0_4, %c0_5] : memref<384x128xbf16, #tpu.memory_space<vmem>>, vector<384x128xbf16>
    %cst = arith.constant dense<0.000000e+00> : vector<128x128xf32>
    %6 = tpu.matmul %4, %5, %cst {dimension_numbers = #tpu.dot_dimension_numbers<[1], [0], [0], [1], [0, 0, 1, 1], [], []>} : vector<128x384xbf16>, vector<384x128xbf16>, vector<128x128xf32> -> vector<128x128xf32>
    %7 = arith.addf %3, %6 : vector<128x128xf32>
    %c0_6 = arith.constant 0 : index
    %c0_7 = arith.constant 0 : index
    %8 = vector.load %arg6[%c0_6, %c0_7] : memref<128x128xf32, #tpu.memory_space<vmem>>, vector<128x128xf32>
    tpu.vector_store %arg6[%c0_6, %c0_7], %7 {strides = array<i32>} : memref<128x128xf32, #tpu.memory_space<vmem>>, vector<128x128xf32>,
    %c2_i32 = arith.constant 2 : i32
    %9 = arith.cmpi eq, %arg2, %c2_i32 : i32
    %10 = arith.extui %9 : i1 to i32
    %c0_i32_8 = arith.constant 0 : i32
    %11 = arith.cmpi ne, %10, %c0_i32_8 : i32
    scf.if %11 {
      %c0_9 = arith.constant 0 : index
      %c0_10 = arith.constant 0 : index
      %12 = vector.load %arg6[%c0_9, %c0_10] : memref<128x128xf32, #tpu.memory_space<vmem>>, vector<128x128xf32>
      %13 = arith.truncf %12 : vector<128x128xf32> to vector<128x128xbf16>
      %c0_11 = arith.constant 0 : index
      %c0_12 = arith.constant 0 : index
      %14 = vector.load %arg5[%c0_11, %c0_12] : memref<128x128xbf16, #tpu.memory_space<vmem>>, vector<128x128xbf16>
      tpu.vector_store %arg5[%c0_11, %c0_12], %13 {strides = array<i32>} : memref<128x128xbf16, #tpu.memory_space<vmem>>, vector<128x128xbf16>,
    } else {
    }
    return
  }
  func.func @transform_0(%arg0: i32, %arg1: i32, %arg2: i32) -> (i32, i32) {
    %c0_i32 = arith.constant 0 : i32
    return %arg0, %arg2 : i32, i32
  }
  func.func @transform_1(%arg0: i32, %arg1: i32, %arg2: i32) -> (i32, i32) {
    %c0_i32 = arith.constant 0 : i32
    return %arg2, %arg1 : i32, i32
  }
  func.func @transform_2(%arg0: i32, %arg1: i32, %arg2: i32) -> (i32, i32) {
    %c0_i32 = arith.constant 0 : i32
    return %arg0, %arg1 : i32, i32
  }
}

module attributes {stable_mosaic.version = 11 : i64} {
  func.func @_pool_mean_kernel(%arg0: i32, %arg1: memref<4x32x128xbf16, #tpu.memory_space<vmem>>, %arg2: memref<32x128xbf16, #tpu.memory_space<vmem>>) attributes {dimension_semantics = [#tpu.dimension_semantics<parallel>], iteration_bounds = array<i64: 1>, scalar_prefetch = 0 : i64, scratch_operands = 0 : i64, tpu.core_type = #tpu.core_type<tc>, window_params = [{transform_indices = @transform_0, window_bounds = array<i64: 4, 32, 128>}, {transform_indices = @transform_1, window_bounds = array<i64: 32, 128>}]} {
    %c0 = arith.constant 0 : index
    %c0_0 = arith.constant 0 : index
    %c0_1 = arith.constant 0 : index
    %0 = vector.load %arg1[%c0, %c0_0, %c0_1] : memref<4x32x128xbf16, #tpu.memory_space<vmem>>, vector<4x32x128xbf16>
    %1 = arith.extf %0 : vector<4x32x128xbf16> to vector<4x32x128xf32>
    %cst = arith.constant dense<0.000000e+00> : vector<32x128xf32>
    %2 = vector.multi_reduction <add>, %1, %cst [0] : vector<4x32x128xf32> to vector<32x128xf32>
    %cst_2 = arith.constant 4.000000e+00 : f32
    %3 = vector.broadcast %cst_2 : f32 to vector<32x128xf32>
    %4 = arith.divf %2, %3 : vector<32x128xf32>
    %5 = arith.truncf %4 : vector<32x128xf32> to vector<32x128xbf16>
    %c0_3 = arith.constant 0 : index
    %c0_4 = arith.constant 0 : index
    %6 = vector.load %arg2[%c0_3, %c0_4] : memref<32x128xbf16, #tpu.memory_space<vmem>>, vector<32x128xbf16>
    tpu.vector_store %arg2[%c0_3, %c0_4], %5 {strides = array<i32>} : memref<32x128xbf16, #tpu.memory_space<vmem>>, vector<32x128xbf16>,
    return
  }
  func.func @transform_0(%arg0: i32) -> (i32, i32, i32) {
    %c0_i32 = arith.constant 0 : i32
    %c0_i32_0 = arith.constant 0 : i32
    %c0_i32_1 = arith.constant 0 : i32
    return %c0_i32, %arg0, %c0_i32_0 : i32, i32, i32
  }
  func.func @transform_1(%arg0: i32) -> (i32, i32) {
    %c0_i32 = arith.constant 0 : i32
    %c0_i32_0 = arith.constant 0 : i32
    return %arg0, %c0_i32 : i32, i32
  }
}

module attributes {stable_mosaic.version = 11 : i64} {
  func.func @_bn_stats_kernel(%arg0: i32, %arg1: memref<32x128xbf16, #tpu.memory_space<vmem>>, %arg2: memref<1x128xf32, #tpu.memory_space<vmem>>, %arg3: memref<1x128xf32, #tpu.memory_space<vmem>>, %arg4: memref<1x128xf32, #tpu.memory_space<vmem>>, %arg5: memref<1x128xf32, #tpu.memory_space<vmem>>) attributes {dimension_semantics = [#tpu.dimension_semantics<arbitrary>], iteration_bounds = array<i64: 1>, scalar_prefetch = 0 : i64, scratch_operands = 2 : i64, tpu.core_type = #tpu.core_type<tc>, window_params = [{transform_indices = @transform_0, window_bounds = array<i64: 32, 128>}, {pipeline_mode = #tpu.pipeline_mode<synchronous>, transform_indices = @transform_1, window_bounds = array<i64: 1, 128>}, {pipeline_mode = #tpu.pipeline_mode<synchronous>, transform_indices = @transform_2, window_bounds = array<i64: 1, 128>}]} {
    %c0_i32 = arith.constant 0 : i32
    %0 = arith.cmpi eq, %arg0, %c0_i32 : i32
    %1 = arith.extui %0 : i1 to i32
    %c0_i32_0 = arith.constant 0 : i32
    %2 = arith.cmpi ne, %1, %c0_i32_0 : i32
    scf.if %2 {
      %cst_13 = arith.constant 0.000000e+00 : f32
      %19 = vector.broadcast %cst_13 : f32 to vector<1x128xf32>
      %c0_14 = arith.constant 0 : index
      %c0_15 = arith.constant 0 : index
      %20 = vector.load %arg4[%c0_14, %c0_15] : memref<1x128xf32, #tpu.memory_space<vmem>>, vector<1x128xf32>
      tpu.vector_store %arg4[%c0_14, %c0_15], %19 {strides = array<i32>} : memref<1x128xf32, #tpu.memory_space<vmem>>, vector<1x128xf32>,
      %cst_16 = arith.constant 0.000000e+00 : f32
      %21 = vector.broadcast %cst_16 : f32 to vector<1x128xf32>
      %c0_17 = arith.constant 0 : index
      %c0_18 = arith.constant 0 : index
      %22 = vector.load %arg5[%c0_17, %c0_18] : memref<1x128xf32, #tpu.memory_space<vmem>>, vector<1x128xf32>
      tpu.vector_store %arg5[%c0_17, %c0_18], %21 {strides = array<i32>} : memref<1x128xf32, #tpu.memory_space<vmem>>, vector<1x128xf32>,
    } else {
    }
    %c0 = arith.constant 0 : index
    %c0_1 = arith.constant 0 : index
    %3 = vector.load %arg1[%c0, %c0_1] : memref<32x128xbf16, #tpu.memory_space<vmem>>, vector<32x128xbf16>
    %4 = arith.extf %3 : vector<32x128xbf16> to vector<32x128xf32>
    %c0_2 = arith.constant 0 : index
    %c0_3 = arith.constant 0 : index
    %5 = vector.load %arg4[%c0_2, %c0_3] : memref<1x128xf32, #tpu.memory_space<vmem>>, vector<1x128xf32>
    %cst = arith.constant dense<0.000000e+00> : vector<128xf32>
    %6 = vector.multi_reduction <add>, %4, %cst [0] : vector<32x128xf32> to vector<128xf32>
    %7 = vector.shape_cast %6 : vector<128xf32> to vector<1x128xf32>
    %8 = arith.addf %5, %7 : vector<1x128xf32>
    %c0_4 = arith.constant 0 : index
    %c0_5 = arith.constant 0 : index
    %9 = vector.load %arg4[%c0_4, %c0_5] : memref<1x128xf32, #tpu.memory_space<vmem>>, vector<1x128xf32>
    tpu.vector_store %arg4[%c0_4, %c0_5], %8 {strides = array<i32>} : memref<1x128xf32, #tpu.memory_space<vmem>>, vector<1x128xf32>,
    %c0_6 = arith.constant 0 : index
    %c0_7 = arith.constant 0 : index
    %10 = vector.load %arg5[%c0_6, %c0_7] : memref<1x128xf32, #tpu.memory_space<vmem>>, vector<1x128xf32>
    %11 = arith.mulf %4, %4 : vector<32x128xf32>
    %cst_8 = arith.constant dense<0.000000e+00> : vector<128xf32>
    %12 = vector.multi_reduction <add>, %11, %cst_8 [0] : vector<32x128xf32> to vector<128xf32>
    %13 = vector.shape_cast %12 : vector<128xf32> to vector<1x128xf32>
    %14 = arith.addf %10, %13 : vector<1x128xf32>
    %c0_9 = arith.constant 0 : index
    %c0_10 = arith.constant 0 : index
    %15 = vector.load %arg5[%c0_9, %c0_10] : memref<1x128xf32, #tpu.memory_space<vmem>>, vector<1x128xf32>
    tpu.vector_store %arg5[%c0_9, %c0_10], %14 {strides = array<i32>} : memref<1x128xf32, #tpu.memory_space<vmem>>, vector<1x128xf32>,
    %c0_i32_11 = arith.constant 0 : i32
    %16 = arith.cmpi eq, %arg0, %c0_i32_11 : i32
    %17 = arith.extui %16 : i1 to i32
    %c0_i32_12 = arith.constant 0 : i32
    %18 = arith.cmpi ne, %17, %c0_i32_12 : i32
    scf.if %18 {
      %c0_13 = arith.constant 0 : index
      %c0_14 = arith.constant 0 : index
      %19 = vector.load %arg4[%c0_13, %c0_14] : memref<1x128xf32, #tpu.memory_space<vmem>>, vector<1x128xf32>
      %c0_15 = arith.constant 0 : index
      %c0_16 = arith.constant 0 : index
      %20 = vector.load %arg2[%c0_15, %c0_16] : memref<1x128xf32, #tpu.memory_space<vmem>>, vector<1x128xf32>
      tpu.vector_store %arg2[%c0_15, %c0_16], %19 {strides = array<i32>} : memref<1x128xf32, #tpu.memory_space<vmem>>, vector<1x128xf32>,
      %c0_17 = arith.constant 0 : index
      %c0_18 = arith.constant 0 : index
      %21 = vector.load %arg5[%c0_17, %c0_18] : memref<1x128xf32, #tpu.memory_space<vmem>>, vector<1x128xf32>
      %c0_19 = arith.constant 0 : index
      %c0_20 = arith.constant 0 : index
      %22 = vector.load %arg3[%c0_19, %c0_20] : memref<1x128xf32, #tpu.memory_space<vmem>>, vector<1x128xf32>
      tpu.vector_store %arg3[%c0_19, %c0_20], %21 {strides = array<i32>} : memref<1x128xf32, #tpu.memory_space<vmem>>, vector<1x128xf32>,
    } else {
    }
    return
  }
  func.func @transform_0(%arg0: i32) -> (i32, i32) {
    %c0_i32 = arith.constant 0 : i32
    %c0_i32_0 = arith.constant 0 : i32
    return %arg0, %c0_i32 : i32, i32
  }
  func.func @transform_1(%arg0: i32) -> (i32, i32) {
    %c0_i32 = arith.constant 0 : i32
    %c0_i32_0 = arith.constant 0 : i32
    %c0_i32_1 = arith.constant 0 : i32
    return %c0_i32, %c0_i32_0 : i32, i32
  }
  func.func @transform_2(%arg0: i32) -> (i32, i32) {
    %c0_i32 = arith.constant 0 : i32
    %c0_i32_0 = arith.constant 0 : i32
    %c0_i32_1 = arith.constant 0 : i32
    return %c0_i32, %c0_i32_0 : i32, i32
  }
}

module attributes {stable_mosaic.version = 11 : i64} {
  func.func @_bn_matmul_kernel(%arg0: i32, %arg1: i32, %arg2: i32, %arg3: memref<128x128xbf16, #tpu.memory_space<vmem>>, %arg4: memref<1x128xf32, #tpu.memory_space<vmem>>, %arg5: memref<1x128xf32, #tpu.memory_space<vmem>>, %arg6: memref<128x128xbf16, #tpu.memory_space<vmem>>, %arg7: memref<128x128xbf16, #tpu.memory_space<vmem>>, %arg8: memref<128x128xf32, #tpu.memory_space<vmem>>) attributes {dimension_semantics = [#tpu.dimension_semantics<parallel>, #tpu.dimension_semantics<parallel>, #tpu.dimension_semantics<arbitrary>], iteration_bounds = array<i64: 1, 1, 1>, scalar_prefetch = 0 : i64, scratch_operands = 1 : i64, tpu.core_type = #tpu.core_type<tc>, window_params = [{transform_indices = @transform_0, window_bounds = array<i64: 128, 128>}, {transform_indices = @transform_1, window_bounds = array<i64: 1, 128>}, {transform_indices = @transform_2, window_bounds = array<i64: 1, 128>}, {transform_indices = @transform_3, window_bounds = array<i64: 128, 128>}, {transform_indices = @transform_4, window_bounds = array<i64: 128, 128>}]} {
    %c0_i32 = arith.constant 0 : i32
    %0 = arith.cmpi eq, %arg2, %c0_i32 : i32
    %1 = arith.extui %0 : i1 to i32
    %c0_i32_0 = arith.constant 0 : i32
    %2 = arith.cmpi ne, %1, %c0_i32_0 : i32
    scf.if %2 {
      %cst_15 = arith.constant 0.000000e+00 : f32
      %22 = vector.broadcast %cst_15 : f32 to vector<128x128xf32>
      %c0_16 = arith.constant 0 : index
      %c0_17 = arith.constant 0 : index
      %23 = vector.load %arg8[%c0_16, %c0_17] : memref<128x128xf32, #tpu.memory_space<vmem>>, vector<128x128xf32>
      tpu.vector_store %arg8[%c0_16, %c0_17], %22 {strides = array<i32>} : memref<128x128xf32, #tpu.memory_space<vmem>>, vector<128x128xf32>,
    } else {
    }
    %c0 = arith.constant 0 : index
    %c0_1 = arith.constant 0 : index
    %3 = vector.load %arg3[%c0, %c0_1] : memref<128x128xbf16, #tpu.memory_space<vmem>>, vector<128x128xbf16>
    %4 = arith.extf %3 : vector<128x128xbf16> to vector<128x128xf32>
    %c0_2 = arith.constant 0 : index
    %c0_3 = arith.constant 0 : index
    %5 = vector.load %arg4[%c0_2, %c0_3] : memref<1x128xf32, #tpu.memory_space<vmem>>, vector<1x128xf32>
    %6 = vector.broadcast %5 : vector<1x128xf32> to vector<128x128xf32>
    %7 = arith.mulf %4, %6 : vector<128x128xf32>
    %c0_4 = arith.constant 0 : index
    %c0_5 = arith.constant 0 : index
    %8 = vector.load %arg5[%c0_4, %c0_5] : memref<1x128xf32, #tpu.memory_space<vmem>>, vector<1x128xf32>
    %9 = vector.broadcast %8 : vector<1x128xf32> to vector<128x128xf32>
    %10 = arith.addf %7, %9 : vector<128x128xf32>
    %cst = arith.constant 0.000000e+00 : f32
    %11 = vector.broadcast %cst : f32 to vector<128x128xf32>
    %12 = arith.maximumf %10, %11 : vector<128x128xf32>
    %c0_6 = arith.constant 0 : index
    %c0_7 = arith.constant 0 : index
    %13 = vector.load %arg8[%c0_6, %c0_7] : memref<128x128xf32, #tpu.memory_space<vmem>>, vector<128x128xf32>
    %14 = arith.truncf %12 : vector<128x128xf32> to vector<128x128xbf16>
    %c0_8 = arith.constant 0 : index
    %c0_9 = arith.constant 0 : index
    %15 = vector.load %arg6[%c0_8, %c0_9] : memref<128x128xbf16, #tpu.memory_space<vmem>>, vector<128x128xbf16>
    %cst_10 = arith.constant dense<0.000000e+00> : vector<128x128xf32>
    %16 = tpu.matmul %14, %15, %cst_10 {dimension_numbers = #tpu.dot_dimension_numbers<[1], [0], [0], [1], [0, 0, 1, 1], [], []>} : vector<128x128xbf16>, vector<128x128xbf16>, vector<128x128xf32> -> vector<128x128xf32>
    %17 = arith.addf %13, %16 : vector<128x128xf32>
    %c0_11 = arith.constant 0 : index
    %c0_12 = arith.constant 0 : index
    %18 = vector.load %arg8[%c0_11, %c0_12] : memref<128x128xf32, #tpu.memory_space<vmem>>, vector<128x128xf32>
    tpu.vector_store %arg8[%c0_11, %c0_12], %17 {strides = array<i32>} : memref<128x128xf32, #tpu.memory_space<vmem>>, vector<128x128xf32>,
    %c0_i32_13 = arith.constant 0 : i32
    %19 = arith.cmpi eq, %arg2, %c0_i32_13 : i32
    %20 = arith.extui %19 : i1 to i32
    %c0_i32_14 = arith.constant 0 : i32
    %21 = arith.cmpi ne, %20, %c0_i32_14 : i32
    scf.if %21 {
      %c0_15 = arith.constant 0 : index
      %c0_16 = arith.constant 0 : index
      %22 = vector.load %arg8[%c0_15, %c0_16] : memref<128x128xf32, #tpu.memory_space<vmem>>, vector<128x128xf32>
      %23 = arith.truncf %22 : vector<128x128xf32> to vector<128x128xbf16>
      %c0_17 = arith.constant 0 : index
      %c0_18 = arith.constant 0 : index
      %24 = vector.load %arg7[%c0_17, %c0_18] : memref<128x128xbf16, #tpu.memory_space<vmem>>, vector<128x128xbf16>
      tpu.vector_store %arg7[%c0_17, %c0_18], %23 {strides = array<i32>} : memref<128x128xbf16, #tpu.memory_space<vmem>>, vector<128x128xbf16>,
    } else {
    }
    return
  }
  func.func @transform_0(%arg0: i32, %arg1: i32, %arg2: i32) -> (i32, i32) {
    %c0_i32 = arith.constant 0 : i32
    return %arg0, %arg2 : i32, i32
  }
  func.func @transform_1(%arg0: i32, %arg1: i32, %arg2: i32) -> (i32, i32) {
    %c0_i32 = arith.constant 0 : i32
    %c0_i32_0 = arith.constant 0 : i32
    return %c0_i32, %arg2 : i32, i32
  }
  func.func @transform_2(%arg0: i32, %arg1: i32, %arg2: i32) -> (i32, i32) {
    %c0_i32 = arith.constant 0 : i32
    %c0_i32_0 = arith.constant 0 : i32
    return %c0_i32, %arg2 : i32, i32
  }
  func.func @transform_3(%arg0: i32, %arg1: i32, %arg2: i32) -> (i32, i32) {
    %c0_i32 = arith.constant 0 : i32
    return %arg2, %arg1 : i32, i32
  }
  func.func @transform_4(%arg0: i32, %arg1: i32, %arg2: i32) -> (i32, i32) {
    %c0_i32 = arith.constant 0 : i32
    return %arg0, %arg1 : i32, i32
  }
}

module attributes {stable_mosaic.version = 11 : i64} {
  func.func @_bn_matmul_kernel(%arg0: i32, %arg1: i32, %arg2: i32, %arg3: memref<32x128xbf16, #tpu.memory_space<vmem>>, %arg4: memref<1x128xf32, #tpu.memory_space<vmem>>, %arg5: memref<1x128xf32, #tpu.memory_space<vmem>>, %arg6: memref<128x128xbf16, #tpu.memory_space<vmem>>, %arg7: memref<32x128xf32, #tpu.memory_space<vmem>>, %arg8: memref<32x128xf32, #tpu.memory_space<vmem>>) attributes {dimension_semantics = [#tpu.dimension_semantics<parallel>, #tpu.dimension_semantics<parallel>, #tpu.dimension_semantics<arbitrary>], iteration_bounds = array<i64: 1, 1, 1>, scalar_prefetch = 0 : i64, scratch_operands = 1 : i64, tpu.core_type = #tpu.core_type<tc>, window_params = [{transform_indices = @transform_0, window_bounds = array<i64: 32, 128>}, {transform_indices = @transform_1, window_bounds = array<i64: 1, 128>}, {transform_indices = @transform_2, window_bounds = array<i64: 1, 128>}, {transform_indices = @transform_3, window_bounds = array<i64: 128, 128>}, {transform_indices = @transform_4, window_bounds = array<i64: 32, 128>}]} {
    %c0_i32 = arith.constant 0 : i32
    %0 = arith.cmpi eq, %arg2, %c0_i32 : i32
    %1 = arith.extui %0 : i1 to i32
    %c0_i32_0 = arith.constant 0 : i32
    %2 = arith.cmpi ne, %1, %c0_i32_0 : i32
    scf.if %2 {
      %cst_15 = arith.constant 0.000000e+00 : f32
      %22 = vector.broadcast %cst_15 : f32 to vector<32x128xf32>
      %c0_16 = arith.constant 0 : index
      %c0_17 = arith.constant 0 : index
      %23 = vector.load %arg8[%c0_16, %c0_17] : memref<32x128xf32, #tpu.memory_space<vmem>>, vector<32x128xf32>
      tpu.vector_store %arg8[%c0_16, %c0_17], %22 {strides = array<i32>} : memref<32x128xf32, #tpu.memory_space<vmem>>, vector<32x128xf32>,
    } else {
    }
    %c0 = arith.constant 0 : index
    %c0_1 = arith.constant 0 : index
    %3 = vector.load %arg3[%c0, %c0_1] : memref<32x128xbf16, #tpu.memory_space<vmem>>, vector<32x128xbf16>
    %4 = arith.extf %3 : vector<32x128xbf16> to vector<32x128xf32>
    %c0_2 = arith.constant 0 : index
    %c0_3 = arith.constant 0 : index
    %5 = vector.load %arg4[%c0_2, %c0_3] : memref<1x128xf32, #tpu.memory_space<vmem>>, vector<1x128xf32>
    %6 = vector.broadcast %5 : vector<1x128xf32> to vector<32x128xf32>
    %7 = arith.mulf %4, %6 : vector<32x128xf32>
    %c0_4 = arith.constant 0 : index
    %c0_5 = arith.constant 0 : index
    %8 = vector.load %arg5[%c0_4, %c0_5] : memref<1x128xf32, #tpu.memory_space<vmem>>, vector<1x128xf32>
    %9 = vector.broadcast %8 : vector<1x128xf32> to vector<32x128xf32>
    %10 = arith.addf %7, %9 : vector<32x128xf32>
    %cst = arith.constant 0.000000e+00 : f32
    %11 = vector.broadcast %cst : f32 to vector<32x128xf32>
    %12 = arith.maximumf %10, %11 : vector<32x128xf32>
    %c0_6 = arith.constant 0 : index
    %c0_7 = arith.constant 0 : index
    %13 = vector.load %arg8[%c0_6, %c0_7] : memref<32x128xf32, #tpu.memory_space<vmem>>, vector<32x128xf32>
    %14 = arith.truncf %12 : vector<32x128xf32> to vector<32x128xbf16>
    %c0_8 = arith.constant 0 : index
    %c0_9 = arith.constant 0 : index
    %15 = vector.load %arg6[%c0_8, %c0_9] : memref<128x128xbf16, #tpu.memory_space<vmem>>, vector<128x128xbf16>
    %cst_10 = arith.constant dense<0.000000e+00> : vector<32x128xf32>
    %16 = tpu.matmul %14, %15, %cst_10 {dimension_numbers = #tpu.dot_dimension_numbers<[1], [0], [0], [1], [0, 0, 1, 1], [], []>} : vector<32x128xbf16>, vector<128x128xbf16>, vector<32x128xf32> -> vector<32x128xf32>
    %17 = arith.addf %13, %16 : vector<32x128xf32>
    %c0_11 = arith.constant 0 : index
    %c0_12 = arith.constant 0 : index
    %18 = vector.load %arg8[%c0_11, %c0_12] : memref<32x128xf32, #tpu.memory_space<vmem>>, vector<32x128xf32>
    tpu.vector_store %arg8[%c0_11, %c0_12], %17 {strides = array<i32>} : memref<32x128xf32, #tpu.memory_space<vmem>>, vector<32x128xf32>,
    %c0_i32_13 = arith.constant 0 : i32
    %19 = arith.cmpi eq, %arg2, %c0_i32_13 : i32
    %20 = arith.extui %19 : i1 to i32
    %c0_i32_14 = arith.constant 0 : i32
    %21 = arith.cmpi ne, %20, %c0_i32_14 : i32
    scf.if %21 {
      %c0_15 = arith.constant 0 : index
      %c0_16 = arith.constant 0 : index
      %22 = vector.load %arg8[%c0_15, %c0_16] : memref<32x128xf32, #tpu.memory_space<vmem>>, vector<32x128xf32>
      %c0_17 = arith.constant 0 : index
      %c0_18 = arith.constant 0 : index
      %23 = vector.load %arg7[%c0_17, %c0_18] : memref<32x128xf32, #tpu.memory_space<vmem>>, vector<32x128xf32>
      tpu.vector_store %arg7[%c0_17, %c0_18], %22 {strides = array<i32>} : memref<32x128xf32, #tpu.memory_space<vmem>>, vector<32x128xf32>,
    } else {
    }
    return
  }
  func.func @transform_0(%arg0: i32, %arg1: i32, %arg2: i32) -> (i32, i32) {
    %c0_i32 = arith.constant 0 : i32
    return %arg0, %arg2 : i32, i32
  }
  func.func @transform_1(%arg0: i32, %arg1: i32, %arg2: i32) -> (i32, i32) {
    %c0_i32 = arith.constant 0 : i32
    %c0_i32_0 = arith.constant 0 : i32
    return %c0_i32, %arg2 : i32, i32
  }
  func.func @transform_2(%arg0: i32, %arg1: i32, %arg2: i32) -> (i32, i32) {
    %c0_i32 = arith.constant 0 : i32
    %c0_i32_0 = arith.constant 0 : i32
    return %c0_i32, %arg2 : i32, i32
  }
  func.func @transform_3(%arg0: i32, %arg1: i32, %arg2: i32) -> (i32, i32) {
    %c0_i32 = arith.constant 0 : i32
    return %arg2, %arg1 : i32, i32
  }
  func.func @transform_4(%arg0: i32, %arg1: i32, %arg2: i32) -> (i32, i32) {
    %c0_i32 = arith.constant 0 : i32
    return %arg0, %arg1 : i32, i32
  }
}

module attributes {stable_mosaic.version = 11 : i64} {
  func.func @_bn_relu_kernel(%arg0: i32, %arg1: memref<32x128xf32, #tpu.memory_space<vmem>>, %arg2: memref<1x128xf32, #tpu.memory_space<vmem>>, %arg3: memref<1x128xf32, #tpu.memory_space<vmem>>, %arg4: memref<32x128xbf16, #tpu.memory_space<vmem>>) attributes {dimension_semantics = [#tpu.dimension_semantics<parallel>], iteration_bounds = array<i64: 1>, scalar_prefetch = 0 : i64, scratch_operands = 0 : i64, tpu.core_type = #tpu.core_type<tc>, window_params = [{transform_indices = @transform_0, window_bounds = array<i64: 32, 128>}, {pipeline_mode = #tpu.pipeline_mode<synchronous>, transform_indices = @transform_1, window_bounds = array<i64: 1, 128>}, {pipeline_mode = #tpu.pipeline_mode<synchronous>, transform_indices = @transform_2, window_bounds = array<i64: 1, 128>}, {transform_indices = @transform_3, window_bounds = array<i64: 32, 128>}]} {
    %c0 = arith.constant 0 : index
    %c0_0 = arith.constant 0 : index
    %0 = vector.load %arg1[%c0, %c0_0] : memref<32x128xf32, #tpu.memory_space<vmem>>, vector<32x128xf32>
    %c0_1 = arith.constant 0 : index
    %c0_2 = arith.constant 0 : index
    %1 = vector.load %arg2[%c0_1, %c0_2] : memref<1x128xf32, #tpu.memory_space<vmem>>, vector<1x128xf32>
    %2 = vector.broadcast %1 : vector<1x128xf32> to vector<32x128xf32>
    %3 = arith.mulf %0, %2 : vector<32x128xf32>
    %c0_3 = arith.constant 0 : index
    %c0_4 = arith.constant 0 : index
    %4 = vector.load %arg3[%c0_3, %c0_4] : memref<1x128xf32, #tpu.memory_space<vmem>>, vector<1x128xf32>
    %5 = vector.broadcast %4 : vector<1x128xf32> to vector<32x128xf32>
    %6 = arith.addf %3, %5 : vector<32x128xf32>
    %cst = arith.constant 0.000000e+00 : f32
    %7 = vector.broadcast %cst : f32 to vector<32x128xf32>
    %8 = arith.maximumf %6, %7 : vector<32x128xf32>
    %9 = arith.truncf %8 : vector<32x128xf32> to vector<32x128xbf16>
    %c0_5 = arith.constant 0 : index
    %c0_6 = arith.constant 0 : index
    %10 = vector.load %arg4[%c0_5, %c0_6] : memref<32x128xbf16, #tpu.memory_space<vmem>>, vector<32x128xbf16>
    tpu.vector_store %arg4[%c0_5, %c0_6], %9 {strides = array<i32>} : memref<32x128xbf16, #tpu.memory_space<vmem>>, vector<32x128xbf16>,
    return
  }
  func.func @transform_0(%arg0: i32) -> (i32, i32) {
    %c0_i32 = arith.constant 0 : i32
    %c0_i32_0 = arith.constant 0 : i32
    return %arg0, %c0_i32 : i32, i32
  }
  func.func @transform_1(%arg0: i32) -> (i32, i32) {
    %c0_i32 = arith.constant 0 : i32
    %c0_i32_0 = arith.constant 0 : i32
    %c0_i32_1 = arith.constant 0 : i32
    return %c0_i32, %c0_i32_0 : i32, i32
  }
  func.func @transform_2(%arg0: i32) -> (i32, i32) {
    %c0_i32 = arith.constant 0 : i32
    %c0_i32_0 = arith.constant 0 : i32
    %c0_i32_1 = arith.constant 0 : i32
    return %c0_i32, %c0_i32_0 : i32, i32
  }
  func.func @transform_3(%arg0: i32) -> (i32, i32) {
    %c0_i32 = arith.constant 0 : i32
    %c0_i32_0 = arith.constant 0 : i32
    return %arg0, %c0_i32 : i32, i32
  }
}

module attributes {stable_mosaic.version = 11 : i64} {
  func.func @_bn_stats_kernel(%arg0: i32, %arg1: memref<32x128xf32, #tpu.memory_space<vmem>>, %arg2: memref<1x128xf32, #tpu.memory_space<vmem>>, %arg3: memref<1x128xf32, #tpu.memory_space<vmem>>, %arg4: memref<1x128xf32, #tpu.memory_space<vmem>>, %arg5: memref<1x128xf32, #tpu.memory_space<vmem>>) attributes {dimension_semantics = [#tpu.dimension_semantics<arbitrary>], iteration_bounds = array<i64: 1>, scalar_prefetch = 0 : i64, scratch_operands = 2 : i64, tpu.core_type = #tpu.core_type<tc>, window_params = [{transform_indices = @transform_0, window_bounds = array<i64: 32, 128>}, {pipeline_mode = #tpu.pipeline_mode<synchronous>, transform_indices = @transform_1, window_bounds = array<i64: 1, 128>}, {pipeline_mode = #tpu.pipeline_mode<synchronous>, transform_indices = @transform_2, window_bounds = array<i64: 1, 128>}]} {
    %c0_i32 = arith.constant 0 : i32
    %0 = arith.cmpi eq, %arg0, %c0_i32 : i32
    %1 = arith.extui %0 : i1 to i32
    %c0_i32_0 = arith.constant 0 : i32
    %2 = arith.cmpi ne, %1, %c0_i32_0 : i32
    scf.if %2 {
      %cst_13 = arith.constant 0.000000e+00 : f32
      %18 = vector.broadcast %cst_13 : f32 to vector<1x128xf32>
      %c0_14 = arith.constant 0 : index
      %c0_15 = arith.constant 0 : index
      %19 = vector.load %arg4[%c0_14, %c0_15] : memref<1x128xf32, #tpu.memory_space<vmem>>, vector<1x128xf32>
      tpu.vector_store %arg4[%c0_14, %c0_15], %18 {strides = array<i32>} : memref<1x128xf32, #tpu.memory_space<vmem>>, vector<1x128xf32>,
      %cst_16 = arith.constant 0.000000e+00 : f32
      %20 = vector.broadcast %cst_16 : f32 to vector<1x128xf32>
      %c0_17 = arith.constant 0 : index
      %c0_18 = arith.constant 0 : index
      %21 = vector.load %arg5[%c0_17, %c0_18] : memref<1x128xf32, #tpu.memory_space<vmem>>, vector<1x128xf32>
      tpu.vector_store %arg5[%c0_17, %c0_18], %20 {strides = array<i32>} : memref<1x128xf32, #tpu.memory_space<vmem>>, vector<1x128xf32>,
    } else {
    }
    %c0 = arith.constant 0 : index
    %c0_1 = arith.constant 0 : index
    %3 = vector.load %arg1[%c0, %c0_1] : memref<32x128xf32, #tpu.memory_space<vmem>>, vector<32x128xf32>
    %c0_2 = arith.constant 0 : index
    %c0_3 = arith.constant 0 : index
    %4 = vector.load %arg4[%c0_2, %c0_3] : memref<1x128xf32, #tpu.memory_space<vmem>>, vector<1x128xf32>
    %cst = arith.constant dense<0.000000e+00> : vector<128xf32>
    %5 = vector.multi_reduction <add>, %3, %cst [0] : vector<32x128xf32> to vector<128xf32>
    %6 = vector.shape_cast %5 : vector<128xf32> to vector<1x128xf32>
    %7 = arith.addf %4, %6 : vector<1x128xf32>
    %c0_4 = arith.constant 0 : index
    %c0_5 = arith.constant 0 : index
    %8 = vector.load %arg4[%c0_4, %c0_5] : memref<1x128xf32, #tpu.memory_space<vmem>>, vector<1x128xf32>
    tpu.vector_store %arg4[%c0_4, %c0_5], %7 {strides = array<i32>} : memref<1x128xf32, #tpu.memory_space<vmem>>, vector<1x128xf32>,
    %c0_6 = arith.constant 0 : index
    %c0_7 = arith.constant 0 : index
    %9 = vector.load %arg5[%c0_6, %c0_7] : memref<1x128xf32, #tpu.memory_space<vmem>>, vector<1x128xf32>
    %10 = arith.mulf %3, %3 : vector<32x128xf32>
    %cst_8 = arith.constant dense<0.000000e+00> : vector<128xf32>
    %11 = vector.multi_reduction <add>, %10, %cst_8 [0] : vector<32x128xf32> to vector<128xf32>
    %12 = vector.shape_cast %11 : vector<128xf32> to vector<1x128xf32>
    %13 = arith.addf %9, %12 : vector<1x128xf32>
    %c0_9 = arith.constant 0 : index
    %c0_10 = arith.constant 0 : index
    %14 = vector.load %arg5[%c0_9, %c0_10] : memref<1x128xf32, #tpu.memory_space<vmem>>, vector<1x128xf32>
    tpu.vector_store %arg5[%c0_9, %c0_10], %13 {strides = array<i32>} : memref<1x128xf32, #tpu.memory_space<vmem>>, vector<1x128xf32>,
    %c0_i32_11 = arith.constant 0 : i32
    %15 = arith.cmpi eq, %arg0, %c0_i32_11 : i32
    %16 = arith.extui %15 : i1 to i32
    %c0_i32_12 = arith.constant 0 : i32
    %17 = arith.cmpi ne, %16, %c0_i32_12 : i32
    scf.if %17 {
      %c0_13 = arith.constant 0 : index
      %c0_14 = arith.constant 0 : index
      %18 = vector.load %arg4[%c0_13, %c0_14] : memref<1x128xf32, #tpu.memory_space<vmem>>, vector<1x128xf32>
      %c0_15 = arith.constant 0 : index
      %c0_16 = arith.constant 0 : index
      %19 = vector.load %arg2[%c0_15, %c0_16] : memref<1x128xf32, #tpu.memory_space<vmem>>, vector<1x128xf32>
      tpu.vector_store %arg2[%c0_15, %c0_16], %18 {strides = array<i32>} : memref<1x128xf32, #tpu.memory_space<vmem>>, vector<1x128xf32>,
      %c0_17 = arith.constant 0 : index
      %c0_18 = arith.constant 0 : index
      %20 = vector.load %arg5[%c0_17, %c0_18] : memref<1x128xf32, #tpu.memory_space<vmem>>, vector<1x128xf32>
      %c0_19 = arith.constant 0 : index
      %c0_20 = arith.constant 0 : index
      %21 = vector.load %arg3[%c0_19, %c0_20] : memref<1x128xf32, #tpu.memory_space<vmem>>, vector<1x128xf32>
      tpu.vector_store %arg3[%c0_19, %c0_20], %20 {strides = array<i32>} : memref<1x128xf32, #tpu.memory_space<vmem>>, vector<1x128xf32>,
    } else {
    }
    return
  }
  func.func @transform_0(%arg0: i32) -> (i32, i32) {
    %c0_i32 = arith.constant 0 : i32
    %c0_i32_0 = arith.constant 0 : i32
    return %arg0, %c0_i32 : i32, i32
  }
  func.func @transform_1(%arg0: i32) -> (i32, i32) {
    %c0_i32 = arith.constant 0 : i32
    %c0_i32_0 = arith.constant 0 : i32
    %c0_i32_1 = arith.constant 0 : i32
    return %c0_i32, %c0_i32_0 : i32, i32
  }
  func.func @transform_2(%arg0: i32) -> (i32, i32) {
    %c0_i32 = arith.constant 0 : i32
    %c0_i32_0 = arith.constant 0 : i32
    %c0_i32_1 = arith.constant 0 : i32
    return %c0_i32, %c0_i32_0 : i32, i32
  }
}

module attributes {stable_mosaic.version = 11 : i64} {
  func.func @_gap_kernel(%arg0: memref<2x16x128xf32, #tpu.memory_space<vmem>>, %arg1: memref<2x128xf32, #tpu.memory_space<vmem>>) attributes {dimension_semantics = [], scalar_prefetch = 0 : i64, scratch_operands = 0 : i64, tpu.core_type = #tpu.core_type<tc>} {
    %c0 = arith.constant 0 : index
    %c0_0 = arith.constant 0 : index
    %c0_1 = arith.constant 0 : index
    %0 = vector.load %arg0[%c0, %c0_0, %c0_1] : memref<2x16x128xf32, #tpu.memory_space<vmem>>, vector<2x16x128xf32>
    %cst = arith.constant dense<0.000000e+00> : vector<2x128xf32>
    %1 = vector.multi_reduction <add>, %0, %cst [1] : vector<2x16x128xf32> to vector<2x128xf32>
    %cst_2 = arith.constant 1.600000e+01 : f32
    %2 = vector.broadcast %cst_2 : f32 to vector<2x128xf32>
    %3 = arith.divf %1, %2 : vector<2x128xf32>
    %c0_3 = arith.constant 0 : index
    %c0_4 = arith.constant 0 : index
    %4 = vector.load %arg1[%c0_3, %c0_4] : memref<2x128xf32, #tpu.memory_space<vmem>>, vector<2x128xf32>
    tpu.vector_store %arg1[%c0_3, %c0_4], %3 {strides = array<i32>} : memref<2x128xf32, #tpu.memory_space<vmem>>, vector<2x128xf32>,
    return
  }
}

module attributes {stable_mosaic.version = 11 : i64} {
  func.func @_matmul_kernel(%arg0: i32, %arg1: i32, %arg2: i32, %arg3: memref<32x384xbf16, #tpu.memory_space<vmem>>, %arg4: memref<384x128xbf16, #tpu.memory_space<vmem>>, %arg5: memref<32x128xbf16, #tpu.memory_space<vmem>>, %arg6: memref<32x128xf32, #tpu.memory_space<vmem>>) attributes {dimension_semantics = [#tpu.dimension_semantics<parallel>, #tpu.dimension_semantics<parallel>, #tpu.dimension_semantics<arbitrary>], iteration_bounds = array<i64: 1, 1, 3>, scalar_prefetch = 0 : i64, scratch_operands = 1 : i64, tpu.core_type = #tpu.core_type<tc>, window_params = [{transform_indices = @transform_0, window_bounds = array<i64: 32, 384>}, {transform_indices = @transform_1, window_bounds = array<i64: 384, 128>}, {transform_indices = @transform_2, window_bounds = array<i64: 32, 128>}]} {
    %c0_i32 = arith.constant 0 : i32
    %0 = arith.cmpi eq, %arg2, %c0_i32 : i32
    %1 = arith.extui %0 : i1 to i32
    %c0_i32_0 = arith.constant 0 : i32
    %2 = arith.cmpi ne, %1, %c0_i32_0 : i32
    scf.if %2 {
      %cst_9 = arith.constant 0.000000e+00 : f32
      %12 = vector.broadcast %cst_9 : f32 to vector<32x128xf32>
      %c0_10 = arith.constant 0 : index
      %c0_11 = arith.constant 0 : index
      %13 = vector.load %arg6[%c0_10, %c0_11] : memref<32x128xf32, #tpu.memory_space<vmem>>, vector<32x128xf32>
      tpu.vector_store %arg6[%c0_10, %c0_11], %12 {strides = array<i32>} : memref<32x128xf32, #tpu.memory_space<vmem>>, vector<32x128xf32>,
    } else {
    }
    %c0 = arith.constant 0 : index
    %c0_1 = arith.constant 0 : index
    %3 = vector.load %arg6[%c0, %c0_1] : memref<32x128xf32, #tpu.memory_space<vmem>>, vector<32x128xf32>
    %c0_2 = arith.constant 0 : index
    %c0_3 = arith.constant 0 : index
    %4 = vector.load %arg3[%c0_2, %c0_3] : memref<32x384xbf16, #tpu.memory_space<vmem>>, vector<32x384xbf16>
    %c0_4 = arith.constant 0 : index
    %c0_5 = arith.constant 0 : index
    %5 = vector.load %arg4[%c0_4, %c0_5] : memref<384x128xbf16, #tpu.memory_space<vmem>>, vector<384x128xbf16>
    %cst = arith.constant dense<0.000000e+00> : vector<32x128xf32>
    %6 = tpu.matmul %4, %5, %cst {dimension_numbers = #tpu.dot_dimension_numbers<[1], [0], [0], [1], [0, 0, 1, 1], [], []>} : vector<32x384xbf16>, vector<384x128xbf16>, vector<32x128xf32> -> vector<32x128xf32>
    %7 = arith.addf %3, %6 : vector<32x128xf32>
    %c0_6 = arith.constant 0 : index
    %c0_7 = arith.constant 0 : index
    %8 = vector.load %arg6[%c0_6, %c0_7] : memref<32x128xf32, #tpu.memory_space<vmem>>, vector<32x128xf32>
    tpu.vector_store %arg6[%c0_6, %c0_7], %7 {strides = array<i32>} : memref<32x128xf32, #tpu.memory_space<vmem>>, vector<32x128xf32>,
    %c2_i32 = arith.constant 2 : i32
    %9 = arith.cmpi eq, %arg2, %c2_i32 : i32
    %10 = arith.extui %9 : i1 to i32
    %c0_i32_8 = arith.constant 0 : i32
    %11 = arith.cmpi ne, %10, %c0_i32_8 : i32
    scf.if %11 {
      %c0_9 = arith.constant 0 : index
      %c0_10 = arith.constant 0 : index
      %12 = vector.load %arg6[%c0_9, %c0_10] : memref<32x128xf32, #tpu.memory_space<vmem>>, vector<32x128xf32>
      %13 = arith.truncf %12 : vector<32x128xf32> to vector<32x128xbf16>
      %c0_11 = arith.constant 0 : index
      %c0_12 = arith.constant 0 : index
      %14 = vector.load %arg5[%c0_11, %c0_12] : memref<32x128xbf16, #tpu.memory_space<vmem>>, vector<32x128xbf16>
      tpu.vector_store %arg5[%c0_11, %c0_12], %13 {strides = array<i32>} : memref<32x128xbf16, #tpu.memory_space<vmem>>, vector<32x128xbf16>,
    } else {
    }
    return
  }
  func.func @transform_0(%arg0: i32, %arg1: i32, %arg2: i32) -> (i32, i32) {
    %c0_i32 = arith.constant 0 : i32
    return %arg0, %arg2 : i32, i32
  }
  func.func @transform_1(%arg0: i32, %arg1: i32, %arg2: i32) -> (i32, i32) {
    %c0_i32 = arith.constant 0 : i32
    return %arg2, %arg1 : i32, i32
  }
  func.func @transform_2(%arg0: i32, %arg1: i32, %arg2: i32) -> (i32, i32) {
    %c0_i32 = arith.constant 0 : i32
    return %arg0, %arg1 : i32, i32
  }
}

module attributes {stable_mosaic.version = 11 : i64} {
  func.func @_bn_relu_kernel(%arg0: i32, %arg1: memref<32x128xbf16, #tpu.memory_space<vmem>>, %arg2: memref<1x128xf32, #tpu.memory_space<vmem>>, %arg3: memref<1x128xf32, #tpu.memory_space<vmem>>, %arg4: memref<32x128xf32, #tpu.memory_space<vmem>>) attributes {dimension_semantics = [#tpu.dimension_semantics<parallel>], iteration_bounds = array<i64: 1>, scalar_prefetch = 0 : i64, scratch_operands = 0 : i64, tpu.core_type = #tpu.core_type<tc>, window_params = [{transform_indices = @transform_0, window_bounds = array<i64: 32, 128>}, {pipeline_mode = #tpu.pipeline_mode<synchronous>, transform_indices = @transform_1, window_bounds = array<i64: 1, 128>}, {pipeline_mode = #tpu.pipeline_mode<synchronous>, transform_indices = @transform_2, window_bounds = array<i64: 1, 128>}, {transform_indices = @transform_3, window_bounds = array<i64: 32, 128>}]} {
    %c0 = arith.constant 0 : index
    %c0_0 = arith.constant 0 : index
    %0 = vector.load %arg1[%c0, %c0_0] : memref<32x128xbf16, #tpu.memory_space<vmem>>, vector<32x128xbf16>
    %1 = arith.extf %0 : vector<32x128xbf16> to vector<32x128xf32>
    %c0_1 = arith.constant 0 : index
    %c0_2 = arith.constant 0 : index
    %2 = vector.load %arg2[%c0_1, %c0_2] : memref<1x128xf32, #tpu.memory_space<vmem>>, vector<1x128xf32>
    %3 = vector.broadcast %2 : vector<1x128xf32> to vector<32x128xf32>
    %4 = arith.mulf %1, %3 : vector<32x128xf32>
    %c0_3 = arith.constant 0 : index
    %c0_4 = arith.constant 0 : index
    %5 = vector.load %arg3[%c0_3, %c0_4] : memref<1x128xf32, #tpu.memory_space<vmem>>, vector<1x128xf32>
    %6 = vector.broadcast %5 : vector<1x128xf32> to vector<32x128xf32>
    %7 = arith.addf %4, %6 : vector<32x128xf32>
    %cst = arith.constant 0.000000e+00 : f32
    %8 = vector.broadcast %cst : f32 to vector<32x128xf32>
    %9 = arith.maximumf %7, %8 : vector<32x128xf32>
    %c0_5 = arith.constant 0 : index
    %c0_6 = arith.constant 0 : index
    %10 = vector.load %arg4[%c0_5, %c0_6] : memref<32x128xf32, #tpu.memory_space<vmem>>, vector<32x128xf32>
    tpu.vector_store %arg4[%c0_5, %c0_6], %9 {strides = array<i32>} : memref<32x128xf32, #tpu.memory_space<vmem>>, vector<32x128xf32>,
    return
  }
  func.func @transform_0(%arg0: i32) -> (i32, i32) {
    %c0_i32 = arith.constant 0 : i32
    %c0_i32_0 = arith.constant 0 : i32
    return %arg0, %c0_i32 : i32, i32
  }
  func.func @transform_1(%arg0: i32) -> (i32, i32) {
    %c0_i32 = arith.constant 0 : i32
    %c0_i32_0 = arith.constant 0 : i32
    %c0_i32_1 = arith.constant 0 : i32
    return %c0_i32, %c0_i32_0 : i32, i32
  }
  func.func @transform_2(%arg0: i32) -> (i32, i32) {
    %c0_i32 = arith.constant 0 : i32
    %c0_i32_0 = arith.constant 0 : i32
    %c0_i32_1 = arith.constant 0 : i32
    return %c0_i32, %c0_i32_0 : i32, i32
  }
  func.func @transform_3(%arg0: i32) -> (i32, i32) {
    %c0_i32 = arith.constant 0 : i32
    %c0_i32_0 = arith.constant 0 : i32
    return %arg0, %c0_i32 : i32, i32
  }
}

module attributes {stable_mosaic.version = 11 : i64} {
  func.func @_matmul_kernel(%arg0: i32, %arg1: i32, %arg2: i32, %arg3: memref<8x128xbf16, #tpu.memory_space<vmem>>, %arg4: memref<128x128xbf16, #tpu.memory_space<vmem>>, %arg5: memref<8x128xf32, #tpu.memory_space<vmem>>, %arg6: memref<8x128xf32, #tpu.memory_space<vmem>>) attributes {dimension_semantics = [#tpu.dimension_semantics<parallel>, #tpu.dimension_semantics<parallel>, #tpu.dimension_semantics<arbitrary>], iteration_bounds = array<i64: 1, 1, 1>, scalar_prefetch = 0 : i64, scratch_operands = 1 : i64, tpu.core_type = #tpu.core_type<tc>, window_params = [{transform_indices = @transform_0, window_bounds = array<i64: 8, 128>}, {transform_indices = @transform_1, window_bounds = array<i64: 128, 128>}, {transform_indices = @transform_2, window_bounds = array<i64: 8, 128>}]} {
    %c0_i32 = arith.constant 0 : i32
    %0 = arith.cmpi eq, %arg2, %c0_i32 : i32
    %1 = arith.extui %0 : i1 to i32
    %c0_i32_0 = arith.constant 0 : i32
    %2 = arith.cmpi ne, %1, %c0_i32_0 : i32
    scf.if %2 {
      %cst_10 = arith.constant 0.000000e+00 : f32
      %12 = vector.broadcast %cst_10 : f32 to vector<8x128xf32>
      %c0_11 = arith.constant 0 : index
      %c0_12 = arith.constant 0 : index
      %13 = vector.load %arg6[%c0_11, %c0_12] : memref<8x128xf32, #tpu.memory_space<vmem>>, vector<8x128xf32>
      tpu.vector_store %arg6[%c0_11, %c0_12], %12 {strides = array<i32>} : memref<8x128xf32, #tpu.memory_space<vmem>>, vector<8x128xf32>,
    } else {
    }
    %c0 = arith.constant 0 : index
    %c0_1 = arith.constant 0 : index
    %3 = vector.load %arg6[%c0, %c0_1] : memref<8x128xf32, #tpu.memory_space<vmem>>, vector<8x128xf32>
    %c0_2 = arith.constant 0 : index
    %c0_3 = arith.constant 0 : index
    %4 = vector.load %arg3[%c0_2, %c0_3] : memref<8x128xbf16, #tpu.memory_space<vmem>>, vector<8x128xbf16>
    %c0_4 = arith.constant 0 : index
    %c0_5 = arith.constant 0 : index
    %5 = vector.load %arg4[%c0_4, %c0_5] : memref<128x128xbf16, #tpu.memory_space<vmem>>, vector<128x128xbf16>
    %cst = arith.constant dense<0.000000e+00> : vector<8x128xf32>
    %6 = tpu.matmul %4, %5, %cst {dimension_numbers = #tpu.dot_dimension_numbers<[1], [0], [0], [1], [0, 0, 1, 1], [], []>} : vector<8x128xbf16>, vector<128x128xbf16>, vector<8x128xf32> -> vector<8x128xf32>
    %7 = arith.addf %3, %6 : vector<8x128xf32>
    %c0_6 = arith.constant 0 : index
    %c0_7 = arith.constant 0 : index
    %8 = vector.load %arg6[%c0_6, %c0_7] : memref<8x128xf32, #tpu.memory_space<vmem>>, vector<8x128xf32>
    tpu.vector_store %arg6[%c0_6, %c0_7], %7 {strides = array<i32>} : memref<8x128xf32, #tpu.memory_space<vmem>>, vector<8x128xf32>,
    %c0_i32_8 = arith.constant 0 : i32
    %9 = arith.cmpi eq, %arg2, %c0_i32_8 : i32
    %10 = arith.extui %9 : i1 to i32
    %c0_i32_9 = arith.constant 0 : i32
    %11 = arith.cmpi ne, %10, %c0_i32_9 : i32
    scf.if %11 {
      %c0_10 = arith.constant 0 : index
      %c0_11 = arith.constant 0 : index
      %12 = vector.load %arg6[%c0_10, %c0_11] : memref<8x128xf32, #tpu.memory_space<vmem>>, vector<8x128xf32>
      %c0_12 = arith.constant 0 : index
      %c0_13 = arith.constant 0 : index
      %13 = vector.load %arg5[%c0_12, %c0_13] : memref<8x128xf32, #tpu.memory_space<vmem>>, vector<8x128xf32>
      tpu.vector_store %arg5[%c0_12, %c0_13], %12 {strides = array<i32>} : memref<8x128xf32, #tpu.memory_space<vmem>>, vector<8x128xf32>,
    } else {
    }
    return
  }
  func.func @transform_0(%arg0: i32, %arg1: i32, %arg2: i32) -> (i32, i32) {
    %c0_i32 = arith.constant 0 : i32
    return %arg0, %arg2 : i32, i32
  }
  func.func @transform_1(%arg0: i32, %arg1: i32, %arg2: i32) -> (i32, i32) {
    %c0_i32 = arith.constant 0 : i32
    return %arg2, %arg1 : i32, i32
  }
  func.func @transform_2(%arg0: i32, %arg1: i32, %arg2: i32) -> (i32, i32) {
    %c0_i32 = arith.constant 0 : i32
    return %arg0, %arg1 : i32, i32
  }
}

</mosaic_0001>

<bundles_post_ra>
// kernel: densenet_forward.32
= control target key start
LH: loop header
LB: loop body
LE: loop exit
PB: predicated region body
PF: predicated region fallthrough
CT: control target
= control target key end

     0   :  { %v304_v0 = vmov 0.0   ;;  %s518_s0 = inlined_call_operand.vmem [shape: f32[512,128], index: 0, kind: input, shape index: {}]   ;;  %s519_s1 = inlined_call_operand.vmem [shape: f32[1,128], index: 1, kind: output, shape index: {0}]   ;;  %s520_s2 = inlined_call_operand.vmem [shape: f32[1,128], index: 2, kind: output, shape index: {1}]  }
   0x1   :  { %14 = vst [vmem:[#allocation2] sm:$0x1] %v304_v0  ;;  %v16_v1 = vld [vmem:[%s518_s0] sm:$0xff]  ;;  %v17_v2 = vld [vmem:[%s518_s0 + $0x8] sm:$0xff]  ;;  %v18_v3 = vld [vmem:[%s518_s0 + $0x10] sm:$0xff] }
   0x2   :  { %15 = vst [vmem:[#allocation3] sm:$0x1] %v304_v0  ;;  %v19_v4 = vld [vmem:[%s518_s0 + $0x18] sm:$0xff]  ;;  %v81_v5 = vadd.f32 %v17_v2, %v16_v1  ;;  %v153_v6 = vmul.f32 %v16_v1, %v16_v1  ;;  %v154_v7 = vmul.f32 %v17_v2, %v17_v2  ;;  %v155_v8 = vmul.f32 %v18_v3, %v18_v3  ;;  %v20_v9 = vld [vmem:[%s518_s0 + $0x20] sm:$0xff]  ;;  %v21_v13 = vld [vmem:[%s518_s0 + $0x28] sm:$0xff] }
   0x3   :  { %v156_v11 = vmul.f32 %v19_v4, %v19_v4  ;;  %v157_v15 = vmul.f32 %v20_v9, %v20_v9  ;;  %v22_v17 = vld [vmem:[%s518_s0 + $0x30] sm:$0xff]  ;;  %v158_v19 = vmul.f32 %v21_v13, %v21_v13  ;;  %v23_v21 = vld [vmem:[%s518_s0 + $0x38] sm:$0xff]  ;;  %v24_v25 = vld [vmem:[%s518_s0 + $0x40] sm:$0xff] }
   0x4   :  { %v82_v10 = vadd.f32 %v81_v5, %v18_v3  ;;  %v217_v12 = vadd.f32 %v154_v7, %v153_v6  ;;  %v159_v23 = vmul.f32 %v22_v17, %v22_v17  ;;  %v160_v27 = vmul.f32 %v23_v21, %v23_v21  ;;  %v25_v29 = vld [vmem:[%s518_s0 + $0x48] sm:$0xff]  ;;  %v26_v33 = vld [vmem:[%s518_s0 + $0x50] sm:$0xff]  ;;  %v27_v37 = vld [vmem:[%s518_s0 + $0x58] sm:$0xff] }
   0x5   :  { %v161_v31 = vmul.f32 %v24_v25, %v24_v25  ;;  %v162_v35 = vmul.f32 %v25_v29, %v25_v29  ;;  %v163_v39 = vmul.f32 %v26_v33, %v26_v33  ;;  %v28_v41 = vld [vmem:[%s518_s0 + $0x60] sm:$0xff]  ;;  %v164_v43 = vmul.f32 %v27_v37, %v27_v37  ;;  %v29_v45 = vld [vmem:[%s518_s0 + $0x68] sm:$0xff]  ;;  %v30_v49 = vld [vmem:[%s518_s0 + $0x70] sm:$0xff] }
   0x6   :  { %v83_v14 = vadd.f32 %v82_v10, %v19_v4  ;;  %v218_v16 = vadd.f32 %v217_v12, %v155_v8  ;;  %v165_v47 = vmul.f32 %v28_v41, %v28_v41  ;;  %v166_v51 = vmul.f32 %v29_v45, %v29_v45  ;;  %v31_v53 = vld [vmem:[%s518_s0 + $0x78] sm:$0xff]  ;;  %v32_v57 = vld [vmem:[%s518_s0 + $0x80] sm:$0xff]  ;;  %v33_v61 = vld [vmem:[%s518_s0 + $0x88] sm:$0xff] }
   0x7   :  { %v167_v55 = vmul.f32 %v30_v49, %v30_v49  ;;  %v168_v59 = vmul.f32 %v31_v53, %v31_v53  ;;  %v169_v63 = vmul.f32 %v32_v57, %v32_v57  ;;  %v34_v1 = vld [vmem:[%s518_s0 + $0x90] sm:$0xff]  ;;  %v170_v3 = vmul.f32 %v33_v61, %v33_v61  ;;  %v35_v5 = vld [vmem:[%s518_s0 + $0x98] sm:$0xff] }
   0x8   :  { %v84_v18 = vadd.f32 %v83_v14, %v20_v9  ;;  %v219_v20 = vadd.f32 %v218_v16, %v156_v11  ;;  %v171_v7 = vmul.f32 %v34_v1, %v34_v1  ;;  %v36_v9 = vld [vmem:[%s518_s0 + $0xa0] sm:$0xff]  ;;  %v172_v11 = vmul.f32 %v35_v5, %v35_v5 }
   0xa   :  { %v85_v22 = vadd.f32 %v84_v18, %v21_v13  ;;  %v220_v24 = vadd.f32 %v219_v20, %v157_v15  ;;  %v37_v13 = vld [vmem:[%s518_s0 + $0xa8] sm:$0xff]  ;;  %v173_v15 = vmul.f32 %v36_v9, %v36_v9 }
   0xc   :  { %v86_v26 = vadd.f32 %v85_v22, %v22_v17  ;;  %v221_v28 = vadd.f32 %v220_v24, %v158_v19  ;;  %v38_v17 = vld [vmem:[%s518_s0 + $0xb0] sm:$0xff]  ;;  %v174_v19 = vmul.f32 %v37_v13, %v37_v13 }
   0xe   :  { %v87_v30 = vadd.f32 %v86_v26, %v23_v21  ;;  %v222_v32 = vadd.f32 %v221_v28, %v159_v23  ;;  %v39_v21 = vld [vmem:[%s518_s0 + $0xb8] sm:$0xff]  ;;  %v175_v23 = vmul.f32 %v38_v17, %v38_v17 }
  0x10   :  { %v88_v34 = vadd.f32 %v87_v30, %v24_v25  ;;  %v223_v36 = vadd.f32 %v222_v32, %v160_v27  ;;  %v40_v25 = vld [vmem:[%s518_s0 + $0xc0] sm:$0xff]  ;;  %v176_v27 = vmul.f32 %v39_v21, %v39_v21 }
  0x12   :  { %v89_v38 = vadd.f32 %v88_v34, %v25_v29  ;;  %v224_v40 = vadd.f32 %v223_v36, %v161_v31  ;;  %v41_v29 = vld [vmem:[%s518_s0 + $0xc8] sm:$0xff]  ;;  %v177_v31 = vmul.f32 %v40_v25, %v40_v25 }
  0x14   :  { %v90_v42 = vadd.f32 %v89_v38, %v26_v33  ;;  %v225_v44 = vadd.f32 %v224_v40, %v162_v35  ;;  %v42_v33 = vld [vmem:[%s518_s0 + $0xd0] sm:$0xff]  ;;  %v178_v35 = vmul.f32 %v41_v29, %v41_v29 }
  0x16   :  { %v91_v46 = vadd.f32 %v90_v42, %v27_v37  ;;  %v226_v48 = vadd.f32 %v225_v44, %v163_v39  ;;  %v43_v37 = vld [vmem:[%s518_s0 + $0xd8] sm:$0xff]  ;;  %v179_v39 = vmul.f32 %v42_v33, %v42_v33 }
  0x18   :  { %v92_v50 = vadd.f32 %v91_v46, %v28_v41  ;;  %v227_v52 = vadd.f32 %v226_v48, %v164_v43  ;;  %v44_v41 = vld [vmem:[%s518_s0 + $0xe0] sm:$0xff]  ;;  %v180_v43 = vmul.f32 %v43_v37, %v43_v37 }
  0x1a   :  { %v93_v54 = vadd.f32 %v92_v50, %v29_v45  ;;  %v228_v56 = vadd.f32 %v227_v52, %v165_v47  ;;  %v45_v45 = vld [vmem:[%s518_s0 + $0xe8] sm:$0xff]  ;;  %v181_v47 = vmul.f32 %v44_v41, %v44_v41 }
  0x1c   :  { %v94_v58 = vadd.f32 %v93_v54, %v30_v49  ;;  %v229_v60 = vadd.f32 %v228_v56, %v166_v51  ;;  %v46_v49 = vld [vmem:[%s518_s0 + $0xf0] sm:$0xff]  ;;  %v182_v51 = vmul.f32 %v45_v45, %v45_v45 }
  0x1e   :  { %v95_v62 = vadd.f32 %v94_v58, %v31_v53  ;;  %v230_v0 = vadd.f32 %v229_v60, %v167_v55  ;;  %v47_v53 = vld [vmem:[%s518_s0 + $0xf8] sm:$0xff]  ;;  %v183_v55 = vmul.f32 %v46_v49, %v46_v49 }
  0x20   :  { %v96_v2 = vadd.f32 %v95_v62, %v32_v57  ;;  %v231_v4 = vadd.f32 %v230_v0, %v168_v59  ;;  %v48_v57 = vld [vmem:[%s518_s0 + $0x100] sm:$0xff]  ;;  %v184_v59 = vmul.f32 %v47_v53, %v47_v53 }
  0x22   :  { %v97_v6 = vadd.f32 %v96_v2, %v33_v61  ;;  %v232_v8 = vadd.f32 %v231_v4, %v169_v63  ;;  %v49_v61 = vld [vmem:[%s518_s0 + $0x108] sm:$0xff]  ;;  %v185_v63 = vmul.f32 %v48_v57, %v48_v57 }
  0x24   :  { %v98_v10 = vadd.f32 %v97_v6, %v34_v1  ;;  %v233_v12 = vadd.f32 %v232_v8, %v170_v3  ;;  %v50_v1 = vld [vmem:[%s518_s0 + $0x110] sm:$0xff]  ;;  %v186_v3 = vmul.f32 %v49_v61, %v49_v61 }
  0x26   :  { %v99_v14 = vadd.f32 %v98_v10, %v35_v5  ;;  %v234_v16 = vadd.f32 %v233_v12, %v171_v7  ;;  %v51_v5 = vld [vmem:[%s518_s0 + $0x118] sm:$0xff]  ;;  %v187_v7 = vmul.f32 %v50_v1, %v50_v1 }
  0x28   :  { %v100_v18 = vadd.f32 %v99_v14, %v36_v9  ;;  %v235_v20 = vadd.f32 %v234_v16, %v172_v11  ;;  %v52_v9 = vld [vmem:[%s518_s0 + $0x120] sm:$0xff]  ;;  %v188_v11 = vmul.f32 %v51_v5, %v51_v5 }
  0x2a   :  { %v101_v22 = vadd.f32 %v100_v18, %v37_v13  ;;  %v236_v24 = vadd.f32 %v235_v20, %v173_v15  ;;  %v53_v13 = vld [vmem:[%s518_s0 + $0x128] sm:$0xff]  ;;  %v189_v15 = vmul.f32 %v52_v9, %v52_v9 }
  0x2c   :  { %v102_v26 = vadd.f32 %v101_v22, %v38_v17  ;;  %v237_v28 = vadd.f32 %v236_v24, %v174_v19  ;;  %v54_v17 = vld [vmem:[%s518_s0 + $0x130] sm:$0xff]  ;;  %v190_v19 = vmul.f32 %v53_v13, %v53_v13 }
  0x2e   :  { %v103_v30 = vadd.f32 %v102_v26, %v39_v21  ;;  %v238_v32 = vadd.f32 %v237_v28, %v175_v23  ;;  %v55_v21 = vld [vmem:[%s518_s0 + $0x138] sm:$0xff]  ;;  %v191_v23 = vmul.f32 %v54_v17, %v54_v17 }
  0x30   :  { %v104_v34 = vadd.f32 %v103_v30, %v40_v25  ;;  %v239_v36 = vadd.f32 %v238_v32, %v176_v27  ;;  %v56_v25 = vld [vmem:[%s518_s0 + $0x140] sm:$0xff]  ;;  %v192_v27 = vmul.f32 %v55_v21, %v55_v21 }
  0x32   :  { %v105_v38 = vadd.f32 %v104_v34, %v41_v29  ;;  %v240_v40 = vadd.f32 %v239_v36, %v177_v31  ;;  %v57_v29 = vld [vmem:[%s518_s0 + $0x148] sm:$0xff]  ;;  %v193_v31 = vmul.f32 %v56_v25, %v56_v25 }
  0x34   :  { %v106_v42 = vadd.f32 %v105_v38, %v42_v33  ;;  %v241_v44 = vadd.f32 %v240_v40, %v178_v35  ;;  %v58_v33 = vld [vmem:[%s518_s0 + $0x150] sm:$0xff]  ;;  %v194_v35 = vmul.f32 %v57_v29, %v57_v29 }
  0x36   :  { %v107_v46 = vadd.f32 %v106_v42, %v43_v37  ;;  %v242_v48 = vadd.f32 %v241_v44, %v179_v39  ;;  %v59_v37 = vld [vmem:[%s518_s0 + $0x158] sm:$0xff]  ;;  %v195_v39 = vmul.f32 %v58_v33, %v58_v33 }
  0x38   :  { %v108_v50 = vadd.f32 %v107_v46, %v44_v41  ;;  %v243_v52 = vadd.f32 %v242_v48, %v180_v43  ;;  %v60_v41 = vld [vmem:[%s518_s0 + $0x160] sm:$0xff]  ;;  %v196_v43 = vmul.f32 %v59_v37, %v59_v37 }
  0x3a   :  { %v109_v54 = vadd.f32 %v108_v50, %v45_v45  ;;  %v244_v56 = vadd.f32 %v243_v52, %v181_v47  ;;  %v61_v45 = vld [vmem:[%s518_s0 + $0x168] sm:$0xff]  ;;  %v197_v47 = vmul.f32 %v60_v41, %v60_v41 }
  0x3c   :  { %v110_v58 = vadd.f32 %v109_v54, %v46_v49  ;;  %v245_v60 = vadd.f32 %v244_v56, %v182_v51  ;;  %v62_v49 = vld [vmem:[%s518_s0 + $0x170] sm:$0xff]  ;;  %v198_v51 = vmul.f32 %v61_v45, %v61_v45 }
  0x3e   :  { %v111_v62 = vadd.f32 %v110_v58, %v47_v53  ;;  %v246_v0 = vadd.f32 %v245_v60, %v183_v55  ;;  %v63_v53 = vld [vmem:[%s518_s0 + $0x178] sm:$0xff]  ;;  %v199_v55 = vmul.f32 %v62_v49, %v62_v49 }
  0x40   :  { %v112_v2 = vadd.f32 %v111_v62, %v48_v57  ;;  %v247_v4 = vadd.f32 %v246_v0, %v184_v59  ;;  %v64_v57 = vld [vmem:[%s518_s0 + $0x180] sm:$0xff]  ;;  %v200_v59 = vmul.f32 %v63_v53, %v63_v53 }
  0x42   :  { %v113_v6 = vadd.f32 %v112_v2, %v49_v61  ;;  %v248_v8 = vadd.f32 %v247_v4, %v185_v63  ;;  %v65_v61 = vld [vmem:[%s518_s0 + $0x188] sm:$0xff]  ;;  %v201_v63 = vmul.f32 %v64_v57, %v64_v57 }
  0x44   :  { %v114_v10 = vadd.f32 %v113_v6, %v50_v1  ;;  %v249_v12 = vadd.f32 %v248_v8, %v186_v3  ;;  %v66_v1 = vld [vmem:[%s518_s0 + $0x190] sm:$0xff]  ;;  %v202_v3 = vmul.f32 %v65_v61, %v65_v61 }
  0x46   :  { %v115_v14 = vadd.f32 %v114_v10, %v51_v5  ;;  %v250_v16 = vadd.f32 %v249_v12, %v187_v7  ;;  %v67_v5 = vld [vmem:[%s518_s0 + $0x198] sm:$0xff]  ;;  %v203_v7 = vmul.f32 %v66_v1, %v66_v1 }
  0x48   :  { %v116_v18 = vadd.f32 %v115_v14, %v52_v9  ;;  %v251_v20 = vadd.f32 %v250_v16, %v188_v11  ;;  %v68_v9 = vld [vmem:[%s518_s0 + $0x1a0] sm:$0xff]  ;;  %v204_v11 = vmul.f32 %v67_v5, %v67_v5 }
  0x4a   :  { %v117_v22 = vadd.f32 %v116_v18, %v53_v13  ;;  %v252_v24 = vadd.f32 %v251_v20, %v189_v15  ;;  %v69_v13 = vld [vmem:[%s518_s0 + $0x1a8] sm:$0xff]  ;;  %v205_v15 = vmul.f32 %v68_v9, %v68_v9 }
  0x4c   :  { %v118_v26 = vadd.f32 %v117_v22, %v54_v17  ;;  %v253_v28 = vadd.f32 %v252_v24, %v190_v19  ;;  %v70_v17 = vld [vmem:[%s518_s0 + $0x1b0] sm:$0xff]  ;;  %v206_v19 = vmul.f32 %v69_v13, %v69_v13 }
  0x4e   :  { %v119_v30 = vadd.f32 %v118_v26, %v55_v21  ;;  %v254_v32 = vadd.f32 %v253_v28, %v191_v23  ;;  %v71_v21 = vld [vmem:[%s518_s0 + $0x1b8] sm:$0xff]  ;;  %v207_v23 = vmul.f32 %v70_v17, %v70_v17 }
  0x50   :  { %v120_v34 = vadd.f32 %v119_v30, %v56_v25  ;;  %v255_v36 = vadd.f32 %v254_v32, %v192_v27  ;;  %v72_v25 = vld [vmem:[%s518_s0 + $0x1c0] sm:$0xff]  ;;  %v208_v27 = vmul.f32 %v71_v21, %v71_v21 }
  0x52   :  { %v121_v38 = vadd.f32 %v120_v34, %v57_v29  ;;  %v256_v40 = vadd.f32 %v255_v36, %v193_v31  ;;  %v73_v29 = vld [vmem:[%s518_s0 + $0x1c8] sm:$0xff]  ;;  %v209_v31 = vmul.f32 %v72_v25, %v72_v25 }
  0x54   :  { %v122_v42 = vadd.f32 %v121_v38, %v58_v33  ;;  %v257_v44 = vadd.f32 %v256_v40, %v194_v35  ;;  %v74_v33 = vld [vmem:[%s518_s0 + $0x1d0] sm:$0xff]  ;;  %v210_v35 = vmul.f32 %v73_v29, %v73_v29 }
  0x56   :  { %v123_v46 = vadd.f32 %v122_v42, %v59_v37  ;;  %v258_v48 = vadd.f32 %v257_v44, %v195_v39  ;;  %v75_v37 = vld [vmem:[%s518_s0 + $0x1d8] sm:$0xff]  ;;  %v211_v39 = vmul.f32 %v74_v33, %v74_v33 }
  0x58   :  { %v124_v50 = vadd.f32 %v123_v46, %v60_v41  ;;  %v259_v52 = vadd.f32 %v258_v48, %v196_v43  ;;  %v76_v41 = vld [vmem:[%s518_s0 + $0x1e0] sm:$0xff]  ;;  %v212_v43 = vmul.f32 %v75_v37, %v75_v37 }
  0x5a   :  { %v125_v54 = vadd.f32 %v124_v50, %v61_v45  ;;  %v260_v56 = vadd.f32 %v259_v52, %v197_v47  ;;  %v77_v45 = vld [vmem:[%s518_s0 + $0x1e8] sm:$0xff]  ;;  %v213_v47 = vmul.f32 %v76_v41, %v76_v41 }
  0x5c   :  { %v126_v58 = vadd.f32 %v125_v54, %v62_v49  ;;  %v261_v60 = vadd.f32 %v260_v56, %v198_v51  ;;  %v78_v49 = vld [vmem:[%s518_s0 + $0x1f0] sm:$0xff]  ;;  %v214_v51 = vmul.f32 %v77_v45, %v77_v45 }
  0x5e   :  { %v127_v62 = vadd.f32 %v126_v58, %v63_v53  ;;  %v262_v0 = vadd.f32 %v261_v60, %v199_v55  ;;  %v79_v53 = vld [vmem:[%s518_s0 + $0x1f8] sm:$0xff]  ;;  %v215_v55 = vmul.f32 %v78_v49, %v78_v49 }
  0x5f   :  { %v216_v58 = vmul.f32 %v79_v53, %v79_v53 }
  0x60   :  { %v128_v2 = vadd.f32 %v127_v62, %v64_v57  ;;  %v263_v4 = vadd.f32 %v262_v0, %v200_v59 }
  0x62   :  { %v129_v6 = vadd.f32 %v128_v2, %v65_v61  ;;  %v264_v8 = vadd.f32 %v263_v4, %v201_v63 }
  0x64   :  { %v130_v10 = vadd.f32 %v129_v6, %v66_v1  ;;  %v265_v12 = vadd.f32 %v264_v8, %v202_v3 }
  0x66   :  { %v131_v14 = vadd.f32 %v130_v10, %v67_v5  ;;  %v266_v16 = vadd.f32 %v265_v12, %v203_v7  ;;  %v80_v7 = vld [vmem:[#allocation2] sm:$0x1]  ;;  %v152_v12 = vld [vmem:[#allocation3] sm:$0x1] }
  0x68   :  { %v132_v18 = vadd.f32 %v131_v14, %v68_v9  ;;  %v267_v20 = vadd.f32 %v266_v16, %v204_v11 }
  0x6a   :  { %v133_v22 = vadd.f32 %v132_v18, %v69_v13  ;;  %v268_v24 = vadd.f32 %v267_v20, %v205_v15 }
  0x6c   :  { %v134_v26 = vadd.f32 %v133_v22, %v70_v17  ;;  %v269_v28 = vadd.f32 %v268_v24, %v206_v19 }
  0x6e   :  { %v135_v30 = vadd.f32 %v134_v26, %v71_v21  ;;  %v270_v32 = vadd.f32 %v269_v28, %v207_v23 }
  0x70   :  { %v136_v34 = vadd.f32 %v135_v30, %v72_v25  ;;  %v271_v36 = vadd.f32 %v270_v32, %v208_v27 }
  0x72   :  { %v137_v38 = vadd.f32 %v136_v34, %v73_v29  ;;  %v272_v40 = vadd.f32 %v271_v36, %v209_v31 }
  0x74   :  { %v138_v42 = vadd.f32 %v137_v38, %v74_v33  ;;  %v273_v44 = vadd.f32 %v272_v40, %v210_v35 }
  0x76   :  { %v139_v46 = vadd.f32 %v138_v42, %v75_v37  ;;  %v274_v48 = vadd.f32 %v273_v44, %v211_v39 }
  0x78   :  { %v140_v50 = vadd.f32 %v139_v46, %v76_v41  ;;  %v275_v52 = vadd.f32 %v274_v48, %v212_v43 }
  0x7a   :  { %v141_v54 = vadd.f32 %v140_v50, %v77_v45  ;;  %v276_v56 = vadd.f32 %v275_v52, %v213_v47 }
  0x7c   :  { %v142_v57 = vadd.f32 %v141_v54, %v78_v49  ;;  %v277_v59 = vadd.f32 %v276_v56, %v214_v51 }
  0x7e   :  { %v143_v60 = vadd.f32 %v142_v57, %v79_v53  ;;  %v278_v61 = vadd.f32 %v277_v59, %v215_v55 }
  0x80   :  { %v144_v62 = vrot.slane %v143_v60, 4  ;;  %v279_v63 = vadd.f32 %v278_v61, %v216_v58 }
  0x82   :  { %v145_v0 = vadd.f32 %v144_v62, %v143_v60  ;;  %v280_v1 = vrot.slane %v279_v63, 4 }
  0x84   :  { %v146_v2 = vrot.slane %v145_v0, 2  ;;  %v281_v3 = vadd.f32 %v280_v1, %v279_v63 }
  0x86   :  { %v147_v4 = vadd.f32 %v146_v2, %v145_v0  ;;  %v282_v5 = vrot.slane %v281_v3, 2 }
  0x88   :  { %v148_v6 = vrot.slane %v147_v4, 1  ;;  %v283_v8 = vadd.f32 %v282_v5, %v281_v3 }
  0x8a   :  { %v149_v9 = vadd.f32 %v148_v6, %v147_v4  ;;  %v284_v10 = vrot.slane %v283_v8, 1 }
  0x8c   :  { %v150_v11 = vadd.f32 %v149_v9, %v80_v7  ;;  %v285_v13 = vadd.f32 %v284_v10, %v283_v8 }
  0x8e   :  { %151 = vst [vmem:[#allocation2] sm:$0x1] %v150_v11  ;;  %v286_v14 = vadd.f32 %v285_v13, %v152_v12 }
  0x90   :  { %287 = vst [vmem:[#allocation3] sm:$0x1] %v286_v14 }
  0x95   :  { %v291_v15 = vld [vmem:[#allocation2] sm:$0x1] }
  0x96   :  { %292 = vst [vmem:[%s519_s1] sm:$0x1] %v291_v15 }
  0x97   :  { %v293_v16 = vld [vmem:[#allocation3] sm:$0x1] }
  0x98   :  { %294 = vst [vmem:[%s520_s2] sm:$0x1] %v293_v16 }

// kernel: densenet_forward.33
= control target key start
LH: loop header
LB: loop body
LE: loop exit
PB: predicated region body
PF: predicated region fallthrough
CT: control target
= control target key end

     0   :  { %s1049_s0 = inlined_call_operand.vmem [shape: f32[512,128], index: 0, kind: input, shape index: {}]   ;;  %s1050_s1 = inlined_call_operand.vmem [shape: f32[1,128], index: 1, kind: input, shape index: {}]   ;;  %s1051_s2 = inlined_call_operand.vmem [shape: f32[1,128], index: 2, kind: input, shape index: {}]   ;;  %s1052_s3 = inlined_call_operand.vmem [shape: bf16[512,128], index: 3, kind: output, shape index: {}]  }
   0x1   :  { %v14_v0 = vld [vmem:[%s1049_s0] sm:$0xff]  ;;  %v15_v1 = vld [vmem:[%s1049_s0 + $0x8] sm:$0xff]  ;;  %v16_v4 = vld [vmem:[%s1049_s0 + $0x10] sm:$0xff] }
   0x2   :  { %v632_v2 = vld [vmem:[%s1050_s1] ss:$0 sm:$0xff]  ;;  %v17_v5 = vld [vmem:[%s1049_s0 + $0x18] sm:$0xff]  ;;  %v19_v11 = vld [vmem:[%s1049_s0 + $0x28] sm:$0xff] }
   0x3   :  { %v637_v3 = vld [vmem:[%s1051_s2] ss:$0 sm:$0xff]  ;;  %v82_v7 = vmul.f32 %v632_v2, %v14_v0  ;;  %v83_v8 = vmul.f32 %v632_v2, %v15_v1  ;;  %v84_v9 = vmul.f32 %v632_v2, %v16_v4  ;;  %v85_v10 = vmul.f32 %v632_v2, %v17_v5  ;;  %v20_v12 = vld [vmem:[%s1049_s0 + $0x30] sm:$0xff]  ;;  %v21_v13 = vld [vmem:[%s1049_s0 + $0x38] sm:$0xff] }
   0x4   :  { %v18_v6 = vld [vmem:[%s1049_s0 + $0x20] sm:$0xff]  ;;  %v87_v15 = vmul.f32 %v632_v2, %v19_v11  ;;  %v88_v16 = vmul.f32 %v632_v2, %v20_v12  ;;  %v89_v17 = vmul.f32 %v632_v2, %v21_v13  ;;  %v23_v27 = vld [vmem:[%s1049_s0 + $0x48] sm:$0xff]  ;;  %v24_v32 = vld [vmem:[%s1049_s0 + $0x50] sm:$0xff] }
   0x5   :  { %v86_v14 = vmul.f32 %v632_v2, %v18_v6  ;;  %v150_v18 = vadd.f32 %v637_v3, %v82_v7  ;;  %v151_v19 = vadd.f32 %v637_v3, %v83_v8  ;;  %v152_v20 = vadd.f32 %v637_v3, %v84_v9  ;;  %v22_v26 = vld [vmem:[%s1049_s0 + $0x40] sm:$0xff]  ;;  %v25_v33 = vld [vmem:[%s1049_s0 + $0x58] sm:$0xff]  ;;  %v27_v39 = vld [vmem:[%s1049_s0 + $0x68] sm:$0xff] }
   0x6   :  { %v153_v21 = vadd.f32 %v637_v3, %v85_v10  ;;  %v155_v23 = vadd.f32 %v637_v3, %v87_v15  ;;  %v156_v24 = vadd.f32 %v637_v3, %v88_v16  ;;  %v157_v25 = vadd.f32 %v637_v3, %v89_v17  ;;  %v26_v38 = vld [vmem:[%s1049_s0 + $0x60] sm:$0xff]  ;;  %v28_v44 = vld [vmem:[%s1049_s0 + $0x70] sm:$0xff]  ;;  %v29_v45 = vld [vmem:[%s1049_s0 + $0x78] sm:$0xff] }
   0x7   :  { %v154_v22 = vadd.f32 %v637_v3, %v86_v14  ;;  %v214_v28 = vmax.f32 %v150_v18, 0.0  ;;  %v215_v29 = vmax.f32 %v151_v19, 0.0  ;;  %v216_v30 = vmax.f32 %v152_v20, 0.0  ;;  %v30_v58 = vld [vmem:[%s1049_s0 + $0x80] sm:$0xff]  ;;  %v31_v63 = vld [vmem:[%s1049_s0 + $0x88] sm:$0xff]  ;;  %v32_v6 = vld [vmem:[%s1049_s0 + $0x90] sm:$0xff] }
   0x8   :  { %v217_v31 = vmax.f32 %v153_v21, 0.0  ;;  %v219_v35 = vmax.f32 %v155_v23, 0.0  ;;  %v220_v36 = vmax.f32 %v156_v24, 0.0  ;;  %v221_v37 = vmax.f32 %v157_v25, 0.0  ;;  %v33_v7 = vld [vmem:[%s1049_s0 + $0x98] sm:$0xff]  ;;  %v34_v12 = vld [vmem:[%s1049_s0 + $0xa0] sm:$0xff] }
   0x9   :  { %v218_v34 = vmax.f32 %v154_v22, 0.0  ;;  %v413_v40 = vpack.c.bf16 %v215_v29, %v214_v28  ;;  %v90_v42 = vmul.f32 %v632_v2, %v22_v26  ;;  %v91_v43 = vmul.f32 %v632_v2, %v23_v27  ;;  %v35_v13 = vld [vmem:[%s1049_s0 + $0xa8] sm:$0xff]  ;;  %v36_v18 = vld [vmem:[%s1049_s0 + $0xb0] sm:$0xff]  ;;  %v37_v23 = vld [vmem:[%s1049_s0 + $0xb8] sm:$0xff] }
   0xa   :  { %v418_v41 = vpack.c.bf16 %v217_v31, %v216_v30  ;;  %v428_v47 = vpack.c.bf16 %v221_v37, %v220_v36  ;;  %v92_v48 = vmul.f32 %v632_v2, %v24_v32  ;;  %v93_v49 = vmul.f32 %v632_v2, %v25_v33  ;;  %v38_v28 = vld [vmem:[%s1049_s0 + $0xc0] sm:$0xff]  ;;  %v39_v37 = vld [vmem:[%s1049_s0 + $0xc8] sm:$0xff] }
   0xb   :  { %v423_v46 = vpack.c.bf16 %v219_v35, %v218_v34  ;;  %414 = vst [vmem:[%s1052_s3] sm:$0xff] %v413_v40   ;;  %v158_v50 = vadd.f32 %v637_v3, %v90_v42  ;;  %v159_v51 = vadd.f32 %v637_v3, %v91_v43  ;;  %v94_v52 = vmul.f32 %v632_v2, %v26_v38  ;;  %v40_v42 = vld [vmem:[%s1049_s0 + $0xd0] sm:$0xff]  ;;  %v41_v43 = vld [vmem:[%s1049_s0 + $0xd8] sm:$0xff] }
   0xc   :  { %v95_v53 = vmul.f32 %v632_v2, %v27_v39  ;;  %570 = vst [vmem:[%s1052_s3 + $0x8] sm:$0xff] %v418_v41   ;;  %v160_v54 = vadd.f32 %v637_v3, %v92_v48  ;;  %v161_v55 = vadd.f32 %v637_v3, %v93_v49  ;;  %v96_v56 = vmul.f32 %v632_v2, %v28_v44  ;;  %v42_v48 = vld [vmem:[%s1049_s0 + $0xe0] sm:$0xff]  ;;  %v43_v49 = vld [vmem:[%s1049_s0 + $0xe8] sm:$0xff] }
   0xd   :  { %v97_v57 = vmul.f32 %v632_v2, %v29_v45  ;;  %571 = vst [vmem:[%s1052_s3 + $0x10] sm:$0xff] %v423_v46   ;;  %v222_v59 = vmax.f32 %v158_v50, 0.0  ;;  %v223_v60 = vmax.f32 %v159_v51, 0.0  ;;  %v162_v61 = vadd.f32 %v637_v3, %v94_v52 }
   0xe   :  { %v163_v62 = vadd.f32 %v637_v3, %v95_v53  ;;  %572 = vst [vmem:[%s1052_s3 + $0x18] sm:$0xff] %v428_v47   ;;  %v224_v0 = vmax.f32 %v160_v54, 0.0  ;;  %v225_v1 = vmax.f32 %v161_v55, 0.0  ;;  %v164_v4 = vadd.f32 %v637_v3, %v96_v56  ;;  %v44_v54 = vld [vmem:[%s1049_s0 + $0xf0] sm:$0xff] }
   0xf   :  { %v165_v5 = vadd.f32 %v637_v3, %v97_v57  ;;  %v433_v8 = vpack.c.bf16 %v223_v60, %v222_v59  ;;  %v226_v9 = vmax.f32 %v162_v61, 0.0  ;;  %v98_v11 = vmul.f32 %v632_v2, %v30_v58  ;;  %v45_v59 = vld [vmem:[%s1049_s0 + $0xf8] sm:$0xff] }
  0x10   :  { %v227_v10 = vmax.f32 %v163_v62, 0.0  ;;  %v438_v14 = vpack.c.bf16 %v225_v1, %v224_v0  ;;  %v228_v15 = vmax.f32 %v164_v4, 0.0  ;;  %v99_v17 = vmul.f32 %v632_v2, %v31_v63  ;;  %v46_v0 = vld [vmem:[%s1049_s0 + $0x100] sm:$0xff] }
  0x11   :  { %v229_v16 = vmax.f32 %v165_v5, 0.0  ;;  %573 = vst [vmem:[%s1052_s3 + $0x20] sm:$0xff] %v433_v8   ;;  %v166_v20 = vadd.f32 %v637_v3, %v98_v11  ;;  %v100_v21 = vmul.f32 %v632_v2, %v32_v6  ;;  %v101_v22 = vmul.f32 %v632_v2, %v33_v7  ;;  %v47_v11 = vld [vmem:[%s1049_s0 + $0x108] sm:$0xff] }
  0x12   :  { %v443_v19 = vpack.c.bf16 %v227_v10, %v226_v9  ;;  %574 = vst [vmem:[%s1052_s3 + $0x28] sm:$0xff] %v438_v14   ;;  %v167_v25 = vadd.f32 %v637_v3, %v99_v17  ;;  %v102_v26 = vmul.f32 %v632_v2, %v34_v12  ;;  %v103_v27 = vmul.f32 %v632_v2, %v35_v13  ;;  %v49_v17 = vld [vmem:[%s1049_s0 + $0x118] sm:$0xff] }
  0x13   :  { %v448_v24 = vpack.c.bf16 %v229_v16, %v228_v15  ;;  %v230_v29 = vmax.f32 %v166_v20, 0.0  ;;  %v168_v30 = vadd.f32 %v637_v3, %v100_v21  ;;  %v169_v31 = vadd.f32 %v637_v3, %v101_v22  ;;  %v48_v16 = vld [vmem:[%s1049_s0 + $0x110] sm:$0xff]  ;;  %v50_v22 = vld [vmem:[%s1049_s0 + $0x120] sm:$0xff] }
  0x14   :  { %575 = vst [vmem:[%s1052_s3 + $0x30] sm:$0xff] %v443_v19   ;;  %v104_v32 = vmul.f32 %v632_v2, %v36_v18  ;;  %v231_v33 = vmax.f32 %v167_v25, 0.0  ;;  %v170_v34 = vadd.f32 %v637_v3, %v102_v26  ;;  %v171_v35 = vadd.f32 %v637_v3, %v103_v27 }
  0x15   :  { %576 = vst [vmem:[%s1052_s3 + $0x38] sm:$0xff] %v448_v24   ;;  %v105_v36 = vmul.f32 %v632_v2, %v37_v23  ;;  %v232_v38 = vmax.f32 %v168_v30, 0.0  ;;  %v233_v39 = vmax.f32 %v169_v31, 0.0  ;;  %v106_v41 = vmul.f32 %v632_v2, %v38_v28  ;;  %v51_v23 = vld [vmem:[%s1049_s0 + $0x128] sm:$0xff]  ;;  %v52_v28 = vld [vmem:[%s1049_s0 + $0x130] sm:$0xff] }
  0x16   :  { %v172_v40 = vadd.f32 %v637_v3, %v104_v32  ;;  %v453_v44 = vpack.c.bf16 %v231_v33, %v230_v29  ;;  %v234_v45 = vmax.f32 %v170_v34, 0.0  ;;  %v235_v46 = vmax.f32 %v171_v35, 0.0  ;;  %v53_v33 = vld [vmem:[%s1049_s0 + $0x138] sm:$0xff] }
  0x17   :  { %v173_v47 = vadd.f32 %v637_v3, %v105_v36  ;;  %v458_v50 = vpack.c.bf16 %v233_v39, %v232_v38  ;;  %v107_v52 = vmul.f32 %v632_v2, %v39_v37  ;;  %v174_v53 = vadd.f32 %v637_v3, %v106_v41  ;;  %v54_v38 = vld [vmem:[%s1049_s0 + $0x140] sm:$0xff] }
  0x18   :  { %v236_v51 = vmax.f32 %v172_v40, 0.0  ;;  %577 = vst [vmem:[%s1052_s3 + $0x40] sm:$0xff] %v453_v44   ;;  %v463_v55 = vpack.c.bf16 %v235_v46, %v234_v45  ;;  %v108_v57 = vmul.f32 %v632_v2, %v40_v42  ;;  %v109_v58 = vmul.f32 %v632_v2, %v41_v43 }
  0x19   :  { %v237_v56 = vmax.f32 %v173_v47, 0.0  ;;  %578 = vst [vmem:[%s1052_s3 + $0x48] sm:$0xff] %v458_v50   ;;  %v175_v60 = vadd.f32 %v637_v3, %v107_v52  ;;  %v238_v61 = vmax.f32 %v174_v53, 0.0  ;;  %v110_v62 = vmul.f32 %v632_v2, %v42_v48  ;;  %v55_v47 = vld [vmem:[%s1049_s0 + $0x148] sm:$0xff]  ;;  %v56_v52 = vld [vmem:[%s1049_s0 + $0x150] sm:$0xff]  ;;  %v57_v53 = vld [vmem:[%s1049_s0 + $0x158] sm:$0xff] }
  0x1a   :  { %v111_v63 = vmul.f32 %v632_v2, %v43_v49  ;;  %579 = vst [vmem:[%s1052_s3 + $0x50] sm:$0xff] %v463_v55   ;;  %v176_v4 = vadd.f32 %v637_v3, %v108_v57  ;;  %v177_v5 = vadd.f32 %v637_v3, %v109_v58  ;;  %v112_v6 = vmul.f32 %v632_v2, %v44_v54  ;;  %v58_v58 = vld [vmem:[%s1049_s0 + $0x160] sm:$0xff] }
  0x1b   :  { %v468_v1 = vpack.c.bf16 %v237_v56, %v236_v51  ;;  %v239_v7 = vmax.f32 %v175_v60, 0.0  ;;  %v178_v8 = vadd.f32 %v637_v3, %v110_v62  ;;  %v113_v10 = vmul.f32 %v632_v2, %v45_v59  ;;  %v59_v59 = vld [vmem:[%s1049_s0 + $0x168] sm:$0xff] }
  0x1c   :  { %v179_v9 = vadd.f32 %v637_v3, %v111_v63  ;;  %v240_v12 = vmax.f32 %v176_v4, 0.0  ;;  %v241_v13 = vmax.f32 %v177_v5, 0.0  ;;  %v180_v14 = vadd.f32 %v637_v3, %v112_v6 }
  0x1d   :  { %580 = vst [vmem:[%s1052_s3 + $0x58] sm:$0xff] %v468_v1   ;;  %v114_v15 = vmul.f32 %v632_v2, %v46_v0  ;;  %v473_v18 = vpack.c.bf16 %v239_v7, %v238_v61  ;;  %v242_v19 = vmax.f32 %v178_v8, 0.0  ;;  %v181_v21 = vadd.f32 %v637_v3, %v113_v10  ;;  %v60_v0 = vld [vmem:[%s1049_s0 + $0x170] sm:$0xff]  ;;  %v61_v7 = vld [vmem:[%s1049_s0 + $0x178] sm:$0xff] }
  0x1e   :  { %v243_v20 = vmax.f32 %v179_v9, 0.0  ;;  %v478_v24 = vpack.c.bf16 %v241_v13, %v240_v12  ;;  %v244_v25 = vmax.f32 %v180_v14, 0.0  ;;  %v115_v26 = vmul.f32 %v632_v2, %v47_v11  ;;  %v62_v12 = vld [vmem:[%s1049_s0 + $0x180] sm:$0xff] }
  0x1f   :  { %v182_v27 = vadd.f32 %v637_v3, %v114_v15  ;;  %581 = vst [vmem:[%s1052_s3 + $0x60] sm:$0xff] %v473_v18   ;;  %v245_v30 = vmax.f32 %v181_v21, 0.0  ;;  %v116_v31 = vmul.f32 %v632_v2, %v48_v16  ;;  %v117_v32 = vmul.f32 %v632_v2, %v49_v17  ;;  %v63_v21 = vld [vmem:[%s1049_s0 + $0x188] sm:$0xff] }
  0x20   :  { %v483_v29 = vpack.c.bf16 %v243_v20, %v242_v19  ;;  %582 = vst [vmem:[%s1052_s3 + $0x68] sm:$0xff] %v478_v24   ;;  %v183_v34 = vadd.f32 %v637_v3, %v115_v26  ;;  %v118_v36 = vmul.f32 %v632_v2, %v50_v22  ;;  %v119_v37 = vmul.f32 %v632_v2, %v51_v23  ;;  %v64_v26 = vld [vmem:[%s1049_s0 + $0x190] sm:$0xff] }
  0x21   :  { %v246_v35 = vmax.f32 %v182_v27, 0.0  ;;  %v488_v39 = vpack.c.bf16 %v245_v30, %v244_v25  ;;  %v184_v40 = vadd.f32 %v637_v3, %v116_v31  ;;  %v185_v41 = vadd.f32 %v637_v3, %v117_v32  ;;  %v65_v27 = vld [vmem:[%s1049_s0 + $0x198] sm:$0xff]  ;;  %v66_v32 = vld [vmem:[%s1049_s0 + $0x1a0] sm:$0xff] }
  0x22   :  { %583 = vst [vmem:[%s1052_s3 + $0x70] sm:$0xff] %v483_v29   ;;  %v120_v42 = vmul.f32 %v632_v2, %v52_v28  ;;  %v247_v43 = vmax.f32 %v183_v34, 0.0  ;;  %v186_v44 = vadd.f32 %v637_v3, %v118_v36  ;;  %v187_v45 = vadd.f32 %v637_v3, %v119_v37 }
  0x23   :  { %v121_v46 = vmul.f32 %v632_v2, %v53_v33  ;;  %584 = vst [vmem:[%s1052_s3 + $0x78] sm:$0xff] %v488_v39   ;;  %v248_v48 = vmax.f32 %v184_v40, 0.0  ;;  %v249_v49 = vmax.f32 %v185_v41, 0.0  ;;  %v122_v51 = vmul.f32 %v632_v2, %v54_v38  ;;  %v67_v33 = vld [vmem:[%s1049_s0 + $0x1a8] sm:$0xff]  ;;  %v68_v38 = vld [vmem:[%s1049_s0 + $0x1b0] sm:$0xff] }
  0x24   :  { %v188_v50 = vadd.f32 %v637_v3, %v120_v42  ;;  %v493_v54 = vpack.c.bf16 %v247_v43, %v246_v35  ;;  %v250_v55 = vmax.f32 %v186_v44, 0.0  ;;  %v251_v56 = vmax.f32 %v187_v45, 0.0  ;;  %v69_v43 = vld [vmem:[%s1049_s0 + $0x1b8] sm:$0xff] }
  0x25   :  { %v189_v57 = vadd.f32 %v637_v3, %v121_v46  ;;  %v498_v60 = vpack.c.bf16 %v249_v49, %v248_v48  ;;  %v123_v62 = vmul.f32 %v632_v2, %v55_v47  ;;  %v190_v63 = vadd.f32 %v637_v3, %v122_v51  ;;  %v70_v48 = vld [vmem:[%s1049_s0 + $0x1c0] sm:$0xff] }
  0x26   :  { %v252_v61 = vmax.f32 %v188_v50, 0.0  ;;  %585 = vst [vmem:[%s1052_s3 + $0x80] sm:$0xff] %v493_v54   ;;  %v503_v1 = vpack.c.bf16 %v251_v56, %v250_v55  ;;  %v124_v5 = vmul.f32 %v632_v2, %v56_v52  ;;  %v125_v6 = vmul.f32 %v632_v2, %v57_v53 }
  0x27   :  { %v253_v4 = vmax.f32 %v189_v57, 0.0  ;;  %586 = vst [vmem:[%s1052_s3 + $0x88] sm:$0xff] %v498_v60   ;;  %v191_v8 = vadd.f32 %v637_v3, %v123_v62  ;;  %v254_v9 = vmax.f32 %v190_v63, 0.0  ;;  %v126_v10 = vmul.f32 %v632_v2, %v58_v58  ;;  %v71_v57 = vld [vmem:[%s1049_s0 + $0x1c8] sm:$0xff]  ;;  %v72_v62 = vld [vmem:[%s1049_s0 + $0x1d0] sm:$0xff]  ;;  %v73_v63 = vld [vmem:[%s1049_s0 + $0x1d8] sm:$0xff] }
  0x28   :  { %v127_v11 = vmul.f32 %v632_v2, %v59_v59  ;;  %587 = vst [vmem:[%s1052_s3 + $0x90] sm:$0xff] %v503_v1   ;;  %v192_v14 = vadd.f32 %v637_v3, %v124_v5  ;;  %v193_v15 = vadd.f32 %v637_v3, %v125_v6  ;;  %v128_v16 = vmul.f32 %v632_v2, %v60_v0  ;;  %v74_v6 = vld [vmem:[%s1049_s0 + $0x1e0] sm:$0xff] }
  0x29   :  { %v508_v13 = vpack.c.bf16 %v253_v4, %v252_v61  ;;  %v255_v17 = vmax.f32 %v191_v8, 0.0  ;;  %v194_v18 = vadd.f32 %v637_v3, %v126_v10  ;;  %v129_v20 = vmul.f32 %v632_v2, %v61_v7  ;;  %v75_v7 = vld [vmem:[%s1049_s0 + $0x1e8] sm:$0xff] }
  0x2a   :  { %v195_v19 = vadd.f32 %v637_v3, %v127_v11  ;;  %v256_v22 = vmax.f32 %v192_v14, 0.0  ;;  %v257_v23 = vmax.f32 %v193_v15, 0.0  ;;  %v196_v24 = vadd.f32 %v637_v3, %v128_v16 }
  0x2b   :  { %588 = vst [vmem:[%s1052_s3 + $0x98] sm:$0xff] %v508_v13   ;;  %v130_v25 = vmul.f32 %v632_v2, %v62_v12  ;;  %v513_v28 = vpack.c.bf16 %v255_v17, %v254_v9  ;;  %v258_v29 = vmax.f32 %v194_v18, 0.0  ;;  %v197_v31 = vadd.f32 %v637_v3, %v129_v20  ;;  %v76_v12 = vld [vmem:[%s1049_s0 + $0x1f0] sm:$0xff]  ;;  %v77_v17 = vld [vmem:[%s1049_s0 + $0x1f8] sm:$0xff] }
  0x2c   :  { %v259_v30 = vmax.f32 %v195_v19, 0.0  ;;  %v518_v34 = vpack.c.bf16 %v257_v23, %v256_v22  ;;  %v260_v35 = vmax.f32 %v196_v24, 0.0  ;;  %v131_v36 = vmul.f32 %v632_v2, %v63_v21 }
  0x2d   :  { %v198_v37 = vadd.f32 %v637_v3, %v130_v25  ;;  %589 = vst [vmem:[%s1052_s3 + $0xa0] sm:$0xff] %v513_v28   ;;  %v261_v40 = vmax.f32 %v197_v31, 0.0  ;;  %v132_v41 = vmul.f32 %v632_v2, %v64_v26  ;;  %v133_v42 = vmul.f32 %v632_v2, %v65_v27 }
  0x2e   :  { %v523_v39 = vpack.c.bf16 %v259_v30, %v258_v29  ;;  %590 = vst [vmem:[%s1052_s3 + $0xa8] sm:$0xff] %v518_v34   ;;  %v199_v44 = vadd.f32 %v637_v3, %v131_v36  ;;  %v134_v46 = vmul.f32 %v632_v2, %v66_v32  ;;  %v135_v47 = vmul.f32 %v632_v2, %v67_v33 }
  0x2f   :  { %v262_v45 = vmax.f32 %v198_v37, 0.0  ;;  %v528_v49 = vpack.c.bf16 %v261_v40, %v260_v35  ;;  %v200_v50 = vadd.f32 %v637_v3, %v132_v41  ;;  %v201_v51 = vadd.f32 %v637_v3, %v133_v42 }
  0x30   :  { %591 = vst [vmem:[%s1052_s3 + $0xb0] sm:$0xff] %v523_v39   ;;  %v136_v52 = vmul.f32 %v632_v2, %v68_v38  ;;  %v263_v53 = vmax.f32 %v199_v44, 0.0  ;;  %v202_v54 = vadd.f32 %v637_v3, %v134_v46  ;;  %v203_v55 = vadd.f32 %v637_v3, %v135_v47 }
  0x31   :  { %v137_v56 = vmul.f32 %v632_v2, %v69_v43  ;;  %592 = vst [vmem:[%s1052_s3 + $0xb8] sm:$0xff] %v528_v49   ;;  %v264_v58 = vmax.f32 %v200_v50, 0.0  ;;  %v265_v59 = vmax.f32 %v201_v51, 0.0  ;;  %v138_v61 = vmul.f32 %v632_v2, %v70_v48 }
  0x32   :  { %v204_v60 = vadd.f32 %v637_v3, %v136_v52  ;;  %v533_v0 = vpack.c.bf16 %v263_v53, %v262_v45  ;;  %v266_v1 = vmax.f32 %v202_v54, 0.0  ;;  %v267_v4 = vmax.f32 %v203_v55, 0.0 }
  0x33   :  { %v205_v5 = vadd.f32 %v637_v3, %v137_v56  ;;  %v538_v8 = vpack.c.bf16 %v265_v59, %v264_v58  ;;  %v139_v10 = vmul.f32 %v632_v2, %v71_v57  ;;  %v206_v11 = vadd.f32 %v637_v3, %v138_v61 }
  0x34   :  { %v268_v9 = vmax.f32 %v204_v60, 0.0  ;;  %593 = vst [vmem:[%s1052_s3 + $0xc0] sm:$0xff] %v533_v0   ;;  %v543_v13 = vpack.c.bf16 %v267_v4, %v266_v1  ;;  %v140_v15 = vmul.f32 %v632_v2, %v72_v62  ;;  %v141_v16 = vmul.f32 %v632_v2, %v73_v63 }
  0x35   :  { %v269_v14 = vmax.f32 %v205_v5, 0.0  ;;  %594 = vst [vmem:[%s1052_s3 + $0xc8] sm:$0xff] %v538_v8   ;;  %v207_v18 = vadd.f32 %v637_v3, %v139_v10  ;;  %v270_v19 = vmax.f32 %v206_v11, 0.0  ;;  %v142_v20 = vmul.f32 %v632_v2, %v74_v6 }
  0x36   :  { %v143_v21 = vmul.f32 %v632_v2, %v75_v7  ;;  %595 = vst [vmem:[%s1052_s3 + $0xd0] sm:$0xff] %v543_v13   ;;  %v208_v23 = vadd.f32 %v637_v3, %v140_v15  ;;  %v209_v24 = vadd.f32 %v637_v3, %v141_v16  ;;  %v144_v25 = vmul.f32 %v632_v2, %v76_v12 }
  0x37   :  { %v548_v22 = vpack.c.bf16 %v269_v14, %v268_v9  ;;  %v271_v26 = vmax.f32 %v207_v18, 0.0  ;;  %v210_v27 = vadd.f32 %v637_v3, %v142_v20  ;;  %v145_v29 = vmul.f32 %v632_v2, %v77_v17 }
  0x38   :  { %v211_v28 = vadd.f32 %v637_v3, %v143_v21  ;;  %v272_v30 = vmax.f32 %v208_v23, 0.0  ;;  %v273_v31 = vmax.f32 %v209_v24, 0.0  ;;  %v212_v32 = vadd.f32 %v637_v3, %v144_v25 }
  0x39   :  { %596 = vst [vmem:[%s1052_s3 + $0xd8] sm:$0xff] %v548_v22   ;;  %v553_v33 = vpack.c.bf16 %v271_v26, %v270_v19  ;;  %v274_v34 = vmax.f32 %v210_v27, 0.0  ;;  %v213_v36 = vadd.f32 %v637_v3, %v145_v29 }
  0x3a   :  { %v275_v35 = vmax.f32 %v211_v28, 0.0  ;;  %v558_v37 = vpack.c.bf16 %v273_v31, %v272_v30  ;;  %v276_v38 = vmax.f32 %v212_v32, 0.0 }
  0x3b   :  { %597 = vst [vmem:[%s1052_s3 + $0xe0] sm:$0xff] %v553_v33   ;;  %v277_v39 = vmax.f32 %v213_v36, 0.0 }
  0x3c   :  { %v563_v2 = vpack.c.bf16 %v275_v35, %v274_v34  ;;  %598 = vst [vmem:[%s1052_s3 + $0xe8] sm:$0xff] %v558_v37  }
  0x3d   :  { %v568_v40 = vpack.c.bf16 %v277_v39, %v276_v38 }
  0x3e   :  { %599 = vst [vmem:[%s1052_s3 + $0xf0] sm:$0xff] %v563_v2  }
  0x3f   :  { %600 = vst [vmem:[%s1052_s3 + $0xf8] sm:$0xff] %v568_v40  }

// kernel: densenet_forward.31
= control target key start
LH: loop header
LB: loop body
LE: loop exit
PB: predicated region body
PF: predicated region fallthrough
CT: control target
= control target key end

     0   :  { %s2311_s1 = inlined_call_operand.vmem [shape: bf16[256,128], index: 1, kind: input, shape index: {}]   ;;  %s2312_s0 = inlined_call_operand.vmem [shape: bf16[512,256], index: 0, kind: input, shape index: {}]   ;;  %s2313_s2 = inlined_call_operand.vmem [shape: f32[512,128], index: 2, kind: output, shape index: {}]  }
   0x1   :  { %v1647_v0 = vld [vmem:[%s2311_s1 + $0x38] sm:$0xff]  ;;  %v1646_v2 = vld [vmem:[%s2311_s1 + $0x30] sm:$0xff]  ;;  %v1645_v4 = vld [vmem:[%s2311_s1 + $0x28] sm:$0xff] }
   0x2   :  { %v1655_v1 = vld [vmem:[%s2311_s1 + $0x78] sm:$0xff]  ;;  %655 = vmatpush.bf16.msra.mxu0 %v1647_v0  ;;  %1656 = vmatpush.bf16.msra.mxu2 %v1647_v0  ;;  %v1654_v3 = vld [vmem:[%s2311_s1 + $0x70] sm:$0xff]  ;;  %v1653_v5 = vld [vmem:[%s2311_s1 + $0x68] sm:$0xff] }
   0x3   :  { %824 = vmatpush.bf16.msra.mxu1 %v1655_v1  ;;  %1664 = vmatpush.bf16.msra.mxu3 %v1655_v1  ;;  %v1644_v6 = vld [vmem:[%s2311_s1 + $0x20] sm:$0xff]  ;;  %v1643_v8 = vld [vmem:[%s2311_s1 + $0x18] sm:$0xff]  ;;  %v1642_v10 = vld [vmem:[%s2311_s1 + $0x10] sm:$0xff] }
   0x4   :  { %v1652_v7 = vld [vmem:[%s2311_s1 + $0x60] sm:$0xff]  ;;  %v1651_v9 = vld [vmem:[%s2311_s1 + $0x58] sm:$0xff]  ;;  %v1650_v11 = vld [vmem:[%s2311_s1 + $0x50] sm:$0xff] }
   0x5   :  { %v1641_v12 = vld [vmem:[%s2311_s1 + $0x8] sm:$0xff]  ;;  %v1640_v14 = vld [vmem:[%s2311_s1] sm:$0xff]  ;;  %v1266_v28 = vld [vmem:[%s2312_s0 + $0x10] sm:$0xf] }
   0x6   :  { %656 = vmatpush.bf16.msra.mxu0 %v1646_v2  ;;  %1657 = vmatpush.bf16.msra.mxu2 %v1646_v2  ;;  %v1649_v13 = vld [vmem:[%s2311_s1 + $0x48] sm:$0xff]  ;;  %v1648_v15 = vld [vmem:[%s2311_s1 + $0x40] sm:$0xff]  ;;  %v1579_v29 = vld [vmem:[%s2312_s0 + $0x14] sm:$0xf0] }
   0x7   :  { %825 = vmatpush.bf16.msra.mxu1 %v1654_v3  ;;  %1665 = vmatpush.bf16.msra.mxu3 %v1654_v3  ;;  %v1258_v16 = vld [vmem:[%s2312_s0] sm:$0xf]  ;;  %v1577_v17 = vld [vmem:[%s2312_s0 + $0x4] sm:$0xf0]  ;;  %v1576_v20 = vld [vmem:[%s2312_s0 + $0x4] sm:$0xf]  ;;  %v1267_v36 = vor.u32 %v1579_v29, %v1266_v28 }
   0x8   :  { %v1386_v18 = vld [vmem:[%s2312_s0 + $0x100] sm:$0xf]  ;;  %v1609_v19 = vld [vmem:[%s2312_s0 + $0x104] sm:$0xf0]  ;;  %v1260_v21 = vld [vmem:[%s2312_s0 + $0x8] sm:$0xf0]  ;;  %v1259_v24 = vor.u32 %v1577_v17, %v1258_v16 }
   0x9   :  { %v1608_v22 = vld [vmem:[%s2312_s0 + $0x104] sm:$0xf]  ;;  %v1388_v23 = vld [vmem:[%s2312_s0 + $0x108] sm:$0xf0]  ;;  %v1387_v25 = vor.u32 %v1609_v19, %v1386_v18  ;;  %v1263_v26 = vor.u32 %v1576_v20, %v1260_v21  ;;  %v1394_v30 = vld [vmem:[%s2312_s0 + $0x110] sm:$0xf] }
   0xa   :  { %657 = vmatpush.bf16.msra.mxu0 %v1645_v4  ;;  %1658 = vmatpush.bf16.msra.mxu2 %v1645_v4  ;;  %v1391_v27 = vor.u32 %v1608_v22, %v1388_v23  ;;  %v1611_v31 = vld [vmem:[%s2312_s0 + $0x114] sm:$0xf0]  ;;  %v1578_v32 = vld [vmem:[%s2312_s0 + $0x14] sm:$0xf]  ;;  %v1268_v33 = vld [vmem:[%s2312_s0 + $0x18] sm:$0xf0] }
   0xb   :  { %826 = vmatpush.bf16.msra.mxu1 %v1653_v5  ;;  %1666 = vmatpush.bf16.msra.mxu3 %v1653_v5  ;;  %v1610_v34 = vld [vmem:[%s2312_s0 + $0x114] sm:$0xf]  ;;  %v1396_v35 = vld [vmem:[%s2312_s0 + $0x118] sm:$0xf0]  ;;  %v1395_v37 = vor.u32 %v1611_v31, %v1394_v30  ;;  %v1271_v38 = vor.u32 %v1578_v32, %v1268_v33  ;;  %v1274_v40 = vld [vmem:[%s2312_s0 + $0x20] sm:$0xf] }
   0xc   :  { %v1399_v39 = vor.u32 %v1610_v34, %v1396_v35  ;;  %v1581_v41 = vld [vmem:[%s2312_s0 + $0x24] sm:$0xf0]  ;;  %v1402_v42 = vld [vmem:[%s2312_s0 + $0x120] sm:$0xf]  ;;  %v1580_v44 = vld [vmem:[%s2312_s0 + $0x24] sm:$0xf] }
   0xd   :  { %v1613_v43 = vld [vmem:[%s2312_s0 + $0x124] sm:$0xf0]  ;;  %v1276_v45 = vld [vmem:[%s2312_s0 + $0x28] sm:$0xf0]  ;;  %v1612_v46 = vld [vmem:[%s2312_s0 + $0x124] sm:$0xf]  ;;  %v1275_v48 = vor.u32 %v1581_v41, %v1274_v40 }
   0xe   :  { %658 = vmatpush.bf16.msra.mxu0 %v1644_v6  ;;  %1659 = vmatpush.bf16.msra.mxu2 %v1644_v6  ;;  %v1404_v47 = vld [vmem:[%s2312_s0 + $0x128] sm:$0xf0]  ;;  %v1403_v49 = vor.u32 %v1613_v43, %v1402_v42  ;;  %v1279_v50 = vor.u32 %v1580_v44, %v1276_v45  ;;  %v1282_v52 = vld [vmem:[%s2312_s0 + $0x30] sm:$0xf]  ;;  %v1583_v53 = vld [vmem:[%s2312_s0 + $0x34] sm:$0xf0] }
   0xf   :  { %827 = vmatpush.bf16.msra.mxu1 %v1652_v7  ;;  %1667 = vmatpush.bf16.msra.mxu3 %v1652_v7  ;;  %v1407_v51 = vor.u32 %v1612_v46, %v1404_v47  ;;  %v1410_v54 = vld [vmem:[%s2312_s0 + $0x130] sm:$0xf]  ;;  %v1615_v55 = vld [vmem:[%s2312_s0 + $0x134] sm:$0xf0]  ;;  %v1582_v56 = vld [vmem:[%s2312_s0 + $0x34] sm:$0xf]  ;;  %v1283_v60 = vor.u32 %v1583_v53, %v1282_v52 }
  0x10   :  { %v1284_v57 = vld [vmem:[%s2312_s0 + $0x38] sm:$0xf0]  ;;  %v1614_v58 = vld [vmem:[%s2312_s0 + $0x134] sm:$0xf]  ;;  %v1411_v61 = vor.u32 %v1615_v55, %v1410_v54  ;;  %v1290_v0 = vld [vmem:[%s2312_s0 + $0x40] sm:$0xf] }
  0x11   :  { %v1412_v59 = vld [vmem:[%s2312_s0 + $0x138] sm:$0xf0]  ;;  %v1287_v62 = vor.u32 %v1582_v56, %v1284_v57  ;;  %v1585_v1 = vld [vmem:[%s2312_s0 + $0x44] sm:$0xf0]  ;;  %v1418_v2 = vld [vmem:[%s2312_s0 + $0x140] sm:$0xf] }
  0x12   :  { %659 = vmatpush.bf16.msra.mxu0 %v1643_v8  ;;  %1660 = vmatpush.bf16.msra.mxu2 %v1643_v8  ;;  %v1415_v63 = vor.u32 %v1614_v58, %v1412_v59  ;;  %v1617_v3 = vld [vmem:[%s2312_s0 + $0x144] sm:$0xf0]  ;;  %v1584_v4 = vld [vmem:[%s2312_s0 + $0x44] sm:$0xf]  ;;  %v1292_v5 = vld [vmem:[%s2312_s0 + $0x48] sm:$0xf0]  ;;  %v1291_v8 = vor.u32 %v1585_v1, %v1290_v0 }
  0x13   :  { %828 = vmatpush.bf16.msra.mxu1 %v1651_v9  ;;  %1668 = vmatpush.bf16.msra.mxu3 %v1651_v9  ;;  %v1616_v6 = vld [vmem:[%s2312_s0 + $0x144] sm:$0xf]  ;;  %v1420_v7 = vld [vmem:[%s2312_s0 + $0x148] sm:$0xf0]  ;;  %v1419_v9 = vor.u32 %v1617_v3, %v1418_v2  ;;  %v1586_v16 = vld [vmem:[%s2312_s0 + $0x54] sm:$0xf] }
  0x14   :  { %v1300_v17 = vld [vmem:[%s2312_s0 + $0x58] sm:$0xf0]  ;;  %v1618_v18 = vld [vmem:[%s2312_s0 + $0x154] sm:$0xf]  ;;  %v1588_v28 = vld [vmem:[%s2312_s0 + $0x64] sm:$0xf] }
  0x15   :  { %v1428_v19 = vld [vmem:[%s2312_s0 + $0x158] sm:$0xf0]  ;;  %v1303_v22 = vor.u32 %v1586_v16, %v1300_v17  ;;  %v1308_v29 = vld [vmem:[%s2312_s0 + $0x68] sm:$0xf0]  ;;  %v1620_v30 = vld [vmem:[%s2312_s0 + $0x164] sm:$0xf] }
  0x16   :  { %660 = vmatpush.bf16.msra.mxu0 %v1642_v10  ;;  %1661 = vmatpush.bf16.msra.mxu2 %v1642_v10  ;;  %v1295_v10 = vor.u32 %v1584_v4, %v1292_v5  ;;  %v1431_v23 = vor.u32 %v1618_v18, %v1428_v19  ;;  %v1436_v31 = vld [vmem:[%s2312_s0 + $0x168] sm:$0xf0]  ;;  %v1311_v34 = vor.u32 %v1588_v28, %v1308_v29  ;;  %v1590_v40 = vld [vmem:[%s2312_s0 + $0x74] sm:$0xf]  ;;  %v1316_v41 = vld [vmem:[%s2312_s0 + $0x78] sm:$0xf0] }
  0x17   :  { %829 = vmatpush.bf16.msra.mxu1 %v1650_v11  ;;  %1669 = vmatpush.bf16.msra.mxu3 %v1650_v11  ;;  %v1423_v11 = vor.u32 %v1616_v6, %v1420_v7  ;;  %v1439_v35 = vor.u32 %v1620_v30, %v1436_v31  ;;  %v1622_v42 = vld [vmem:[%s2312_s0 + $0x174] sm:$0xf]  ;;  %v1444_v43 = vld [vmem:[%s2312_s0 + $0x178] sm:$0xf0]  ;;  %v1319_v46 = vor.u32 %v1590_v40, %v1316_v41  ;;  %v1592_v52 = vld [vmem:[%s2312_s0 + $0x84] sm:$0xf] }
  0x18   :  { %v1447_v47 = vor.u32 %v1622_v42, %v1444_v43  ;;  %v1324_v53 = vld [vmem:[%s2312_s0 + $0x88] sm:$0xf0]  ;;  %v1624_v54 = vld [vmem:[%s2312_s0 + $0x184] sm:$0xf]  ;;  %v1330_v5 = vld [vmem:[%s2312_s0 + $0x90] sm:$0xf] }
  0x19   :  { %v1452_v55 = vld [vmem:[%s2312_s0 + $0x188] sm:$0xf0]  ;;  %v1327_v59 = vor.u32 %v1592_v52, %v1324_v53  ;;  %v1595_v6 = vld [vmem:[%s2312_s0 + $0x94] sm:$0xf0]  ;;  %v1458_v7 = vld [vmem:[%s2312_s0 + $0x190] sm:$0xf] }
  0x1a   :  { %661 = vmatpush.bf16.msra.mxu0 %v1641_v12  ;;  %1662 = vmatpush.bf16.msra.mxu2 %v1641_v12  ;;  %v1298_v12 = vld [vmem:[%s2312_s0 + $0x50] sm:$0xf]  ;;  %v1338_v29 = vld [vmem:[%s2312_s0 + $0xa0] sm:$0xf]  ;;  %v1597_v30 = vld [vmem:[%s2312_s0 + $0xa4] sm:$0xf0] }
  0x1b   :  { %830 = vmatpush.bf16.msra.mxu1 %v1649_v13  ;;  %1670 = vmatpush.bf16.msra.mxu3 %v1649_v13  ;;  %v1587_v13 = vld [vmem:[%s2312_s0 + $0x54] sm:$0xf0]  ;;  %v1466_v31 = vld [vmem:[%s2312_s0 + $0x1a0] sm:$0xf]  ;;  %v1346_v53 = vld [vmem:[%s2312_s0 + $0xb0] sm:$0xf] }
  0x1c   :  { %v1299_v20 = vor.u32 %v1587_v13, %v1298_v12  ;;  %v1460_v12 = vld [vmem:[%s2312_s0 + $0x198] sm:$0xf0] }
  0x1e   :  { %662 = vmatpush.bf16.msra.mxu0 %v1640_v14  ;;  %1663 = vmatpush.bf16.msra.mxu2 %v1640_v14  ;;  %v1426_v14 = vld [vmem:[%s2312_s0 + $0x150] sm:$0xf] }
  0x1f   :  { %831 = vmatpush.bf16.msra.mxu1 %v1648_v15  ;;  %1671 = vmatpush.bf16.msra.mxu3 %v1648_v15  ;;  %v1619_v15 = vld [vmem:[%s2312_s0 + $0x154] sm:$0xf0] }
  0x20   :  { %v1427_v21 = vor.u32 %v1619_v15, %v1426_v14  ;;  %v1331_v15 = vor.u32 %v1595_v6, %v1330_v5 }
  0x21   :  { %663 = vmatmul.bf16.vlgmr.msra.gmra.mxu0 %v1259_v24  ;;  %743 = vmatmul.bf16.vlgmr.msra.gmra.mxu2 %v1387_v25  ;;  %v1306_v24 = vld [vmem:[%s2312_s0 + $0x60] sm:$0xf]  ;;  %v1589_v25 = vld [vmem:[%s2312_s0 + $0x64] sm:$0xf0] }
  0x22   :  { %832 = vmatmul.bf16.vlgmr.msra.gmra.mxu1 %v1263_v26  ;;  %912 = vmatmul.bf16.vlgmr.msra.gmra.mxu3 %v1391_v27  ;;  %v1434_v26 = vld [vmem:[%s2312_s0 + $0x160] sm:$0xf]  ;;  %v1621_v27 = vld [vmem:[%s2312_s0 + $0x164] sm:$0xf0]  ;;  %v1307_v32 = vor.u32 %v1589_v25, %v1306_v24 }
  0x23   :  { %v1435_v33 = vor.u32 %v1621_v27, %v1434_v26 }
  0x31   :  { %668 = vmatmul.bf16.gmra.mxu0 %v1267_v36  ;;  %748 = vmatmul.bf16.gmra.mxu2 %v1395_v37  ;;  %v1314_v36 = vld [vmem:[%s2312_s0 + $0x70] sm:$0xf]  ;;  %v1591_v37 = vld [vmem:[%s2312_s0 + $0x74] sm:$0xf0] }
  0x32   :  { %837 = vmatmul.bf16.gmra.mxu1 %v1271_v38  ;;  %917 = vmatmul.bf16.gmra.mxu3 %v1399_v39  ;;  %v1442_v38 = vld [vmem:[%s2312_s0 + $0x170] sm:$0xf]  ;;  %v1623_v39 = vld [vmem:[%s2312_s0 + $0x174] sm:$0xf0]  ;;  %v1315_v44 = vor.u32 %v1591_v37, %v1314_v36  ;;  %v1468_v36 = vld [vmem:[%s2312_s0 + $0x1a8] sm:$0xf0] }
  0x33   :  { %v1443_v45 = vor.u32 %v1623_v39, %v1442_v38  ;;  %v1339_v39 = vor.u32 %v1597_v30, %v1338_v29 }
  0x41   :  { %673 = vmatmul.bf16.gmra.mxu0 %v1275_v48  ;;  %753 = vmatmul.bf16.gmra.mxu2 %v1403_v49  ;;  %v1322_v48 = vld [vmem:[%s2312_s0 + $0x80] sm:$0xf]  ;;  %v1593_v49 = vld [vmem:[%s2312_s0 + $0x84] sm:$0xf0] }
  0x42   :  { %842 = vmatmul.bf16.gmra.mxu1 %v1279_v50  ;;  %922 = vmatmul.bf16.gmra.mxu3 %v1407_v51  ;;  %v1450_v50 = vld [vmem:[%s2312_s0 + $0x180] sm:$0xf]  ;;  %v1625_v51 = vld [vmem:[%s2312_s0 + $0x184] sm:$0xf0]  ;;  %v1323_v56 = vor.u32 %v1593_v49, %v1322_v48 }
  0x43   :  { %v1451_v57 = vor.u32 %v1625_v51, %v1450_v50 }
  0x51   :  { %678 = vmatmul.bf16.gmra.mxu0 %v1283_v60  ;;  %758 = vmatmul.bf16.gmra.mxu2 %v1411_v61  ;;  %v1455_v60 = vor.u32 %v1624_v54, %v1452_v55  ;;  %v1599_v54 = vld [vmem:[%s2312_s0 + $0xb4] sm:$0xf0]  ;;  %v1474_v55 = vld [vmem:[%s2312_s0 + $0x1b0] sm:$0xf] }
  0x52   :  { %847 = vmatmul.bf16.gmra.mxu1 %v1287_v62  ;;  %927 = vmatmul.bf16.gmra.mxu3 %v1415_v63 }
  0x61   :  { %683 = vmatmul.bf16.gmra.mxu0 %v1291_v8  ;;  %763 = vmatmul.bf16.gmra.mxu2 %v1419_v9  ;;  %v1627_v8 = vld [vmem:[%s2312_s0 + $0x194] sm:$0xf0]  ;;  %v1594_v9 = vld [vmem:[%s2312_s0 + $0x94] sm:$0xf] }
  0x62   :  { %852 = vmatmul.bf16.gmra.mxu1 %v1295_v10  ;;  %932 = vmatmul.bf16.gmra.mxu3 %v1423_v11  ;;  %v1332_v10 = vld [vmem:[%s2312_s0 + $0x98] sm:$0xf0]  ;;  %v1626_v11 = vld [vmem:[%s2312_s0 + $0x194] sm:$0xf]  ;;  %v1459_v16 = vor.u32 %v1627_v8, %v1458_v7 }
  0x63   :  { %v1335_v19 = vor.u32 %v1594_v9, %v1332_v10 }
  0x71   :  { %688 = vmatmul.bf16.gmra.mxu0 %v1299_v20  ;;  %768 = vmatmul.bf16.gmra.mxu2 %v1427_v21  ;;  %v1463_v20 = vor.u32 %v1626_v11, %v1460_v12 }
  0x72   :  { %857 = vmatmul.bf16.gmra.mxu1 %v1303_v22  ;;  %937 = vmatmul.bf16.gmra.mxu3 %v1431_v23 }
  0x81   :  { %693 = vmatmul.bf16.gmra.mxu0 %v1307_v32  ;;  %773 = vmatmul.bf16.gmra.mxu2 %v1435_v33  ;;  %v1629_v32 = vld [vmem:[%s2312_s0 + $0x1a4] sm:$0xf0]  ;;  %v1596_v33 = vld [vmem:[%s2312_s0 + $0xa4] sm:$0xf] }
  0x82   :  { %862 = vmatmul.bf16.gmra.mxu1 %v1311_v34  ;;  %942 = vmatmul.bf16.gmra.mxu3 %v1439_v35  ;;  %v1340_v34 = vld [vmem:[%s2312_s0 + $0xa8] sm:$0xf0]  ;;  %v1628_v35 = vld [vmem:[%s2312_s0 + $0x1a4] sm:$0xf]  ;;  %v1467_v40 = vor.u32 %v1629_v32, %v1466_v31 }
  0x83   :  { %v1343_v43 = vor.u32 %v1596_v33, %v1340_v34 }
  0x91   :  { %698 = vmatmul.bf16.gmra.mxu0 %v1315_v44  ;;  %778 = vmatmul.bf16.gmra.mxu2 %v1443_v45  ;;  %v1471_v44 = vor.u32 %v1628_v35, %v1468_v36 }
  0x92   :  { %867 = vmatmul.bf16.gmra.mxu1 %v1319_v46  ;;  %947 = vmatmul.bf16.gmra.mxu3 %v1447_v47 }
  0x9e   :  { %v664_v58 = vpop.f32.mrf.mxu0 }
  0x9f   :  { %v833_v61 = vpop.f32.mrf.mxu1 }
  0xa0   :  { %v834_v62 = vadd.f32 %v833_v61, %v664_v58  ;;  %v1348_v58 = vld [vmem:[%s2312_s0 + $0xb8] sm:$0xf0] }
  0xa1   :  { %703 = vmatmul.bf16.gmra.mxu0 %v1323_v56  ;;  %783 = vmatmul.bf16.gmra.mxu2 %v1451_v57  ;;  %v1631_v56 = vld [vmem:[%s2312_s0 + $0x1b4] sm:$0xf0]  ;;  %v1598_v57 = vld [vmem:[%s2312_s0 + $0xb4] sm:$0xf] }
  0xa2   :  { %1188 = vst [vmem:[%s2313_s2] sm:$0xff] %v834_v62  ;;  %872 = vmatmul.bf16.gmra.mxu1 %v1327_v59  ;;  %952 = vmatmul.bf16.gmra.mxu3 %v1455_v60  ;;  %v1630_v59 = vld [vmem:[%s2312_s0 + $0x1b4] sm:$0xf]  ;;  %v1476_v60 = vld [vmem:[%s2312_s0 + $0x1b8] sm:$0xf0] }
  0xa4   :  { %v744_v63 = vpop.f32.mrf.mxu2 }
  0xa5   :  { %v913_v0 = vpop.f32.mrf.mxu3 }
  0xa6   :  { %v914_v1 = vadd.f32 %v913_v0, %v744_v63  ;;  %v666_v2 = vpop.f32.mrf.mxu0  ;;  %v1347_v63 = vor.u32 %v1599_v54, %v1346_v53  ;;  %v1475_v0 = vor.u32 %v1631_v56, %v1474_v55 }
  0xa7   :  { %v835_v3 = vpop.f32.mrf.mxu1 }
  0xa8   :  { %1220 = vst [vmem:[%s2313_s2 + $0x100] sm:$0xff] %v914_v1  ;;  %v836_v4 = vadd.f32 %v835_v3, %v666_v2  ;;  %v1351_v3 = vor.u32 %v1598_v57, %v1348_v58 }
  0xaa   :  { %1189 = vst [vmem:[%s2313_s2 + $0x8] sm:$0xff] %v836_v4  ;;  %v1479_v4 = vor.u32 %v1630_v59, %v1476_v60 }
  0xac   :  { %v746_v13 = vpop.f32.mrf.mxu2 }
  0xad   :  { %v915_v14 = vpop.f32.mrf.mxu3 }
  0xae   :  { %v916_v17 = vadd.f32 %v915_v14, %v746_v13  ;;  %v669_v18 = vpop.f32.mrf.mxu0  ;;  %v1354_v13 = vld [vmem:[%s2312_s0 + $0xc0] sm:$0xf]  ;;  %v1601_v14 = vld [vmem:[%s2312_s0 + $0xc4] sm:$0xf0] }
  0xaf   :  { %v838_v21 = vpop.f32.mrf.mxu1 }
  0xb0   :  { %1221 = vst [vmem:[%s2313_s2 + $0x108] sm:$0xff] %v916_v17  ;;  %v839_v22 = vadd.f32 %v838_v21, %v669_v18  ;;  %v1600_v17 = vld [vmem:[%s2312_s0 + $0xc4] sm:$0xf]  ;;  %v1356_v18 = vld [vmem:[%s2312_s0 + $0xc8] sm:$0xf0] }
  0xb1   :  { %708 = vmatmul.bf16.gmra.mxu0 %v1331_v15  ;;  %788 = vmatmul.bf16.gmra.mxu2 %v1459_v16  ;;  %v1482_v15 = vld [vmem:[%s2312_s0 + $0x1c0] sm:$0xf]  ;;  %v1633_v16 = vld [vmem:[%s2312_s0 + $0x1c4] sm:$0xf0] }
  0xb2   :  { %1190 = vst [vmem:[%s2313_s2 + $0x10] sm:$0xff] %v839_v22  ;;  %877 = vmatmul.bf16.gmra.mxu1 %v1335_v19  ;;  %957 = vmatmul.bf16.gmra.mxu3 %v1463_v20  ;;  %v1632_v19 = vld [vmem:[%s2312_s0 + $0x1c4] sm:$0xf]  ;;  %v1484_v20 = vld [vmem:[%s2312_s0 + $0x1c8] sm:$0xf0] }
  0xb4   :  { %v749_v23 = vpop.f32.mrf.mxu2 }
  0xb5   :  { %v918_v24 = vpop.f32.mrf.mxu3 }
  0xb6   :  { %v919_v25 = vadd.f32 %v918_v24, %v749_v23  ;;  %v671_v26 = vpop.f32.mrf.mxu0  ;;  %v1355_v23 = vor.u32 %v1601_v14, %v1354_v13  ;;  %v1483_v24 = vor.u32 %v1633_v16, %v1482_v15 }
  0xb7   :  { %v840_v27 = vpop.f32.mrf.mxu1 }
  0xb8   :  { %1222 = vst [vmem:[%s2313_s2 + $0x110] sm:$0xff] %v919_v25  ;;  %v841_v28 = vadd.f32 %v840_v27, %v671_v26  ;;  %v1359_v27 = vor.u32 %v1600_v17, %v1356_v18 }
  0xba   :  { %1191 = vst [vmem:[%s2313_s2 + $0x18] sm:$0xff] %v841_v28  ;;  %v1487_v28 = vor.u32 %v1632_v19, %v1484_v20 }
  0xbc   :  { %v751_v37 = vpop.f32.mrf.mxu2 }
  0xbd   :  { %v920_v38 = vpop.f32.mrf.mxu3 }
  0xbe   :  { %v921_v41 = vadd.f32 %v920_v38, %v751_v37  ;;  %v674_v42 = vpop.f32.mrf.mxu0  ;;  %v1362_v37 = vld [vmem:[%s2312_s0 + $0xd0] sm:$0xf]  ;;  %v1603_v38 = vld [vmem:[%s2312_s0 + $0xd4] sm:$0xf0] }
  0xbf   :  { %v843_v45 = vpop.f32.mrf.mxu1 }
  0xc0   :  { %1223 = vst [vmem:[%s2313_s2 + $0x118] sm:$0xff] %v921_v41  ;;  %v844_v46 = vadd.f32 %v843_v45, %v674_v42  ;;  %v1602_v41 = vld [vmem:[%s2312_s0 + $0xd4] sm:$0xf]  ;;  %v1364_v42 = vld [vmem:[%s2312_s0 + $0xd8] sm:$0xf0] }
  0xc1   :  { %713 = vmatmul.bf16.gmra.mxu0 %v1339_v39  ;;  %793 = vmatmul.bf16.gmra.mxu2 %v1467_v40  ;;  %v1490_v39 = vld [vmem:[%s2312_s0 + $0x1d0] sm:$0xf]  ;;  %v1635_v40 = vld [vmem:[%s2312_s0 + $0x1d4] sm:$0xf0] }
  0xc2   :  { %1192 = vst [vmem:[%s2313_s2 + $0x20] sm:$0xff] %v844_v46  ;;  %882 = vmatmul.bf16.gmra.mxu1 %v1343_v43  ;;  %962 = vmatmul.bf16.gmra.mxu3 %v1471_v44  ;;  %v1634_v43 = vld [vmem:[%s2312_s0 + $0x1d4] sm:$0xf]  ;;  %v1492_v44 = vld [vmem:[%s2312_s0 + $0x1d8] sm:$0xf0] }
  0xc4   :  { %v754_v47 = vpop.f32.mrf.mxu2 }
  0xc5   :  { %v923_v48 = vpop.f32.mrf.mxu3 }
  0xc6   :  { %v924_v49 = vadd.f32 %v923_v48, %v754_v47  ;;  %v676_v50 = vpop.f32.mrf.mxu0  ;;  %v1363_v47 = vor.u32 %v1603_v38, %v1362_v37  ;;  %v1491_v48 = vor.u32 %v1635_v40, %v1490_v39 }
  0xc7   :  { %v845_v51 = vpop.f32.mrf.mxu1 }
  0xc8   :  { %1224 = vst [vmem:[%s2313_s2 + $0x120] sm:$0xff] %v924_v49  ;;  %v846_v52 = vadd.f32 %v845_v51, %v676_v50  ;;  %v1367_v51 = vor.u32 %v1602_v41, %v1364_v42 }
  0xca   :  { %1193 = vst [vmem:[%s2313_s2 + $0x28] sm:$0xff] %v846_v52  ;;  %v1495_v52 = vor.u32 %v1634_v43, %v1492_v44 }
  0xcc   :  { %v756_v61 = vpop.f32.mrf.mxu2 }
  0xcd   :  { %v925_v62 = vpop.f32.mrf.mxu3 }
  0xce   :  { %v926_v1 = vadd.f32 %v925_v62, %v756_v61  ;;  %v679_v2 = vpop.f32.mrf.mxu0  ;;  %v1370_v61 = vld [vmem:[%s2312_s0 + $0xe0] sm:$0xf]  ;;  %v1605_v62 = vld [vmem:[%s2312_s0 + $0xe4] sm:$0xf0] }
  0xcf   :  { %v848_v5 = vpop.f32.mrf.mxu1 }
  0xd0   :  { %1225 = vst [vmem:[%s2313_s2 + $0x128] sm:$0xff] %v926_v1  ;;  %v849_v6 = vadd.f32 %v848_v5, %v679_v2  ;;  %v1604_v1 = vld [vmem:[%s2312_s0 + $0xe4] sm:$0xf]  ;;  %v1372_v2 = vld [vmem:[%s2312_s0 + $0xe8] sm:$0xf0] }
  0xd1   :  { %718 = vmatmul.bf16.gmra.mxu0 %v1347_v63  ;;  %798 = vmatmul.bf16.gmra.mxu2 %v1475_v0  ;;  %v1498_v63 = vld [vmem:[%s2312_s0 + $0x1e0] sm:$0xf]  ;;  %v1637_v0 = vld [vmem:[%s2312_s0 + $0x1e4] sm:$0xf0] }
  0xd2   :  { %1194 = vst [vmem:[%s2313_s2 + $0x30] sm:$0xff] %v849_v6  ;;  %887 = vmatmul.bf16.gmra.mxu1 %v1351_v3  ;;  %967 = vmatmul.bf16.gmra.mxu3 %v1479_v4  ;;  %v1636_v3 = vld [vmem:[%s2312_s0 + $0x1e4] sm:$0xf]  ;;  %v1500_v4 = vld [vmem:[%s2312_s0 + $0x1e8] sm:$0xf0] }
  0xd4   :  { %v759_v7 = vpop.f32.mrf.mxu2 }
  0xd5   :  { %v928_v8 = vpop.f32.mrf.mxu3 }
  0xd6   :  { %v929_v9 = vadd.f32 %v928_v8, %v759_v7  ;;  %v681_v10 = vpop.f32.mrf.mxu0  ;;  %v1371_v7 = vor.u32 %v1605_v62, %v1370_v61  ;;  %v1499_v8 = vor.u32 %v1637_v0, %v1498_v63 }
  0xd7   :  { %v850_v11 = vpop.f32.mrf.mxu1 }
  0xd8   :  { %1226 = vst [vmem:[%s2313_s2 + $0x130] sm:$0xff] %v929_v9  ;;  %v851_v12 = vadd.f32 %v850_v11, %v681_v10  ;;  %v1375_v11 = vor.u32 %v1604_v1, %v1372_v2 }
  0xda   :  { %1195 = vst [vmem:[%s2313_s2 + $0x38] sm:$0xff] %v851_v12  ;;  %v1503_v12 = vor.u32 %v1636_v3, %v1500_v4 }
  0xdc   :  { %v761_v21 = vpop.f32.mrf.mxu2 }
  0xdd   :  { %v930_v22 = vpop.f32.mrf.mxu3 }
  0xde   :  { %v931_v25 = vadd.f32 %v930_v22, %v761_v21  ;;  %v684_v26 = vpop.f32.mrf.mxu0  ;;  %v1378_v21 = vld [vmem:[%s2312_s0 + $0xf0] sm:$0xf]  ;;  %v1607_v22 = vld [vmem:[%s2312_s0 + $0xf4] sm:$0xf0] }
  0xdf   :  { %v853_v29 = vpop.f32.mrf.mxu1 }
  0xe0   :  { %1227 = vst [vmem:[%s2313_s2 + $0x138] sm:$0xff] %v931_v25  ;;  %v854_v30 = vadd.f32 %v853_v29, %v684_v26  ;;  %v1606_v25 = vld [vmem:[%s2312_s0 + $0xf4] sm:$0xf]  ;;  %v1380_v26 = vld [vmem:[%s2312_s0 + $0xf8] sm:$0xf0] }
  0xe1   :  { %723 = vmatmul.bf16.gmra.mxu0 %v1355_v23  ;;  %803 = vmatmul.bf16.gmra.mxu2 %v1483_v24  ;;  %v1506_v23 = vld [vmem:[%s2312_s0 + $0x1f0] sm:$0xf]  ;;  %v1639_v24 = vld [vmem:[%s2312_s0 + $0x1f4] sm:$0xf0] }
  0xe2   :  { %1196 = vst [vmem:[%s2313_s2 + $0x40] sm:$0xff] %v854_v30  ;;  %892 = vmatmul.bf16.gmra.mxu1 %v1359_v27  ;;  %972 = vmatmul.bf16.gmra.mxu3 %v1487_v28  ;;  %v1638_v27 = vld [vmem:[%s2312_s0 + $0x1f4] sm:$0xf]  ;;  %v1508_v28 = vld [vmem:[%s2312_s0 + $0x1f8] sm:$0xf0] }
  0xe4   :  { %v764_v31 = vpop.f32.mrf.mxu2 }
  0xe5   :  { %v933_v32 = vpop.f32.mrf.mxu3 }
  0xe6   :  { %v934_v33 = vadd.f32 %v933_v32, %v764_v31  ;;  %v686_v34 = vpop.f32.mrf.mxu0  ;;  %v1379_v31 = vor.u32 %v1607_v22, %v1378_v21  ;;  %v1507_v32 = vor.u32 %v1639_v24, %v1506_v23 }
  0xe7   :  { %v855_v35 = vpop.f32.mrf.mxu1 }
  0xe8   :  { %1228 = vst [vmem:[%s2313_s2 + $0x140] sm:$0xff] %v934_v33  ;;  %v856_v36 = vadd.f32 %v855_v35, %v686_v34  ;;  %v1383_v35 = vor.u32 %v1606_v25, %v1380_v26 }
  0xea   :  { %1197 = vst [vmem:[%s2313_s2 + $0x48] sm:$0xff] %v856_v36  ;;  %v1511_v36 = vor.u32 %v1638_v27, %v1508_v28 }
  0xec   :  { %v766_v45 = vpop.f32.mrf.mxu2 }
  0xed   :  { %v935_v46 = vpop.f32.mrf.mxu3 }
  0xee   :  { %v936_v49 = vadd.f32 %v935_v46, %v766_v45  ;;  %v689_v50 = vpop.f32.mrf.mxu0 }
  0xef   :  { %v858_v53 = vpop.f32.mrf.mxu1 }
  0xf0   :  { %1229 = vst [vmem:[%s2313_s2 + $0x148] sm:$0xff] %v936_v49  ;;  %v859_v54 = vadd.f32 %v858_v53, %v689_v50 }
  0xf1   :  { %728 = vmatmul.bf16.gmra.mxu0 %v1363_v47  ;;  %808 = vmatmul.bf16.gmra.mxu2 %v1491_v48 }
  0xf2   :  { %1198 = vst [vmem:[%s2313_s2 + $0x50] sm:$0xff] %v859_v54  ;;  %897 = vmatmul.bf16.gmra.mxu1 %v1367_v51  ;;  %977 = vmatmul.bf16.gmra.mxu3 %v1495_v52 }
  0xf4   :  { %v769_v55 = vpop.f32.mrf.mxu2 }
  0xf5   :  { %v938_v56 = vpop.f32.mrf.mxu3 }
  0xf6   :  { %v939_v57 = vadd.f32 %v938_v56, %v769_v55  ;;  %v691_v58 = vpop.f32.mrf.mxu0 }
  0xf7   :  { %v860_v59 = vpop.f32.mrf.mxu1 }
  0xf8   :  { %1230 = vst [vmem:[%s2313_s2 + $0x150] sm:$0xff] %v939_v57  ;;  %v861_v60 = vadd.f32 %v860_v59, %v691_v58 }
  0xfa   :  { %1199 = vst [vmem:[%s2313_s2 + $0x58] sm:$0xff] %v861_v60 }
  0xfc   :  { %v771_v5 = vpop.f32.mrf.mxu2 }
  0xfd   :  { %v940_v6 = vpop.f32.mrf.mxu3 }
  0xfe   :  { %v941_v9 = vadd.f32 %v940_v6, %v771_v5  ;;  %v694_v10 = vpop.f32.mrf.mxu0 }
  0xff   :  { %v863_v13 = vpop.f32.mrf.mxu1 }
 0x100   :  { %1231 = vst [vmem:[%s2313_s2 + $0x158] sm:$0xff] %v941_v9  ;;  %v864_v14 = vadd.f32 %v863_v13, %v694_v10 }
 0x101   :  { %733 = vmatmul.bf16.gmra.mxu0 %v1371_v7  ;;  %813 = vmatmul.bf16.gmra.mxu2 %v1499_v8 }
 0x102   :  { %1200 = vst [vmem:[%s2313_s2 + $0x60] sm:$0xff] %v864_v14  ;;  %902 = vmatmul.bf16.gmra.mxu1 %v1375_v11  ;;  %982 = vmatmul.bf16.gmra.mxu3 %v1503_v12 }
 0x104   :  { %v774_v15 = vpop.f32.mrf.mxu2 }
 0x105   :  { %v943_v16 = vpop.f32.mrf.mxu3 }
 0x106   :  { %v944_v17 = vadd.f32 %v943_v16, %v774_v15  ;;  %v696_v18 = vpop.f32.mrf.mxu0 }
 0x107   :  { %v865_v19 = vpop.f32.mrf.mxu1 }
 0x108   :  { %1232 = vst [vmem:[%s2313_s2 + $0x160] sm:$0xff] %v944_v17  ;;  %v866_v20 = vadd.f32 %v865_v19, %v696_v18 }
 0x10a   :  { %1201 = vst [vmem:[%s2313_s2 + $0x68] sm:$0xff] %v866_v20 }
 0x10c   :  { %v776_v29 = vpop.f32.mrf.mxu2 }
 0x10d   :  { %v945_v30 = vpop.f32.mrf.mxu3 }
 0x10e   :  { %v946_v33 = vadd.f32 %v945_v30, %v776_v29  ;;  %v699_v34 = vpop.f32.mrf.mxu0 }
 0x10f   :  { %v868_v37 = vpop.f32.mrf.mxu1 }
 0x110   :  { %1233 = vst [vmem:[%s2313_s2 + $0x168] sm:$0xff] %v946_v33  ;;  %v869_v38 = vadd.f32 %v868_v37, %v699_v34 }
 0x111   :  { %738 = vmatmul.bf16.gmra.mxu0 %v1379_v31  ;;  %818 = vmatmul.bf16.gmra.mxu2 %v1507_v32 }
 0x112   :  { %1202 = vst [vmem:[%s2313_s2 + $0x70] sm:$0xff] %v869_v38  ;;  %907 = vmatmul.bf16.gmra.mxu1 %v1383_v35  ;;  %987 = vmatmul.bf16.gmra.mxu3 %v1511_v36 }
 0x114   :  { %v779_v39 = vpop.f32.mrf.mxu2 }
 0x115   :  { %v948_v40 = vpop.f32.mrf.mxu3 }
 0x116   :  { %v949_v41 = vadd.f32 %v948_v40, %v779_v39  ;;  %v701_v42 = vpop.f32.mrf.mxu0 }
 0x117   :  { %v870_v43 = vpop.f32.mrf.mxu1 }
 0x118   :  { %1234 = vst [vmem:[%s2313_s2 + $0x170] sm:$0xff] %v949_v41  ;;  %v871_v44 = vadd.f32 %v870_v43, %v701_v42 }
 0x11a   :  { %1203 = vst [vmem:[%s2313_s2 + $0x78] sm:$0xff] %v871_v44 }
 0x11c   :  { %v781_v45 = vpop.f32.mrf.mxu2 }
 0x11d   :  { %v950_v46 = vpop.f32.mrf.mxu3 }
 0x11e   :  { %v951_v47 = vadd.f32 %v950_v46, %v781_v45  ;;  %v704_v48 = vpop.f32.mrf.mxu0 }
 0x11f   :  { %v873_v49 = vpop.f32.mrf.mxu1 }
 0x120   :  { %1235 = vst [vmem:[%s2313_s2 + $0x178] sm:$0xff] %v951_v47  ;;  %v874_v50 = vadd.f32 %v873_v49, %v704_v48 }
 0x122   :  { %1204 = vst [vmem:[%s2313_s2 + $0x80] sm:$0xff] %v874_v50 }
 0x124   :  { %v784_v51 = vpop.f32.mrf.mxu2 }
 0x125   :  { %v953_v52 = vpop.f32.mrf.mxu3 }
 0x126   :  { %v954_v53 = vadd.f32 %v953_v52, %v784_v51  ;;  %v706_v54 = vpop.f32.mrf.mxu0 }
 0x127   :  { %v875_v55 = vpop.f32.mrf.mxu1 }
 0x128   :  { %1236 = vst [vmem:[%s2313_s2 + $0x180] sm:$0xff] %v954_v53  ;;  %v876_v56 = vadd.f32 %v875_v55, %v706_v54 }
 0x12a   :  { %1205 = vst [vmem:[%s2313_s2 + $0x88] sm:$0xff] %v876_v56 }
 0x12c   :  { %v786_v57 = vpop.f32.mrf.mxu2 }
 0x12d   :  { %v955_v58 = vpop.f32.mrf.mxu3 }
 0x12e   :  { %v956_v59 = vadd.f32 %v955_v58, %v786_v57  ;;  %v709_v60 = vpop.f32.mrf.mxu0 }
 0x12f   :  { %v878_v61 = vpop.f32.mrf.mxu1 }
 0x130   :  { %1237 = vst [vmem:[%s2313_s2 + $0x188] sm:$0xff] %v956_v59  ;;  %v879_v62 = vadd.f32 %v878_v61, %v709_v60 }
 0x132   :  { %1206 = vst [vmem:[%s2313_s2 + $0x90] sm:$0xff] %v879_v62 }
 0x134   :  { %v789_v63 = vpop.f32.mrf.mxu2 }
 0x135   :  { %v958_v0 = vpop.f32.mrf.mxu3 }
 0x136   :  { %v959_v1 = vadd.f32 %v958_v0, %v789_v63  ;;  %v711_v2 = vpop.f32.mrf.mxu0 }
 0x137   :  { %v880_v3 = vpop.f32.mrf.mxu1 }
 0x138   :  { %1238 = vst [vmem:[%s2313_s2 + $0x190] sm:$0xff] %v959_v1  ;;  %v881_v4 = vadd.f32 %v880_v3, %v711_v2 }
 0x13a   :  { %1207 = vst [vmem:[%s2313_s2 + $0x98] sm:$0xff] %v881_v4 }
 0x13c   :  { %v791_v5 = vpop.f32.mrf.mxu2 }
 0x13d   :  { %v960_v6 = vpop.f32.mrf.mxu3 }
 0x13e   :  { %v961_v7 = vadd.f32 %v960_v6, %v791_v5  ;;  %v714_v8 = vpop.f32.mrf.mxu0 }
 0x13f   :  { %v883_v9 = vpop.f32.mrf.mxu1 }
 0x140   :  { %1239 = vst [vmem:[%s2313_s2 + $0x198] sm:$0xff] %v961_v7  ;;  %v884_v10 = vadd.f32 %v883_v9, %v714_v8 }
 0x142   :  { %1208 = vst [vmem:[%s2313_s2 + $0xa0] sm:$0xff] %v884_v10 }
 0x144   :  { %v794_v11 = vpop.f32.mrf.mxu2 }
 0x145   :  { %v963_v12 = vpop.f32.mrf.mxu3 }
 0x146   :  { %v964_v13 = vadd.f32 %v963_v12, %v794_v11  ;;  %v716_v14 = vpop.f32.mrf.mxu0 }
 0x147   :  { %v885_v15 = vpop.f32.mrf.mxu1 }
 0x148   :  { %1240 = vst [vmem:[%s2313_s2 + $0x1a0] sm:$0xff] %v964_v13  ;;  %v886_v16 = vadd.f32 %v885_v15, %v716_v14 }
 0x14a   :  { %1209 = vst [vmem:[%s2313_s2 + $0xa8] sm:$0xff] %v886_v16 }
 0x14c   :  { %v796_v17 = vpop.f32.mrf.mxu2 }
 0x14d   :  { %v965_v18 = vpop.f32.mrf.mxu3 }
 0x14e   :  { %v966_v19 = vadd.f32 %v965_v18, %v796_v17  ;;  %v719_v20 = vpop.f32.mrf.mxu0 }
 0x14f   :  { %v888_v21 = vpop.f32.mrf.mxu1 }
 0x150   :  { %1241 = vst [vmem:[%s2313_s2 + $0x1a8] sm:$0xff] %v966_v19  ;;  %v889_v22 = vadd.f32 %v888_v21, %v719_v20 }
 0x152   :  { %1210 = vst [vmem:[%s2313_s2 + $0xb0] sm:$0xff] %v889_v22 }
 0x154   :  { %v799_v23 = vpop.f32.mrf.mxu2 }
 0x155   :  { %v968_v24 = vpop.f32.mrf.mxu3 }
 0x156   :  { %v969_v25 = vadd.f32 %v968_v24, %v799_v23  ;;  %v721_v26 = vpop.f32.mrf.mxu0 }
 0x157   :  { %v890_v27 = vpop.f32.mrf.mxu1 }
 0x158   :  { %1242 = vst [vmem:[%s2313_s2 + $0x1b0] sm:$0xff] %v969_v25  ;;  %v891_v28 = vadd.f32 %v890_v27, %v721_v26 }
 0x15a   :  { %1211 = vst [vmem:[%s2313_s2 + $0xb8] sm:$0xff] %v891_v28 }
 0x15c   :  { %v801_v29 = vpop.f32.mrf.mxu2 }
 0x15d   :  { %v970_v30 = vpop.f32.mrf.mxu3 }
 0x15e   :  { %v971_v31 = vadd.f32 %v970_v30, %v801_v29  ;;  %v724_v32 = vpop.f32.mrf.mxu0 }
 0x15f   :  { %v893_v33 = vpop.f32.mrf.mxu1 }
 0x160   :  { %1243 = vst [vmem:[%s2313_s2 + $0x1b8] sm:$0xff] %v971_v31  ;;  %v894_v34 = vadd.f32 %v893_v33, %v724_v32 }
 0x162   :  { %1212 = vst [vmem:[%s2313_s2 + $0xc0] sm:$0xff] %v894_v34 }
 0x164   :  { %v804_v35 = vpop.f32.mrf.mxu2 }
 0x165   :  { %v973_v36 = vpop.f32.mrf.mxu3 }
 0x166   :  { %v974_v37 = vadd.f32 %v973_v36, %v804_v35  ;;  %v726_v38 = vpop.f32.mrf.mxu0 }
 0x167   :  { %v895_v39 = vpop.f32.mrf.mxu1 }
 0x168   :  { %1244 = vst [vmem:[%s2313_s2 + $0x1c0] sm:$0xff] %v974_v37  ;;  %v896_v40 = vadd.f32 %v895_v39, %v726_v38 }
 0x16a   :  { %1213 = vst [vmem:[%s2313_s2 + $0xc8] sm:$0xff] %v896_v40 }
 0x16c   :  { %v806_v41 = vpop.f32.mrf.mxu2 }
 0x16d   :  { %v975_v42 = vpop.f32.mrf.mxu3 }
 0x16e   :  { %v976_v43 = vadd.f32 %v975_v42, %v806_v41  ;;  %v729_v44 = vpop.f32.mrf.mxu0 }
 0x16f   :  { %v898_v45 = vpop.f32.mrf.mxu1 }
 0x170   :  { %1245 = vst [vmem:[%s2313_s2 + $0x1c8] sm:$0xff] %v976_v43  ;;  %v899_v46 = vadd.f32 %v898_v45, %v729_v44 }
 0x172   :  { %1214 = vst [vmem:[%s2313_s2 + $0xd0] sm:$0xff] %v899_v46 }
 0x174   :  { %v809_v47 = vpop.f32.mrf.mxu2 }
 0x175   :  { %v978_v48 = vpop.f32.mrf.mxu3 }
 0x176   :  { %v979_v49 = vadd.f32 %v978_v48, %v809_v47  ;;  %v731_v50 = vpop.f32.mrf.mxu0 }
 0x177   :  { %v900_v51 = vpop.f32.mrf.mxu1 }
 0x178   :  { %1246 = vst [vmem:[%s2313_s2 + $0x1d0] sm:$0xff] %v979_v49  ;;  %v901_v52 = vadd.f32 %v900_v51, %v731_v50 }
 0x17a   :  { %1215 = vst [vmem:[%s2313_s2 + $0xd8] sm:$0xff] %v901_v52 }
 0x17c   :  { %v811_v53 = vpop.f32.mrf.mxu2 }
 0x17d   :  { %v980_v54 = vpop.f32.mrf.mxu3 }
 0x17e   :  { %v981_v55 = vadd.f32 %v980_v54, %v811_v53  ;;  %v734_v56 = vpop.f32.mrf.mxu0 }
 0x17f   :  { %v903_v57 = vpop.f32.mrf.mxu1 }
 0x180   :  { %1247 = vst [vmem:[%s2313_s2 + $0x1d8] sm:$0xff] %v981_v55  ;;  %v904_v58 = vadd.f32 %v903_v57, %v734_v56 }
 0x182   :  { %1216 = vst [vmem:[%s2313_s2 + $0xe0] sm:$0xff] %v904_v58 }
 0x184   :  { %v814_v59 = vpop.f32.mrf.mxu2 }
 0x185   :  { %v983_v60 = vpop.f32.mrf.mxu3 }
 0x186   :  { %v984_v61 = vadd.f32 %v983_v60, %v814_v59  ;;  %v736_v62 = vpop.f32.mrf.mxu0 }
 0x187   :  { %v905_v63 = vpop.f32.mrf.mxu1 }
 0x188   :  { %1248 = vst [vmem:[%s2313_s2 + $0x1e0] sm:$0xff] %v984_v61  ;;  %v906_v0 = vadd.f32 %v905_v63, %v736_v62 }
 0x18a   :  { %1217 = vst [vmem:[%s2313_s2 + $0xe8] sm:$0xff] %v906_v0 }
 0x18c   :  { %v816_v1 = vpop.f32.mrf.mxu2 }
 0x18d   :  { %v985_v2 = vpop.f32.mrf.mxu3 }
 0x18e   :  { %v986_v3 = vadd.f32 %v985_v2, %v816_v1  ;;  %v739_v4 = vpop.f32.mrf.mxu0 }
 0x18f   :  { %v908_v5 = vpop.f32.mrf.mxu1 }
 0x190   :  { %1249 = vst [vmem:[%s2313_s2 + $0x1e8] sm:$0xff] %v986_v3  ;;  %v909_v6 = vadd.f32 %v908_v5, %v739_v4 }
 0x192   :  { %1218 = vst [vmem:[%s2313_s2 + $0xf0] sm:$0xff] %v909_v6 }
 0x194   :  { %v819_v7 = vpop.f32.mrf.mxu2 }
 0x195   :  { %v988_v8 = vpop.f32.mrf.mxu3 }
 0x196   :  { %v989_v9 = vadd.f32 %v988_v8, %v819_v7  ;;  %v741_v10 = vpop.f32.mrf.mxu0 }
 0x197   :  { %v910_v11 = vpop.f32.mrf.mxu1 }
 0x198   :  { %1250 = vst [vmem:[%s2313_s2 + $0x1f0] sm:$0xff] %v989_v9  ;;  %v911_v12 = vadd.f32 %v910_v11, %v741_v10 }
 0x19a   :  { %1219 = vst [vmem:[%s2313_s2 + $0xf8] sm:$0xff] %v911_v12 }
 0x19c   :  { %v821_v13 = vpop.f32.mrf.mxu2 }
 0x19d   :  { %v990_v14 = vpop.f32.mrf.mxu3 }
 0x19e   :  { %v991_v15 = vadd.f32 %v990_v14, %v821_v13 }
 0x1a0   :  { %1251 = vst [vmem:[%s2313_s2 + $0x1f8] sm:$0xff] %v991_v15 }

// kernel: densenet_forward.35
= control target key start
LH: loop header
LB: loop body
LE: loop exit
PB: predicated region body
PF: predicated region fallthrough
CT: control target
= control target key end

     0   :  { %v167_v0 = vmov 0.0   ;;  %s213_s0 = inlined_call_operand.vmem [shape: bf16[128,128], index: 0, kind: input, shape index: {}]   ;;  %s214_s1 = inlined_call_operand.vmem [shape: f32[1,128], index: 1, kind: output, shape index: {0}]   ;;  %s215_s2 = inlined_call_operand.vmem [shape: f32[1,128], index: 2, kind: output, shape index: {1}]  }
   0x1   :  { %14 = vst [vmem:[#allocation2] sm:$0x1] %v167_v0  ;;  %v128_v1 = vld [vmem:[%s213_s0] sm:$0xff]   ;;  %v159_v2 = vld [vmem:[%s213_s0 + $0x8] sm:$0xff]   ;;  %v160_v6 = vld [vmem:[%s213_s0 + $0x10] sm:$0xff]  }
   0x2   :  { %15 = vst [vmem:[#allocation3] sm:$0x1] %v167_v0  ;;  %v129_v3 = vunpack.c.l.bf16 %v128_v1  ;;  %v130_v4 = vunpack.c.h.bf16 %v128_v1  ;;  %v133_v5 = vunpack.c.l.bf16 %v159_v2  ;;  %v134_v7 = vunpack.c.h.bf16 %v159_v2  ;;  %v161_v14 = vld [vmem:[%s213_s0 + $0x18] sm:$0xff]   ;;  %v162_v23 = vld [vmem:[%s213_s0 + $0x20] sm:$0xff]   ;;  %v163_v32 = vld [vmem:[%s213_s0 + $0x28] sm:$0xff]  }
   0x3   :  { %v137_v11 = vunpack.c.l.bf16 %v160_v6  ;;  %v138_v15 = vunpack.c.h.bf16 %v160_v6  ;;  %v141_v19 = vunpack.c.l.bf16 %v161_v14  ;;  %v142_v24 = vunpack.c.h.bf16 %v161_v14  ;;  %v164_v41 = vld [vmem:[%s213_s0 + $0x30] sm:$0xff]   ;;  %v165_v50 = vld [vmem:[%s213_s0 + $0x38] sm:$0xff]  }
   0x4   :  { %v49_v8 = vadd.f32 %v130_v4, %v129_v3  ;;  %v73_v9 = vmul.f32 %v129_v3, %v129_v3  ;;  %v74_v10 = vmul.f32 %v130_v4, %v130_v4  ;;  %v75_v13 = vmul.f32 %v133_v5, %v133_v5 }
   0x5   :  { %v76_v17 = vmul.f32 %v134_v7, %v134_v7  ;;  %v77_v21 = vmul.f32 %v137_v11, %v137_v11  ;;  %v78_v26 = vmul.f32 %v138_v15, %v138_v15  ;;  %v145_v28 = vunpack.c.l.bf16 %v162_v23 }
   0x6   :  { %v50_v12 = vadd.f32 %v133_v5, %v49_v8  ;;  %v89_v18 = vadd.f32 %v74_v10, %v73_v9  ;;  %v79_v30 = vmul.f32 %v141_v19, %v141_v19  ;;  %v146_v33 = vunpack.c.h.bf16 %v162_v23 }
   0x7   :  { %v80_v35 = vmul.f32 %v142_v24, %v142_v24  ;;  %v149_v37 = vunpack.c.l.bf16 %v163_v32  ;;  %v81_v39 = vmul.f32 %v145_v28, %v145_v28  ;;  %v150_v42 = vunpack.c.h.bf16 %v163_v32 }
   0x8   :  { %v51_v16 = vadd.f32 %v134_v7, %v50_v12  ;;  %v90_v22 = vadd.f32 %v89_v18, %v75_v13  ;;  %v82_v44 = vmul.f32 %v146_v33, %v146_v33  ;;  %v153_v46 = vunpack.c.l.bf16 %v164_v41 }
   0x9   :  { %v83_v48 = vmul.f32 %v149_v37, %v149_v37  ;;  %v154_v51 = vunpack.c.h.bf16 %v164_v41  ;;  %v84_v53 = vmul.f32 %v150_v42, %v150_v42  ;;  %v157_v55 = vunpack.c.l.bf16 %v165_v50 }
   0xa   :  { %v52_v20 = vadd.f32 %v137_v11, %v51_v16  ;;  %v91_v27 = vadd.f32 %v90_v22, %v76_v17  ;;  %v85_v57 = vmul.f32 %v153_v46, %v153_v46  ;;  %v158_v59 = vunpack.c.h.bf16 %v165_v50 }
   0xb   :  { %v86_v61 = vmul.f32 %v154_v51, %v154_v51  ;;  %v87_v0 = vmul.f32 %v157_v55, %v157_v55 }
   0xc   :  { %v53_v25 = vadd.f32 %v138_v15, %v52_v20  ;;  %v92_v31 = vadd.f32 %v91_v27, %v77_v21  ;;  %v88_v3 = vmul.f32 %v158_v59, %v158_v59  ;;  %v48_v15 = vld [vmem:[#allocation2] sm:$0x1]  ;;  %v72_v20 = vld [vmem:[#allocation3] sm:$0x1] }
   0xe   :  { %v54_v29 = vadd.f32 %v141_v19, %v53_v25  ;;  %v93_v36 = vadd.f32 %v92_v31, %v78_v26 }
  0x10   :  { %v55_v34 = vadd.f32 %v142_v24, %v54_v29  ;;  %v94_v40 = vadd.f32 %v93_v36, %v79_v30 }
  0x12   :  { %v56_v38 = vadd.f32 %v145_v28, %v55_v34  ;;  %v95_v45 = vadd.f32 %v94_v40, %v80_v35 }
  0x14   :  { %v57_v43 = vadd.f32 %v146_v33, %v56_v38  ;;  %v96_v49 = vadd.f32 %v95_v45, %v81_v39 }
  0x16   :  { %v58_v47 = vadd.f32 %v149_v37, %v57_v43  ;;  %v97_v54 = vadd.f32 %v96_v49, %v82_v44 }
  0x18   :  { %v59_v52 = vadd.f32 %v150_v42, %v58_v47  ;;  %v98_v58 = vadd.f32 %v97_v54, %v83_v48 }
  0x1a   :  { %v60_v56 = vadd.f32 %v153_v46, %v59_v52  ;;  %v99_v62 = vadd.f32 %v98_v58, %v84_v53 }
  0x1c   :  { %v61_v60 = vadd.f32 %v154_v51, %v60_v56  ;;  %v100_v1 = vadd.f32 %v99_v62, %v85_v57 }
  0x1e   :  { %v62_v63 = vadd.f32 %v157_v55, %v61_v60  ;;  %v101_v4 = vadd.f32 %v100_v1, %v86_v61 }
  0x20   :  { %v63_v2 = vadd.f32 %v158_v59, %v62_v63  ;;  %v102_v6 = vadd.f32 %v101_v4, %v87_v0 }
  0x22   :  { %v64_v5 = vrot.slane %v63_v2, 4  ;;  %v103_v8 = vadd.f32 %v102_v6, %v88_v3 }
  0x24   :  { %v65_v7 = vadd.f32 %v64_v5, %v63_v2  ;;  %v104_v10 = vrot.slane %v103_v8, 4 }
  0x26   :  { %v66_v9 = vrot.slane %v65_v7, 2  ;;  %v105_v12 = vadd.f32 %v104_v10, %v103_v8 }
  0x28   :  { %v67_v11 = vadd.f32 %v66_v9, %v65_v7  ;;  %v106_v14 = vrot.slane %v105_v12, 2 }
  0x2a   :  { %v68_v13 = vrot.slane %v67_v11, 1  ;;  %v107_v17 = vadd.f32 %v106_v14, %v105_v12 }
  0x2c   :  { %v69_v16 = vadd.f32 %v68_v13, %v67_v11  ;;  %v108_v19 = vrot.slane %v107_v17, 1 }
  0x2e   :  { %v70_v18 = vadd.f32 %v69_v16, %v48_v15  ;;  %v109_v21 = vadd.f32 %v108_v19, %v107_v17 }
  0x30   :  { %71 = vst [vmem:[#allocation2] sm:$0x1] %v70_v18  ;;  %v110_v22 = vadd.f32 %v109_v21, %v72_v20 }
  0x32   :  { %111 = vst [vmem:[#allocation3] sm:$0x1] %v110_v22 }
  0x37   :  { %v115_v23 = vld [vmem:[#allocation2] sm:$0x1] }
  0x38   :  { %116 = vst [vmem:[%s214_s1] sm:$0x1] %v115_v23 }
  0x39   :  { %v117_v24 = vld [vmem:[#allocation3] sm:$0x1] }
  0x3a   :  { %118 = vst [vmem:[%s215_s2] sm:$0x1] %v117_v24 }

// kernel: densenet_forward.37
= control target key start
LH: loop header
LB: loop body
LE: loop exit
PB: predicated region body
PF: predicated region fallthrough
CT: control target
= control target key end

     0   :  { %v112_v0 = vmov 0.0   ;;  %s182_s0 = inlined_call_operand.vmem [shape: f32[128,128], index: 0, kind: input, shape index: {}]   ;;  %s183_s1 = inlined_call_operand.vmem [shape: f32[1,128], index: 1, kind: output, shape index: {0}]   ;;  %s184_s2 = inlined_call_operand.vmem [shape: f32[1,128], index: 2, kind: output, shape index: {1}]  }
   0x1   :  { %14 = vst [vmem:[#allocation2] sm:$0x1] %v112_v0  ;;  %v16_v1 = vld [vmem:[%s182_s0] sm:$0xff]  ;;  %v17_v2 = vld [vmem:[%s182_s0 + $0x8] sm:$0xff]  ;;  %v18_v3 = vld [vmem:[%s182_s0 + $0x10] sm:$0xff] }
   0x2   :  { %15 = vst [vmem:[#allocation3] sm:$0x1] %v112_v0  ;;  %v19_v4 = vld [vmem:[%s182_s0 + $0x18] sm:$0xff]  ;;  %v33_v5 = vadd.f32 %v17_v2, %v16_v1  ;;  %v57_v6 = vmul.f32 %v16_v1, %v16_v1  ;;  %v58_v7 = vmul.f32 %v17_v2, %v17_v2  ;;  %v59_v8 = vmul.f32 %v18_v3, %v18_v3  ;;  %v20_v9 = vld [vmem:[%s182_s0 + $0x20] sm:$0xff]  ;;  %v21_v13 = vld [vmem:[%s182_s0 + $0x28] sm:$0xff] }
   0x3   :  { %v60_v11 = vmul.f32 %v19_v4, %v19_v4  ;;  %v61_v15 = vmul.f32 %v20_v9, %v20_v9  ;;  %v22_v17 = vld [vmem:[%s182_s0 + $0x30] sm:$0xff]  ;;  %v62_v19 = vmul.f32 %v21_v13, %v21_v13  ;;  %v23_v21 = vld [vmem:[%s182_s0 + $0x38] sm:$0xff]  ;;  %v24_v25 = vld [vmem:[%s182_s0 + $0x40] sm:$0xff] }
   0x4   :  { %v34_v10 = vadd.f32 %v33_v5, %v18_v3  ;;  %v73_v12 = vadd.f32 %v58_v7, %v57_v6  ;;  %v63_v23 = vmul.f32 %v22_v17, %v22_v17  ;;  %v64_v27 = vmul.f32 %v23_v21, %v23_v21  ;;  %v25_v29 = vld [vmem:[%s182_s0 + $0x48] sm:$0xff]  ;;  %v26_v33 = vld [vmem:[%s182_s0 + $0x50] sm:$0xff]  ;;  %v27_v37 = vld [vmem:[%s182_s0 + $0x58] sm:$0xff] }
   0x5   :  { %v65_v31 = vmul.f32 %v24_v25, %v24_v25  ;;  %v66_v35 = vmul.f32 %v25_v29, %v25_v29  ;;  %v67_v39 = vmul.f32 %v26_v33, %v26_v33  ;;  %v28_v41 = vld [vmem:[%s182_s0 + $0x60] sm:$0xff]  ;;  %v68_v43 = vmul.f32 %v27_v37, %v27_v37  ;;  %v29_v45 = vld [vmem:[%s182_s0 + $0x68] sm:$0xff]  ;;  %v30_v49 = vld [vmem:[%s182_s0 + $0x70] sm:$0xff] }
   0x6   :  { %v35_v14 = vadd.f32 %v34_v10, %v19_v4  ;;  %v74_v16 = vadd.f32 %v73_v12, %v59_v8  ;;  %v69_v47 = vmul.f32 %v28_v41, %v28_v41  ;;  %v70_v51 = vmul.f32 %v29_v45, %v29_v45  ;;  %v31_v53 = vld [vmem:[%s182_s0 + $0x78] sm:$0xff] }
   0x7   :  { %v71_v55 = vmul.f32 %v30_v49, %v30_v49  ;;  %v72_v58 = vmul.f32 %v31_v53, %v31_v53 }
   0x8   :  { %v36_v18 = vadd.f32 %v35_v14, %v20_v9  ;;  %v75_v20 = vadd.f32 %v74_v16, %v60_v11  ;;  %v32_v7 = vld [vmem:[#allocation2] sm:$0x1] }
   0x9   :  { %v56_v12 = vld [vmem:[#allocation3] sm:$0x1] }
   0xa   :  { %v37_v22 = vadd.f32 %v36_v18, %v21_v13  ;;  %v76_v24 = vadd.f32 %v75_v20, %v61_v15 }
   0xc   :  { %v38_v26 = vadd.f32 %v37_v22, %v22_v17  ;;  %v77_v28 = vadd.f32 %v76_v24, %v62_v19 }
   0xe   :  { %v39_v30 = vadd.f32 %v38_v26, %v23_v21  ;;  %v78_v32 = vadd.f32 %v77_v28, %v63_v23 }
  0x10   :  { %v40_v34 = vadd.f32 %v39_v30, %v24_v25  ;;  %v79_v36 = vadd.f32 %v78_v32, %v64_v27 }
  0x12   :  { %v41_v38 = vadd.f32 %v40_v34, %v25_v29  ;;  %v80_v40 = vadd.f32 %v79_v36, %v65_v31 }
  0x14   :  { %v42_v42 = vadd.f32 %v41_v38, %v26_v33  ;;  %v81_v44 = vadd.f32 %v80_v40, %v66_v35 }
  0x16   :  { %v43_v46 = vadd.f32 %v42_v42, %v27_v37  ;;  %v82_v48 = vadd.f32 %v81_v44, %v67_v39 }
  0x18   :  { %v44_v50 = vadd.f32 %v43_v46, %v28_v41  ;;  %v83_v52 = vadd.f32 %v82_v48, %v68_v43 }
  0x1a   :  { %v45_v54 = vadd.f32 %v44_v50, %v29_v45  ;;  %v84_v56 = vadd.f32 %v83_v52, %v69_v47 }
  0x1c   :  { %v46_v57 = vadd.f32 %v45_v54, %v30_v49  ;;  %v85_v59 = vadd.f32 %v84_v56, %v70_v51 }
  0x1e   :  { %v47_v60 = vadd.f32 %v46_v57, %v31_v53  ;;  %v86_v61 = vadd.f32 %v85_v59, %v71_v55 }
  0x20   :  { %v48_v62 = vrot.slane %v47_v60, 4  ;;  %v87_v63 = vadd.f32 %v86_v61, %v72_v58 }
  0x22   :  { %v49_v0 = vadd.f32 %v48_v62, %v47_v60  ;;  %v88_v1 = vrot.slane %v87_v63, 4 }
  0x24   :  { %v50_v2 = vrot.slane %v49_v0, 2  ;;  %v89_v3 = vadd.f32 %v88_v1, %v87_v63 }
  0x26   :  { %v51_v4 = vadd.f32 %v50_v2, %v49_v0  ;;  %v90_v5 = vrot.slane %v89_v3, 2 }
  0x28   :  { %v52_v6 = vrot.slane %v51_v4, 1  ;;  %v91_v8 = vadd.f32 %v90_v5, %v89_v3 }
  0x2a   :  { %v53_v9 = vadd.f32 %v52_v6, %v51_v4  ;;  %v92_v10 = vrot.slane %v91_v8, 1 }
  0x2c   :  { %v54_v11 = vadd.f32 %v53_v9, %v32_v7  ;;  %v93_v13 = vadd.f32 %v92_v10, %v91_v8 }
  0x2e   :  { %55 = vst [vmem:[#allocation2] sm:$0x1] %v54_v11  ;;  %v94_v14 = vadd.f32 %v93_v13, %v56_v12 }
  0x30   :  { %95 = vst [vmem:[#allocation3] sm:$0x1] %v94_v14 }
  0x35   :  { %v99_v15 = vld [vmem:[#allocation2] sm:$0x1] }
  0x36   :  { %100 = vst [vmem:[%s183_s1] sm:$0x1] %v99_v15 }
  0x37   :  { %v101_v16 = vld [vmem:[#allocation3] sm:$0x1] }
  0x38   :  { %102 = vst [vmem:[%s184_s2] sm:$0x1] %v101_v16 }

// kernel: densenet_forward.34
= control target key start
LH: loop header
LB: loop body
LE: loop exit
PB: predicated region body
PF: predicated region fallthrough
CT: control target
= control target key end

     0   :  { %s1116_s0 = inlined_call_operand.vmem [shape: bf16[9,128,128], index: 0, kind: input, shape index: {}]   ;;  %s1117_s1 = inlined_call_operand.vmem [shape: bf16[128,128], index: 1, kind: output, shape index: {}]  }
   0x1   :  { %v461_v0 = vld [vmem:[%s1116_s0] sm:$0xff]   ;;  %v788_v16 = vld [vmem:[%s1116_s0 + $0x8] sm:$0xff]   ;;  %v789_v56 = vld [vmem:[%s1116_s0 + $0x10] sm:$0xff]  }
   0x2   :  { %v795_v1 = vld [vmem:[%s1116_s0 + $0x40] sm:$0xff]   ;;  %v462_v3 = vunpack.c.l.bf16 %v461_v0  ;;  %v463_v4 = vunpack.c.h.bf16 %v461_v0  ;;  %v796_v17 = vld [vmem:[%s1116_s0 + $0x48] sm:$0xff]   ;;  %v466_v28 = vunpack.c.l.bf16 %v788_v16  ;;  %v467_v29 = vunpack.c.h.bf16 %v788_v16  ;;  %v797_v61 = vld [vmem:[%s1116_s0 + $0x50] sm:$0xff]  }
   0x3   :  { %v803_v2 = vld [vmem:[%s1116_s0 + $0x80] sm:$0xff]   ;;  %v494_v5 = vunpack.c.l.bf16 %v795_v1  ;;  %v495_v6 = vunpack.c.h.bf16 %v795_v1  ;;  %v804_v26 = vld [vmem:[%s1116_s0 + $0x88] sm:$0xff]   ;;  %v498_v30 = vunpack.c.l.bf16 %v796_v17  ;;  %v499_v31 = vunpack.c.h.bf16 %v796_v17 }
   0x4   :  { %v811_v7 = vld [vmem:[%s1116_s0 + $0xc0] sm:$0xff]   ;;  %v526_v8 = vunpack.c.l.bf16 %v803_v2  ;;  %v527_v9 = vunpack.c.h.bf16 %v803_v2  ;;  %v812_v36 = vld [vmem:[%s1116_s0 + $0xc8] sm:$0xff]   ;;  %v530_v39 = vunpack.c.l.bf16 %v804_v26  ;;  %v531_v40 = vunpack.c.h.bf16 %v804_v26 }
   0x5   :  { %v819_v10 = vld [vmem:[%s1116_s0 + $0x100] sm:$0xff]   ;;  %v558_v12 = vunpack.c.l.bf16 %v811_v7  ;;  %v559_v13 = vunpack.c.h.bf16 %v811_v7  ;;  %v296_v14 = vmax.f32 %v462_v3, %v494_v5  ;;  %v304_v15 = vmax.f32 %v463_v4, %v495_v6  ;;  %v820_v41 = vld [vmem:[%s1116_s0 + $0x108] sm:$0xff]   ;;  %v805_v7 = vld [vmem:[%s1116_s0 + $0x90] sm:$0xff]  }
   0x6   :  { %v827_v11 = vld [vmem:[%s1116_s0 + $0x140] sm:$0xff]   ;;  %v590_v18 = vunpack.c.l.bf16 %v819_v10  ;;  %v591_v19 = vunpack.c.h.bf16 %v819_v10  ;;  %v828_v46 = vld [vmem:[%s1116_s0 + $0x148] sm:$0xff]   ;;  %v562_v47 = vunpack.c.l.bf16 %v812_v36  ;;  %v563_v48 = vunpack.c.h.bf16 %v812_v36 }
   0x7   :  { %v835_v20 = vld [vmem:[%s1116_s0 + $0x180] sm:$0xff]   ;;  %v622_v21 = vunpack.c.l.bf16 %v827_v11  ;;  %v623_v22 = vunpack.c.h.bf16 %v827_v11  ;;  %v297_v24 = vmax.f32 %v296_v14, %v526_v8  ;;  %v305_v25 = vmax.f32 %v304_v15, %v527_v9  ;;  %v836_v49 = vld [vmem:[%s1116_s0 + $0x188] sm:$0xff]  }
   0x8   :  { %v843_v23 = vld [vmem:[%s1116_s0 + $0x1c0] sm:$0xff]   ;;  %v654_v32 = vunpack.c.l.bf16 %v835_v20  ;;  %v655_v33 = vunpack.c.h.bf16 %v835_v20  ;;  %v312_v50 = vmax.f32 %v466_v28, %v498_v30  ;;  %v320_v51 = vmax.f32 %v467_v29, %v499_v31  ;;  %v844_v2 = vld [vmem:[%s1116_s0 + $0x1c8] sm:$0xff]   ;;  %v837_v30 = vld [vmem:[%s1116_s0 + $0x190] sm:$0xff]  }
   0x9   :  { %v851_v27 = vld [vmem:[%s1116_s0 + $0x200] sm:$0xff]   ;;  %v298_v34 = vmax.f32 %v297_v24, %v558_v12  ;;  %v306_v35 = vmax.f32 %v305_v25, %v559_v13  ;;  %v686_v37 = vunpack.c.l.bf16 %v843_v23  ;;  %v687_v38 = vunpack.c.h.bf16 %v843_v23  ;;  %v852_v10 = vld [vmem:[%s1116_s0 + $0x208] sm:$0xff]   ;;  %v813_v13 = vld [vmem:[%s1116_s0 + $0xd0] sm:$0xff]  }
   0xa   :  { %v718_v42 = vunpack.c.l.bf16 %v851_v27  ;;  %v719_v43 = vunpack.c.h.bf16 %v851_v27  ;;  %v594_v54 = vunpack.c.l.bf16 %v820_v41  ;;  %v595_v55 = vunpack.c.h.bf16 %v820_v41  ;;  %v829_v27 = vld [vmem:[%s1116_s0 + $0x150] sm:$0xff]  }
   0xb   :  { %v299_v44 = vmax.f32 %v298_v34, %v590_v18  ;;  %v307_v45 = vmax.f32 %v306_v35, %v591_v19  ;;  %v626_v57 = vunpack.c.l.bf16 %v828_v46  ;;  %v627_v58 = vunpack.c.h.bf16 %v828_v46 }
   0xc   :  { %v313_v59 = vmax.f32 %v312_v50, %v530_v39  ;;  %v321_v60 = vmax.f32 %v320_v51, %v531_v40  ;;  %v658_v0 = vunpack.c.l.bf16 %v836_v49  ;;  %v659_v1 = vunpack.c.h.bf16 %v836_v49 }
   0xd   :  { %v300_v52 = vmax.f32 %v299_v44, %v622_v21  ;;  %v308_v53 = vmax.f32 %v307_v45, %v623_v22  ;;  %v470_v5 = vunpack.c.l.bf16 %v789_v56  ;;  %v471_v6 = vunpack.c.h.bf16 %v789_v56  ;;  %v821_v22 = vld [vmem:[%s1116_s0 + $0x110] sm:$0xff]  }
   0xe   :  { %v314_v3 = vmax.f32 %v313_v59, %v562_v47  ;;  %v322_v4 = vmax.f32 %v321_v60, %v563_v48  ;;  %v502_v11 = vunpack.c.l.bf16 %v797_v61  ;;  %v503_v12 = vunpack.c.h.bf16 %v797_v61  ;;  %v845_v47 = vld [vmem:[%s1116_s0 + $0x1d0] sm:$0xff]  }
   0xf   :  { %v301_v62 = vmax.f32 %v300_v52, %v654_v32  ;;  %v309_v63 = vmax.f32 %v308_v53, %v655_v33  ;;  %v690_v14 = vunpack.c.l.bf16 %v844_v2  ;;  %v691_v15 = vunpack.c.h.bf16 %v844_v2  ;;  %v806_v52 = vld [vmem:[%s1116_s0 + $0x98] sm:$0xff]  }
  0x10   :  { %v315_v16 = vmax.f32 %v314_v3, %v594_v54  ;;  %v323_v17 = vmax.f32 %v322_v4, %v595_v55  ;;  %v534_v20 = vunpack.c.l.bf16 %v805_v7  ;;  %v535_v21 = vunpack.c.h.bf16 %v805_v7  ;;  %v853_v55 = vld [vmem:[%s1116_s0 + $0x210] sm:$0xff]   ;;  %v822_v3 = vld [vmem:[%s1116_s0 + $0x118] sm:$0xff]  }
  0x11   :  { %v302_v8 = vmax.f32 %v301_v62, %v686_v37  ;;  %v310_v9 = vmax.f32 %v309_v63, %v687_v38  ;;  %v722_v23 = vunpack.c.l.bf16 %v852_v10  ;;  %v566_v26 = vunpack.c.l.bf16 %v813_v13  ;;  %v790_v37 = vld [vmem:[%s1116_s0 + $0x18] sm:$0xff]  }
  0x12   :  { %v316_v24 = vmax.f32 %v315_v16, %v626_v57  ;;  %v324_v25 = vmax.f32 %v323_v17, %v627_v58  ;;  %v567_v29 = vunpack.c.h.bf16 %v813_v13  ;;  %v328_v31 = vmax.f32 %v470_v5, %v502_v11  ;;  %v814_v62 = vld [vmem:[%s1116_s0 + $0xd8] sm:$0xff]  }
  0x13   :  { %v303_v18 = vmax.f32 %v302_v8, %v718_v42  ;;  %v311_v19 = vmax.f32 %v310_v9, %v719_v43  ;;  %v336_v32 = vmax.f32 %v471_v6, %v503_v12  ;;  %v723_v33 = vunpack.c.h.bf16 %v852_v10  ;;  %v798_v42 = vld [vmem:[%s1116_s0 + $0x58] sm:$0xff]  }
  0x14   :  { %v317_v34 = vmax.f32 %v316_v24, %v658_v0  ;;  %v325_v35 = vmax.f32 %v324_v25, %v659_v1  ;;  %v598_v36 = vunpack.c.l.bf16 %v821_v22  ;;  %v599_v38 = vunpack.c.h.bf16 %v821_v22  ;;  %v830_v8 = vld [vmem:[%s1116_s0 + $0x158] sm:$0xff]  }
  0x15   :  { %v751_v28 = vpack.c.bf16 %v311_v19, %v303_v18  ;;  %v630_v39 = vunpack.c.l.bf16 %v829_v27  ;;  %v329_v40 = vmax.f32 %v328_v31, %v534_v20  ;;  %v337_v41 = vmax.f32 %v336_v32, %v535_v21  ;;  %v838_v11 = vld [vmem:[%s1116_s0 + $0x198] sm:$0xff]   ;;  %v791_v18 = vld [vmem:[%s1116_s0 + $0x20] sm:$0xff]  }
  0x16   :  { %v318_v43 = vmax.f32 %v317_v34, %v690_v14  ;;  %v326_v44 = vmax.f32 %v325_v35, %v691_v15  ;;  %v631_v45 = vunpack.c.h.bf16 %v829_v27  ;;  %v662_v46 = vunpack.c.l.bf16 %v837_v30  ;;  %v799_v19 = vld [vmem:[%s1116_s0 + $0x60] sm:$0xff]  }
  0x17   :  { %752 = vst [vmem:[%s1117_s1] sm:$0xff] %v751_v28   ;;  %v330_v48 = vmax.f32 %v329_v40, %v566_v26  ;;  %v338_v49 = vmax.f32 %v337_v41, %v567_v29  ;;  %v474_v50 = vunpack.c.l.bf16 %v790_v37  ;;  %v475_v51 = vunpack.c.h.bf16 %v790_v37  ;;  %v846_v28 = vld [vmem:[%s1116_s0 + $0x1d8] sm:$0xff]   ;;  %v807_v29 = vld [vmem:[%s1116_s0 + $0xa0] sm:$0xff]  }
  0x18   :  { %v319_v53 = vmax.f32 %v318_v43, %v722_v23  ;;  %v327_v54 = vmax.f32 %v326_v44, %v723_v33  ;;  %v506_v56 = vunpack.c.l.bf16 %v798_v42  ;;  %v507_v57 = vunpack.c.h.bf16 %v798_v42  ;;  %v823_v44 = vld [vmem:[%s1116_s0 + $0x120] sm:$0xff]  }
  0x19   :  { %v663_v58 = vunpack.c.h.bf16 %v837_v30  ;;  %v694_v59 = vunpack.c.l.bf16 %v845_v47  ;;  %v331_v60 = vmax.f32 %v330_v48, %v598_v36  ;;  %v339_v61 = vmax.f32 %v338_v49, %v599_v38  ;;  %v854_v30 = vld [vmem:[%s1116_s0 + $0x218] sm:$0xff]  }
  0x1a   :  { %v756_v63 = vpack.c.bf16 %v327_v54, %v319_v53  ;;  %v695_v0 = vunpack.c.h.bf16 %v845_v47  ;;  %v538_v1 = vunpack.c.l.bf16 %v806_v52  ;;  %v539_v2 = vunpack.c.h.bf16 %v806_v52  ;;  %v831_v52 = vld [vmem:[%s1116_s0 + $0x160] sm:$0xff]  }
  0x1b   :  { %v726_v4 = vunpack.c.l.bf16 %v853_v55  ;;  %v727_v5 = vunpack.c.h.bf16 %v853_v55  ;;  %v332_v6 = vmax.f32 %v331_v60, %v630_v39  ;;  %v340_v7 = vmax.f32 %v339_v61, %v631_v45  ;;  %v815_v39 = vld [vmem:[%s1116_s0 + $0xe0] sm:$0xff]  }
  0x1c   :  { %859 = vst [vmem:[%s1117_s1 + $0x8] sm:$0xff] %v756_v63   ;;  %v570_v9 = vunpack.c.l.bf16 %v814_v62  ;;  %v571_v10 = vunpack.c.h.bf16 %v814_v62  ;;  %v344_v12 = vmax.f32 %v474_v50, %v506_v56  ;;  %v352_v13 = vmax.f32 %v475_v51, %v507_v57  ;;  %v839_v53 = vld [vmem:[%s1116_s0 + $0x1a0] sm:$0xff]  }
  0x1d   :  { %v333_v14 = vmax.f32 %v332_v6, %v662_v46  ;;  %v341_v15 = vmax.f32 %v340_v7, %v663_v58  ;;  %v602_v16 = vunpack.c.l.bf16 %v822_v3  ;;  %v603_v17 = vunpack.c.h.bf16 %v822_v3  ;;  %v847_v7 = vld [vmem:[%s1116_s0 + $0x1e0] sm:$0xff]  }
  0x1e   :  { %v634_v20 = vunpack.c.l.bf16 %v830_v8  ;;  %v635_v21 = vunpack.c.h.bf16 %v830_v8  ;;  %v345_v22 = vmax.f32 %v344_v12, %v538_v1  ;;  %v353_v23 = vmax.f32 %v352_v13, %v539_v2 }
  0x1f   :  { %v334_v24 = vmax.f32 %v333_v14, %v694_v59  ;;  %v342_v25 = vmax.f32 %v341_v15, %v695_v0  ;;  %v666_v26 = vunpack.c.l.bf16 %v838_v11  ;;  %v667_v27 = vunpack.c.h.bf16 %v838_v11  ;;  %v792_v59 = vld [vmem:[%s1116_s0 + $0x28] sm:$0xff]  }
  0x20   :  { %v346_v31 = vmax.f32 %v345_v22, %v570_v9  ;;  %v354_v32 = vmax.f32 %v353_v23, %v571_v10  ;;  %v478_v33 = vunpack.c.l.bf16 %v791_v18  ;;  %v510_v34 = vunpack.c.l.bf16 %v799_v19  ;;  %v800_v0 = vld [vmem:[%s1116_s0 + $0x68] sm:$0xff]  }
  0x21   :  { %v335_v35 = vmax.f32 %v334_v24, %v726_v4  ;;  %v343_v36 = vmax.f32 %v342_v25, %v727_v5  ;;  %v479_v37 = vunpack.c.h.bf16 %v791_v18  ;;  %v511_v38 = vunpack.c.h.bf16 %v799_v19  ;;  %v808_v10 = vld [vmem:[%s1116_s0 + $0xa8] sm:$0xff]  }
  0x22   :  { %v698_v40 = vunpack.c.l.bf16 %v846_v28  ;;  %v347_v41 = vmax.f32 %v346_v31, %v602_v16  ;;  %v355_v42 = vmax.f32 %v354_v32, %v603_v17  ;;  %v542_v43 = vunpack.c.l.bf16 %v807_v29  ;;  %v816_v15 = vld [vmem:[%s1116_s0 + $0xe8] sm:$0xff]  }
  0x23   :  { %v761_v45 = vpack.c.bf16 %v343_v36, %v335_v35  ;;  %v699_v46 = vunpack.c.h.bf16 %v846_v28  ;;  %v730_v47 = vunpack.c.l.bf16 %v854_v30  ;;  %v543_v48 = vunpack.c.h.bf16 %v807_v29  ;;  %v824_v25 = vld [vmem:[%s1116_s0 + $0x128] sm:$0xff]  }
  0x24   :  { %v348_v49 = vmax.f32 %v347_v41, %v634_v20  ;;  %v356_v50 = vmax.f32 %v355_v42, %v635_v21  ;;  %v574_v51 = vunpack.c.l.bf16 %v815_v39  ;;  %v360_v54 = vmax.f32 %v478_v33, %v510_v34  ;;  %v855_v21 = vld [vmem:[%s1116_s0 + $0x220] sm:$0xff]   ;;  %v832_v32 = vld [vmem:[%s1116_s0 + $0x168] sm:$0xff]  }
  0x25   :  { %860 = vst [vmem:[%s1117_s1 + $0x10] sm:$0xff] %v761_v45   ;;  %v731_v55 = vunpack.c.h.bf16 %v854_v30  ;;  %v575_v56 = vunpack.c.h.bf16 %v815_v39  ;;  %v606_v57 = vunpack.c.l.bf16 %v823_v44  ;;  %v368_v58 = vmax.f32 %v479_v37, %v511_v38  ;;  %v840_v33 = vld [vmem:[%s1116_s0 + $0x1a8] sm:$0xff]   ;;  %v801_v45 = vld [vmem:[%s1116_s0 + $0x70] sm:$0xff]  }
  0x26   :  { %v349_v60 = vmax.f32 %v348_v49, %v666_v26  ;;  %v357_v61 = vmax.f32 %v356_v50, %v667_v27  ;;  %v607_v62 = vunpack.c.h.bf16 %v823_v44  ;;  %v361_v63 = vmax.f32 %v360_v54, %v542_v43 }
  0x27   :  { %v638_v1 = vunpack.c.l.bf16 %v831_v52  ;;  %v639_v2 = vunpack.c.h.bf16 %v831_v52  ;;  %v670_v3 = vunpack.c.l.bf16 %v839_v53  ;;  %v369_v4 = vmax.f32 %v368_v58, %v543_v48 }
  0x28   :  { %v350_v5 = vmax.f32 %v349_v60, %v698_v40  ;;  %v358_v6 = vmax.f32 %v357_v61, %v699_v46  ;;  %v362_v8 = vmax.f32 %v361_v63, %v574_v51  ;;  %v482_v9 = vunpack.c.l.bf16 %v792_v59  ;;  %v793_v40 = vld [vmem:[%s1116_s0 + $0x30] sm:$0xff]   ;;  %v848_v51 = vld [vmem:[%s1116_s0 + $0x1e8] sm:$0xff]  }
  0x29   :  { %v370_v11 = vmax.f32 %v369_v4, %v575_v56  ;;  %v483_v12 = vunpack.c.h.bf16 %v792_v59  ;;  %v514_v13 = vunpack.c.l.bf16 %v800_v0  ;;  %v515_v14 = vunpack.c.h.bf16 %v800_v0  ;;  %v817_v0 = vld [vmem:[%s1116_s0 + $0xf0] sm:$0xff]  }
  0x2a   :  { %v351_v16 = vmax.f32 %v350_v5, %v730_v47  ;;  %v359_v17 = vmax.f32 %v358_v6, %v731_v55  ;;  %v671_v18 = vunpack.c.h.bf16 %v839_v53  ;;  %v363_v19 = vmax.f32 %v362_v8, %v606_v57  ;;  %v809_v55 = vld [vmem:[%s1116_s0 + $0xb0] sm:$0xff]  }
  0x2b   :  { %v702_v20 = vunpack.c.l.bf16 %v847_v7  ;;  %v371_v22 = vmax.f32 %v370_v11, %v607_v62  ;;  %v546_v23 = vunpack.c.l.bf16 %v808_v10  ;;  %v547_v24 = vunpack.c.h.bf16 %v808_v10 }
  0x2c   :  { %v766_v26 = vpack.c.bf16 %v359_v17, %v351_v16  ;;  %v703_v27 = vunpack.c.h.bf16 %v847_v7  ;;  %v364_v28 = vmax.f32 %v363_v19, %v638_v1  ;;  %v578_v29 = vunpack.c.l.bf16 %v816_v15  ;;  %v794_v19 = vld [vmem:[%s1116_s0 + $0x38] sm:$0xff]  }
  0x2d   :  { %v372_v30 = vmax.f32 %v371_v22, %v639_v2  ;;  %v579_v31 = vunpack.c.h.bf16 %v816_v15  ;;  %v376_v34 = vmax.f32 %v482_v9, %v514_v13  ;;  %v384_v35 = vmax.f32 %v483_v12, %v515_v14  ;;  %v856_v2 = vld [vmem:[%s1116_s0 + $0x228] sm:$0xff]   ;;  %v825_v9 = vld [vmem:[%s1116_s0 + $0x130] sm:$0xff]  }
  0x2e   :  { %861 = vst [vmem:[%s1117_s1 + $0x18] sm:$0xff] %v766_v26   ;;  %v734_v36 = vunpack.c.l.bf16 %v855_v21  ;;  %v735_v37 = vunpack.c.h.bf16 %v855_v21  ;;  %v365_v38 = vmax.f32 %v364_v28, %v670_v3  ;;  %v610_v39 = vunpack.c.l.bf16 %v824_v25  ;;  %v833_v12 = vld [vmem:[%s1116_s0 + $0x170] sm:$0xff]  }
  0x2f   :  { %v373_v41 = vmax.f32 %v372_v30, %v671_v18  ;;  %v611_v42 = vunpack.c.h.bf16 %v824_v25  ;;  %v377_v43 = vmax.f32 %v376_v34, %v546_v23  ;;  %v385_v44 = vmax.f32 %v384_v35, %v547_v24  ;;  %v802_v24 = vld [vmem:[%s1116_s0 + $0x78] sm:$0xff]  }
  0x30   :  { %v366_v46 = vmax.f32 %v365_v38, %v702_v20  ;;  %v642_v47 = vunpack.c.l.bf16 %v832_v32  ;;  %v643_v48 = vunpack.c.h.bf16 %v832_v32  ;;  %v674_v49 = vunpack.c.l.bf16 %v840_v33  ;;  %v810_v34 = vld [vmem:[%s1116_s0 + $0xb8] sm:$0xff]  }
  0x31   :  { %v374_v50 = vmax.f32 %v373_v41, %v703_v27  ;;  %v378_v52 = vmax.f32 %v377_v43, %v578_v29  ;;  %v386_v53 = vmax.f32 %v385_v44, %v579_v31  ;;  %v486_v54 = vunpack.c.l.bf16 %v793_v40  ;;  %v841_v29 = vld [vmem:[%s1116_s0 + $0x1b0] sm:$0xff]   ;;  %v818_v44 = vld [vmem:[%s1116_s0 + $0xf8] sm:$0xff]  }
  0x32   :  { %v367_v56 = vmax.f32 %v366_v46, %v734_v36  ;;  %v487_v57 = vunpack.c.h.bf16 %v793_v40  ;;  %v518_v58 = vunpack.c.l.bf16 %v801_v45  ;;  %v519_v59 = vunpack.c.h.bf16 %v801_v45  ;;  %v857_v46 = vld [vmem:[%s1116_s0 + $0x230] sm:$0xff]  }
  0x33   :  { %v375_v60 = vmax.f32 %v374_v50, %v735_v37  ;;  %v675_v61 = vunpack.c.h.bf16 %v840_v33  ;;  %v379_v62 = vmax.f32 %v378_v52, %v610_v39  ;;  %v387_v63 = vmax.f32 %v386_v53, %v611_v42  ;;  %v849_v37 = vld [vmem:[%s1116_s0 + $0x1f0] sm:$0xff]   ;;  %v826_v53 = vld [vmem:[%s1116_s0 + $0x138] sm:$0xff]  }
  0x34   :  { %v706_v1 = vunpack.c.l.bf16 %v848_v51  ;;  %v550_v3 = vunpack.c.l.bf16 %v809_v55  ;;  %v551_v4 = vunpack.c.h.bf16 %v809_v55  ;;  %v707_v6 = vunpack.c.h.bf16 %v848_v51 }
  0x35   :  { %v771_v5 = vpack.c.bf16 %v375_v60, %v367_v56  ;;  %v380_v7 = vmax.f32 %v379_v62, %v642_v47  ;;  %v388_v8 = vmax.f32 %v387_v63, %v643_v48  ;;  %v582_v10 = vunpack.c.l.bf16 %v817_v0  ;;  %v834_v62 = vld [vmem:[%s1116_s0 + $0x178] sm:$0xff]  }
  0x36   :  { %v583_v11 = vunpack.c.h.bf16 %v817_v0  ;;  %v392_v13 = vmax.f32 %v486_v54, %v518_v58  ;;  %v400_v14 = vmax.f32 %v487_v57, %v519_v59  ;;  %v738_v15 = vunpack.c.l.bf16 %v856_v2 }
  0x37   :  { %862 = vst [vmem:[%s1117_s1 + $0x20] sm:$0xff] %v771_v5   ;;  %v739_v16 = vunpack.c.h.bf16 %v856_v2  ;;  %v381_v17 = vmax.f32 %v380_v7, %v674_v49  ;;  %v389_v18 = vmax.f32 %v388_v8, %v675_v61  ;;  %v614_v20 = vunpack.c.l.bf16 %v825_v9  ;;  %v842_v5 = vld [vmem:[%s1116_s0 + $0x1b8] sm:$0xff]  }
  0x38   :  { %v615_v21 = vunpack.c.h.bf16 %v825_v9  ;;  %v393_v22 = vmax.f32 %v392_v13, %v550_v3  ;;  %v401_v23 = vmax.f32 %v400_v14, %v551_v4  ;;  %v646_v27 = vunpack.c.l.bf16 %v833_v12 }
  0x39   :  { %v382_v25 = vmax.f32 %v381_v17, %v706_v1  ;;  %v390_v26 = vmax.f32 %v389_v18, %v707_v6  ;;  %v647_v28 = vunpack.c.h.bf16 %v833_v12  ;;  %v490_v32 = vunpack.c.l.bf16 %v794_v19  ;;  %v850_v12 = vld [vmem:[%s1116_s0 + $0x1f8] sm:$0xff]  }
  0x3a   :  { %v394_v30 = vmax.f32 %v393_v22, %v582_v10  ;;  %v402_v31 = vmax.f32 %v401_v23, %v583_v11  ;;  %v491_v33 = vunpack.c.h.bf16 %v794_v19  ;;  %v522_v38 = vunpack.c.l.bf16 %v802_v24  ;;  %v858_v18 = vld [vmem:[%s1116_s0 + $0x238] sm:$0xff]  }
  0x3b   :  { %v383_v35 = vmax.f32 %v382_v25, %v738_v15  ;;  %v391_v36 = vmax.f32 %v390_v26, %v739_v16  ;;  %v523_v39 = vunpack.c.h.bf16 %v802_v24  ;;  %v678_v40 = vunpack.c.l.bf16 %v841_v29 }
  0x3c   :  { %v679_v41 = vunpack.c.h.bf16 %v841_v29  ;;  %v395_v42 = vmax.f32 %v394_v30, %v614_v20  ;;  %v403_v43 = vmax.f32 %v402_v31, %v615_v21  ;;  %v554_v47 = vunpack.c.l.bf16 %v810_v34 }
  0x3d   :  { %v776_v45 = vpack.c.bf16 %v391_v36, %v383_v35  ;;  %v555_v48 = vunpack.c.h.bf16 %v810_v34  ;;  %v710_v49 = vunpack.c.l.bf16 %v849_v37  ;;  %v711_v50 = vunpack.c.h.bf16 %v849_v37 }
  0x3e   :  { %v396_v51 = vmax.f32 %v395_v42, %v646_v27  ;;  %v404_v52 = vmax.f32 %v403_v43, %v647_v28  ;;  %v586_v54 = vunpack.c.l.bf16 %v818_v44  ;;  %v587_v55 = vunpack.c.h.bf16 %v818_v44 }
  0x3f   :  { %863 = vst [vmem:[%s1117_s1 + $0x28] sm:$0xff] %v776_v45   ;;  %v408_v56 = vmax.f32 %v490_v32, %v522_v38  ;;  %v416_v57 = vmax.f32 %v491_v33, %v523_v39  ;;  %v742_v58 = vunpack.c.l.bf16 %v857_v46  ;;  %v743_v59 = vunpack.c.h.bf16 %v857_v46 }
  0x40   :  { %v397_v60 = vmax.f32 %v396_v51, %v678_v40  ;;  %v405_v61 = vmax.f32 %v404_v52, %v679_v41  ;;  %v618_v63 = vunpack.c.l.bf16 %v826_v53  ;;  %v619_v0 = vunpack.c.h.bf16 %v826_v53 }
  0x41   :  { %v409_v1 = vmax.f32 %v408_v56, %v554_v47  ;;  %v417_v2 = vmax.f32 %v416_v57, %v555_v48  ;;  %v650_v6 = vunpack.c.l.bf16 %v834_v62  ;;  %v651_v7 = vunpack.c.h.bf16 %v834_v62 }
  0x42   :  { %v398_v3 = vmax.f32 %v397_v60, %v710_v49  ;;  %v406_v4 = vmax.f32 %v405_v61, %v711_v50  ;;  %v682_v13 = vunpack.c.l.bf16 %v842_v5  ;;  %v683_v14 = vunpack.c.h.bf16 %v842_v5 }
  0x43   :  { %v410_v8 = vmax.f32 %v409_v1, %v586_v54  ;;  %v418_v9 = vmax.f32 %v417_v2, %v587_v55  ;;  %v714_v19 = vunpack.c.l.bf16 %v850_v12  ;;  %v715_v20 = vunpack.c.h.bf16 %v850_v12 }
  0x44   :  { %v399_v10 = vmax.f32 %v398_v3, %v742_v58  ;;  %v407_v11 = vmax.f32 %v406_v4, %v743_v59  ;;  %v746_v23 = vunpack.c.l.bf16 %v858_v18  ;;  %v747_v24 = vunpack.c.h.bf16 %v858_v18 }
  0x45   :  { %v411_v15 = vmax.f32 %v410_v8, %v618_v63  ;;  %v419_v16 = vmax.f32 %v418_v9, %v619_v0 }
  0x46   :  { %v781_v17 = vpack.c.bf16 %v407_v11, %v399_v10 }
  0x47   :  { %v412_v21 = vmax.f32 %v411_v15, %v650_v6  ;;  %v420_v22 = vmax.f32 %v419_v16, %v651_v7 }
  0x48   :  { %864 = vst [vmem:[%s1117_s1 + $0x30] sm:$0xff] %v781_v17  }
  0x49   :  { %v413_v25 = vmax.f32 %v412_v21, %v682_v13  ;;  %v421_v26 = vmax.f32 %v420_v22, %v683_v14 }
  0x4b   :  { %v414_v27 = vmax.f32 %v413_v25, %v714_v19  ;;  %v422_v28 = vmax.f32 %v421_v26, %v715_v20 }
  0x4d   :  { %v415_v29 = vmax.f32 %v414_v27, %v746_v23  ;;  %v423_v30 = vmax.f32 %v422_v28, %v747_v24 }
  0x4f   :  { %v786_v31 = vpack.c.bf16 %v423_v30, %v415_v29 }
  0x51   :  { %865 = vst [vmem:[%s1117_s1 + $0x38] sm:$0xff] %v786_v31  }

// kernel: densenet_forward.36
= control target key start
LH: loop header
LB: loop body
LE: loop exit
PB: predicated region body
PF: predicated region fallthrough
CT: control target
= control target key end

     0   :  { %s601_s3 = inlined_call_operand.vmem [shape: bf16[128,128], index: 3, kind: input, shape index: {}]   ;;  %s602_s1 = inlined_call_operand.vmem [shape: f32[1,128], index: 1, kind: input, shape index: {}]   ;;  %s603_s2 = inlined_call_operand.vmem [shape: f32[1,128], index: 2, kind: input, shape index: {}]   ;;  %s604_s0 = inlined_call_operand.vmem [shape: bf16[128,128], index: 0, kind: input, shape index: {}]   ;;  %s605_s4 = inlined_call_operand.vmem [shape: f32[128,128], index: 4, kind: output, shape index: {}]  }
   0x1   :  { %v372_v0 = vld [vmem:[%s601_s3 + $0x38] sm:$0xff]  ;;  %v371_v1 = vld [vmem:[%s601_s3 + $0x30] sm:$0xff]  ;;  %v370_v2 = vld [vmem:[%s601_s3 + $0x28] sm:$0xff] }
   0x2   :  { %213 = vmatpush.bf16.msra.mxu0 %v372_v0  ;;  %412 = vmatpush.bf16.msra.mxu1 %v372_v0  ;;  %v374_v3 = vld [vmem:[%s604_s0] sm:$0xff]   ;;  %v406_v5 = vld [vmem:[%s604_s0 + $0x10] sm:$0xff]   ;;  %v368_v15 = vld [vmem:[%s601_s3 + $0x18] sm:$0xff] }
   0x3   :  { %413 = vmatpush.bf16.msra.mxu2 %v372_v0  ;;  %414 = vmatpush.bf16.msra.mxu3 %v372_v0  ;;  %v369_v4 = vld [vmem:[%s601_s3 + $0x20] sm:$0xff]  ;;  %v410_v7 = vld [vmem:[%s604_s0 + $0x30] sm:$0xff]   ;;  %v375_v8 = vunpack.c.l.bf16 %v374_v3  ;;  %v376_v9 = vunpack.c.h.bf16 %v374_v3  ;;  %v383_v11 = vunpack.c.l.bf16 %v406_v5  ;;  %v384_v12 = vunpack.c.h.bf16 %v406_v5  ;;  %v366_v34 = vld [vmem:[%s601_s3 + $0x8] sm:$0xff] }
   0x4   :  { %v408_v6 = vld [vmem:[%s604_s0 + $0x20] sm:$0xff]   ;;  %v399_v16 = vunpack.c.l.bf16 %v410_v7  ;;  %v400_v17 = vunpack.c.h.bf16 %v410_v7  ;;  %v367_v25 = vld [vmem:[%s601_s3 + $0x10] sm:$0xff]  ;;  %v405_v43 = vld [vmem:[%s604_s0 + $0x8] sm:$0xff]  }
   0x5   :  { %v490_v10 = vld [vmem:[%s602_s1] ss:$0 sm:$0xff]  ;;  %v391_v13 = vunpack.c.l.bf16 %v408_v6  ;;  %v392_v14 = vunpack.c.h.bf16 %v408_v6  ;;  %v407_v44 = vld [vmem:[%s604_s0 + $0x18] sm:$0xff]   ;;  %v409_v48 = vld [vmem:[%s604_s0 + $0x28] sm:$0xff]   ;;  %v379_v51 = vunpack.c.l.bf16 %v405_v43  ;;  %v380_v52 = vunpack.c.h.bf16 %v405_v43 }
   0x6   :  { %214 = vmatpush.bf16.msra.mxu0 %v371_v1  ;;  %415 = vmatpush.bf16.msra.mxu1 %v371_v1  ;;  %v73_v18 = vmul.f32 %v490_v10, %v375_v8  ;;  %v74_v19 = vmul.f32 %v490_v10, %v376_v9  ;;  %v500_v20 = vld [vmem:[%s603_s2] ss:$0 sm:$0xff]  ;;  %v77_v21 = vmul.f32 %v490_v10, %v383_v11  ;;  %v411_v49 = vld [vmem:[%s604_s0 + $0x38] sm:$0xff]   ;;  %v387_v53 = vunpack.c.l.bf16 %v407_v44 }
   0x7   :  { %416 = vmatpush.bf16.msra.mxu2 %v371_v1  ;;  %417 = vmatpush.bf16.msra.mxu3 %v371_v1  ;;  %v78_v22 = vmul.f32 %v490_v10, %v384_v12  ;;  %v81_v23 = vmul.f32 %v490_v10, %v391_v13  ;;  %v82_v24 = vmul.f32 %v490_v10, %v392_v14  ;;  %v365_v45 = vld [vmem:[%s601_s3] sm:$0xff]  ;;  %v388_v56 = vunpack.c.h.bf16 %v407_v44 }
   0x8   :  { %v85_v26 = vmul.f32 %v490_v10, %v399_v16  ;;  %v86_v27 = vmul.f32 %v490_v10, %v400_v17  ;;  %v93_v28 = vadd.f32 %v500_v20, %v73_v18  ;;  %v94_v29 = vadd.f32 %v500_v20, %v74_v19 }
   0x9   :  { %v97_v30 = vadd.f32 %v500_v20, %v77_v21  ;;  %v98_v31 = vadd.f32 %v500_v20, %v78_v22  ;;  %v101_v32 = vadd.f32 %v500_v20, %v81_v23  ;;  %v102_v33 = vadd.f32 %v500_v20, %v82_v24 }
   0xa   :  { %215 = vmatpush.bf16.msra.mxu0 %v370_v2  ;;  %418 = vmatpush.bf16.msra.mxu1 %v370_v2  ;;  %v105_v35 = vadd.f32 %v500_v20, %v85_v26  ;;  %v106_v36 = vadd.f32 %v500_v20, %v86_v27  ;;  %v109_v37 = vmax.f32 %v93_v28, 0.0  ;;  %v110_v38 = vmax.f32 %v94_v29, 0.0 }
   0xb   :  { %419 = vmatpush.bf16.msra.mxu2 %v370_v2  ;;  %420 = vmatpush.bf16.msra.mxu3 %v370_v2  ;;  %v113_v39 = vmax.f32 %v97_v30, 0.0  ;;  %v114_v40 = vmax.f32 %v98_v31, 0.0  ;;  %v117_v41 = vmax.f32 %v101_v32, 0.0  ;;  %v118_v42 = vmax.f32 %v102_v33, 0.0 }
   0xc   :  { %v121_v46 = vmax.f32 %v105_v35, 0.0  ;;  %v122_v47 = vmax.f32 %v106_v36, 0.0  ;;  %v141_v50 = vpack.c.bf16 %v110_v38, %v109_v37  ;;  %v395_v57 = vunpack.c.l.bf16 %v409_v48 }
   0xd   :  { %v143_v54 = vpack.c.bf16 %v114_v40, %v113_v39  ;;  %v145_v55 = vpack.c.bf16 %v118_v42, %v117_v41  ;;  %v396_v59 = vunpack.c.h.bf16 %v409_v48  ;;  %v403_v60 = vunpack.c.l.bf16 %v411_v49 }
   0xe   :  { %216 = vmatpush.bf16.msra.mxu0 %v369_v4  ;;  %421 = vmatpush.bf16.msra.mxu1 %v369_v4  ;;  %v147_v58 = vpack.c.bf16 %v122_v47, %v121_v46  ;;  %v404_v61 = vunpack.c.h.bf16 %v411_v49  ;;  %v75_v62 = vmul.f32 %v490_v10, %v379_v51  ;;  %v76_v63 = vmul.f32 %v490_v10, %v380_v52 }
   0xf   :  { %422 = vmatpush.bf16.msra.mxu2 %v369_v4  ;;  %423 = vmatpush.bf16.msra.mxu3 %v369_v4  ;;  %v79_v0 = vmul.f32 %v490_v10, %v387_v53  ;;  %v80_v1 = vmul.f32 %v490_v10, %v388_v56  ;;  %v83_v2 = vmul.f32 %v490_v10, %v395_v57 }
  0x10   :  { %v84_v3 = vmul.f32 %v490_v10, %v396_v59  ;;  %v87_v4 = vmul.f32 %v490_v10, %v403_v60  ;;  %v88_v5 = vmul.f32 %v490_v10, %v404_v61  ;;  %v95_v6 = vadd.f32 %v500_v20, %v75_v62 }
  0x11   :  { %v96_v7 = vadd.f32 %v500_v20, %v76_v63  ;;  %v99_v8 = vadd.f32 %v500_v20, %v79_v0  ;;  %v100_v9 = vadd.f32 %v500_v20, %v80_v1  ;;  %v103_v11 = vadd.f32 %v500_v20, %v83_v2 }
  0x12   :  { %217 = vmatpush.bf16.msra.mxu0 %v368_v15  ;;  %424 = vmatpush.bf16.msra.mxu1 %v368_v15  ;;  %v104_v12 = vadd.f32 %v500_v20, %v84_v3  ;;  %v107_v13 = vadd.f32 %v500_v20, %v87_v4  ;;  %v108_v14 = vadd.f32 %v500_v20, %v88_v5 }
  0x13   :  { %425 = vmatpush.bf16.msra.mxu2 %v368_v15  ;;  %426 = vmatpush.bf16.msra.mxu3 %v368_v15  ;;  %v111_v15 = vmax.f32 %v95_v6, 0.0  ;;  %v112_v16 = vmax.f32 %v96_v7, 0.0  ;;  %v115_v17 = vmax.f32 %v99_v8, 0.0  ;;  %v116_v10 = vmax.f32 %v100_v9, 0.0 }
  0x14   :  { %v119_v18 = vmax.f32 %v103_v11, 0.0  ;;  %v120_v19 = vmax.f32 %v104_v12, 0.0  ;;  %v123_v21 = vmax.f32 %v107_v13, 0.0  ;;  %v124_v22 = vmax.f32 %v108_v14, 0.0 }
  0x15   :  { %v142_v23 = vpack.c.bf16 %v112_v16, %v111_v15  ;;  %v144_v24 = vpack.c.bf16 %v116_v10, %v115_v17 }
  0x16   :  { %218 = vmatpush.bf16.msra.mxu0 %v367_v25  ;;  %427 = vmatpush.bf16.msra.mxu1 %v367_v25  ;;  %v148_v26 = vpack.c.bf16 %v124_v22, %v123_v21 }
  0x17   :  { %428 = vmatpush.bf16.msra.mxu2 %v367_v25  ;;  %429 = vmatpush.bf16.msra.mxu3 %v367_v25  ;;  %v146_v25 = vpack.c.bf16 %v120_v19, %v119_v18 }
  0x1a   :  { %219 = vmatpush.bf16.msra.mxu0 %v366_v34  ;;  %430 = vmatpush.bf16.msra.mxu1 %v366_v34 }
  0x1b   :  { %431 = vmatpush.bf16.msra.mxu2 %v366_v34  ;;  %432 = vmatpush.bf16.msra.mxu3 %v366_v34 }
  0x1e   :  { %220 = vmatpush.bf16.msra.mxu0 %v365_v45  ;;  %433 = vmatpush.bf16.msra.mxu1 %v365_v45 }
  0x1f   :  { %434 = vmatpush.bf16.msra.mxu2 %v365_v45  ;;  %435 = vmatpush.bf16.msra.mxu3 %v365_v45 }
  0x21   :  { %221 = vmatmul.bf16.vlgmr.msra.gmra.mxu0 %v141_v50  ;;  %231 = vmatmul.bf16.vlgmr.msra.gmra.mxu1 %v143_v54 }
  0x22   :  { %241 = vmatmul.bf16.vlgmr.msra.gmra.mxu2 %v145_v55  ;;  %251 = vmatmul.bf16.vlgmr.msra.gmra.mxu3 %v147_v58 }
  0x31   :  { %226 = vmatmul.bf16.gmra.mxu0 %v142_v23  ;;  %236 = vmatmul.bf16.gmra.mxu1 %v144_v24 }
  0x32   :  { %246 = vmatmul.bf16.gmra.mxu2 %v146_v25  ;;  %256 = vmatmul.bf16.gmra.mxu3 %v148_v26 }
  0x9e   :  { %v222_v27 = vpop.f32.mrf.mxu0  ;;  %v232_v28 = vpop.f32.mrf.mxu1 }
  0x9f   :  { %313 = vst [vmem:[%s605_s4] sm:$0xff] %v222_v27 }
  0xa0   :  { %317 = vst [vmem:[%s605_s4 + $0x20] sm:$0xff] %v232_v28 }
  0xa5   :  { %v242_v20 = vpop.f32.mrf.mxu2  ;;  %v252_v29 = vpop.f32.mrf.mxu3 }
  0xa6   :  { %321 = vst [vmem:[%s605_s4 + $0x40] sm:$0xff] %v242_v20  ;;  %v224_v30 = vpop.f32.mrf.mxu0  ;;  %v234_v31 = vpop.f32.mrf.mxu1 }
  0xa7   :  { %325 = vst [vmem:[%s605_s4 + $0x60] sm:$0xff] %v252_v29 }
  0xa8   :  { %314 = vst [vmem:[%s605_s4 + $0x8] sm:$0xff] %v224_v30 }
  0xa9   :  { %318 = vst [vmem:[%s605_s4 + $0x28] sm:$0xff] %v234_v31 }
  0xad   :  { %v244_v32 = vpop.f32.mrf.mxu2  ;;  %v254_v33 = vpop.f32.mrf.mxu3 }
  0xae   :  { %322 = vst [vmem:[%s605_s4 + $0x48] sm:$0xff] %v244_v32  ;;  %v227_v34 = vpop.f32.mrf.mxu0  ;;  %v237_v35 = vpop.f32.mrf.mxu1 }
  0xaf   :  { %326 = vst [vmem:[%s605_s4 + $0x68] sm:$0xff] %v254_v33 }
  0xb0   :  { %315 = vst [vmem:[%s605_s4 + $0x10] sm:$0xff] %v227_v34 }
  0xb1   :  { %319 = vst [vmem:[%s605_s4 + $0x30] sm:$0xff] %v237_v35 }
  0xb5   :  { %v247_v36 = vpop.f32.mrf.mxu2  ;;  %v257_v37 = vpop.f32.mrf.mxu3 }
  0xb6   :  { %323 = vst [vmem:[%s605_s4 + $0x50] sm:$0xff] %v247_v36  ;;  %v229_v38 = vpop.f32.mrf.mxu0  ;;  %v239_v39 = vpop.f32.mrf.mxu1 }
  0xb7   :  { %327 = vst [vmem:[%s605_s4 + $0x70] sm:$0xff] %v257_v37 }
  0xb8   :  { %316 = vst [vmem:[%s605_s4 + $0x18] sm:$0xff] %v229_v38 }
  0xb9   :  { %320 = vst [vmem:[%s605_s4 + $0x38] sm:$0xff] %v239_v39 }
  0xbd   :  { %v249_v40 = vpop.f32.mrf.mxu2  ;;  %v259_v41 = vpop.f32.mrf.mxu3 }
  0xbe   :  { %324 = vst [vmem:[%s605_s4 + $0x58] sm:$0xff] %v249_v40 }
  0xbf   :  { %328 = vst [vmem:[%s605_s4 + $0x78] sm:$0xff] %v259_v41 }

// kernel: densenet_forward.38
= control target key start
LH: loop header
LB: loop body
LE: loop exit
PB: predicated region body
PF: predicated region fallthrough
CT: control target
= control target key end

     0   :  { %s287_s0 = inlined_call_operand.vmem [shape: f32[128,128], index: 0, kind: input, shape index: {}]   ;;  %s288_s1 = inlined_call_operand.vmem [shape: f32[1,128], index: 1, kind: input, shape index: {}]   ;;  %s289_s2 = inlined_call_operand.vmem [shape: f32[1,128], index: 2, kind: input, shape index: {}]   ;;  %s290_s3 = inlined_call_operand.vmem [shape: bf16[128,128], index: 3, kind: output, shape index: {}]  }
   0x1   :  { %v14_v0 = vld [vmem:[%s287_s0] sm:$0xff]  ;;  %v15_v1 = vld [vmem:[%s287_s0 + $0x8] sm:$0xff]  ;;  %v16_v4 = vld [vmem:[%s287_s0 + $0x10] sm:$0xff] }
   0x2   :  { %v169_v2 = vld [vmem:[%s288_s1] ss:$0 sm:$0xff]  ;;  %v17_v5 = vld [vmem:[%s287_s0 + $0x18] sm:$0xff]  ;;  %v19_v11 = vld [vmem:[%s287_s0 + $0x28] sm:$0xff] }
   0x3   :  { %v203_v3 = vld [vmem:[%s289_s2] ss:$0 sm:$0xff]  ;;  %v34_v7 = vmul.f32 %v169_v2, %v14_v0  ;;  %v35_v8 = vmul.f32 %v169_v2, %v15_v1  ;;  %v36_v9 = vmul.f32 %v169_v2, %v16_v4  ;;  %v37_v10 = vmul.f32 %v169_v2, %v17_v5  ;;  %v20_v12 = vld [vmem:[%s287_s0 + $0x30] sm:$0xff]  ;;  %v21_v13 = vld [vmem:[%s287_s0 + $0x38] sm:$0xff] }
   0x4   :  { %v18_v6 = vld [vmem:[%s287_s0 + $0x20] sm:$0xff]  ;;  %v39_v15 = vmul.f32 %v169_v2, %v19_v11  ;;  %v40_v16 = vmul.f32 %v169_v2, %v20_v12  ;;  %v41_v17 = vmul.f32 %v169_v2, %v21_v13  ;;  %v23_v27 = vld [vmem:[%s287_s0 + $0x48] sm:$0xff]  ;;  %v24_v32 = vld [vmem:[%s287_s0 + $0x50] sm:$0xff] }
   0x5   :  { %v38_v14 = vmul.f32 %v169_v2, %v18_v6  ;;  %v54_v18 = vadd.f32 %v203_v3, %v34_v7  ;;  %v55_v19 = vadd.f32 %v203_v3, %v35_v8  ;;  %v56_v20 = vadd.f32 %v203_v3, %v36_v9  ;;  %v22_v26 = vld [vmem:[%s287_s0 + $0x40] sm:$0xff]  ;;  %v25_v33 = vld [vmem:[%s287_s0 + $0x58] sm:$0xff]  ;;  %v27_v39 = vld [vmem:[%s287_s0 + $0x68] sm:$0xff] }
   0x6   :  { %v57_v21 = vadd.f32 %v203_v3, %v37_v10  ;;  %v59_v23 = vadd.f32 %v203_v3, %v39_v15  ;;  %v60_v24 = vadd.f32 %v203_v3, %v40_v16  ;;  %v61_v25 = vadd.f32 %v203_v3, %v41_v17  ;;  %v26_v38 = vld [vmem:[%s287_s0 + $0x60] sm:$0xff]  ;;  %v28_v44 = vld [vmem:[%s287_s0 + $0x70] sm:$0xff]  ;;  %v29_v45 = vld [vmem:[%s287_s0 + $0x78] sm:$0xff] }
   0x7   :  { %v58_v22 = vadd.f32 %v203_v3, %v38_v14  ;;  %v70_v28 = vmax.f32 %v54_v18, 0.0  ;;  %v71_v29 = vmax.f32 %v55_v19, 0.0  ;;  %v72_v30 = vmax.f32 %v56_v20, 0.0 }
   0x8   :  { %v73_v31 = vmax.f32 %v57_v21, 0.0  ;;  %v75_v35 = vmax.f32 %v59_v23, 0.0  ;;  %v76_v36 = vmax.f32 %v60_v24, 0.0  ;;  %v77_v37 = vmax.f32 %v61_v25, 0.0 }
   0x9   :  { %v74_v34 = vmax.f32 %v58_v22, 0.0  ;;  %v125_v40 = vpack.c.bf16 %v71_v29, %v70_v28  ;;  %v42_v42 = vmul.f32 %v169_v2, %v22_v26  ;;  %v43_v43 = vmul.f32 %v169_v2, %v23_v27 }
   0xa   :  { %v130_v41 = vpack.c.bf16 %v73_v31, %v72_v30  ;;  %v140_v47 = vpack.c.bf16 %v77_v37, %v76_v36  ;;  %v44_v48 = vmul.f32 %v169_v2, %v24_v32  ;;  %v45_v49 = vmul.f32 %v169_v2, %v25_v33 }
   0xb   :  { %v135_v46 = vpack.c.bf16 %v75_v35, %v74_v34  ;;  %126 = vst [vmem:[%s290_s3] sm:$0xff] %v125_v40   ;;  %v62_v50 = vadd.f32 %v203_v3, %v42_v42  ;;  %v63_v51 = vadd.f32 %v203_v3, %v43_v43  ;;  %v46_v52 = vmul.f32 %v169_v2, %v26_v38 }
   0xc   :  { %v47_v53 = vmul.f32 %v169_v2, %v27_v39  ;;  %162 = vst [vmem:[%s290_s3 + $0x8] sm:$0xff] %v130_v41   ;;  %v64_v54 = vadd.f32 %v203_v3, %v44_v48  ;;  %v65_v55 = vadd.f32 %v203_v3, %v45_v49  ;;  %v48_v56 = vmul.f32 %v169_v2, %v28_v44 }
   0xd   :  { %v49_v57 = vmul.f32 %v169_v2, %v29_v45  ;;  %163 = vst [vmem:[%s290_s3 + $0x10] sm:$0xff] %v135_v46   ;;  %v78_v58 = vmax.f32 %v62_v50, 0.0  ;;  %v79_v59 = vmax.f32 %v63_v51, 0.0  ;;  %v66_v60 = vadd.f32 %v203_v3, %v46_v52 }
   0xe   :  { %v67_v61 = vadd.f32 %v203_v3, %v47_v53  ;;  %164 = vst [vmem:[%s290_s3 + $0x18] sm:$0xff] %v140_v47   ;;  %v80_v62 = vmax.f32 %v64_v54, 0.0  ;;  %v81_v63 = vmax.f32 %v65_v55, 0.0  ;;  %v68_v0 = vadd.f32 %v203_v3, %v48_v56 }
   0xf   :  { %v69_v1 = vadd.f32 %v203_v3, %v49_v57  ;;  %v145_v2 = vpack.c.bf16 %v79_v59, %v78_v58  ;;  %v82_v4 = vmax.f32 %v66_v60, 0.0 }
  0x10   :  { %v83_v5 = vmax.f32 %v67_v61, 0.0  ;;  %v150_v6 = vpack.c.bf16 %v81_v63, %v80_v62  ;;  %v84_v7 = vmax.f32 %v68_v0, 0.0 }
  0x11   :  { %v85_v8 = vmax.f32 %v69_v1, 0.0  ;;  %165 = vst [vmem:[%s290_s3 + $0x20] sm:$0xff] %v145_v2  }
  0x12   :  { %v155_v9 = vpack.c.bf16 %v83_v5, %v82_v4  ;;  %166 = vst [vmem:[%s290_s3 + $0x28] sm:$0xff] %v150_v6  }
  0x13   :  { %v160_v10 = vpack.c.bf16 %v85_v8, %v84_v7 }
  0x14   :  { %167 = vst [vmem:[%s290_s3 + $0x30] sm:$0xff] %v155_v9  }
  0x15   :  { %168 = vst [vmem:[%s290_s3 + $0x38] sm:$0xff] %v160_v10  }

// kernel: densenet_forward.47
= control target key start
LH: loop header
LB: loop body
LE: loop exit
PB: predicated region body
PF: predicated region fallthrough
CT: control target
= control target key end

     0   :  { %v128_v3 = vmov 4.0   ;;  %s169_s0 = inlined_call_operand.vmem [shape: bf16[4,32,128], index: 0, kind: input, shape index: {}]   ;;  %s170_s1 = inlined_call_operand.vmem [shape: bf16[32,128], index: 1, kind: output, shape index: {}]  }
   0x1   :  { %v76_v0 = vld [vmem:[%s169_s0] sm:$0xff]   ;;  %v118_v1 = vld [vmem:[%s169_s0 + $0x10] sm:$0xff]   ;;  %126 = vrcp.f32 %v128_v3  ;;  %v117_v8 = vld [vmem:[%s169_s0 + $0x8] sm:$0xff]  }
   0x2   :  { %v120_v2 = vld [vmem:[%s169_s0 + $0x20] sm:$0xff]   ;;  %v77_v4 = vunpack.c.l.bf16 %v76_v0  ;;  %v78_v5 = vunpack.c.h.bf16 %v76_v0  ;;  %v85_v6 = vunpack.c.l.bf16 %v118_v1  ;;  %v86_v7 = vunpack.c.h.bf16 %v118_v1  ;;  %v119_v9 = vld [vmem:[%s169_s0 + $0x18] sm:$0xff]   ;;  %v121_v12 = vld [vmem:[%s169_s0 + $0x28] sm:$0xff]  }
   0x3   :  { %v93_v10 = vunpack.c.l.bf16 %v120_v2  ;;  %v94_v11 = vunpack.c.h.bf16 %v120_v2  ;;  %v122_v13 = vld [vmem:[%s169_s0 + $0x30] sm:$0xff]   ;;  %v81_v16 = vunpack.c.l.bf16 %v117_v8  ;;  %v82_v17 = vunpack.c.h.bf16 %v117_v8  ;;  %v123_v22 = vld [vmem:[%s169_s0 + $0x38] sm:$0xff]  }
   0x4   :  { %v40_v14 = vadd.f32 %v85_v6, %v77_v4  ;;  %v43_v15 = vadd.f32 %v86_v7, %v78_v5  ;;  %v89_v18 = vunpack.c.l.bf16 %v119_v9  ;;  %v90_v19 = vunpack.c.h.bf16 %v119_v9 }
   0x5   :  { %v97_v20 = vunpack.c.l.bf16 %v121_v12  ;;  %v98_v21 = vunpack.c.h.bf16 %v121_v12  ;;  %v101_v24 = vunpack.c.l.bf16 %v122_v13  ;;  %v102_v27 = vunpack.c.h.bf16 %v122_v13 }
   0x6   :  { %v46_v25 = vadd.f32 %v89_v18, %v81_v16  ;;  %v49_v26 = vadd.f32 %v90_v19, %v82_v17  ;;  %v41_v28 = vadd.f32 %v93_v10, %v40_v14  ;;  %v44_v29 = vadd.f32 %v94_v11, %v43_v15 }
   0x7   :  { %v127_v23 = vpop.eup %126  ;;  %v105_v31 = vunpack.c.l.bf16 %v123_v22  ;;  %v106_v32 = vunpack.c.h.bf16 %v123_v22 }
   0x8   :  { %v53_v30 = vmul.f32 4.0, %v127_v23  ;;  %v47_v33 = vadd.f32 %v97_v20, %v46_v25  ;;  %v50_v34 = vadd.f32 %v98_v21, %v49_v26  ;;  %v42_v36 = vadd.f32 %v101_v24, %v41_v28 }
   0x9   :  { %v45_v38 = vadd.f32 %v102_v27, %v44_v29  ;;  %vm57_vm0 = vweird.f32 %v127_v23 }
   0xa   :  { %v54_v35 = vsub.f32 1.0, %v53_v30  ;;  %v48_v39 = vadd.f32 %v105_v31, %v47_v33  ;;  %v51_v40 = vadd.f32 %v106_v32, %v50_v34 }
   0xc   :  { %v55_v37 = vmul.f32 %v127_v23, %v54_v35 }
   0xe   :  { %v56_v41 = vadd.f32 %v127_v23, %v55_v37 }
  0x10   :  { %v58_v42 = vsel %vm57_vm0, %v127_v23, %v56_v41 }
  0x11   :  { %v59_v43 = vmul.f32 %v58_v42, %v42_v36  ;;  %v60_v44 = vmul.f32 %v58_v42, %v45_v38  ;;  %v61_v45 = vmul.f32 %v58_v42, %v48_v39  ;;  %v62_v46 = vmul.f32 %v58_v42, %v51_v40 }
  0x13   :  { %v110_v47 = vpack.c.bf16 %v60_v44, %v59_v43  ;;  %v115_v48 = vpack.c.bf16 %v62_v46, %v61_v45 }
  0x15   :  { %111 = vst [vmem:[%s170_s1] sm:$0xff] %v110_v47  }
  0x16   :  { %124 = vst [vmem:[%s170_s1 + $0x8] sm:$0xff] %v115_v48  }

// kernel: densenet_forward.39
= control target key start
LH: loop header
LB: loop body
LE: loop exit
PB: predicated region body
PF: predicated region fallthrough
CT: control target
= control target key end

     0   :  { %s1481_s9 = smov 0   ;;  %s1483_s10 = smov 0   ;;  %s1768_s0 = inlined_call_operand.vmem [shape: bf16[128,1152], index: 0, kind: input, shape index: {}]   ;;  %s1769_s1 = inlined_call_operand.vmem [shape: bf16[1152,128], index: 1, kind: input, shape index: {}]   ;;  %s1770_s2 = inlined_call_operand.vmem [shape: bf16[128,128], index: 2, kind: output, shape index: {}]  }
   0x1   :  { %s1485_s11 = smov 0   ;;  %s1487_s12 = smov 0  }
   0x2   :  { %s1489_s13 = smov 0  }
   0x3 LB: > { %s24_s14 = sadd.s32 1, %s1459_s12  ;;  %p47_p1 = scmp.ne.s32.totalorder %s1451_s10, %s1447_s9  ;;  %s1463_s13 = sphi %s1489_s13, %s12_s13   ;;  %s1459_s12 = sphi %s1487_s12, %s1774_s12   ;;  %s1455_s11 = sphi %s1485_s11, %s1773_s11   ;;  %s1451_s10 = sphi %s1483_s10, %s1772_s10   ;;  %s1447_s9 = sphi %s1481_s9, %s1771_s9  }
   0x4   : > { %p25_p0 = scmp.ge.s32.totalorder %s24_s14, 3  ;;  %p48_p2 = scmp.eq.s32.totalorder %s1463_s13, 0 }
   0x5   : > { %s40_s16 = sadd.s32 1, %s1451_s10  ;;  %p1028_p5 = scmp.ge.s32.totalorder %s1463_s13, 3 }
   0x6   : > { %s1776_s14 = smov (%p25_p0, %s24_s14), 0  ;;  %p49_p3 = por %p48_p2, %p47_p1 }
   0x7   : > { %s36_s15 = ssub.s32 %s1459_s12, %s1776_s14  ;;  %129 = sbr.rel (%p1028_p5) target bundleno = 49 (0x31), region = 16 }
   0x8   : > { %p38_p4 = scmp.eq.s32.totalorder %s36_s15, 0 }
   0xa   : > { %s1516_s17 = scalar_select %p38_p4, %s1451_s10, %s40_s16  }
   0xc   : > { %132 = sbr.rel (!%p49_p3) target bundleno = 49 (0x31), region = 20  ;;  %s134_s18 = sand.u32 (%p49_p3), 1, %s1451_s10  }
   0xd   : > { %s1262_s19 = smul.u32 (%p49_p3), 12, %s1459_s12 }
   0xe   : > { %s1382_s20 = smul.u32 (%p49_p3), 192, %s134_s18 }
   0xf   : > { %s1524_s23 = scalar_lea.vmem (%p49_p3), %s1768_s0, %s1262_s19 }
  0x10   : > { %v157_v0 = vld [vmem:[%s1524_s23] sm:$0xff] (%p49_p3)  ;;  %v161_v2 = vld [vmem:[%s1524_s23 + $0x48] sm:$0xff] (%p49_p3)  ;;  %s1529_s24 = scalar_lea.vmem (%p49_p3), [#allocation3], %s1382_s20  ;;  %v165_v4 = vld [vmem:[%s1524_s23 + $0x90] sm:$0xff] (%p49_p3) }
  0x11   : > { %v159_v1 = vld [vmem:[%s1524_s23 + $0x24] sm:$0xff]  ;;  %158 = vst [vmem:[%s1529_s24] sm:$0xff] %v157_v0  ;;  %v163_v3 = vld [vmem:[%s1524_s23 + $0x6c] sm:$0xff]  ;;  %v167_v5 = vld [vmem:[%s1524_s23 + $0xb4] sm:$0xff] }
  0x12   : > { %160 = vst [vmem:[%s1529_s24 + $0xc] sm:$0xff] %v159_v1  ;;  %v169_v6 = vld [vmem:[%s1524_s23 + $0xd8] sm:$0xff]  ;;  %v173_v8 = vld [vmem:[%s1524_s23 + $0x120] sm:$0xff]  ;;  %v177_v10 = vld [vmem:[%s1524_s23 + $0x168] sm:$0xff] }
  0x13   : > { %162 = vst [vmem:[%s1529_s24 + $0x18] sm:$0xff] %v161_v2  ;;  %v171_v7 = vld [vmem:[%s1524_s23 + $0xfc] sm:$0xff]  ;;  %v175_v9 = vld [vmem:[%s1524_s23 + $0x144] sm:$0xff]  ;;  %v179_v11 = vld [vmem:[%s1524_s23 + $0x18c] sm:$0xff] }
  0x14   : > { %164 = vst [vmem:[%s1529_s24 + $0x24] sm:$0xff] %v163_v3  ;;  %v181_v12 = vld [vmem:[%s1524_s23 + $0x1b0] sm:$0xff]  ;;  %v185_v14 = vld [vmem:[%s1524_s23 + $0x1f8] sm:$0xff]  ;;  %v1030_v16 = vld [vmem:[%s1524_s23 + $0x8] sm:$0xf] }
  0x15   : > { %166 = vst [vmem:[%s1529_s24 + $0x30] sm:$0xff] %v165_v4  ;;  %v183_v13 = vld [vmem:[%s1524_s23 + $0x1d4] sm:$0xff]  ;;  %v187_v15 = vld [vmem:[%s1524_s23 + $0x21c] sm:$0xff]  ;;  %v1032_v17 = vld [vmem:[%s1524_s23 + $0x2c] sm:$0xf] }
  0x16   : > { %168 = vst [vmem:[%s1529_s24 + $0x3c] sm:$0xff] %v167_v5  ;;  %v1034_v18 = vld [vmem:[%s1524_s23 + $0x50] sm:$0xf]  ;;  %v1036_v19 = vld [vmem:[%s1524_s23 + $0x74] sm:$0xf] }
  0x17   : > { %170 = vst [vmem:[%s1529_s24 + $0x48] sm:$0xff] %v169_v6  ;;  %v1038_v20 = vld [vmem:[%s1524_s23 + $0x98] sm:$0xf]  ;;  %v1040_v21 = vld [vmem:[%s1524_s23 + $0xbc] sm:$0xf] }
  0x18   : > { %172 = vst [vmem:[%s1529_s24 + $0x54] sm:$0xff] %v171_v7  ;;  %v1042_v22 = vld [vmem:[%s1524_s23 + $0xe0] sm:$0xf]  ;;  %v1044_v23 = vld [vmem:[%s1524_s23 + $0x104] sm:$0xf] }
  0x19   : > { %174 = vst [vmem:[%s1529_s24 + $0x60] sm:$0xff] %v173_v8  ;;  %v1046_v24 = vld [vmem:[%s1524_s23 + $0x128] sm:$0xf]  ;;  %v1048_v25 = vld [vmem:[%s1524_s23 + $0x14c] sm:$0xf] }
  0x1a   : > { %176 = vst [vmem:[%s1529_s24 + $0x6c] sm:$0xff] %v175_v9  ;;  %v1050_v26 = vld [vmem:[%s1524_s23 + $0x170] sm:$0xf]  ;;  %v1052_v27 = vld [vmem:[%s1524_s23 + $0x194] sm:$0xf] }
  0x1b   : > { %178 = vst [vmem:[%s1529_s24 + $0x78] sm:$0xff] %v177_v10  ;;  %v1054_v28 = vld [vmem:[%s1524_s23 + $0x1b8] sm:$0xf]  ;;  %v1056_v29 = vld [vmem:[%s1524_s23 + $0x1dc] sm:$0xf] }
  0x1c   : > { %180 = vst [vmem:[%s1529_s24 + $0x84] sm:$0xff] %v179_v11  ;;  %v1058_v30 = vld [vmem:[%s1524_s23 + $0x200] sm:$0xf]  ;;  %v1060_v31 = vld [vmem:[%s1524_s23 + $0x224] sm:$0xf] }
  0x1d   : > { %182 = vst [vmem:[%s1529_s24 + $0x90] sm:$0xff] %v181_v12 }
  0x1e   : > { %184 = vst [vmem:[%s1529_s24 + $0x9c] sm:$0xff] %v183_v13 }
  0x1f   : > { %186 = vst [vmem:[%s1529_s24 + $0xa8] sm:$0xff] %v185_v14 }
  0x20   : > { %188 = vst [vmem:[%s1529_s24 + $0xb4] sm:$0xff] %v187_v15 }
  0x21   : > { %1031 = vst [vmem:[%s1529_s24 + $0x8] sm:$0xf] %v1030_v16 }
  0x22   : > { %1033 = vst [vmem:[%s1529_s24 + $0x14] sm:$0xf] %v1032_v17 }
  0x23   : > { %1035 = vst [vmem:[%s1529_s24 + $0x20] sm:$0xf] %v1034_v18 }
  0x24   : > { %1037 = vst [vmem:[%s1529_s24 + $0x2c] sm:$0xf] %v1036_v19 }
  0x25   : > { %1039 = vst [vmem:[%s1529_s24 + $0x38] sm:$0xf] %v1038_v20 }
  0x26   : > { %1041 = vst [vmem:[%s1529_s24 + $0x44] sm:$0xf] %v1040_v21 }
  0x27   : > { %1043 = vst [vmem:[%s1529_s24 + $0x50] sm:$0xf] %v1042_v22 }
  0x28   : > { %1045 = vst [vmem:[%s1529_s24 + $0x5c] sm:$0xf] %v1044_v23 }
  0x29   : > { %1047 = vst [vmem:[%s1529_s24 + $0x68] sm:$0xf] %v1046_v24 }
  0x2a   : > { %1049 = vst [vmem:[%s1529_s24 + $0x74] sm:$0xf] %v1048_v25 }
  0x2b   : > { %1051 = vst [vmem:[%s1529_s24 + $0x80] sm:$0xf] %v1050_v26 }
  0x2c   : > { %1053 = vst [vmem:[%s1529_s24 + $0x8c] sm:$0xf] %v1052_v27 }
  0x2d   : > { %1055 = vst [vmem:[%s1529_s24 + $0x98] sm:$0xf] %v1054_v28 }
  0x2e   : > { %1057 = vst [vmem:[%s1529_s24 + $0xa4] sm:$0xf] %v1056_v29 }
  0x2f   : > { %1059 = vst [vmem:[%s1529_s24 + $0xb0] sm:$0xf] %v1058_v30 }
  0x30   : > { %1061 = vst [vmem:[%s1529_s24 + $0xbc] sm:$0xf] %v1060_v31 }
  0x31 PF: > { %p1062_p6 = scmp.ge.s32.totalorder %s1463_s13, 1  ;;  %p245_p7 = scmp.lt.s32.totalorder %s1463_s13, 4 }
  0x33   : > { %p246_p8 = pnand %p1062_p6, %p245_p7 }
  0x34   : > { %s252_s25 = sand.u32 (!%p246_p8), 1, %s1447_s9   ;;  %s286_s26 = smul.u32 (!%p246_p8), 48, %s1455_s11 }
  0x35   : > { %249 = sbr.rel (%p246_p8) target bundleno = 350 (0x15e), region = 50  ;;  %p1064_p10 = scmp.ne.s32.totalorder (!%p246_p8), %s1455_s11, 0 }
  0x36   : > { %s1383_s27 = smul.u32 (!%p246_p8), 192, %s252_s25  ;;  %p287_p9 = scmp.lt.s32.totalorder (!%p246_p8), %s286_s26, 143 }
  0x38   : > { %s1601_s4 = scalar_lea.vmem (!%p246_p8), [#allocation3], %s1383_s27 }
  0x3a   : > { %s1778_s26 = smov (!%p287_p9, %s286_s26), 143  ;;  %307 = sbr.rel (%p1064_p10) target bundleno = 80 (0x50), region = 58 }
  0x3b   : > { %s1063_s28 = sshll.u32 %s1778_s26, 2 }
  0x3c   : > { %s1599_s3 = scalar_lea.vmem %s1769_s1, %s1063_s28 }
  0x3f   : > { %v1465_v32 = vmov 0.0  }
  0x40   : > { %308 = vst [vmem:[#allocation2 + $0x30] sm:$0xff] %v1465_v32 }
  0x41   : > { %309 = vst [vmem:[#allocation2] sm:$0xff] %v1465_v32 }
  0x42   : > { %310 = vst [vmem:[#allocation2 + $0x58] sm:$0xff] %v1465_v32 }
  0x43   : > { %311 = vst [vmem:[#allocation2 + $0x18] sm:$0xff] %v1465_v32 }
  0x44   : > { %312 = vst [vmem:[#allocation2 + $0x50] sm:$0xff] %v1465_v32 }
  0x45   : > { %313 = vst [vmem:[#allocation2 + $0x68] sm:$0xff] %v1465_v32 }
  0x46   : > { %314 = vst [vmem:[#allocation2 + $0x8] sm:$0xff] %v1465_v32 }
  0x47   : > { %315 = vst [vmem:[#allocation2 + $0x48] sm:$0xff] %v1465_v32 }
  0x48   : > { %316 = vst [vmem:[#allocation2 + $0x40] sm:$0xff] %v1465_v32 }
  0x49   : > { %317 = vst [vmem:[#allocation2 + $0x20] sm:$0xff] %v1465_v32 }
  0x4a   : > { %318 = vst [vmem:[#allocation2 + $0x10] sm:$0xff] %v1465_v32 }
  0x4b   : > { %319 = vst [vmem:[#allocation2 + $0x38] sm:$0xff] %v1465_v32 }
  0x4c   : > { %320 = vst [vmem:[#allocation2 + $0x60] sm:$0xff] %v1465_v32 }
  0x4d   : > { %321 = vst [vmem:[#allocation2 + $0x70] sm:$0xff] %v1465_v32 }
  0x4e   : > { %322 = vst [vmem:[#allocation2 + $0x78] sm:$0xff] %v1465_v32 }
  0x4f   : > { %323 = vst [vmem:[#allocation2 + $0x28] sm:$0xff] %v1465_v32 }
  0x50 PF: > { %v1294_v33 = vld [vmem:[%s1599_s3 + $0x38] sm:$0xff]  ;;  %v1293_v36 = vld [vmem:[%s1599_s3 + $0x30] sm:$0xff]  ;;  %v1292_v39 = vld [vmem:[%s1599_s3 + $0x28] sm:$0xff]  ;;  %p1257_p11 = scmp.ne.s32.totalorder %s1455_s11, 2 }
  0x51   : > { %v1606_v34 = vld [vmem:[%s1599_s3 + $0x78] sm:$0xff]  ;;  %692 = vmatpush.bf16.msra.mxu0 %v1294_v33  ;;  %1358 = vmatpush.bf16.msra.mxu3 %v1294_v33  ;;  %v1615_v37 = vld [vmem:[%s1599_s3 + $0x70] sm:$0xff]  ;;  %v1300_v40 = vld [vmem:[%s1599_s3 + $0x68] sm:$0xff] }
  0x52   : > { %v1609_v35 = vld [vmem:[%s1599_s3 + $0xb8] sm:$0xff]  ;;  %741 = vmatpush.bf16.msra.mxu1 %v1606_v34  ;;  %v1618_v38 = vld [vmem:[%s1599_s3 + $0xb0] sm:$0xff]  ;;  %v1625_v41 = vld [vmem:[%s1599_s3 + $0xa8] sm:$0xff] }
  0x53   : > { %790 = vmatpush.bf16.msra.mxu2 %v1609_v35  ;;  %v1291_v42 = vld [vmem:[%s1599_s3 + $0x20] sm:$0xff]  ;;  %v1290_v45 = vld [vmem:[%s1599_s3 + $0x18] sm:$0xff]  ;;  %v1289_v48 = vld [vmem:[%s1599_s3 + $0x10] sm:$0xff] }
  0x54   : > { %v1299_v43 = vld [vmem:[%s1599_s3 + $0x60] sm:$0xff]  ;;  %v1298_v46 = vld [vmem:[%s1599_s3 + $0x58] sm:$0xff]  ;;  %v1297_v49 = vld [vmem:[%s1599_s3 + $0x50] sm:$0xff] }
  0x55   : > { %693 = vmatpush.bf16.msra.mxu0 %v1293_v36  ;;  %1359 = vmatpush.bf16.msra.mxu3 %v1293_v36  ;;  %v1631_v44 = vld [vmem:[%s1599_s3 + $0xa0] sm:$0xff]  ;;  %v1637_v47 = vld [vmem:[%s1599_s3 + $0x98] sm:$0xff]  ;;  %v1643_v50 = vld [vmem:[%s1599_s3 + $0x90] sm:$0xff] }
  0x56   : > { %742 = vmatpush.bf16.msra.mxu1 %v1615_v37  ;;  %v1288_v51 = vld [vmem:[%s1599_s3 + $0x8] sm:$0xff]  ;;  %v1287_v54 = vld [vmem:[%s1599_s3] sm:$0xff]  ;;  %v1139_v59 = vld [vmem:[%s1601_s4 + $0x90] sm:$0xf] }
  0x57   : > { %791 = vmatpush.bf16.msra.mxu2 %v1618_v38  ;;  %v1296_v52 = vld [vmem:[%s1599_s3 + $0x48] sm:$0xff]  ;;  %v1295_v55 = vld [vmem:[%s1599_s3 + $0x40] sm:$0xff]  ;;  %v1282_v60 = vld [vmem:[%s1601_s4 + $0x98] sm:$0xf0] }
  0x58   : > { %v1649_v53 = vld [vmem:[%s1599_s3 + $0x88] sm:$0xff]  ;;  %v1654_v56 = vld [vmem:[%s1599_s3 + $0x80] sm:$0xff]  ;;  %v1069_v62 = vld [vmem:[%s1601_s4 + $0xc] sm:$0xf0]  ;;  %v1140_v2 = vor.u32 %v1282_v60, %v1139_v59 }
  0x59   : > { %694 = vmatpush.bf16.msra.mxu0 %v1292_v39  ;;  %1360 = vmatpush.bf16.msra.mxu3 %v1292_v39  ;;  %v1067_v57 = vld [vmem:[%s1601_s4] sm:$0xf]  ;;  %v1264_v58 = vld [vmem:[%s1601_s4 + $0x8] sm:$0xf0]  ;;  %v1263_v61 = vld [vmem:[%s1601_s4 + $0x4] sm:$0xf] }
  0x5a   : > { %743 = vmatpush.bf16.msra.mxu1 %v1300_v40  ;;  %v1075_v63 = vld [vmem:[%s1601_s4 + $0x8] sm:$0xf]  ;;  %v1265_v0 = vld [vmem:[%s1601_s4 + $0x10] sm:$0xf0]  ;;  %v1068_v1 = vor.u32 %v1264_v58, %v1067_v57  ;;  %v1072_v3 = vor.u32 %v1263_v61, %v1069_v62  ;;  %v1079_v5 = vld [vmem:[%s1601_s4 + $0x18] sm:$0xf] }
  0x5b   : > { %792 = vmatpush.bf16.msra.mxu2 %v1625_v41  ;;  %v1076_v4 = vor.u32 %v1265_v0, %v1075_v63  ;;  %v1267_v6 = vld [vmem:[%s1601_s4 + $0x20] sm:$0xf0]  ;;  %v1151_v7 = vld [vmem:[%s1601_s4 + $0xa8] sm:$0xf]  ;;  %v1285_v8 = vld [vmem:[%s1601_s4 + $0xb0] sm:$0xf0] }
  0x5c   : > { %v1266_v9 = vld [vmem:[%s1601_s4 + $0x1c] sm:$0xf]  ;;  %v1081_v10 = vld [vmem:[%s1601_s4 + $0x24] sm:$0xf0]  ;;  %v1087_v11 = vld [vmem:[%s1601_s4 + $0x20] sm:$0xf]  ;;  %v1080_v13 = vor.u32 %v1267_v6, %v1079_v5  ;;  %v1152_v14 = vor.u32 %v1285_v8, %v1151_v7 }
  0x5d   : > { %695 = vmatpush.bf16.msra.mxu0 %v1291_v42  ;;  %1361 = vmatpush.bf16.msra.mxu3 %v1291_v42  ;;  %v1268_v12 = vld [vmem:[%s1601_s4 + $0x28] sm:$0xf0]  ;;  %v1084_v15 = vor.u32 %v1266_v9, %v1081_v10  ;;  %v1091_v17 = vld [vmem:[%s1601_s4 + $0x30] sm:$0xf]  ;;  %v1270_v18 = vld [vmem:[%s1601_s4 + $0x38] sm:$0xf0] }
  0x5e   : > { %744 = vmatpush.bf16.msra.mxu1 %v1299_v43  ;;  %v1088_v16 = vor.u32 %v1268_v12, %v1087_v11  ;;  %v1269_v19 = vld [vmem:[%s1601_s4 + $0x34] sm:$0xf]  ;;  %v1141_v21 = vld [vmem:[%s1601_s4 + $0x9c] sm:$0xf0]  ;;  %v1099_v23 = vld [vmem:[%s1601_s4 + $0x38] sm:$0xf]  ;;  %v1092_v25 = vor.u32 %v1270_v18, %v1091_v17 }
  0x5f   : > { %793 = vmatpush.bf16.msra.mxu2 %v1631_v44  ;;  %v1281_v20 = vld [vmem:[%s1601_s4 + $0x94] sm:$0xf]  ;;  %v1093_v22 = vld [vmem:[%s1601_s4 + $0x3c] sm:$0xf0]  ;;  %v1271_v24 = vld [vmem:[%s1601_s4 + $0x40] sm:$0xf0] }
  0x60   : > { %v1144_v26 = vor.u32 %v1281_v20, %v1141_v21  ;;  %v1096_v27 = vor.u32 %v1269_v19, %v1093_v22  ;;  %v1100_v28 = vor.u32 %v1271_v24, %v1099_v23  ;;  %v1103_v29 = vld [vmem:[%s1601_s4 + $0x48] sm:$0xf]  ;;  %v1273_v30 = vld [vmem:[%s1601_s4 + $0x50] sm:$0xf0]  ;;  %v1272_v31 = vld [vmem:[%s1601_s4 + $0x4c] sm:$0xf] }
  0x61   : > { %696 = vmatpush.bf16.msra.mxu0 %v1290_v45  ;;  %1362 = vmatpush.bf16.msra.mxu3 %v1290_v45  ;;  %v1284_v32 = vld [vmem:[%s1601_s4 + $0xac] sm:$0xf]  ;;  %v1153_v33 = vld [vmem:[%s1601_s4 + $0xb4] sm:$0xf0]  ;;  %v1274_v36 = vld [vmem:[%s1601_s4 + $0x58] sm:$0xf0] }
  0x62   : > { %745 = vmatpush.bf16.msra.mxu1 %v1298_v46  ;;  %v1156_v39 = vor.u32 %v1284_v32, %v1153_v33  ;;  %v1276_v42 = vld [vmem:[%s1601_s4 + $0x68] sm:$0xf0]  ;;  %v1283_v45 = vld [vmem:[%s1601_s4 + $0xa0] sm:$0xf0]  ;;  %v1159_v57 = vld [vmem:[%s1601_s4 + $0xb0] sm:$0xf] }
  0x63   : > { %794 = vmatpush.bf16.msra.mxu2 %v1637_v47  ;;  %v1129_v58 = vld [vmem:[%s1601_s4 + $0x84] sm:$0xf0]  ;;  %v1135_v59 = vld [vmem:[%s1601_s4 + $0x80] sm:$0xf]  ;;  %v1280_v60 = vld [vmem:[%s1601_s4 + $0x88] sm:$0xf0] }
  0x64   : > { %v1136_v0 = vor.u32 %v1280_v60, %v1135_v59  ;;  %v324_v5 = vld [vmem:[#allocation2 + $0x30] sm:$0xff]  ;;  %v326_v21 = vld [vmem:[#allocation2 + $0x58] sm:$0xff] }
  0x65   : > { %697 = vmatpush.bf16.msra.mxu0 %v1289_v48  ;;  %1363 = vmatpush.bf16.msra.mxu3 %v1289_v48  ;;  %v1277_v48 = vld [vmem:[%s1601_s4 + $0x70] sm:$0xf0] }
  0x66   : > { %746 = vmatpush.bf16.msra.mxu1 %v1297_v49 }
  0x67   : > { %795 = vmatpush.bf16.msra.mxu2 %v1643_v50 }
  0x69   : > { %698 = vmatpush.bf16.msra.mxu0 %v1288_v51  ;;  %1364 = vmatpush.bf16.msra.mxu3 %v1288_v51 }
  0x6a   : > { %747 = vmatpush.bf16.msra.mxu1 %v1296_v52 }
  0x6b   : > { %796 = vmatpush.bf16.msra.mxu2 %v1649_v53 }
  0x6d   : > { %699 = vmatpush.bf16.msra.mxu0 %v1287_v54  ;;  %1365 = vmatpush.bf16.msra.mxu3 %v1287_v54  ;;  %v1279_v54 = vld [vmem:[%s1601_s4 + $0x80] sm:$0xf0] }
  0x6e   : > { %748 = vmatpush.bf16.msra.mxu1 %v1295_v55 }
  0x6f   : > { %797 = vmatpush.bf16.msra.mxu2 %v1654_v56 }
  0x70   : > { %700 = vmatmul.bf16.vlgmr.msra.gmra.mxu0 %v1068_v1  ;;  %730 = vmatmul.bf16.vlgmr.msra.gmra.mxu3 %v1140_v2 }
  0x71   : > { %1366 = vmatpush.bf16.msrb.mxu3 %v1606_v34  ;;  %749 = vmatmul.bf16.vlgmr.msra.gmra.mxu1 %v1072_v3  ;;  %v1105_v34 = vld [vmem:[%s1601_s4 + $0x54] sm:$0xf0] }
  0x72   : > { %798 = vmatmul.bf16.vlgmr.msra.gmra.mxu2 %v1076_v4 }
  0x75   : > { %1367 = vmatpush.bf16.msrb.mxu3 %v1615_v37  ;;  %v1104_v37 = vor.u32 %v1273_v30, %v1103_v29  ;;  %v327_v29 = vld [vmem:[#allocation2 + $0x18] sm:$0xff] }
  0x79   : > { %1368 = vmatpush.bf16.msrb.mxu3 %v1300_v40 }
  0x7d   : > { %1369 = vmatpush.bf16.msrb.mxu3 %v1299_v43  ;;  %v1275_v43 = vld [vmem:[%s1601_s4 + $0x64] sm:$0xf] }
  0x80   : > { %705 = vmatmul.bf16.gmra.mxu0 %v1080_v13  ;;  %735 = vmatmul.bf16.gmra.mxu3 %v1152_v14  ;;  %v325_v13 = vld [vmem:[#allocation2] sm:$0xff] }
  0x81   : > { %1370 = vmatpush.bf16.msrb.mxu3 %v1298_v46  ;;  %754 = vmatmul.bf16.gmra.mxu1 %v1084_v15  ;;  %v1117_v46 = vld [vmem:[%s1601_s4 + $0x6c] sm:$0xf0] }
  0x82   : > { %803 = vmatmul.bf16.gmra.mxu2 %v1088_v16  ;;  %v1120_v51 = vor.u32 %v1275_v43, %v1117_v46 }
  0x85   : > { %1371 = vmatpush.bf16.msrb.mxu3 %v1297_v49 }
  0x89   : > { %1372 = vmatpush.bf16.msrb.mxu3 %v1296_v52 }
  0x8d   : > { %1373 = vmatpush.bf16.msrb.mxu3 %v1295_v55  ;;  %v1278_v55 = vld [vmem:[%s1601_s4 + $0x7c] sm:$0xf] }
  0x8e   : > { %v1132_v63 = vor.u32 %v1278_v55, %v1129_v58 }
  0x90   : > { %710 = vmatmul.bf16.gmra.mxu0 %v1092_v25  ;;  %779 = vmatmul.bf16.vlgmr.msrb.gmra.mxu3 %v1144_v26 }
  0x91   : > { %1374 = vmatpush.bf16.msra.mxu3 %v1609_v35  ;;  %759 = vmatmul.bf16.gmra.mxu1 %v1096_v27  ;;  %v1111_v35 = vld [vmem:[%s1601_s4 + $0x50] sm:$0xf] }
  0x92   : > { %808 = vmatmul.bf16.gmra.mxu2 %v1100_v28  ;;  %v1112_v40 = vor.u32 %v1274_v36, %v1111_v35 }
  0x95   : > { %1375 = vmatpush.bf16.msra.mxu3 %v1618_v38  ;;  %v1108_v38 = vor.u32 %v1272_v31, %v1105_v34 }
  0x99   : > { %1376 = vmatpush.bf16.msra.mxu3 %v1625_v41  ;;  %v1115_v41 = vld [vmem:[%s1601_s4 + $0x60] sm:$0xf] }
  0x9a   : > { %v1116_v49 = vor.u32 %v1276_v42, %v1115_v41 }
  0x9d   : > { %1377 = vmatpush.bf16.msra.mxu3 %v1631_v44  ;;  %v1147_v44 = vld [vmem:[%s1601_s4 + $0x98] sm:$0xf] }
  0xa0   : > { %715 = vmatmul.bf16.gmra.mxu0 %v1104_v37  ;;  %784 = vmatmul.bf16.gmra.mxu3 %v1156_v39  ;;  %v328_v37 = vld [vmem:[#allocation2 + $0x50] sm:$0xff] }
  0xa1   : > { %1378 = vmatpush.bf16.msra.mxu3 %v1637_v47  ;;  %764 = vmatmul.bf16.gmra.mxu1 %v1108_v38  ;;  %v1123_v47 = vld [vmem:[%s1601_s4 + $0x68] sm:$0xf] }
  0xa2   : > { %813 = vmatmul.bf16.gmra.mxu2 %v1112_v40  ;;  %v1124_v52 = vor.u32 %v1277_v48, %v1123_v47 }
  0xa5   : > { %1379 = vmatpush.bf16.msra.mxu3 %v1643_v50  ;;  %v1148_v50 = vor.u32 %v1283_v45, %v1147_v44  ;;  %v329_v45 = vld [vmem:[#allocation2 + $0x68] sm:$0xff] }
  0xa9   : > { %1380 = vmatpush.bf16.msra.mxu3 %v1649_v53  ;;  %v1127_v53 = vld [vmem:[%s1601_s4 + $0x78] sm:$0xf] }
  0xaa   : > { %v1128_v61 = vor.u32 %v1279_v54, %v1127_v53  ;;  %v330_v53 = vld [vmem:[#allocation2 + $0x8] sm:$0xff] }
  0xad   : > { %1381 = vmatpush.bf16.msra.mxu3 %v1654_v56  ;;  %v1286_v56 = vld [vmem:[%s1601_s4 + $0xb8] sm:$0xf0] }
  0xae   : > { %v1160_v62 = vor.u32 %v1286_v56, %v1159_v57 }
  0xb0   : > { %720 = vmatmul.bf16.gmra.mxu0 %v1116_v49  ;;  %828 = vmatmul.bf16.vlgmr.msra.gmra.mxu3 %v1148_v50 }
  0xb1   : > { %769 = vmatmul.bf16.gmra.mxu1 %v1120_v51 }
  0xb2   : > { %818 = vmatmul.bf16.gmra.mxu2 %v1124_v52 }
  0xc0   : > { %725 = vmatmul.bf16.gmra.mxu0 %v1128_v61  ;;  %833 = vmatmul.bf16.gmra.mxu3 %v1160_v62  ;;  %v331_v61 = vld [vmem:[#allocation2 + $0x48] sm:$0xff] }
  0xc1   : > { %774 = vmatmul.bf16.gmra.mxu1 %v1132_v63 }
  0xc2   : > { %823 = vmatmul.bf16.gmra.mxu2 %v1136_v0 }
  0xed   : > { %v701_v1 = vpop.f32.mrf.mxu0 }
  0xee   : > { %v750_v2 = vpop.f32.mrf.mxu1 }
  0xef   : > { %v751_v3 = vadd.f32 %v750_v2, %v701_v1 }
  0xf3   : > { %v1716_v4 = vpop.f32.mrf.mxu3 }
  0xf5   : > { %v799_v6 = vpop.f32.mrf.mxu2  ;;  %v703_v8 = vpop.f32.mrf.mxu0 }
  0xf6   : > { %v800_v7 = vadd.f32 %v799_v6, %v751_v3  ;;  %v752_v9 = vpop.f32.mrf.mxu1  ;;  %v336_v6 = vld [vmem:[#allocation2 + $0x60] sm:$0xff] }
  0xf7   : > { %v753_v11 = vadd.f32 %v752_v9, %v703_v8  ;;  %v332_v8 = vld [vmem:[#allocation2 + $0x40] sm:$0xff] }
  0xf8   : > { %v839_v10 = vadd.f32 %v800_v7, %v324_v5 }
  0xfa   : > { %855 = vst [vmem:[#allocation2 + $0x30] sm:$0xff] %v839_v10 }
  0xfb   : > { %v1718_v12 = vpop.f32.mrf.mxu3 }
  0xfd   : > { %v801_v14 = vpop.f32.mrf.mxu2  ;;  %v706_v16 = vpop.f32.mrf.mxu0 }
  0xfe   : > { %v802_v15 = vadd.f32 %v801_v14, %v753_v11  ;;  %v755_v17 = vpop.f32.mrf.mxu1 }
  0xff   : > { %v756_v19 = vadd.f32 %v755_v17, %v706_v16 }
 0x100   : > { %v840_v18 = vadd.f32 %v802_v15, %v325_v13 }
 0x102   : > { %856 = vst [vmem:[#allocation2] sm:$0xff] %v840_v18 }
 0x103   : > { %v1720_v20 = vpop.f32.mrf.mxu3 }
 0x105   : > { %v804_v22 = vpop.f32.mrf.mxu2  ;;  %v708_v24 = vpop.f32.mrf.mxu0 }
 0x106   : > { %v805_v23 = vadd.f32 %v804_v22, %v756_v19  ;;  %v757_v25 = vpop.f32.mrf.mxu1  ;;  %v337_v19 = vld [vmem:[#allocation2 + $0x70] sm:$0xff]  ;;  %v333_v22 = vld [vmem:[#allocation2 + $0x20] sm:$0xff] }
 0x107   : > { %v758_v27 = vadd.f32 %v757_v25, %v708_v24 }
 0x108   : > { %v841_v26 = vadd.f32 %v805_v23, %v326_v21 }
 0x10a   : > { %857 = vst [vmem:[#allocation2 + $0x58] sm:$0xff] %v841_v26 }
 0x10b   : > { %v1722_v28 = vpop.f32.mrf.mxu3 }
 0x10d   : > { %v806_v30 = vpop.f32.mrf.mxu2  ;;  %v711_v32 = vpop.f32.mrf.mxu0 }
 0x10e   : > { %v807_v31 = vadd.f32 %v806_v30, %v758_v27  ;;  %v760_v33 = vpop.f32.mrf.mxu1 }
 0x10f   : > { %v761_v35 = vadd.f32 %v760_v33, %v711_v32  ;;  %v338_v32 = vld [vmem:[#allocation2 + $0x78] sm:$0xff] }
 0x110   : > { %v842_v34 = vadd.f32 %v807_v31, %v327_v29 }
 0x112   : > { %858 = vst [vmem:[#allocation2 + $0x18] sm:$0xff] %v842_v34  ;;  %v334_v34 = vld [vmem:[#allocation2 + $0x10] sm:$0xff] }
 0x113   : > { %v780_v36 = vpop.f32.mrf.mxu3 }
 0x114   : > { %v781_v5 = vadd.f32 %v780_v36, %v1716_v4 }
 0x115   : > { %v809_v39 = vpop.f32.mrf.mxu2  ;;  %v713_v40 = vpop.f32.mrf.mxu0 }
 0x116   : > { %v810_v38 = vadd.f32 %v809_v39, %v761_v35  ;;  %v762_v41 = vpop.f32.mrf.mxu1 }
 0x117   : > { %v763_v43 = vadd.f32 %v762_v41, %v713_v40 }
 0x118   : > { %v843_v42 = vadd.f32 %v810_v38, %v328_v37 }
 0x11a   : > { %859 = vst [vmem:[#allocation2 + $0x50] sm:$0xff] %v843_v42 }
 0x11b   : > { %v782_v44 = vpop.f32.mrf.mxu3 }
 0x11c   : > { %v783_v17 = vadd.f32 %v782_v44, %v1718_v12 }
 0x11d   : > { %v811_v46 = vpop.f32.mrf.mxu2  ;;  %v716_v48 = vpop.f32.mrf.mxu0 }
 0x11e   : > { %v812_v47 = vadd.f32 %v811_v46, %v763_v43  ;;  %v765_v49 = vpop.f32.mrf.mxu1  ;;  %v339_v43 = vld [vmem:[#allocation2 + $0x28] sm:$0xff] }
 0x11f   : > { %v766_v51 = vadd.f32 %v765_v49, %v716_v48 }
 0x120   : > { %v844_v50 = vadd.f32 %v812_v47, %v329_v45  ;;  %v335_v45 = vld [vmem:[#allocation2 + $0x38] sm:$0xff] }
 0x122   : > { %860 = vst [vmem:[#allocation2 + $0x68] sm:$0xff] %v844_v50 }
 0x123   : > { %v785_v52 = vpop.f32.mrf.mxu3 }
 0x124   : > { %v786_v31 = vadd.f32 %v785_v52, %v1720_v20 }
 0x125   : > { %v814_v54 = vpop.f32.mrf.mxu2  ;;  %v718_v57 = vpop.f32.mrf.mxu0 }
 0x126   : > { %v815_v55 = vadd.f32 %v814_v54, %v766_v51  ;;  %v767_v56 = vpop.f32.mrf.mxu1 }
 0x127   : > { %v768_v59 = vadd.f32 %v767_v56, %v718_v57 }
 0x128   : > { %v845_v58 = vadd.f32 %v815_v55, %v330_v53 }
 0x12a   : > { %861 = vst [vmem:[#allocation2 + $0x8] sm:$0xff] %v845_v58 }
 0x12b   : > { %v787_v60 = vpop.f32.mrf.mxu3 }
 0x12c   : > { %v788_v41 = vadd.f32 %v787_v60, %v1722_v28 }
 0x12d   : > { %v816_v62 = vpop.f32.mrf.mxu2  ;;  %v721_v0 = vpop.f32.mrf.mxu0 }
 0x12e   : > { %v817_v63 = vadd.f32 %v816_v62, %v768_v59  ;;  %v770_v1 = vpop.f32.mrf.mxu1 }
 0x12f   : > { %v771_v3 = vadd.f32 %v770_v1, %v721_v0 }
 0x130   : > { %v846_v2 = vadd.f32 %v817_v63, %v331_v61 }
 0x132   : > { %862 = vst [vmem:[#allocation2 + $0x48] sm:$0xff] %v846_v2 }
 0x133   : > { %v829_v7 = vpop.f32.mrf.mxu3 }
 0x134   : > { %v830_v10 = vadd.f32 %v829_v7, %v781_v5 }
 0x135   : > { %v819_v9 = vpop.f32.mrf.mxu2  ;;  %v723_v13 = vpop.f32.mrf.mxu0 }
 0x136   : > { %v820_v11 = vadd.f32 %v819_v9, %v771_v3  ;;  %v851_v14 = vadd.f32 %v830_v10, %v336_v6  ;;  %v772_v15 = vpop.f32.mrf.mxu1 }
 0x137   : > { %v773_v18 = vadd.f32 %v772_v15, %v723_v13 }
 0x138   : > { %v847_v16 = vadd.f32 %v820_v11, %v332_v8  ;;  %867 = vst [vmem:[#allocation2 + $0x60] sm:$0xff] %v851_v14 }
 0x13a   : > { %863 = vst [vmem:[#allocation2 + $0x40] sm:$0xff] %v847_v16 }
 0x13b   : > { %v831_v21 = vpop.f32.mrf.mxu3 }
 0x13c   : > { %v832_v4 = vadd.f32 %v831_v21, %v783_v17 }
 0x13d   : > { %v821_v23 = vpop.f32.mrf.mxu2  ;;  %v726_v26 = vpop.f32.mrf.mxu0 }
 0x13e   : > { %v822_v24 = vadd.f32 %v821_v23, %v773_v18  ;;  %v852_v25 = vadd.f32 %v832_v4, %v337_v19  ;;  %v775_v27 = vpop.f32.mrf.mxu1 }
 0x13f   : > { %v776_v30 = vadd.f32 %v775_v27, %v726_v26 }
 0x140   : > { %v848_v29 = vadd.f32 %v822_v24, %v333_v22  ;;  %868 = vst [vmem:[#allocation2 + $0x70] sm:$0xff] %v852_v25 }
 0x142   : > { %864 = vst [vmem:[#allocation2 + $0x20] sm:$0xff] %v848_v29 }
 0x143   : > { %v834_v33 = vpop.f32.mrf.mxu3 }
 0x144   : > { %v835_v35 = vadd.f32 %v834_v33, %v786_v31 }
 0x145   : > { %v824_v12 = vpop.f32.mrf.mxu2  ;;  %v728_v38 = vpop.f32.mrf.mxu0 }
 0x146   : > { %v825_v36 = vadd.f32 %v824_v12, %v776_v30  ;;  %v853_v37 = vadd.f32 %v835_v35, %v338_v32  ;;  %v777_v40 = vpop.f32.mrf.mxu1 }
 0x147   : > { %v778_v42 = vadd.f32 %v777_v40, %v728_v38 }
 0x148   : > { %v849_v39 = vadd.f32 %v825_v36, %v334_v34  ;;  %869 = vst [vmem:[#allocation2 + $0x78] sm:$0xff] %v853_v37 }
 0x14a   : > { %865 = vst [vmem:[#allocation2 + $0x10] sm:$0xff] %v849_v39 }
 0x14b   : > { %v836_v44 = vpop.f32.mrf.mxu3 }
 0x14c   : > { %v837_v20 = vadd.f32 %v836_v44, %v788_v41 }
 0x14d   : > { %v826_v46 = vpop.f32.mrf.mxu2 }
 0x14e   : > { %v827_v47 = vadd.f32 %v826_v46, %v778_v42  ;;  %v854_v48 = vadd.f32 %v837_v20, %v339_v43  ;;  %874 = sbr.rel (%p1257_p11) target bundleno = 350 (0x15e), region = 62 }
 0x150   : > { %v850_v49 = vadd.f32 %v827_v47, %v335_v45  ;;  %870 = vst [vmem:[#allocation2 + $0x28] sm:$0xff] %v854_v48 }
 0x152   : > { %866 = vst [vmem:[#allocation2 + $0x38] sm:$0xff] %v850_v49 }
 0x153   : > { %v875_v50 = vld [vmem:[#allocation2 + $0x30] sm:$0xff]  ;;  %v876_v51 = vld [vmem:[#allocation2] sm:$0xff]  ;;  %v877_v52 = vld [vmem:[#allocation2 + $0x58] sm:$0xff] }
 0x154   : > { %v1314_v53 = vpack.c.bf16 %v876_v51, %v875_v50  ;;  %v878_v54 = vld [vmem:[#allocation2 + $0x18] sm:$0xff]  ;;  %v879_v28 = vld [vmem:[#allocation2 + $0x50] sm:$0xff]  ;;  %v880_v55 = vld [vmem:[#allocation2 + $0x68] sm:$0xff] }
 0x155   : > { %v1319_v57 = vpack.c.bf16 %v878_v54, %v877_v52  ;;  %v1324_v56 = vpack.c.bf16 %v880_v55, %v879_v28  ;;  %v881_v58 = vld [vmem:[#allocation2 + $0x8] sm:$0xff]  ;;  %v883_v60 = vld [vmem:[#allocation2 + $0x40] sm:$0xff]  ;;  %v885_v63 = vld [vmem:[#allocation2 + $0x10] sm:$0xff] }
 0x156   : > { %v882_v59 = vld [vmem:[#allocation2 + $0x48] sm:$0xff]  ;;  %1315 = vst [vmem:[%s1770_s2] sm:$0xff] %v1314_v53   ;;  %v884_v62 = vld [vmem:[#allocation2 + $0x20] sm:$0xff]  ;;  %v888_v5 = vld [vmem:[#allocation2 + $0x70] sm:$0xff] }
 0x157   : > { %v1329_v61 = vpack.c.bf16 %v882_v59, %v881_v58  ;;  %1351 = vst [vmem:[%s1770_s2 + $0x8] sm:$0xff] %v1319_v57   ;;  %v1334_v1 = vpack.c.bf16 %v884_v62, %v883_v60  ;;  %v887_v3 = vld [vmem:[#allocation2 + $0x60] sm:$0xff]  ;;  %v889_v6 = vld [vmem:[#allocation2 + $0x78] sm:$0xff]  ;;  %v890_v8 = vld [vmem:[#allocation2 + $0x28] sm:$0xff] }
 0x158   : > { %1352 = vst [vmem:[%s1770_s2 + $0x10] sm:$0xff] %v1324_v56   ;;  %v1344_v7 = vpack.c.bf16 %v888_v5, %v887_v3  ;;  %v1349_v9 = vpack.c.bf16 %v890_v8, %v889_v6 }
 0x159   : > { %v886_v0 = vld [vmem:[#allocation2 + $0x38] sm:$0xff]  ;;  %1353 = vst [vmem:[%s1770_s2 + $0x18] sm:$0xff] %v1329_v61  }
 0x15a   : > { %v1339_v2 = vpack.c.bf16 %v886_v0, %v885_v63  ;;  %1354 = vst [vmem:[%s1770_s2 + $0x20] sm:$0xff] %v1334_v1  }
 0x15b   : > { %1356 = vst [vmem:[%s1770_s2 + $0x30] sm:$0xff] %v1344_v7  }
 0x15c   : > { %1355 = vst [vmem:[%s1770_s2 + $0x28] sm:$0xff] %v1339_v2  }
 0x15d   : > { %1357 = vst [vmem:[%s1770_s2 + $0x38] sm:$0xff] %v1349_v9  }
 0x15e PF: > { %s12_s13 = sadd.s32 1, %s1463_s13   ;;  %s1771_s9 = smov %s1451_s10 }
 0x15f   : > { %p9_p12 = scmp.ge.s32.totalorder %s12_s13, 5   ;;  %s1772_s10 = smov %s1516_s17 }
 0x160   : > { %s1773_s11 = smov %s1459_s12  ;;  %s1774_s12 = smov %s1776_s14 }
 0x161   :  { %11 = sbr.rel (!%p9_p12) target bundleno = 3 (0x3), region = 106 }

// kernel: densenet_forward.48
= control target key start
LH: loop header
LB: loop body
LE: loop exit
PB: predicated region body
PF: predicated region fallthrough
CT: control target
= control target key end

     0   :  { %v77_v0 = vmov 0.0   ;;  %s105_s0 = inlined_call_operand.vmem [shape: bf16[32,128], index: 0, kind: input, shape index: {}]   ;;  %s106_s1 = inlined_call_operand.vmem [shape: f32[1,128], index: 1, kind: output, shape index: {0}]   ;;  %s107_s2 = inlined_call_operand.vmem [shape: f32[1,128], index: 2, kind: output, shape index: {1}]  }
   0x1   :  { %14 = vst [vmem:[#allocation2] sm:$0x1] %v77_v0  ;;  %v68_v1 = vld [vmem:[%s105_s0] sm:$0xff]   ;;  %v75_v2 = vld [vmem:[%s105_s0 + $0x8] sm:$0xff]  }
   0x2   :  { %15 = vst [vmem:[#allocation3] sm:$0x1] %v77_v0  ;;  %v69_v3 = vunpack.c.l.bf16 %v68_v1  ;;  %v70_v4 = vunpack.c.h.bf16 %v68_v1  ;;  %v73_v5 = vunpack.c.l.bf16 %v75_v2  ;;  %v74_v6 = vunpack.c.h.bf16 %v75_v2 }
   0x4   :  { %v25_v7 = vadd.f32 %v70_v4, %v69_v3  ;;  %v37_v8 = vmul.f32 %v69_v3, %v69_v3  ;;  %v38_v9 = vmul.f32 %v70_v4, %v70_v4  ;;  %v39_v10 = vmul.f32 %v73_v5, %v73_v5 }
   0x5   :  { %v40_v12 = vmul.f32 %v74_v6, %v74_v6 }
   0x6   :  { %v26_v11 = vadd.f32 %v73_v5, %v25_v7  ;;  %v41_v13 = vadd.f32 %v38_v9, %v37_v8 }
   0x8   :  { %v27_v14 = vadd.f32 %v74_v6, %v26_v11  ;;  %v42_v15 = vadd.f32 %v41_v13, %v39_v10  ;;  %v24_v26 = vld [vmem:[#allocation2] sm:$0x1] }
   0x9   :  { %v36_v29 = vld [vmem:[#allocation3] sm:$0x1] }
   0xa   :  { %v28_v16 = vrot.slane %v27_v14, 4  ;;  %v43_v17 = vadd.f32 %v42_v15, %v40_v12 }
   0xc   :  { %v29_v18 = vadd.f32 %v28_v16, %v27_v14  ;;  %v44_v19 = vrot.slane %v43_v17, 4 }
   0xe   :  { %v30_v20 = vrot.slane %v29_v18, 2  ;;  %v45_v21 = vadd.f32 %v44_v19, %v43_v17 }
  0x10   :  { %v31_v22 = vadd.f32 %v30_v20, %v29_v18  ;;  %v46_v23 = vrot.slane %v45_v21, 2 }
  0x12   :  { %v32_v24 = vrot.slane %v31_v22, 1  ;;  %v47_v25 = vadd.f32 %v46_v23, %v45_v21 }
  0x14   :  { %v33_v27 = vadd.f32 %v32_v24, %v31_v22  ;;  %v48_v28 = vrot.slane %v47_v25, 1 }
  0x16   :  { %v34_v30 = vadd.f32 %v33_v27, %v24_v26  ;;  %v49_v31 = vadd.f32 %v48_v28, %v47_v25 }
  0x18   :  { %35 = vst [vmem:[#allocation2] sm:$0x1] %v34_v30  ;;  %v50_v32 = vadd.f32 %v49_v31, %v36_v29 }
  0x1a   :  { %51 = vst [vmem:[#allocation3] sm:$0x1] %v50_v32 }
  0x1f   :  { %v55_v33 = vld [vmem:[#allocation2] sm:$0x1] }
  0x20   :  { %56 = vst [vmem:[%s106_s1] sm:$0x1] %v55_v33 }
  0x21   :  { %v57_v34 = vld [vmem:[#allocation3] sm:$0x1] }
  0x22   :  { %58 = vst [vmem:[%s107_s2] sm:$0x1] %v57_v34 }

// kernel: densenet_forward.46
= control target key start
LH: loop header
LB: loop body
LE: loop exit
PB: predicated region body
PF: predicated region fallthrough
CT: control target
= control target key end

     0   :  { %s640_s3 = inlined_call_operand.vmem [shape: bf16[128,128], index: 3, kind: input, shape index: {}]   ;;  %s641_s1 = inlined_call_operand.vmem [shape: f32[1,128], index: 1, kind: input, shape index: {}]   ;;  %s642_s2 = inlined_call_operand.vmem [shape: f32[1,128], index: 2, kind: input, shape index: {}]   ;;  %s643_s0 = inlined_call_operand.vmem [shape: bf16[128,128], index: 0, kind: input, shape index: {}]   ;;  %s644_s4 = inlined_call_operand.vmem [shape: bf16[128,128], index: 4, kind: output, shape index: {}]  }
   0x1   :  { %v388_v0 = vld [vmem:[%s640_s3 + $0x38] sm:$0xff]  ;;  %v387_v1 = vld [vmem:[%s640_s3 + $0x30] sm:$0xff]  ;;  %v386_v2 = vld [vmem:[%s640_s3 + $0x28] sm:$0xff] }
   0x2   :  { %213 = vmatpush.bf16.msra.mxu0 %v388_v0  ;;  %475 = vmatpush.bf16.msra.mxu1 %v388_v0  ;;  %v390_v3 = vld [vmem:[%s643_s0] sm:$0xff]   ;;  %v462_v5 = vld [vmem:[%s643_s0 + $0x10] sm:$0xff]   ;;  %v384_v15 = vld [vmem:[%s640_s3 + $0x18] sm:$0xff] }
   0x3   :  { %476 = vmatpush.bf16.msra.mxu2 %v388_v0  ;;  %477 = vmatpush.bf16.msra.mxu3 %v388_v0  ;;  %v385_v4 = vld [vmem:[%s640_s3 + $0x20] sm:$0xff]  ;;  %v466_v7 = vld [vmem:[%s643_s0 + $0x30] sm:$0xff]   ;;  %v391_v8 = vunpack.c.l.bf16 %v390_v3  ;;  %v392_v9 = vunpack.c.h.bf16 %v390_v3  ;;  %v399_v11 = vunpack.c.l.bf16 %v462_v5  ;;  %v400_v12 = vunpack.c.h.bf16 %v462_v5  ;;  %v382_v34 = vld [vmem:[%s640_s3 + $0x8] sm:$0xff] }
   0x4   :  { %v464_v6 = vld [vmem:[%s643_s0 + $0x20] sm:$0xff]   ;;  %v415_v16 = vunpack.c.l.bf16 %v466_v7  ;;  %v416_v17 = vunpack.c.h.bf16 %v466_v7  ;;  %v383_v25 = vld [vmem:[%s640_s3 + $0x10] sm:$0xff]  ;;  %v461_v43 = vld [vmem:[%s643_s0 + $0x8] sm:$0xff]  }
   0x5   :  { %v553_v10 = vld [vmem:[%s641_s1] ss:$0 sm:$0xff]  ;;  %v407_v13 = vunpack.c.l.bf16 %v464_v6  ;;  %v408_v14 = vunpack.c.h.bf16 %v464_v6  ;;  %v463_v44 = vld [vmem:[%s643_s0 + $0x18] sm:$0xff]   ;;  %v465_v48 = vld [vmem:[%s643_s0 + $0x28] sm:$0xff]   ;;  %v395_v51 = vunpack.c.l.bf16 %v461_v43  ;;  %v396_v52 = vunpack.c.h.bf16 %v461_v43 }
   0x6   :  { %214 = vmatpush.bf16.msra.mxu0 %v387_v1  ;;  %478 = vmatpush.bf16.msra.mxu1 %v387_v1  ;;  %v73_v18 = vmul.f32 %v553_v10, %v391_v8  ;;  %v74_v19 = vmul.f32 %v553_v10, %v392_v9  ;;  %v563_v20 = vld [vmem:[%s642_s2] ss:$0 sm:$0xff]  ;;  %v77_v21 = vmul.f32 %v553_v10, %v399_v11  ;;  %v467_v49 = vld [vmem:[%s643_s0 + $0x38] sm:$0xff]   ;;  %v403_v53 = vunpack.c.l.bf16 %v463_v44 }
   0x7   :  { %479 = vmatpush.bf16.msra.mxu2 %v387_v1  ;;  %480 = vmatpush.bf16.msra.mxu3 %v387_v1  ;;  %v78_v22 = vmul.f32 %v553_v10, %v400_v12  ;;  %v81_v23 = vmul.f32 %v553_v10, %v407_v13  ;;  %v82_v24 = vmul.f32 %v553_v10, %v408_v14  ;;  %v381_v45 = vld [vmem:[%s640_s3] sm:$0xff]  ;;  %v404_v56 = vunpack.c.h.bf16 %v463_v44 }
   0x8   :  { %v85_v26 = vmul.f32 %v553_v10, %v415_v16  ;;  %v86_v27 = vmul.f32 %v553_v10, %v416_v17  ;;  %v93_v28 = vadd.f32 %v563_v20, %v73_v18  ;;  %v94_v29 = vadd.f32 %v563_v20, %v74_v19 }
   0x9   :  { %v97_v30 = vadd.f32 %v563_v20, %v77_v21  ;;  %v98_v31 = vadd.f32 %v563_v20, %v78_v22  ;;  %v101_v32 = vadd.f32 %v563_v20, %v81_v23  ;;  %v102_v33 = vadd.f32 %v563_v20, %v82_v24 }
   0xa   :  { %215 = vmatpush.bf16.msra.mxu0 %v386_v2  ;;  %481 = vmatpush.bf16.msra.mxu1 %v386_v2  ;;  %v105_v35 = vadd.f32 %v563_v20, %v85_v26  ;;  %v106_v36 = vadd.f32 %v563_v20, %v86_v27  ;;  %v109_v37 = vmax.f32 %v93_v28, 0.0  ;;  %v110_v38 = vmax.f32 %v94_v29, 0.0 }
   0xb   :  { %482 = vmatpush.bf16.msra.mxu2 %v386_v2  ;;  %483 = vmatpush.bf16.msra.mxu3 %v386_v2  ;;  %v113_v39 = vmax.f32 %v97_v30, 0.0  ;;  %v114_v40 = vmax.f32 %v98_v31, 0.0  ;;  %v117_v41 = vmax.f32 %v101_v32, 0.0  ;;  %v118_v42 = vmax.f32 %v102_v33, 0.0 }
   0xc   :  { %v121_v46 = vmax.f32 %v105_v35, 0.0  ;;  %v122_v47 = vmax.f32 %v106_v36, 0.0  ;;  %v141_v50 = vpack.c.bf16 %v110_v38, %v109_v37  ;;  %v411_v57 = vunpack.c.l.bf16 %v465_v48 }
   0xd   :  { %v143_v54 = vpack.c.bf16 %v114_v40, %v113_v39  ;;  %v145_v55 = vpack.c.bf16 %v118_v42, %v117_v41  ;;  %v412_v59 = vunpack.c.h.bf16 %v465_v48  ;;  %v419_v60 = vunpack.c.l.bf16 %v467_v49 }
   0xe   :  { %216 = vmatpush.bf16.msra.mxu0 %v385_v4  ;;  %484 = vmatpush.bf16.msra.mxu1 %v385_v4  ;;  %v147_v58 = vpack.c.bf16 %v122_v47, %v121_v46  ;;  %v420_v61 = vunpack.c.h.bf16 %v467_v49  ;;  %v75_v62 = vmul.f32 %v553_v10, %v395_v51  ;;  %v76_v63 = vmul.f32 %v553_v10, %v396_v52 }
   0xf   :  { %485 = vmatpush.bf16.msra.mxu2 %v385_v4  ;;  %486 = vmatpush.bf16.msra.mxu3 %v385_v4  ;;  %v79_v0 = vmul.f32 %v553_v10, %v403_v53  ;;  %v80_v1 = vmul.f32 %v553_v10, %v404_v56  ;;  %v83_v2 = vmul.f32 %v553_v10, %v411_v57 }
  0x10   :  { %v84_v3 = vmul.f32 %v553_v10, %v412_v59  ;;  %v87_v4 = vmul.f32 %v553_v10, %v419_v60  ;;  %v88_v5 = vmul.f32 %v553_v10, %v420_v61  ;;  %v95_v6 = vadd.f32 %v563_v20, %v75_v62 }
  0x11   :  { %v96_v7 = vadd.f32 %v563_v20, %v76_v63  ;;  %v99_v8 = vadd.f32 %v563_v20, %v79_v0  ;;  %v100_v9 = vadd.f32 %v563_v20, %v80_v1  ;;  %v103_v11 = vadd.f32 %v563_v20, %v83_v2 }
  0x12   :  { %217 = vmatpush.bf16.msra.mxu0 %v384_v15  ;;  %487 = vmatpush.bf16.msra.mxu1 %v384_v15  ;;  %v104_v12 = vadd.f32 %v563_v20, %v84_v3  ;;  %v107_v13 = vadd.f32 %v563_v20, %v87_v4  ;;  %v108_v14 = vadd.f32 %v563_v20, %v88_v5 }
  0x13   :  { %488 = vmatpush.bf16.msra.mxu2 %v384_v15  ;;  %489 = vmatpush.bf16.msra.mxu3 %v384_v15  ;;  %v111_v15 = vmax.f32 %v95_v6, 0.0  ;;  %v112_v16 = vmax.f32 %v96_v7, 0.0  ;;  %v115_v17 = vmax.f32 %v99_v8, 0.0  ;;  %v116_v10 = vmax.f32 %v100_v9, 0.0 }
  0x14   :  { %v119_v18 = vmax.f32 %v103_v11, 0.0  ;;  %v120_v19 = vmax.f32 %v104_v12, 0.0  ;;  %v123_v21 = vmax.f32 %v107_v13, 0.0  ;;  %v124_v22 = vmax.f32 %v108_v14, 0.0 }
  0x15   :  { %v142_v23 = vpack.c.bf16 %v112_v16, %v111_v15  ;;  %v144_v24 = vpack.c.bf16 %v116_v10, %v115_v17 }
  0x16   :  { %218 = vmatpush.bf16.msra.mxu0 %v383_v25  ;;  %490 = vmatpush.bf16.msra.mxu1 %v383_v25  ;;  %v148_v26 = vpack.c.bf16 %v124_v22, %v123_v21 }
  0x17   :  { %491 = vmatpush.bf16.msra.mxu2 %v383_v25  ;;  %492 = vmatpush.bf16.msra.mxu3 %v383_v25  ;;  %v146_v25 = vpack.c.bf16 %v120_v19, %v119_v18 }
  0x1a   :  { %219 = vmatpush.bf16.msra.mxu0 %v382_v34  ;;  %493 = vmatpush.bf16.msra.mxu1 %v382_v34 }
  0x1b   :  { %494 = vmatpush.bf16.msra.mxu2 %v382_v34  ;;  %495 = vmatpush.bf16.msra.mxu3 %v382_v34 }
  0x1e   :  { %220 = vmatpush.bf16.msra.mxu0 %v381_v45  ;;  %496 = vmatpush.bf16.msra.mxu1 %v381_v45 }
  0x1f   :  { %497 = vmatpush.bf16.msra.mxu2 %v381_v45  ;;  %498 = vmatpush.bf16.msra.mxu3 %v381_v45 }
  0x21   :  { %221 = vmatmul.bf16.vlgmr.msra.gmra.mxu0 %v141_v50  ;;  %231 = vmatmul.bf16.vlgmr.msra.gmra.mxu1 %v143_v54 }
  0x22   :  { %241 = vmatmul.bf16.vlgmr.msra.gmra.mxu2 %v145_v55  ;;  %251 = vmatmul.bf16.vlgmr.msra.gmra.mxu3 %v147_v58 }
  0x31   :  { %226 = vmatmul.bf16.gmra.mxu0 %v142_v23  ;;  %236 = vmatmul.bf16.gmra.mxu1 %v144_v24 }
  0x32   :  { %246 = vmatmul.bf16.gmra.mxu2 %v146_v25  ;;  %256 = vmatmul.bf16.gmra.mxu3 %v148_v26 }
  0x9e   :  { %v222_v27 = vpop.f32.mrf.mxu0  ;;  %v232_v28 = vpop.f32.mrf.mxu1 }
  0xa5   :  { %v242_v29 = vpop.f32.mrf.mxu2  ;;  %v252_v20 = vpop.f32.mrf.mxu3 }
  0xa6   :  { %v224_v30 = vpop.f32.mrf.mxu0  ;;  %v234_v31 = vpop.f32.mrf.mxu1 }
  0xa7   :  { %v424_v32 = vpack.c.bf16 %v224_v30, %v222_v27  ;;  %v434_v33 = vpack.c.bf16 %v234_v31, %v232_v28 }
  0xa9   :  { %425 = vst [vmem:[%s644_s4] sm:$0xff] %v424_v32  }
  0xaa   :  { %469 = vst [vmem:[%s644_s4 + $0x10] sm:$0xff] %v434_v33  }
  0xad   :  { %v244_v34 = vpop.f32.mrf.mxu2  ;;  %v254_v35 = vpop.f32.mrf.mxu3 }
  0xae   :  { %v444_v36 = vpack.c.bf16 %v244_v34, %v242_v29  ;;  %v454_v37 = vpack.c.bf16 %v254_v35, %v252_v20  ;;  %v227_v38 = vpop.f32.mrf.mxu0  ;;  %v237_v39 = vpop.f32.mrf.mxu1 }
  0xb0   :  { %471 = vst [vmem:[%s644_s4 + $0x20] sm:$0xff] %v444_v36  }
  0xb1   :  { %473 = vst [vmem:[%s644_s4 + $0x30] sm:$0xff] %v454_v37  }
  0xb5   :  { %v247_v40 = vpop.f32.mrf.mxu2  ;;  %v257_v41 = vpop.f32.mrf.mxu3 }
  0xb6   :  { %v229_v42 = vpop.f32.mrf.mxu0  ;;  %v239_v43 = vpop.f32.mrf.mxu1 }
  0xb7   :  { %v429_v44 = vpack.c.bf16 %v229_v42, %v227_v38  ;;  %v439_v45 = vpack.c.bf16 %v239_v43, %v237_v39 }
  0xb9   :  { %468 = vst [vmem:[%s644_s4 + $0x8] sm:$0xff] %v429_v44  }
  0xba   :  { %470 = vst [vmem:[%s644_s4 + $0x18] sm:$0xff] %v439_v45  }
  0xbd   :  { %v249_v46 = vpop.f32.mrf.mxu2  ;;  %v259_v47 = vpop.f32.mrf.mxu3 }
  0xbe   :  { %v449_v48 = vpack.c.bf16 %v249_v46, %v247_v40  ;;  %v459_v49 = vpack.c.bf16 %v259_v47, %v257_v41 }
  0xc0   :  { %472 = vst [vmem:[%s644_s4 + $0x28] sm:$0xff] %v449_v48  }
  0xc1   :  { %474 = vst [vmem:[%s644_s4 + $0x38] sm:$0xff] %v459_v49  }

// kernel: densenet_forward.51
= control target key start
LH: loop header
LB: loop body
LE: loop exit
PB: predicated region body
PF: predicated region fallthrough
CT: control target
= control target key end

     0   :  { %s107_s0 = inlined_call_operand.vmem [shape: f32[32,128], index: 0, kind: input, shape index: {}]   ;;  %s108_s1 = inlined_call_operand.vmem [shape: f32[1,128], index: 1, kind: input, shape index: {}]   ;;  %s109_s2 = inlined_call_operand.vmem [shape: f32[1,128], index: 2, kind: input, shape index: {}]   ;;  %s110_s3 = inlined_call_operand.vmem [shape: bf16[32,128], index: 3, kind: output, shape index: {}]  }
   0x1   :  { %v14_v0 = vld [vmem:[%s107_s0] sm:$0xff]  ;;  %v15_v1 = vld [vmem:[%s107_s0 + $0x8] sm:$0xff]  ;;  %v16_v4 = vld [vmem:[%s107_s0 + $0x10] sm:$0xff] }
   0x2   :  { %v61_v2 = vld [vmem:[%s108_s1] ss:$0 sm:$0xff]  ;;  %v17_v5 = vld [vmem:[%s107_s0 + $0x18] sm:$0xff] }
   0x3   :  { %v62_v3 = vld [vmem:[%s109_s2] ss:$0 sm:$0xff]  ;;  %v22_v6 = vmul.f32 %v61_v2, %v14_v0  ;;  %v23_v7 = vmul.f32 %v61_v2, %v15_v1  ;;  %v24_v8 = vmul.f32 %v61_v2, %v16_v4  ;;  %v25_v9 = vmul.f32 %v61_v2, %v17_v5 }
   0x5   :  { %v30_v10 = vadd.f32 %v62_v3, %v22_v6  ;;  %v31_v11 = vadd.f32 %v62_v3, %v23_v7  ;;  %v32_v12 = vadd.f32 %v62_v3, %v24_v8  ;;  %v33_v13 = vadd.f32 %v62_v3, %v25_v9 }
   0x7   :  { %v34_v14 = vmax.f32 %v30_v10, 0.0  ;;  %v35_v15 = vmax.f32 %v31_v11, 0.0  ;;  %v36_v16 = vmax.f32 %v32_v12, 0.0  ;;  %v37_v17 = vmax.f32 %v33_v13, 0.0 }
   0x9   :  { %v53_v18 = vpack.c.bf16 %v35_v15, %v34_v14  ;;  %v58_v19 = vpack.c.bf16 %v37_v17, %v36_v16 }
   0xb   :  { %54 = vst [vmem:[%s110_s3] sm:$0xff] %v53_v18  }
   0xc   :  { %60 = vst [vmem:[%s110_s3 + $0x8] sm:$0xff] %v58_v19  }

// kernel: densenet_forward.50
= control target key start
LH: loop header
LB: loop body
LE: loop exit
PB: predicated region body
PF: predicated region fallthrough
CT: control target
= control target key end

     0   :  { %v64_v0 = vmov 0.0   ;;  %s98_s0 = inlined_call_operand.vmem [shape: f32[32,128], index: 0, kind: input, shape index: {}]   ;;  %s99_s1 = inlined_call_operand.vmem [shape: f32[1,128], index: 1, kind: output, shape index: {0}]   ;;  %s100_s2 = inlined_call_operand.vmem [shape: f32[1,128], index: 2, kind: output, shape index: {1}]  }
   0x1   :  { %14 = vst [vmem:[#allocation2] sm:$0x1] %v64_v0  ;;  %v16_v1 = vld [vmem:[%s98_s0] sm:$0xff]  ;;  %v17_v2 = vld [vmem:[%s98_s0 + $0x8] sm:$0xff]  ;;  %v18_v3 = vld [vmem:[%s98_s0 + $0x10] sm:$0xff] }
   0x2   :  { %15 = vst [vmem:[#allocation3] sm:$0x1] %v64_v0  ;;  %v19_v4 = vld [vmem:[%s98_s0 + $0x18] sm:$0xff]  ;;  %v21_v5 = vadd.f32 %v17_v2, %v16_v1  ;;  %v33_v6 = vmul.f32 %v16_v1, %v16_v1  ;;  %v34_v7 = vmul.f32 %v17_v2, %v17_v2  ;;  %v35_v8 = vmul.f32 %v18_v3, %v18_v3 }
   0x3   :  { %v36_v10 = vmul.f32 %v19_v4, %v19_v4 }
   0x4   :  { %v22_v9 = vadd.f32 %v21_v5, %v18_v3  ;;  %v37_v11 = vadd.f32 %v34_v7, %v33_v6 }
   0x6   :  { %v23_v12 = vadd.f32 %v22_v9, %v19_v4  ;;  %v38_v13 = vadd.f32 %v37_v11, %v35_v8 }
   0x8   :  { %v24_v14 = vrot.slane %v23_v12, 4  ;;  %v39_v15 = vadd.f32 %v38_v13, %v36_v10  ;;  %v20_v24 = vld [vmem:[#allocation2] sm:$0x1] }
   0x9   :  { %v32_v27 = vld [vmem:[#allocation3] sm:$0x1] }
   0xa   :  { %v25_v16 = vadd.f32 %v24_v14, %v23_v12  ;;  %v40_v17 = vrot.slane %v39_v15, 4 }
   0xc   :  { %v26_v18 = vrot.slane %v25_v16, 2  ;;  %v41_v19 = vadd.f32 %v40_v17, %v39_v15 }
   0xe   :  { %v27_v20 = vadd.f32 %v26_v18, %v25_v16  ;;  %v42_v21 = vrot.slane %v41_v19, 2 }
  0x10   :  { %v28_v22 = vrot.slane %v27_v20, 1  ;;  %v43_v23 = vadd.f32 %v42_v21, %v41_v19 }
  0x12   :  { %v29_v25 = vadd.f32 %v28_v22, %v27_v20  ;;  %v44_v26 = vrot.slane %v43_v23, 1 }
  0x14   :  { %v30_v28 = vadd.f32 %v29_v25, %v20_v24  ;;  %v45_v29 = vadd.f32 %v44_v26, %v43_v23 }
  0x16   :  { %31 = vst [vmem:[#allocation2] sm:$0x1] %v30_v28  ;;  %v46_v30 = vadd.f32 %v45_v29, %v32_v27 }
  0x18   :  { %47 = vst [vmem:[#allocation3] sm:$0x1] %v46_v30 }
  0x1d   :  { %v51_v31 = vld [vmem:[#allocation2] sm:$0x1] }
  0x1e   :  { %52 = vst [vmem:[%s99_s1] sm:$0x1] %v51_v31 }
  0x1f   :  { %v53_v32 = vld [vmem:[#allocation3] sm:$0x1] }
  0x20   :  { %54 = vst [vmem:[%s100_s2] sm:$0x1] %v53_v32 }

// kernel: densenet_forward.49
= control target key start
LH: loop header
LB: loop body
LE: loop exit
PB: predicated region body
PF: predicated region fallthrough
CT: control target
= control target key end

     0   :  { %s297_s3 = inlined_call_operand.vmem [shape: bf16[128,128], index: 3, kind: input, shape index: {}]   ;;  %s298_s1 = inlined_call_operand.vmem [shape: f32[1,128], index: 1, kind: input, shape index: {}]   ;;  %s299_s2 = inlined_call_operand.vmem [shape: f32[1,128], index: 2, kind: input, shape index: {}]   ;;  %s300_s0 = inlined_call_operand.vmem [shape: bf16[32,128], index: 0, kind: input, shape index: {}]   ;;  %s301_s4 = inlined_call_operand.vmem [shape: f32[32,128], index: 4, kind: output, shape index: {}]  }
   0x1   :  { %v204_v0 = vld [vmem:[%s297_s3 + $0x38] sm:$0xff]  ;;  %v203_v1 = vld [vmem:[%s297_s3 + $0x30] sm:$0xff]  ;;  %v202_v2 = vld [vmem:[%s297_s3 + $0x28] sm:$0xff] }
   0x2   :  { %123 = vmatpush.bf16.msra.mxu0 %v204_v0  ;;  %214 = vmatpush.bf16.msra.mxu1 %v204_v0  ;;  %v201_v3 = vld [vmem:[%s297_s3 + $0x20] sm:$0xff]  ;;  %v213_v5 = vld [vmem:[%s300_s0 + $0x8] sm:$0xff]   ;;  %v200_v11 = vld [vmem:[%s297_s3 + $0x18] sm:$0xff] }
   0x3   :  { %v206_v4 = vld [vmem:[%s300_s0] sm:$0xff]   ;;  %v211_v9 = vunpack.c.l.bf16 %v213_v5  ;;  %v212_v10 = vunpack.c.h.bf16 %v213_v5  ;;  %v199_v17 = vld [vmem:[%s297_s3 + $0x10] sm:$0xff]  ;;  %v198_v22 = vld [vmem:[%s297_s3 + $0x8] sm:$0xff] }
   0x4   :  { %v207_v6 = vunpack.c.l.bf16 %v206_v4  ;;  %v208_v7 = vunpack.c.h.bf16 %v206_v4  ;;  %v222_v8 = vld [vmem:[%s298_s1] ss:$0 sm:$0xff] }
   0x5   :  { %v223_v14 = vld [vmem:[%s299_s2] ss:$0 sm:$0xff]  ;;  %v39_v15 = vmul.f32 %v222_v8, %v211_v9  ;;  %v40_v16 = vmul.f32 %v222_v8, %v212_v10 }
   0x6   :  { %124 = vmatpush.bf16.msra.mxu0 %v203_v1  ;;  %215 = vmatpush.bf16.msra.mxu1 %v203_v1  ;;  %v37_v12 = vmul.f32 %v222_v8, %v207_v6  ;;  %v38_v13 = vmul.f32 %v222_v8, %v208_v7  ;;  %v197_v27 = vld [vmem:[%s297_s3] sm:$0xff] }
   0x7   :  { %v47_v20 = vadd.f32 %v223_v14, %v39_v15  ;;  %v48_v21 = vadd.f32 %v223_v14, %v40_v16 }
   0x8   :  { %v45_v18 = vadd.f32 %v223_v14, %v37_v12  ;;  %v46_v19 = vadd.f32 %v223_v14, %v38_v13 }
   0x9   :  { %v51_v25 = vmax.f32 %v47_v20, 0.0  ;;  %v52_v26 = vmax.f32 %v48_v21, 0.0 }
   0xa   :  { %125 = vmatpush.bf16.msra.mxu0 %v202_v2  ;;  %216 = vmatpush.bf16.msra.mxu1 %v202_v2  ;;  %v49_v23 = vmax.f32 %v45_v18, 0.0  ;;  %v50_v24 = vmax.f32 %v46_v19, 0.0 }
   0xb   :  { %v58_v29 = vpack.c.bf16 %v52_v26, %v51_v25 }
   0xc   :  { %v57_v28 = vpack.c.bf16 %v50_v24, %v49_v23 }
   0xe   :  { %126 = vmatpush.bf16.msra.mxu0 %v201_v3  ;;  %217 = vmatpush.bf16.msra.mxu1 %v201_v3 }
  0x12   :  { %127 = vmatpush.bf16.msra.mxu0 %v200_v11  ;;  %218 = vmatpush.bf16.msra.mxu1 %v200_v11 }
  0x16   :  { %128 = vmatpush.bf16.msra.mxu0 %v199_v17  ;;  %219 = vmatpush.bf16.msra.mxu1 %v199_v17 }
  0x1a   :  { %129 = vmatpush.bf16.msra.mxu0 %v198_v22  ;;  %220 = vmatpush.bf16.msra.mxu1 %v198_v22 }
  0x1e   :  { %130 = vmatpush.bf16.msra.mxu0 %v197_v27  ;;  %221 = vmatpush.bf16.msra.mxu1 %v197_v27 }
  0x21   :  { %131 = vmatmul.bf16.vlgmr.msra.gmra.mxu0 %v57_v28  ;;  %136 = vmatmul.bf16.vlgmr.msra.gmra.mxu1 %v58_v29 }
  0x9e   :  { %v132_v30 = vpop.f32.mrf.mxu0  ;;  %v137_v31 = vpop.f32.mrf.mxu1 }
  0x9f   :  { %157 = vst [vmem:[%s301_s4] sm:$0xff] %v132_v30 }
  0xa0   :  { %159 = vst [vmem:[%s301_s4 + $0x10] sm:$0xff] %v137_v31 }
  0xa6   :  { %v134_v32 = vpop.f32.mrf.mxu0  ;;  %v139_v33 = vpop.f32.mrf.mxu1 }
  0xa7   :  { %158 = vst [vmem:[%s301_s4 + $0x8] sm:$0xff] %v134_v32 }
  0xa8   :  { %160 = vst [vmem:[%s301_s4 + $0x18] sm:$0xff] %v139_v33 }

// kernel: densenet_forward.60
= control target key start
LH: loop header
LB: loop body
LE: loop exit
PB: predicated region body
PF: predicated region fallthrough
CT: control target
= control target key end

     0   :  { %v48_v3 = vmov 16.0   ;;  %vm37_vm1 = vcmask 1041409   ;;  %s74_s0 = inlined_call_operand.vmem [shape: f32[2,16,128], index: 0, kind: input, shape index: {}]   ;;  %s75_s1 = inlined_call_operand.vmem [shape: f32[2,128], index: 1, kind: output, shape index: {}]  }
   0x1   :  { %v8_v0 = vld [vmem:[%s74_s0] sm:$0xff]  ;;  %v9_v1 = vld [vmem:[%s74_s0 + $0x8] sm:$0xff]  ;;  %v10_v2 = vld [vmem:[%s74_s0 + $0x10] sm:$0xff]  ;;  %46 = vrcp.f32 %v48_v3 }
   0x2   :  { %v11_v4 = vld [vmem:[%s74_s0 + $0x18] sm:$0xff]  ;;  %v12_v5 = vadd.f32 %v9_v1, %v8_v0 }
   0x3   :  { %v19_v6 = vadd.f32 %v11_v4, %v10_v2 }
   0x4   :  { %v13_v7 = vrot.slane %v12_v5, 4 }
   0x5   :  { %v20_v8 = vrot.slane %v19_v6, 4 }
   0x6   :  { %v14_v9 = vadd.f32 %v13_v7, %v12_v5 }
   0x7   :  { %v47_v10 = vpop.eup %46  ;;  %v21_v11 = vadd.f32 %v20_v8, %v19_v6 }
   0x8   :  { %v15_v12 = vrot.slane %v14_v9, 2  ;;  %v27_v13 = vmul.f32 16.0, %v47_v10  ;;  %vm31_vm0 = vweird.f32 %v47_v10 }
   0x9   :  { %v22_v14 = vrot.slane %v21_v11, 2 }
   0xa   :  { %v16_v15 = vadd.f32 %v15_v12, %v14_v9  ;;  %v28_v16 = vsub.f32 1.0, %v27_v13 }
   0xb   :  { %v23_v17 = vadd.f32 %v22_v14, %v21_v11 }
   0xc   :  { %v17_v18 = vrot.slane %v16_v15, 1  ;;  %v29_v19 = vmul.f32 %v47_v10, %v28_v16 }
   0xd   :  { %v24_v20 = vrot.slane %v23_v17, 1 }
   0xe   :  { %v18_v21 = vadd.f32 %v17_v18, %v16_v15  ;;  %v30_v22 = vadd.f32 %v47_v10, %v29_v19 }
   0xf   :  { %v25_v23 = vadd.f32 %v24_v20, %v23_v17 }
  0x10   :  { %v32_v24 = vsel %vm31_vm0, %v47_v10, %v30_v22 }
  0x11   :  { %v33_v25 = vmul.f32 %v32_v24, %v18_v21  ;;  %v34_v26 = vmul.f32 %v32_v24, %v25_v23 }
  0x13   :  { %v38_v27 = vsel %vm37_vm1, %v34_v26, %v33_v25 }
  0x14   :  { %40 = vst [vmem:[%s75_s1] sm:$0x3] %v38_v27 }

// kernel: densenet_forward.59
= control target key start
LH: loop header
LB: loop body
LE: loop exit
PB: predicated region body
PF: predicated region fallthrough
CT: control target
= control target key end

     0   :  { %s105_s0 = inlined_call_operand.vmem [shape: bf16[32,128], index: 0, kind: input, shape index: {}]   ;;  %s106_s1 = inlined_call_operand.vmem [shape: f32[1,128], index: 1, kind: input, shape index: {}]   ;;  %s107_s2 = inlined_call_operand.vmem [shape: f32[1,128], index: 2, kind: input, shape index: {}]   ;;  %s108_s3 = inlined_call_operand.vmem [shape: f32[32,128], index: 3, kind: output, shape index: {}]  }
   0x1   :  { %v51_v0 = vld [vmem:[%s105_s0] sm:$0xff]   ;;  %v58_v5 = vld [vmem:[%s105_s0 + $0x8] sm:$0xff]  }
   0x2   :  { %v59_v1 = vld [vmem:[%s106_s1] ss:$0 sm:$0xff]  ;;  %v52_v2 = vunpack.c.l.bf16 %v51_v0  ;;  %v53_v4 = vunpack.c.h.bf16 %v51_v0  ;;  %v56_v6 = vunpack.c.l.bf16 %v58_v5  ;;  %v57_v7 = vunpack.c.h.bf16 %v58_v5 }
   0x3   :  { %v60_v3 = vld [vmem:[%s107_s2] ss:$0 sm:$0xff] }
   0x4   :  { %v26_v8 = vmul.f32 %v59_v1, %v52_v2  ;;  %v27_v9 = vmul.f32 %v59_v1, %v53_v4  ;;  %v28_v10 = vmul.f32 %v59_v1, %v56_v6  ;;  %v29_v11 = vmul.f32 %v59_v1, %v57_v7 }
   0x6   :  { %v34_v12 = vadd.f32 %v60_v3, %v26_v8  ;;  %v35_v13 = vadd.f32 %v60_v3, %v27_v9  ;;  %v36_v14 = vadd.f32 %v60_v3, %v28_v10  ;;  %v37_v15 = vadd.f32 %v60_v3, %v29_v11 }
   0x8   :  { %v38_v16 = vmax.f32 %v34_v12, 0.0  ;;  %v39_v17 = vmax.f32 %v35_v13, 0.0  ;;  %v40_v18 = vmax.f32 %v36_v14, 0.0  ;;  %v41_v19 = vmax.f32 %v37_v15, 0.0 }
   0xa   :  { %42 = vst [vmem:[%s108_s3] sm:$0xff] %v38_v16 }
   0xb   :  { %43 = vst [vmem:[%s108_s3 + $0x8] sm:$0xff] %v39_v17 }
   0xc   :  { %44 = vst [vmem:[%s108_s3 + $0x10] sm:$0xff] %v40_v18 }
   0xd   :  { %45 = vst [vmem:[%s108_s3 + $0x18] sm:$0xff] %v41_v19 }

// kernel: densenet_forward.52
= control target key start
LH: loop header
LB: loop body
LE: loop exit
PB: predicated region body
PF: predicated region fallthrough
CT: control target
= control target key end

     0   :  { %s973_s9 = smov 0   ;;  %s975_s10 = smov 0   ;;  %s1086_s0 = inlined_call_operand.vmem [shape: bf16[32,1152], index: 0, kind: input, shape index: {}]   ;;  %s1087_s1 = inlined_call_operand.vmem [shape: bf16[1152,128], index: 1, kind: input, shape index: {}]   ;;  %s1088_s2 = inlined_call_operand.vmem [shape: bf16[32,128], index: 2, kind: output, shape index: {}]  }
   0x1   :  { %s977_s11 = smov 0   ;;  %s979_s12 = smov 0  }
   0x2   :  { %s981_s13 = smov 0  }
   0x3 LB: > { %s24_s14 = sadd.s32 1, %s951_s12  ;;  %p47_p1 = scmp.ne.s32.totalorder %s943_s10, %s939_s9  ;;  %s955_s13 = sphi %s981_s13, %s12_s13   ;;  %s951_s12 = sphi %s979_s12, %s1092_s12   ;;  %s947_s11 = sphi %s977_s11, %s1091_s11   ;;  %s943_s10 = sphi %s975_s10, %s1090_s10   ;;  %s939_s9 = sphi %s973_s9, %s1089_s9  }
   0x4   : > { %p25_p0 = scmp.ge.s32.totalorder %s24_s14, 3  ;;  %p48_p2 = scmp.eq.s32.totalorder %s955_s13, 0 }
   0x5   : > { %s40_s16 = sadd.s32 1, %s943_s10  ;;  %p686_p5 = scmp.ge.s32.totalorder %s955_s13, 3 }
   0x6   : > { %s1094_s14 = smov (%p25_p0, %s24_s14), 0  ;;  %p49_p3 = por %p48_p2, %p47_p1 }
   0x7   : > { %s36_s15 = ssub.s32 %s951_s12, %s1094_s14  ;;  %129 = sbr.rel (%p686_p5) target bundleno = 25 (0x19), region = 16 }
   0x8   : > { %p38_p4 = scmp.eq.s32.totalorder %s36_s15, 0 }
   0xa   : > { %s1008_s17 = scalar_select %p38_p4, %s943_s10, %s40_s16  }
   0xc   : > { %132 = sbr.rel (!%p49_p3) target bundleno = 25 (0x19), region = 20  ;;  %s134_s18 = sand.u32 (%p49_p3), 1, %s943_s10  }
   0xd   : > { %s824_s19 = smul.u32 (%p49_p3), 12, %s951_s12 }
   0xe   : > { %s874_s20 = smul.u32 (%p49_p3), 48, %s134_s18 }
   0xf   : > { %s142_s23 = scalar_lea.vmem (%p49_p3), %s1086_s0, %s824_s19 }
  0x10   : > { %v157_v0 = vld [vmem:[%s142_s23] sm:$0xff] (%p49_p3)  ;;  %v161_v2 = vld [vmem:[%s142_s23 + $0x48] sm:$0xff] (%p49_p3)  ;;  %s136_s24 = scalar_lea.vmem (%p49_p3), [#allocation3], %s874_s20  ;;  %v692_v6 = vld [vmem:[%s142_s23 + $0x50] sm:$0xf] (%p49_p3) }
  0x11   : > { %v159_v1 = vld [vmem:[%s142_s23 + $0x24] sm:$0xff]  ;;  %158 = vst [vmem:[%s136_s24] sm:$0xff] %v157_v0  ;;  %v163_v3 = vld [vmem:[%s142_s23 + $0x6c] sm:$0xff]  ;;  %v694_v7 = vld [vmem:[%s142_s23 + $0x74] sm:$0xf] }
  0x12   : > { %160 = vst [vmem:[%s136_s24 + $0xc] sm:$0xff] %v159_v1  ;;  %v688_v4 = vld [vmem:[%s142_s23 + $0x8] sm:$0xf]  ;;  %v690_v5 = vld [vmem:[%s142_s23 + $0x2c] sm:$0xf] }
  0x13   : > { %162 = vst [vmem:[%s136_s24 + $0x18] sm:$0xff] %v161_v2 }
  0x14   : > { %164 = vst [vmem:[%s136_s24 + $0x24] sm:$0xff] %v163_v3 }
  0x15   : > { %689 = vst [vmem:[%s136_s24 + $0x8] sm:$0xf] %v688_v4 }
  0x16   : > { %691 = vst [vmem:[%s136_s24 + $0x14] sm:$0xf] %v690_v5 }
  0x17   : > { %693 = vst [vmem:[%s136_s24 + $0x20] sm:$0xf] %v692_v6 }
  0x18   : > { %695 = vst [vmem:[%s136_s24 + $0x2c] sm:$0xf] %v694_v7 }
  0x19 PF: > { %p696_p6 = scmp.ge.s32.totalorder %s955_s13, 1  ;;  %p197_p7 = scmp.lt.s32.totalorder %s955_s13, 4 }
  0x1b   : > { %p198_p8 = pnand %p696_p6, %p197_p7 }
  0x1c   : > { %s204_s25 = sand.u32 (!%p198_p8), 1, %s939_s9   ;;  %s238_s26 = smul.u32 (!%p198_p8), 48, %s947_s11 }
  0x1d   : > { %201 = sbr.rel (%p198_p8) target bundleno = 249 (0xf9), region = 50  ;;  %p698_p10 = scmp.ne.s32.totalorder (!%p198_p8), %s947_s11, 0 }
  0x1e   : > { %s875_s27 = smul.u32 (!%p198_p8), 48, %s204_s25  ;;  %p239_p9 = scmp.lt.s32.totalorder (!%p198_p8), %s238_s26, 143 }
  0x20   : > { %s1025_s4 = scalar_lea.vmem (!%p198_p8), [#allocation3], %s875_s27 }
  0x22   : > { %s1096_s26 = smov (!%p239_p9, %s238_s26), 143  ;;  %259 = sbr.rel (%p698_p10) target bundleno = 44 (0x2c), region = 58 }
  0x23   : > { %s697_s28 = sshll.u32 %s1096_s26, 2 }
  0x24   : > { %s1023_s3 = scalar_lea.vmem %s1087_s1, %s697_s28 }
  0x27   : > { %v957_v8 = vmov 0.0  }
  0x28   : > { %260 = vst [vmem:[#allocation2 + $0x10] sm:$0xff] %v957_v8 }
  0x29   : > { %261 = vst [vmem:[#allocation2] sm:$0xff] %v957_v8 }
  0x2a   : > { %262 = vst [vmem:[#allocation2 + $0x18] sm:$0xff] %v957_v8 }
  0x2b   : > { %263 = vst [vmem:[#allocation2 + $0x8] sm:$0xff] %v957_v8 }
  0x2c PF: > { %v838_v9 = vld [vmem:[%s1023_s3 + $0x38] sm:$0xff]  ;;  %v837_v12 = vld [vmem:[%s1023_s3 + $0x30] sm:$0xff]  ;;  %v836_v15 = vld [vmem:[%s1023_s3 + $0x28] sm:$0xff]  ;;  %p819_p11 = scmp.ne.s32.totalorder %s947_s11, 2 }
  0x2d   : > { %v846_v10 = vld [vmem:[%s1023_s3 + $0x78] sm:$0xff]  ;;  %500 = vmatpush.bf16.msra.mxu0 %v838_v9  ;;  %v845_v13 = vld [vmem:[%s1023_s3 + $0x70] sm:$0xff]  ;;  %866 = vmatpush.bf16.msra.mxu3 %v838_v9  ;;  %v844_v16 = vld [vmem:[%s1023_s3 + $0x68] sm:$0xff] }
  0x2e   : > { %v854_v11 = vld [vmem:[%s1023_s3 + $0xb8] sm:$0xff]  ;;  %519 = vmatpush.bf16.msra.mxu1 %v846_v10  ;;  %v853_v14 = vld [vmem:[%s1023_s3 + $0xb0] sm:$0xff]  ;;  %v852_v17 = vld [vmem:[%s1023_s3 + $0xa8] sm:$0xff] }
  0x2f   : > { %538 = vmatpush.bf16.msra.mxu2 %v854_v11  ;;  %v835_v18 = vld [vmem:[%s1023_s3 + $0x20] sm:$0xff]  ;;  %v834_v21 = vld [vmem:[%s1023_s3 + $0x18] sm:$0xff]  ;;  %v833_v24 = vld [vmem:[%s1023_s3 + $0x10] sm:$0xff] }
  0x30   : > { %v843_v19 = vld [vmem:[%s1023_s3 + $0x60] sm:$0xff]  ;;  %v842_v22 = vld [vmem:[%s1023_s3 + $0x58] sm:$0xff]  ;;  %v841_v25 = vld [vmem:[%s1023_s3 + $0x50] sm:$0xff] }
  0x31   : > { %501 = vmatpush.bf16.msra.mxu0 %v837_v12  ;;  %867 = vmatpush.bf16.msra.mxu3 %v837_v12  ;;  %v851_v20 = vld [vmem:[%s1023_s3 + $0xa0] sm:$0xff]  ;;  %v850_v23 = vld [vmem:[%s1023_s3 + $0x98] sm:$0xff]  ;;  %v849_v26 = vld [vmem:[%s1023_s3 + $0x90] sm:$0xff] }
  0x32   : > { %520 = vmatpush.bf16.msra.mxu1 %v845_v13  ;;  %v832_v27 = vld [vmem:[%s1023_s3 + $0x8] sm:$0xff]  ;;  %v831_v30 = vld [vmem:[%s1023_s3] sm:$0xff]  ;;  %v264_v54 = vld [vmem:[#allocation2 + $0x10] sm:$0xff] }
  0x33   : > { %539 = vmatpush.bf16.msra.mxu2 %v853_v14  ;;  %v840_v28 = vld [vmem:[%s1023_s3 + $0x48] sm:$0xff]  ;;  %v839_v31 = vld [vmem:[%s1023_s3 + $0x40] sm:$0xff]  ;;  %v266_v4 = vld [vmem:[#allocation2 + $0x18] sm:$0xff] }
  0x34   : > { %v848_v29 = vld [vmem:[%s1023_s3 + $0x88] sm:$0xff]  ;;  %v847_v32 = vld [vmem:[%s1023_s3 + $0x80] sm:$0xff] }
  0x35   : > { %502 = vmatpush.bf16.msra.mxu0 %v836_v15  ;;  %868 = vmatpush.bf16.msra.mxu3 %v836_v15  ;;  %v701_v33 = vld [vmem:[%s1025_s4] sm:$0xf]  ;;  %v826_v34 = vld [vmem:[%s1025_s4 + $0x8] sm:$0xf0]  ;;  %v825_v35 = vld [vmem:[%s1025_s4 + $0x4] sm:$0xf] }
  0x36   : > { %521 = vmatpush.bf16.msra.mxu1 %v844_v16  ;;  %v703_v36 = vld [vmem:[%s1025_s4 + $0xc] sm:$0xf0]  ;;  %v709_v37 = vld [vmem:[%s1025_s4 + $0x8] sm:$0xf]  ;;  %v827_v38 = vld [vmem:[%s1025_s4 + $0x10] sm:$0xf0]  ;;  %v702_v41 = vor.u32 %v826_v34, %v701_v33 }
  0x37   : > { %540 = vmatpush.bf16.msra.mxu2 %v852_v17  ;;  %v713_v39 = vld [vmem:[%s1025_s4 + $0x18] sm:$0xf]  ;;  %v829_v40 = vld [vmem:[%s1025_s4 + $0x20] sm:$0xf0]  ;;  %v706_v42 = vor.u32 %v825_v35, %v703_v36  ;;  %v710_v43 = vor.u32 %v827_v38, %v709_v37  ;;  %v828_v45 = vld [vmem:[%s1025_s4 + $0x1c] sm:$0xf] }
  0x38   : > { %v714_v44 = vor.u32 %v829_v40, %v713_v39  ;;  %v715_v46 = vld [vmem:[%s1025_s4 + $0x24] sm:$0xf0]  ;;  %v721_v47 = vld [vmem:[%s1025_s4 + $0x20] sm:$0xf]  ;;  %v830_v48 = vld [vmem:[%s1025_s4 + $0x28] sm:$0xf0] }
  0x39   : > { %503 = vmatpush.bf16.msra.mxu0 %v835_v18  ;;  %869 = vmatpush.bf16.msra.mxu3 %v835_v18  ;;  %v718_v49 = vor.u32 %v828_v45, %v715_v46  ;;  %v722_v50 = vor.u32 %v830_v48, %v721_v47  ;;  %v265_v61 = vld [vmem:[#allocation2] sm:$0xff]  ;;  %v267_v11 = vld [vmem:[#allocation2 + $0x8] sm:$0xff] }
  0x3a   : > { %522 = vmatpush.bf16.msra.mxu1 %v843_v19 }
  0x3b   : > { %541 = vmatpush.bf16.msra.mxu2 %v851_v20 }
  0x3d   : > { %504 = vmatpush.bf16.msra.mxu0 %v834_v21  ;;  %870 = vmatpush.bf16.msra.mxu3 %v834_v21 }
  0x3e   : > { %523 = vmatpush.bf16.msra.mxu1 %v842_v22 }
  0x3f   : > { %542 = vmatpush.bf16.msra.mxu2 %v850_v23 }
  0x41   : > { %505 = vmatpush.bf16.msra.mxu0 %v833_v24  ;;  %871 = vmatpush.bf16.msra.mxu3 %v833_v24 }
  0x42   : > { %524 = vmatpush.bf16.msra.mxu1 %v841_v25 }
  0x43   : > { %543 = vmatpush.bf16.msra.mxu2 %v849_v26 }
  0x45   : > { %506 = vmatpush.bf16.msra.mxu0 %v832_v27  ;;  %872 = vmatpush.bf16.msra.mxu3 %v832_v27 }
  0x46   : > { %525 = vmatpush.bf16.msra.mxu1 %v840_v28 }
  0x47   : > { %544 = vmatpush.bf16.msra.mxu2 %v848_v29 }
  0x49   : > { %507 = vmatpush.bf16.msra.mxu0 %v831_v30  ;;  %873 = vmatpush.bf16.msra.mxu3 %v831_v30 }
  0x4a   : > { %526 = vmatpush.bf16.msra.mxu1 %v839_v31 }
  0x4b   : > { %545 = vmatpush.bf16.msra.mxu2 %v847_v32 }
  0x4c   : > { %508 = vmatmul.bf16.vlgmr.msra.gmra.mxu0 %v702_v41  ;;  %513 = vmatmul.bf16.vlgmr.msra.gmra.mxu3 %v714_v44 }
  0x4d   : > { %527 = vmatmul.bf16.vlgmr.msra.gmra.mxu1 %v706_v42 }
  0x4e   : > { %546 = vmatmul.bf16.vlgmr.msra.gmra.mxu2 %v710_v43 }
  0x5d   : > { %532 = vmatmul.bf16.gmra.mxu1 %v718_v49 }
  0x5e   : > { %551 = vmatmul.bf16.gmra.mxu2 %v722_v50 }
  0xc9   : > { %v509_v52 = vpop.f32.mrf.mxu0 }
  0xca   : > { %v528_v51 = vpop.f32.mrf.mxu1 }
  0xcb   : > { %v529_v53 = vadd.f32 %v528_v51, %v509_v52 }
  0xcf   : > { %v514_v2 = vpop.f32.mrf.mxu3 }
  0xd1   : > { %v547_v55 = vpop.f32.mrf.mxu2  ;;  %v511_v59 = vpop.f32.mrf.mxu0 }
  0xd2   : > { %v548_v56 = vadd.f32 %v547_v55, %v529_v53  ;;  %v530_v57 = vpop.f32.mrf.mxu1 }
  0xd3   : > { %v531_v60 = vadd.f32 %v530_v57, %v511_v59 }
  0xd4   : > { %v557_v58 = vadd.f32 %v548_v56, %v264_v54 }
  0xd6   : > { %561 = vst [vmem:[#allocation2 + $0x10] sm:$0xff] %v557_v58 }
  0xd7   : > { %v516_v9 = vpop.f32.mrf.mxu3 }
  0xd9   : > { %v549_v62 = vpop.f32.mrf.mxu2 }
  0xda   : > { %v550_v63 = vadd.f32 %v549_v62, %v531_v60  ;;  %v533_v0 = vpop.f32.mrf.mxu1 }
  0xdb   : > { %v534_v3 = vadd.f32 %v533_v0, %v514_v2 }
  0xdc   : > { %v558_v1 = vadd.f32 %v550_v63, %v265_v61 }
  0xde   : > { %562 = vst [vmem:[#allocation2] sm:$0xff] %v558_v1 }
  0xe1   : > { %v552_v5 = vpop.f32.mrf.mxu2 }
  0xe2   : > { %v553_v6 = vadd.f32 %v552_v5, %v534_v3  ;;  %v535_v8 = vpop.f32.mrf.mxu1 }
  0xe3   : > { %v536_v10 = vadd.f32 %v535_v8, %v516_v9 }
  0xe4   : > { %v559_v7 = vadd.f32 %v553_v6, %v266_v4 }
  0xe6   : > { %563 = vst [vmem:[#allocation2 + $0x18] sm:$0xff] %v559_v7 }
  0xe9   : > { %v554_v12 = vpop.f32.mrf.mxu2 }
  0xea   : > { %v555_v13 = vadd.f32 %v554_v12, %v536_v10  ;;  %568 = sbr.rel (%p819_p11) target bundleno = 249 (0xf9), region = 62 }
  0xec   : > { %v560_v14 = vadd.f32 %v555_v13, %v267_v11 }
  0xee   : > { %564 = vst [vmem:[#allocation2 + $0x8] sm:$0xff] %v560_v14 }
  0xef   : > { %v569_v15 = vld [vmem:[#allocation2 + $0x10] sm:$0xff]  ;;  %v570_v16 = vld [vmem:[#allocation2] sm:$0xff]  ;;  %v571_v17 = vld [vmem:[#allocation2 + $0x18] sm:$0xff] }
  0xf0   : > { %v858_v18 = vpack.c.bf16 %v570_v16, %v569_v15 }
  0xf2   : > { %859 = vst [vmem:[%s1088_s2] sm:$0xff] %v858_v18  }
  0xf5   : > { %v572_v19 = vld [vmem:[#allocation2 + $0x8] sm:$0xff] }
  0xf6   : > { %v863_v20 = vpack.c.bf16 %v572_v19, %v571_v17 }
  0xf8   : > { %865 = vst [vmem:[%s1088_s2 + $0x8] sm:$0xff] %v863_v20  }
  0xf9 PF: > { %s12_s13 = sadd.s32 1, %s955_s13   ;;  %s1089_s9 = smov %s943_s10 }
  0xfa   : > { %p9_p12 = scmp.ge.s32.totalorder %s12_s13, 5   ;;  %s1090_s10 = smov %s1008_s17 }
  0xfb   : > { %s1091_s11 = smov %s951_s12  ;;  %s1092_s12 = smov %s1094_s14 }
  0xfc   :  { %11 = sbr.rel (!%p9_p12) target bundleno = 3 (0x3), region = 106 }

// kernel: densenet_forward.61
= control target key start
LH: loop header
LB: loop body
LE: loop exit
PB: predicated region body
PF: predicated region fallthrough
CT: control target
= control target key end

     0   :  { %s191_s1 = inlined_call_operand.vmem [shape: bf16[128,128], index: 1, kind: input, shape index: {}]   ;;  %s192_s0 = inlined_call_operand.vmem [shape: bf16[8,128], index: 0, kind: input, shape index: {}]   ;;  %s193_s2 = inlined_call_operand.vmem [shape: f32[8,128], index: 2, kind: output, shape index: {}]  }
   0x1   :  { %v145_v0 = vld [vmem:[%s191_s1 + $0x38] sm:$0xff]  ;;  %v144_v1 = vld [vmem:[%s191_s1 + $0x30] sm:$0xff]  ;;  %v143_v2 = vld [vmem:[%s191_s1 + $0x28] sm:$0xff] }
   0x2   :  { %82 = vmatpush.bf16.msra.mxu0 %v145_v0  ;;  %v142_v3 = vld [vmem:[%s191_s1 + $0x20] sm:$0xff]  ;;  %v141_v4 = vld [vmem:[%s191_s1 + $0x18] sm:$0xff]  ;;  %v140_v5 = vld [vmem:[%s191_s1 + $0x10] sm:$0xff] }
   0x3   :  { %v139_v6 = vld [vmem:[%s191_s1 + $0x8] sm:$0xff]  ;;  %v138_v7 = vld [vmem:[%s191_s1] sm:$0xff] }
   0x4   :  { %v17_v8 = vld [vmem:[%s192_s0] sm:$0xf] }
   0x6   :  { %83 = vmatpush.bf16.msra.mxu0 %v144_v1 }
   0xa   :  { %84 = vmatpush.bf16.msra.mxu0 %v143_v2 }
   0xe   :  { %85 = vmatpush.bf16.msra.mxu0 %v142_v3 }
  0x12   :  { %86 = vmatpush.bf16.msra.mxu0 %v141_v4 }
  0x16   :  { %87 = vmatpush.bf16.msra.mxu0 %v140_v5 }
  0x1a   :  { %88 = vmatpush.bf16.msra.mxu0 %v139_v6 }
  0x1e   :  { %89 = vmatpush.bf16.msra.mxu0 %v138_v7 }
  0x21   :  { %90 = vmatmul.bf16.vlgmr.msra.gmra.mxu0 %v17_v8 }
  0x9e   :  { %v91_v9 = vpop.f32.mrf.mxu0 }
  0x9f   :  { %101 = vst [vmem:[%s193_s2] sm:$0xff] %v91_v9 }
  0xa6   :  { %v93_v10 = vpop.f32.mrf.mxu0 }

</bundles_post_ra>
